<compile_context>
chip_gen: v7x
topology: tpu7x:2x2x1
jax: 0.10.0
libtpu: 0.0.40
codegen_flags: <defaults>
</compile_context>

<pallas_src>
import jax
import jax.numpy as jnp
from jax import lax
from jax.experimental import pallas as pl
from jax.experimental.pallas import tpu as pltpu

LANE = 128


def _round_up(x, m):
    return ((x + m - 1) // m) * m


def _pad_axis(a, axis, new_size):
    pads = [(0, 0)] * a.ndim
    pads[axis] = (0, new_size - a.shape[axis])
    return jnp.pad(a, pads)


# ----------------------------- fused block kernel -------------------------- #

def _make_block_kernel(*, Nb, Ho, Wo, Cx, Cin_p, Cout_p, stride, has_proj):
    """Fused WideResNet BasicBlock; Nb images per grid step.

    Input ref shape (Nb, Ho, Wo, Cx).  stride==1: Cx == Cin_p.  stride==2: the
    wrapper space-to-depths the image (group g = 2a+b holds x[a::2, b::2, :])
    so Cx == 4*Cin_p and conv1 is a 2x2/stride-1 conv with a repacked weight.
    """
    if stride == 2:
        taps1 = [(dh, dw) for dh in range(2) for dw in range(2)]
        Hp1, Wp1 = Ho + 1, Wo + 1
    else:
        taps1 = [(kh, kw) for kh in range(3) for kw in range(3)]
        Hp1, Wp1 = Ho + 2, Wo + 2
    taps2 = [(kh, kw) for kh in range(3) for kw in range(3)]
    Hp2, Wp2 = Ho + 2, Wo + 2
    M = Nb * Ho * Wo

    def _clear_border(pad, Hp, Wp, C):
        # Only the 1-wide border must be zero; the interior is fully rewritten
        # every step before it is read (correct under megacore sharding).
        zrow = jnp.zeros((Nb, 1, Wp, C), jnp.float32)
        zcol = jnp.zeros((Nb, Hp, 1, C), jnp.float32)
        pad[:, 0:1, :, :] = zrow
        pad[:, Hp - 1:Hp, :, :] = zrow
        pad[:, :, 0:1, :] = zcol
        pad[:, :, Wp - 1:Wp, :] = zcol

    def kernel(*refs):
        if has_proj:
            (x_ref, w1_ref, w2_ref, wsc_ref,
             s1_ref, b1_ref, s2_ref, b2_ref,
             o_ref, pad1, pad2) = refs
        else:
            (x_ref, w1_ref, w2_ref,
             s1_ref, b1_ref, s2_ref, b2_ref,
             o_ref, pad1, pad2) = refs

        x = x_ref[...]                                       # (Nb,Ho,Wo,Cx) f32
        s1 = s1_ref[...].reshape(1, 1, 1, Cx)
        b1 = b1_ref[...].reshape(1, 1, 1, Cx)
        act1 = jnp.maximum(x * s1 + b1, 0.0)                 # BN1 + ReLU (VPU, f32)

        # ---- conv1: zero-bordered buffer + tap-accumulating MXU matmuls ----
        _clear_border(pad1, Hp1, Wp1, Cx)
        if stride == 2:
            # parity plane (a, b) = (g // 2, g % 2) lands at offset (a, b);
            # channel offsets g*Cin_p are lane (128) aligned.
            for g in range(4):
                a, b = divmod(g, 2)
                pad1[:, a:a + Ho, b:b + Wo, g * Cin_p:(g + 1) * Cin_p] = (
                    act1[:, :, :, g * Cin_p:(g + 1) * Cin_p])
        else:
            pad1[:, 1:Ho + 1, 1:Wo + 1, :] = act1

        h = None                                             # (M, Cout_p) f32
        for t, (dh, dw) in enumerate(taps1):
            lhs = pad1[:, dh:dh + Ho, dw:dw + Wo, :].reshape(M, Cx)
            d = jnp.dot(lhs.astype(jnp.bfloat16), w1_ref[t],
                        preferred_element_type=jnp.float32)
            h = d if h is None else h + d

        # ---- shortcut (fused; no extra kernel / zeros-residual DMA) ----
        if has_proj:
            # convShortcut(relu(bn1(x))).  For stride 2 the stride is already
            # folded into the parity packing: group (0, 0) == even rows/cols.
            sc_in = act1[:, :, :, 0:Cin_p] if stride == 2 else act1
            sc = jnp.dot(sc_in.reshape(M, Cin_p).astype(jnp.bfloat16),
                         wsc_ref[...], preferred_element_type=jnp.float32)
        else:
            sc = x.reshape(M, Cin_p)          # identity (Cin==Cout, stride==1)

        # ---- BN2 + ReLU + conv2 (3x3, stride 1) + residual add ----
        act2 = jnp.maximum(h * s2_ref[...] + b2_ref[...], 0.0)
        # TODO(synk): dropout (dropRate > 0, training) would be applied to act2 here.
        _clear_border(pad2, Hp2, Wp2, Cout_p)
        pad2[:, 1:Ho + 1, 1:Wo + 1, :] = act2.reshape(Nb, Ho, Wo, Cout_p)

        out = sc
        for t, (kh, kw) in enumerate(taps2):
            lhs = pad2[:, kh:kh + Ho, kw:kw + Wo, :].reshape(M, Cout_p)
            out = out + jnp.dot(lhs.astype(jnp.bfloat16), w2_ref[t],
                                preferred_element_type=jnp.float32)

        o_ref[...] = out.reshape(Nb, Ho, Wo, Cout_p).astype(o_ref.dtype)

    return kernel


# --------------------------- parameter preparation -------------------------- #

def _pack_w1_stride2(w, Cin_p, Cout_p):
    """Repack a (3,3,Cin,Cout) stride-2 conv weight for the space-to-depth
    formulation: a 2x2 stride-1 conv over 4*Cin_p packed channels.
    Returns (4, 4*Cin_p, Cout_p), tap-major, contraction ordered (a, b, cin)."""
    _, _, Cin, Cout = w.shape
    wp = jnp.zeros((2, 2, 2, 2, Cin_p, Cout_p), w.dtype)
    for dh in range(2):
        for dw in range(2):
            for a in range(2):
                for b in range(2):
                    kh, kw = 2 * dh + (1 - a), 2 * dw + (1 - b)
                    if kh < 3 and kw < 3:
                        wp = wp.at[dh, dw, a, b, :Cin, :Cout].set(w[kh, kw])
    return wp.reshape(4, 4 * Cin_p, Cout_p)


def prepare_block_params(p, stride):
    """Pad channels to lane (128) multiples, reorder conv weights tap-major,
    cast to bf16 and fold the stride-2 repack into w1 -- once, outside the
    per-call wrapper."""
    _, _, Cin, Cout = p["w1"].shape
    Cin_p, Cout_p = _round_up(Cin, LANE), _round_up(Cout, LANE)

    w2 = _pad_axis(_pad_axis(p["w2"], 2, Cout_p), 3, Cout_p)
    w2 = w2.reshape(9, Cout_p, Cout_p).astype(jnp.bfloat16)

    if stride == 2:
        w1 = _pack_w1_stride2(p["w1"], Cin_p, Cout_p).astype(jnp.bfloat16)
        s1 = jnp.tile(_pad_axis(p["s1"], 1, Cin_p), (1, 4))
        b1 = jnp.tile(_pad_axis(p["b1"], 1, Cin_p), (1, 4))
        Cx = 4 * Cin_p
    else:
        w1 = _pad_axis(_pad_axis(p["w1"], 2, Cin_p), 3, Cout_p)
        w1 = w1.reshape(9, Cin_p, Cout_p).astype(jnp.bfloat16)
        s1 = _pad_axis(p["s1"], 1, Cin_p)
        b1 = _pad_axis(p["b1"], 1, Cin_p)
        Cx = Cin_p

    s2 = _pad_axis(p["s2"], 1, Cout_p)
    b2 = _pad_axis(p["b2"], 1, Cout_p)

    if p["w_sc"] is not None:
        wsc = _pad_axis(_pad_axis(p["w_sc"].reshape(Cin, Cout), 0, Cin_p), 1, Cout_p)
        wsc = wsc.astype(jnp.bfloat16)
    else:
        wsc = None

    return dict(w1=w1, w2=w2, wsc=wsc, s1=s1, b1=b1, s2=s2, b2=b2,
                stride=stride, Cin=Cin, Cout=Cout,
                Cin_p=Cin_p, Cout_p=Cout_p, Cx=Cx)


def prepare_network_block_params(layer_params, stride):
    """NetworkBlock._make_layer: layer 0 gets `stride`, the rest stride 1."""
    return [prepare_block_params(p, stride if i == 0 else 1)
            for i, p in enumerate(layer_params)]


# ------------------------------ wrappers ----------------------------------- #

def basic_block_forward(x, prep):
    """One fused BasicBlock.  x: (N, H, W, Cin_p) NHWC f32 (channels already
    lane-padded); returns (N, Ho, Wo, Cout_p) f32 (lane-padded channels)."""
    N, H, W, Cxin = x.shape
    stride = prep["stride"]
    Cin_p, Cout_p, Cx = prep["Cin_p"], prep["Cout_p"], prep["Cx"]
    has_proj = prep["wsc"] is not None
    assert Cxin == Cin_p, (Cxin, Cin_p)
    assert stride in (1, 2), "WideResNet only uses stride 1 / 2"
    if not has_proj:
        assert Cin_p == Cout_p and stride == 1

    if stride == 2:
        assert H % 2 == 0 and W % 2 == 0
        Ho, Wo = H // 2, W // 2
        # space-to-depth: channel group g = 2a + b holds x[:, a::2, b::2, :]
        # TODO(synk): fold this repack into the kernel (strided window reads)
        # to save one XLA pass over the activation.
        x_in = jnp.transpose(x.reshape(N, Ho, 2, Wo, 2, Cin_p),
                             (0, 1, 3, 2, 4, 5)).reshape(N, Ho, Wo, 4 * Cin_p)
        Hp1, Wp1 = Ho + 1, Wo + 1
    else:
        Ho, Wo = H, W
        x_in = x
        Hp1, Wp1 = H + 2, W + 2

    # --- pick Nb (images per grid step) so Nb*Ho*Wo rows feed the MXU while
    # the resident footprint stays inside a VMEM budget ---
    w_bytes = sum(a.size for a in (prep["w1"], prep["w2"]) +
                  ((prep["wsc"],) if has_proj else ()))
    w_bytes *= 2 * 2                                 # bf16 bytes, double-buffered
    per_img = (2 * Ho * Wo * Cx * 4                  # x block (double-buffered f32)
               + 2 * Ho * Wo * Cout_p * 4            # out block
               + Hp1 * Wp1 * Cx * 4                  # pad1 scratch (f32)
               + (Ho + 2) * (Wo + 2) * Cout_p * 4    # pad2 scratch (f32)
               + Ho * Wo * (Cx * 4 + 4 * Cout_p * 4))    # live act/acc values
    budget = 40 << 20
    Nb = 1
    for cand in range(1, N + 1):
        if N % cand:
            continue
        if w_bytes + cand * per_img > budget:
            break
        Nb = cand
        if cand * Ho * Wo >= 1024:
            break
    # Per-shape VMEM limit (the default scoped limit is too small for wide
    # groups; capped below v7x's 64 MiB physical VMEM).
    vmem_limit = int(min(56 << 20, max(32 << 20, (3 * (w_bytes + Nb * per_img)) // 2)))

    kernel = _make_block_kernel(Nb=Nb, Ho=Ho, Wo=Wo, Cx=Cx, Cin_p=Cin_p,
                                Cout_p=Cout_p, stride=stride, has_proj=has_proj)

    in_arrays = [x_in, prep["w1"], prep["w2"]]
    in_specs = [
        pl.BlockSpec((Nb, Ho, Wo, Cx), lambda n: (n, 0, 0, 0)),
        pl.BlockSpec(prep["w1"].shape, lambda n: (0, 0, 0)),
        pl.BlockSpec(prep["w2"].shape, lambda n: (0, 0, 0)),
    ]
    if has_proj:
        in_arrays.append(prep["wsc"])
        in_specs.append(pl.BlockSpec(prep["wsc"].shape, lambda n: (0, 0)))
    in_arrays += [prep["s1"], prep["b1"], prep["s2"], prep["b2"]]
    in_specs += [
        pl.BlockSpec((1, Cx), lambda n: (0, 0)),
        pl.BlockSpec((1, Cx), lambda n: (0, 0)),
        pl.BlockSpec((1, Cout_p), lambda n: (0, 0)),
        pl.BlockSpec((1, Cout_p), lambda n: (0, 0)),
    ]

    return pl.pallas_call(
        kernel,
        out_shape=jax.ShapeDtypeStruct((N, Ho, Wo, Cout_p), x.dtype),
        grid=(N // Nb,),
        in_specs=in_specs,
        out_specs=pl.BlockSpec((Nb, Ho, Wo, Cout_p), lambda n: (n, 0, 0, 0)),
        scratch_shapes=[
            pltpu.VMEM((Nb, Hp1, Wp1, Cx), jnp.float32),            # padded act1
            pltpu.VMEM((Nb, Ho + 2, Wo + 2, Cout_p), jnp.float32),  # padded act2
        ],
        compiler_params=pltpu.CompilerParams(
            dimension_semantics=("parallel",),
            vmem_limit_bytes=vmem_limit,
        ),
    )(*in_arrays)


def network_block_forward(x, prepared):
    """NetworkBlock forward.  x: (N, H, W, in_planes) NHWC f32."""
    x = _pad_axis(x, 3, prepared[0]["Cin_p"])     # lane-pad channels once
    for prep in prepared:
        x = basic_block_forward(x, prep)
    return x[..., :prepared[-1]["Cout"]]


# ------------------------------- params ------------------------------------ #

def _fold_bn(key, c):
    kg, kb, km, kv = jax.random.split(key, 4)
    gamma = 1.0 + 0.1 * jax.random.normal(kg, (c,), jnp.float32)
    beta = 0.1 * jax.random.normal(kb, (c,), jnp.float32)
    mean = 0.1 * jax.random.normal(km, (c,), jnp.float32)
    var = jnp.abs(jax.random.normal(kv, (c,), jnp.float32)) + 0.5
    scale = gamma / jnp.sqrt(var + 1e-5)           # folded inference-mode BN
    bias = beta - mean * scale
    return scale.reshape(1, c), bias.reshape(1, c)


def init_basic_block(key, cin, cout):
    k1, k2, k3, kbn1, kbn2 = jax.random.split(key, 5)
    w1 = jax.random.normal(k1, (3, 3, cin, cout), jnp.float32) * (2.0 / (9 * cout)) ** 0.5
    w2 = jax.random.normal(k2, (3, 3, cout, cout), jnp.float32) * (2.0 / (9 * cout)) ** 0.5
    s1, b1 = _fold_bn(kbn1, cin)
    s2, b2 = _fold_bn(kbn2, cout)
    w_sc = None if cin == cout else (
        jax.random.normal(k3, (1, 1, cin, cout), jnp.float32) * (2.0 / cout) ** 0.5)
    return dict(w1=w1, w2=w2, w_sc=w_sc, s1=s1, b1=b1, s2=s2, b2=b2)


# ---------------------------- pure-JAX references --------------------------- #

def _ref_conv(act, w, stride, pad, low_precision):
    if low_precision:                      # same precision policy as the kernel
        act = act.astype(jnp.bfloat16)
        w = w.astype(jnp.bfloat16)
    return lax.conv_general_dilated(
        act, w, (stride, stride), [(pad, pad), (pad, pad)],
        dimension_numbers=("NHWC", "HWIO", "NHWC"),
        preferred_element_type=jnp.float32)


def _ref_block(x, p, stride, low_precision):
    act1 = jnp.maximum(x * p["s1"] + p["b1"], 0.0)
    h = _ref_conv(act1, p["w1"], stride, 1, low_precision)
    act2 = jnp.maximum(h * p["s2"] + p["b2"], 0.0)
    out = _ref_conv(act2, p["w2"], 1, 1, low_precision)
    sc = x if p["w_sc"] is None else _ref_conv(act1, p["w_sc"], stride, 0, low_precision)
    return out + sc


def _ref_network_block(x, layer_params, stride, low_precision):
    for i, p in enumerate(layer_params):
        x = _ref_block(x, p, stride if i == 0 else 1, low_precision)
    return x


# ---------------------------------- main ------------------------------------ #

if __name__ == "__main__":
    key = jax.random.PRNGKey(0)

    def run_case(nb_layers, in_planes, out_planes, stride, N, H, W, case_key):
        kx, kp = jax.random.split(case_key)
        x_nchw = jax.random.normal(kx, (N, in_planes, H, W), jnp.float32)  # PyTorch NCHW
        x = jnp.transpose(x_nchw, (0, 2, 3, 1))                            # NHWC for kernels

        params = []
        for i, kk in enumerate(jax.random.split(kp, nb_layers)):
            cin = in_planes if i == 0 else out_planes
            params.append(init_basic_block(kk, cin, out_planes))
        prepared = prepare_network_block_params(params, stride)

        fwd = jax.jit(lambda xin: network_block_forward(xin, prepared))
        out = jax.block_until_ready(fwd(x))
        assert out.shape == (N, H // stride, W // stride, out_planes), out.shape

        # Tight check vs a reference with the kernel's precision policy
        # (bf16 conv operands, f32 accumulation).
        ref_lp = _ref_network_block(x, params, stride, low_precision=True)
        err_lp = float(jnp.max(jnp.abs(out - ref_lp)))
        assert err_lp < 5e-2, f"max abs err vs matched-precision reference: {err_lp}"

        # Loose sanity check vs the full-f32 (PyTorch-semantics) reference.
        ref_f32 = _ref_network_block(x, params, stride, low_precision=False)
        err_f32 = float(jnp.max(jnp.abs(out - ref_f32)))
        bound = 0.05 * float(jnp.max(jnp.abs(ref_f32))) + 0.05
        assert err_f32 < bound, f"max abs err vs f32 reference: {err_f32} (bound {bound})"
        return out

    k1, k2 = jax.random.split(key)
    # Main config: stride-2 projection block followed by an identity block.
    out = run_case(nb_layers=2, in_planes=8, out_planes=16, stride=2,
                   N=2, H=16, W=16, case_key=k1)
    # Extra coverage: stride-1 projection shortcut (in_planes != out_planes).
    run_case(nb_layers=1, in_planes=8, out_planes=16, stride=1,
             N=2, H=8, W=8, case_key=k2)

    out_nchw = jnp.transpose(out, (0, 3, 1, 2))   # back to PyTorch NCHW: (2, 16, 8, 8)
    jax.block_until_ready(out_nchw)
    print("KERNEL_OK")
</pallas_src>

<mosaic_0001>
module attributes {stable_mosaic.version = 11 : i64} {
  func.func @kernel(%arg0: i32, %arg1: memref<2x8x8x512xf32, #tpu.memory_space<vmem>>, %arg2: memref<4x512x128xbf16, #tpu.memory_space<vmem>>, %arg3: memref<9x128x128xbf16, #tpu.memory_space<vmem>>, %arg4: memref<128x128xbf16, #tpu.memory_space<vmem>>, %arg5: memref<1x512xf32, #tpu.memory_space<vmem>>, %arg6: memref<1x512xf32, #tpu.memory_space<vmem>>, %arg7: memref<1x128xf32, #tpu.memory_space<vmem>>, %arg8: memref<1x128xf32, #tpu.memory_space<vmem>>, %arg9: memref<2x8x8x128xf32, #tpu.memory_space<vmem>>, %arg10: memref<2x9x9x512xf32, #tpu.memory_space<vmem>>, %arg11: memref<2x10x10x128xf32, #tpu.memory_space<vmem>>) attributes {dimension_semantics = [#tpu.dimension_semantics<parallel>], iteration_bounds = array<i64: 1>, scalar_prefetch = 0 : i64, scratch_operands = 2 : i64, tpu.core_type = #tpu.core_type<tc>, window_params = [{transform_indices = @transform_0, window_bounds = array<i64: 2, 8, 8, 512>}, {pipeline_mode = #tpu.pipeline_mode<synchronous>, transform_indices = @transform_1, window_bounds = array<i64: 4, 512, 128>}, {pipeline_mode = #tpu.pipeline_mode<synchronous>, transform_indices = @transform_2, window_bounds = array<i64: 9, 128, 128>}, {pipeline_mode = #tpu.pipeline_mode<synchronous>, transform_indices = @transform_3, window_bounds = array<i64: 128, 128>}, {pipeline_mode = #tpu.pipeline_mode<synchronous>, transform_indices = @transform_4, window_bounds = array<i64: 1, 512>}, {pipeline_mode = #tpu.pipeline_mode<synchronous>, transform_indices = @transform_5, window_bounds = array<i64: 1, 512>}, {pipeline_mode = #tpu.pipeline_mode<synchronous>, transform_indices = @transform_6, window_bounds = array<i64: 1, 128>}, {pipeline_mode = #tpu.pipeline_mode<synchronous>, transform_indices = @transform_7, window_bounds = array<i64: 1, 128>}, {transform_indices = @transform_8, window_bounds = array<i64: 2, 8, 8, 128>}]} {
    %c0 = arith.constant 0 : index
    %c0_0 = arith.constant 0 : index
    %c0_1 = arith.constant 0 : index
    %c0_2 = arith.constant 0 : index
    %0 = vector.load %arg1[%c0, %c0_0, %c0_1, %c0_2] : memref<2x8x8x512xf32, #tpu.memory_space<vmem>>, vector<2x8x8x512xf32>
    %c0_3 = arith.constant 0 : index
    %c0_4 = arith.constant 0 : index
    %1 = vector.load %arg5[%c0_3, %c0_4] : memref<1x512xf32, #tpu.memory_space<vmem>>, vector<1x512xf32>
    %2 = vector.shape_cast %1 : vector<1x512xf32> to vector<1x1x1x512xf32>
    %c0_5 = arith.constant 0 : index
    %c0_6 = arith.constant 0 : index
    %3 = vector.load %arg6[%c0_5, %c0_6] : memref<1x512xf32, #tpu.memory_space<vmem>>, vector<1x512xf32>
    %4 = vector.shape_cast %3 : vector<1x512xf32> to vector<1x1x1x512xf32>
    %5 = vector.broadcast %2 : vector<1x1x1x512xf32> to vector<2x8x8x512xf32>
    %6 = arith.mulf %0, %5 : vector<2x8x8x512xf32>
    %7 = vector.broadcast %4 : vector<1x1x1x512xf32> to vector<2x8x8x512xf32>
    %8 = arith.addf %6, %7 : vector<2x8x8x512xf32>
    %cst = arith.constant 0.000000e+00 : f32
    %9 = vector.broadcast %cst : f32 to vector<2x8x8x512xf32>
    %10 = arith.maximumf %8, %9 : vector<2x8x8x512xf32>
    %cst_7 = arith.constant 0.000000e+00 : f32
    %11 = vector.broadcast %cst_7 : f32 to vector<2x1x9x512xf32>
    %cst_8 = arith.constant 0.000000e+00 : f32
    %12 = vector.broadcast %cst_8 : f32 to vector<2x9x1x512xf32>
    %c0_9 = arith.constant 0 : index
    %c0_10 = arith.constant 0 : index
    %c0_11 = arith.constant 0 : index
    %c0_12 = arith.constant 0 : index
    %13 = vector.load %arg10[%c0_9, %c0_10, %c0_11, %c0_12] : memref<2x9x9x512xf32, #tpu.memory_space<vmem>>, vector<2x1x9x512xf32>
    tpu.vector_store %arg10[%c0_9, %c0_10, %c0_11, %c0_12], %11 {strides = array<i32>} : memref<2x9x9x512xf32, #tpu.memory_space<vmem>>, vector<2x1x9x512xf32>,
    %c0_13 = arith.constant 0 : index
    %c8 = arith.constant 8 : index
    %c0_14 = arith.constant 0 : index
    %c0_15 = arith.constant 0 : index
    %14 = vector.load %arg10[%c0_13, %c8, %c0_14, %c0_15] : memref<2x9x9x512xf32, #tpu.memory_space<vmem>>, vector<2x1x9x512xf32>
    tpu.vector_store %arg10[%c0_13, %c8, %c0_14, %c0_15], %11 {strides = array<i32>} : memref<2x9x9x512xf32, #tpu.memory_space<vmem>>, vector<2x1x9x512xf32>,
    %c0_16 = arith.constant 0 : index
    %c0_17 = arith.constant 0 : index
    %c0_18 = arith.constant 0 : index
    %c0_19 = arith.constant 0 : index
    %15 = vector.load %arg10[%c0_16, %c0_17, %c0_18, %c0_19] : memref<2x9x9x512xf32, #tpu.memory_space<vmem>>, vector<2x9x1x512xf32>
    tpu.vector_store %arg10[%c0_16, %c0_17, %c0_18, %c0_19], %12 {strides = array<i32>} : memref<2x9x9x512xf32, #tpu.memory_space<vmem>>, vector<2x9x1x512xf32>,
    %c0_20 = arith.constant 0 : index
    %c0_21 = arith.constant 0 : index
    %c8_22 = arith.constant 8 : index
    %c0_23 = arith.constant 0 : index
    %16 = vector.load %arg10[%c0_20, %c0_21, %c8_22, %c0_23] : memref<2x9x9x512xf32, #tpu.memory_space<vmem>>, vector<2x9x1x512xf32>
    tpu.vector_store %arg10[%c0_20, %c0_21, %c8_22, %c0_23], %12 {strides = array<i32>} : memref<2x9x9x512xf32, #tpu.memory_space<vmem>>, vector<2x9x1x512xf32>,
    %17 = vector.extract_strided_slice %10 {offsets = [0, 0, 0, 0], sizes = [2, 8, 8, 128], strides = [1, 1, 1, 1]} : vector<2x8x8x512xf32> to vector<2x8x8x128xf32>
    %c0_24 = arith.constant 0 : index
    %c0_25 = arith.constant 0 : index
    %c0_26 = arith.constant 0 : index
    %c0_27 = arith.constant 0 : index
    %18 = vector.load %arg10[%c0_24, %c0_25, %c0_26, %c0_27] : memref<2x9x9x512xf32, #tpu.memory_space<vmem>>, vector<2x8x8x128xf32>
    tpu.vector_store %arg10[%c0_24, %c0_25, %c0_26, %c0_27], %17 {strides = array<i32>} : memref<2x9x9x512xf32, #tpu.memory_space<vmem>>, vector<2x8x8x128xf32>,
    %19 = vector.extract_strided_slice %10 {offsets = [0, 0, 0, 128], sizes = [2, 8, 8, 128], strides = [1, 1, 1, 1]} : vector<2x8x8x512xf32> to vector<2x8x8x128xf32>
    %c0_28 = arith.constant 0 : index
    %c0_29 = arith.constant 0 : index
    %c1 = arith.constant 1 : index
    %c128 = arith.constant 128 : index
    %20 = vector.load %arg10[%c0_28, %c0_29, %c1, %c128] : memref<2x9x9x512xf32, #tpu.memory_space<vmem>>, vector<2x8x8x128xf32>
    tpu.vector_store %arg10[%c0_28, %c0_29, %c1, %c128], %19 {strides = array<i32>} : memref<2x9x9x512xf32, #tpu.memory_space<vmem>>, vector<2x8x8x128xf32>,
    %21 = vector.extract_strided_slice %10 {offsets = [0, 0, 0, 256], sizes = [2, 8, 8, 128], strides = [1, 1, 1, 1]} : vector<2x8x8x512xf32> to vector<2x8x8x128xf32>
    %c0_30 = arith.constant 0 : index
    %c1_31 = arith.constant 1 : index
    %c0_32 = arith.constant 0 : index
    %c256 = arith.constant 256 : index
    %22 = vector.load %arg10[%c0_30, %c1_31, %c0_32, %c256] : memref<2x9x9x512xf32, #tpu.memory_space<vmem>>, vector<2x8x8x128xf32>
    tpu.vector_store %arg10[%c0_30, %c1_31, %c0_32, %c256], %21 {strides = array<i32>} : memref<2x9x9x512xf32, #tpu.memory_space<vmem>>, vector<2x8x8x128xf32>,
    %23 = vector.extract_strided_slice %10 {offsets = [0, 0, 0, 384], sizes = [2, 8, 8, 128], strides = [1, 1, 1, 1]} : vector<2x8x8x512xf32> to vector<2x8x8x128xf32>
    %c0_33 = arith.constant 0 : index
    %c1_34 = arith.constant 1 : index
    %c1_35 = arith.constant 1 : index
    %c384 = arith.constant 384 : index
    %24 = vector.load %arg10[%c0_33, %c1_34, %c1_35, %c384] : memref<2x9x9x512xf32, #tpu.memory_space<vmem>>, vector<2x8x8x128xf32>
    tpu.vector_store %arg10[%c0_33, %c1_34, %c1_35, %c384], %23 {strides = array<i32>} : memref<2x9x9x512xf32, #tpu.memory_space<vmem>>, vector<2x8x8x128xf32>,
    %c0_36 = arith.constant 0 : index
    %c0_37 = arith.constant 0 : index
    %c0_38 = arith.constant 0 : index
    %c0_39 = arith.constant 0 : index
    %25 = vector.load %arg10[%c0_36, %c0_37, %c0_38, %c0_39] : memref<2x9x9x512xf32, #tpu.memory_space<vmem>>, vector<2x8x8x512xf32>
    %26 = vector.shape_cast %25 : vector<2x8x8x512xf32> to vector<128x512xf32>
    %27 = arith.truncf %26 : vector<128x512xf32> to vector<128x512xbf16>
    %c0_40 = arith.constant 0 : index
    %c0_41 = arith.constant 0 : index
    %c0_42 = arith.constant 0 : index
    %28 = vector.load %arg2[%c0_40, %c0_41, %c0_42] : memref<4x512x128xbf16, #tpu.memory_space<vmem>>, vector<1x512x128xbf16>
    %29 = vector.shape_cast %28 : vector<1x512x128xbf16> to vector<512x128xbf16>
    %cst_43 = arith.constant dense<0.000000e+00> : vector<128x128xf32>
    %30 = tpu.matmul %27, %29, %cst_43 {dimension_numbers = #tpu.dot_dimension_numbers<[1], [0], [0], [1], [0, 0, 1, 1], [], []>} : vector<128x512xbf16>, vector<512x128xbf16>, vector<128x128xf32> -> vector<128x128xf32>
    %c0_44 = arith.constant 0 : index
    %c0_45 = arith.constant 0 : index
    %c1_46 = arith.constant 1 : index
    %c0_47 = arith.constant 0 : index
    %31 = vector.load %arg10[%c0_44, %c0_45, %c1_46, %c0_47] : memref<2x9x9x512xf32, #tpu.memory_space<vmem>>, vector<2x8x8x512xf32>
    %32 = vector.shape_cast %31 : vector<2x8x8x512xf32> to vector<128x512xf32>
    %33 = arith.truncf %32 : vector<128x512xf32> to vector<128x512xbf16>
    %c1_48 = arith.constant 1 : index
    %c0_49 = arith.constant 0 : index
    %c0_50 = arith.constant 0 : index
    %34 = vector.load %arg2[%c1_48, %c0_49, %c0_50] : memref<4x512x128xbf16, #tpu.memory_space<vmem>>, vector<1x512x128xbf16>
    %35 = vector.shape_cast %34 : vector<1x512x128xbf16> to vector<512x128xbf16>
    %cst_51 = arith.constant dense<0.000000e+00> : vector<128x128xf32>
    %36 = tpu.matmul %33, %35, %cst_51 {dimension_numbers = #tpu.dot_dimension_numbers<[1], [0], [0], [1], [0, 0, 1, 1], [], []>} : vector<128x512xbf16>, vector<512x128xbf16>, vector<128x128xf32> -> vector<128x128xf32>
    %37 = arith.addf %30, %36 : vector<128x128xf32>
    %c0_52 = arith.constant 0 : index
    %c1_53 = arith.constant 1 : index
    %c0_54 = arith.constant 0 : index
    %c0_55 = arith.constant 0 : index
    %38 = vector.load %arg10[%c0_52, %c1_53, %c0_54, %c0_55] : memref<2x9x9x512xf32, #tpu.memory_space<vmem>>, vector<2x8x8x512xf32>
    %39 = vector.shape_cast %38 : vector<2x8x8x512xf32> to vector<128x512xf32>
    %40 = arith.truncf %39 : vector<128x512xf32> to vector<128x512xbf16>
    %c2 = arith.constant 2 : index
    %c0_56 = arith.constant 0 : index
    %c0_57 = arith.constant 0 : index
    %41 = vector.load %arg2[%c2, %c0_56, %c0_57] : memref<4x512x128xbf16, #tpu.memory_space<vmem>>, vector<1x512x128xbf16>
    %42 = vector.shape_cast %41 : vector<1x512x128xbf16> to vector<512x128xbf16>
    %cst_58 = arith.constant dense<0.000000e+00> : vector<128x128xf32>
    %43 = tpu.matmul %40, %42, %cst_58 {dimension_numbers = #tpu.dot_dimension_numbers<[1], [0], [0], [1], [0, 0, 1, 1], [], []>} : vector<128x512xbf16>, vector<512x128xbf16>, vector<128x128xf32> -> vector<128x128xf32>
    %44 = arith.addf %37, %43 : vector<128x128xf32>
    %c0_59 = arith.constant 0 : index
    %c1_60 = arith.constant 1 : index
    %c1_61 = arith.constant 1 : index
    %c0_62 = arith.constant 0 : index
    %45 = vector.load %arg10[%c0_59, %c1_60, %c1_61, %c0_62] : memref<2x9x9x512xf32, #tpu.memory_space<vmem>>, vector<2x8x8x512xf32>
    %46 = vector.shape_cast %45 : vector<2x8x8x512xf32> to vector<128x512xf32>
    %47 = arith.truncf %46 : vector<128x512xf32> to vector<128x512xbf16>
    %c3 = arith.constant 3 : index
    %c0_63 = arith.constant 0 : index
    %c0_64 = arith.constant 0 : index
    %48 = vector.load %arg2[%c3, %c0_63, %c0_64] : memref<4x512x128xbf16, #tpu.memory_space<vmem>>, vector<1x512x128xbf16>
    %49 = vector.shape_cast %48 : vector<1x512x128xbf16> to vector<512x128xbf16>
    %cst_65 = arith.constant dense<0.000000e+00> : vector<128x128xf32>
    %50 = tpu.matmul %47, %49, %cst_65 {dimension_numbers = #tpu.dot_dimension_numbers<[1], [0], [0], [1], [0, 0, 1, 1], [], []>} : vector<128x512xbf16>, vector<512x128xbf16>, vector<128x128xf32> -> vector<128x128xf32>
    %51 = arith.addf %44, %50 : vector<128x128xf32>
    %52 = vector.extract_strided_slice %10 {offsets = [0, 0, 0, 0], sizes = [2, 8, 8, 128], strides = [1, 1, 1, 1]} : vector<2x8x8x512xf32> to vector<2x8x8x128xf32>
    %53 = vector.shape_cast %52 : vector<2x8x8x128xf32> to vector<128x128xf32>
    %54 = arith.truncf %53 : vector<128x128xf32> to vector<128x128xbf16>
    %c0_66 = arith.constant 0 : index
    %c0_67 = arith.constant 0 : index
    %55 = vector.load %arg4[%c0_66, %c0_67] : memref<128x128xbf16, #tpu.memory_space<vmem>>, vector<128x128xbf16>
    %cst_68 = arith.constant dense<0.000000e+00> : vector<128x128xf32>
    %56 = tpu.matmul %54, %55, %cst_68 {dimension_numbers = #tpu.dot_dimension_numbers<[1], [0], [0], [1], [0, 0, 1, 1], [], []>} : vector<128x128xbf16>, vector<128x128xbf16>, vector<128x128xf32> -> vector<128x128xf32>
    %c0_69 = arith.constant 0 : index
    %c0_70 = arith.constant 0 : index
    %57 = vector.load %arg7[%c0_69, %c0_70] : memref<1x128xf32, #tpu.memory_space<vmem>>, vector<1x128xf32>
    %58 = vector.broadcast %57 : vector<1x128xf32> to vector<128x128xf32>
    %59 = arith.mulf %51, %58 : vector<128x128xf32>
    %c0_71 = arith.constant 0 : index
    %c0_72 = arith.constant 0 : index
    %60 = vector.load %arg8[%c0_71, %c0_72] : memref<1x128xf32, #tpu.memory_space<vmem>>, vector<1x128xf32>
    %61 = vector.broadcast %60 : vector<1x128xf32> to vector<128x128xf32>
    %62 = arith.addf %59, %61 : vector<128x128xf32>
    %cst_73 = arith.constant 0.000000e+00 : f32
    %63 = vector.broadcast %cst_73 : f32 to vector<128x128xf32>
    %64 = arith.maximumf %62, %63 : vector<128x128xf32>
    %cst_74 = arith.constant 0.000000e+00 : f32
    %65 = vector.broadcast %cst_74 : f32 to vector<2x1x10x128xf32>
    %cst_75 = arith.constant 0.000000e+00 : f32
    %66 = vector.broadcast %cst_75 : f32 to vector<2x10x1x128xf32>
    %c0_76 = arith.constant 0 : index
    %c0_77 = arith.constant 0 : index
    %c0_78 = arith.constant 0 : index
    %c0_79 = arith.constant 0 : index
    %67 = vector.load %arg11[%c0_76, %c0_77, %c0_78, %c0_79] : memref<2x10x10x128xf32, #tpu.memory_space<vmem>>, vector<2x1x10x128xf32>
    tpu.vector_store %arg11[%c0_76, %c0_77, %c0_78, %c0_79], %65 {strides = array<i32>} : memref<2x10x10x128xf32, #tpu.memory_space<vmem>>, vector<2x1x10x128xf32>,
    %c0_80 = arith.constant 0 : index
    %c9 = arith.constant 9 : index
    %c0_81 = arith.constant 0 : index
    %c0_82 = arith.constant 0 : index
    %68 = vector.load %arg11[%c0_80, %c9, %c0_81, %c0_82] : memref<2x10x10x128xf32, #tpu.memory_space<vmem>>, vector<2x1x10x128xf32>
    tpu.vector_store %arg11[%c0_80, %c9, %c0_81, %c0_82], %65 {strides = array<i32>} : memref<2x10x10x128xf32, #tpu.memory_space<vmem>>, vector<2x1x10x128xf32>,
    %c0_83 = arith.constant 0 : index
    %c0_84 = arith.constant 0 : index
    %c0_85 = arith.constant 0 : index
    %c0_86 = arith.constant 0 : index
    %69 = vector.load %arg11[%c0_83, %c0_84, %c0_85, %c0_86] : memref<2x10x10x128xf32, #tpu.memory_space<vmem>>, vector<2x10x1x128xf32>
    tpu.vector_store %arg11[%c0_83, %c0_84, %c0_85, %c0_86], %66 {strides = array<i32>} : memref<2x10x10x128xf32, #tpu.memory_space<vmem>>, vector<2x10x1x128xf32>,
    %c0_87 = arith.constant 0 : index
    %c0_88 = arith.constant 0 : index
    %c9_89 = arith.constant 9 : index
    %c0_90 = arith.constant 0 : index
    %70 = vector.load %arg11[%c0_87, %c0_88, %c9_89, %c0_90] : memref<2x10x10x128xf32, #tpu.memory_space<vmem>>, vector<2x10x1x128xf32>
    tpu.vector_store %arg11[%c0_87, %c0_88, %c9_89, %c0_90], %66 {strides = array<i32>} : memref<2x10x10x128xf32, #tpu.memory_space<vmem>>, vector<2x10x1x128xf32>,
    %71 = vector.shape_cast %64 : vector<128x128xf32> to vector<2x8x8x128xf32>
    %c0_91 = arith.constant 0 : index
    %c1_92 = arith.constant 1 : index
    %c1_93 = arith.constant 1 : index
    %c0_94 = arith.constant 0 : index
    %72 = vector.load %arg11[%c0_91, %c1_92, %c1_93, %c0_94] : memref<2x10x10x128xf32, #tpu.memory_space<vmem>>, vector<2x8x8x128xf32>
    tpu.vector_store %arg11[%c0_91, %c1_92, %c1_93, %c0_94], %71 {strides = array<i32>} : memref<2x10x10x128xf32, #tpu.memory_space<vmem>>, vector<2x8x8x128xf32>,
    %c0_95 = arith.constant 0 : index
    %c0_96 = arith.constant 0 : index
    %c0_97 = arith.constant 0 : index
    %c0_98 = arith.constant 0 : index
    %73 = vector.load %arg11[%c0_95, %c0_96, %c0_97, %c0_98] : memref<2x10x10x128xf32, #tpu.memory_space<vmem>>, vector<2x8x8x128xf32>
    %74 = vector.shape_cast %73 : vector<2x8x8x128xf32> to vector<128x128xf32>
    %75 = arith.truncf %74 : vector<128x128xf32> to vector<128x128xbf16>
    %c0_99 = arith.constant 0 : index
    %c0_100 = arith.constant 0 : index
    %c0_101 = arith.constant 0 : index
    %76 = vector.load %arg3[%c0_99, %c0_100, %c0_101] : memref<9x128x128xbf16, #tpu.memory_space<vmem>>, vector<1x128x128xbf16>
    %77 = vector.shape_cast %76 : vector<1x128x128xbf16> to vector<128x128xbf16>
    %cst_102 = arith.constant dense<0.000000e+00> : vector<128x128xf32>
    %78 = tpu.matmul %75, %77, %cst_102 {dimension_numbers = #tpu.dot_dimension_numbers<[1], [0], [0], [1], [0, 0, 1, 1], [], []>} : vector<128x128xbf16>, vector<128x128xbf16>, vector<128x128xf32> -> vector<128x128xf32>
    %79 = arith.addf %56, %78 : vector<128x128xf32>
    %c0_103 = arith.constant 0 : index
    %c0_104 = arith.constant 0 : index
    %c1_105 = arith.constant 1 : index
    %c0_106 = arith.constant 0 : index
    %80 = vector.load %arg11[%c0_103, %c0_104, %c1_105, %c0_106] : memref<2x10x10x128xf32, #tpu.memory_space<vmem>>, vector<2x8x8x128xf32>
    %81 = vector.shape_cast %80 : vector<2x8x8x128xf32> to vector<128x128xf32>
    %82 = arith.truncf %81 : vector<128x128xf32> to vector<128x128xbf16>
    %c1_107 = arith.constant 1 : index
    %c0_108 = arith.constant 0 : index
    %c0_109 = arith.constant 0 : index
    %83 = vector.load %arg3[%c1_107, %c0_108, %c0_109] : memref<9x128x128xbf16, #tpu.memory_space<vmem>>, vector<1x128x128xbf16>
    %84 = vector.shape_cast %83 : vector<1x128x128xbf16> to vector<128x128xbf16>
    %cst_110 = arith.constant dense<0.000000e+00> : vector<128x128xf32>
    %85 = tpu.matmul %82, %84, %cst_110 {dimension_numbers = #tpu.dot_dimension_numbers<[1], [0], [0], [1], [0, 0, 1, 1], [], []>} : vector<128x128xbf16>, vector<128x128xbf16>, vector<128x128xf32> -> vector<128x128xf32>
    %86 = arith.addf %79, %85 : vector<128x128xf32>
    %c0_111 = arith.constant 0 : index
    %c0_112 = arith.constant 0 : index
    %c2_113 = arith.constant 2 : index
    %c0_114 = arith.constant 0 : index
    %87 = vector.load %arg11[%c0_111, %c0_112, %c2_113, %c0_114] : memref<2x10x10x128xf32, #tpu.memory_space<vmem>>, vector<2x8x8x128xf32>
    %88 = vector.shape_cast %87 : vector<2x8x8x128xf32> to vector<128x128xf32>
    %89 = arith.truncf %88 : vector<128x128xf32> to vector<128x128xbf16>
    %c2_115 = arith.constant 2 : index
    %c0_116 = arith.constant 0 : index
    %c0_117 = arith.constant 0 : index
    %90 = vector.load %arg3[%c2_115, %c0_116, %c0_117] : memref<9x128x128xbf16, #tpu.memory_space<vmem>>, vector<1x128x128xbf16>
    %91 = vector.shape_cast %90 : vector<1x128x128xbf16> to vector<128x128xbf16>
    %cst_118 = arith.constant dense<0.000000e+00> : vector<128x128xf32>
    %92 = tpu.matmul %89, %91, %cst_118 {dimension_numbers = #tpu.dot_dimension_numbers<[1], [0], [0], [1], [0, 0, 1, 1], [], []>} : vector<128x128xbf16>, vector<128x128xbf16>, vector<128x128xf32> -> vector<128x128xf32>
    %93 = arith.addf %86, %92 : vector<128x128xf32>
    %c0_119 = arith.constant 0 : index
    %c1_120 = arith.constant 1 : index
    %c0_121 = arith.constant 0 : index
    %c0_122 = arith.constant 0 : index
    %94 = vector.load %arg11[%c0_119, %c1_120, %c0_121, %c0_122] : memref<2x10x10x128xf32, #tpu.memory_space<vmem>>, vector<2x8x8x128xf32>
    %95 = vector.shape_cast %94 : vector<2x8x8x128xf32> to vector<128x128xf32>
    %96 = arith.truncf %95 : vector<128x128xf32> to vector<128x128xbf16>
    %c3_123 = arith.constant 3 : index
    %c0_124 = arith.constant 0 : index
    %c0_125 = arith.constant 0 : index
    %97 = vector.load %arg3[%c3_123, %c0_124, %c0_125] : memref<9x128x128xbf16, #tpu.memory_space<vmem>>, vector<1x128x128xbf16>
    %98 = vector.shape_cast %97 : vector<1x128x128xbf16> to vector<128x128xbf16>
    %cst_126 = arith.constant dense<0.000000e+00> : vector<128x128xf32>
    %99 = tpu.matmul %96, %98, %cst_126 {dimension_numbers = #tpu.dot_dimension_numbers<[1], [0], [0], [1], [0, 0, 1, 1], [], []>} : vector<128x128xbf16>, vector<128x128xbf16>, vector<128x128xf32> -> vector<128x128xf32>
    %100 = arith.addf %93, %99 : vector<128x128xf32>
    %c0_127 = arith.constant 0 : index
    %c1_128 = arith.constant 1 : index
    %c1_129 = arith.constant 1 : index
    %c0_130 = arith.constant 0 : index
    %101 = vector.load %arg11[%c0_127, %c1_128, %c1_129, %c0_130] : memref<2x10x10x128xf32, #tpu.memory_space<vmem>>, vector<2x8x8x128xf32>
    %102 = vector.shape_cast %101 : vector<2x8x8x128xf32> to vector<128x128xf32>
    %103 = arith.truncf %102 : vector<128x128xf32> to vector<128x128xbf16>
    %c4 = arith.constant 4 : index
    %c0_131 = arith.constant 0 : index
    %c0_132 = arith.constant 0 : index
    %104 = vector.load %arg3[%c4, %c0_131, %c0_132] : memref<9x128x128xbf16, #tpu.memory_space<vmem>>, vector<1x128x128xbf16>
    %105 = vector.shape_cast %104 : vector<1x128x128xbf16> to vector<128x128xbf16>
    %cst_133 = arith.constant dense<0.000000e+00> : vector<128x128xf32>
    %106 = tpu.matmul %103, %105, %cst_133 {dimension_numbers = #tpu.dot_dimension_numbers<[1], [0], [0], [1], [0, 0, 1, 1], [], []>} : vector<128x128xbf16>, vector<128x128xbf16>, vector<128x128xf32> -> vector<128x128xf32>
    %107 = arith.addf %100, %106 : vector<128x128xf32>
    %c0_134 = arith.constant 0 : index
    %c1_135 = arith.constant 1 : index
    %c2_136 = arith.constant 2 : index
    %c0_137 = arith.constant 0 : index
    %108 = vector.load %arg11[%c0_134, %c1_135, %c2_136, %c0_137] : memref<2x10x10x128xf32, #tpu.memory_space<vmem>>, vector<2x8x8x128xf32>
    %109 = vector.shape_cast %108 : vector<2x8x8x128xf32> to vector<128x128xf32>
    %110 = arith.truncf %109 : vector<128x128xf32> to vector<128x128xbf16>
    %c5 = arith.constant 5 : index
    %c0_138 = arith.constant 0 : index
    %c0_139 = arith.constant 0 : index
    %111 = vector.load %arg3[%c5, %c0_138, %c0_139] : memref<9x128x128xbf16, #tpu.memory_space<vmem>>, vector<1x128x128xbf16>
    %112 = vector.shape_cast %111 : vector<1x128x128xbf16> to vector<128x128xbf16>
    %cst_140 = arith.constant dense<0.000000e+00> : vector<128x128xf32>
    %113 = tpu.matmul %110, %112, %cst_140 {dimension_numbers = #tpu.dot_dimension_numbers<[1], [0], [0], [1], [0, 0, 1, 1], [], []>} : vector<128x128xbf16>, vector<128x128xbf16>, vector<128x128xf32> -> vector<128x128xf32>
    %114 = arith.addf %107, %113 : vector<128x128xf32>
    %c0_141 = arith.constant 0 : index
    %c2_142 = arith.constant 2 : index
    %c0_143 = arith.constant 0 : index
    %c0_144 = arith.constant 0 : index
    %115 = vector.load %arg11[%c0_141, %c2_142, %c0_143, %c0_144] : memref<2x10x10x128xf32, #tpu.memory_space<vmem>>, vector<2x8x8x128xf32>
    %116 = vector.shape_cast %115 : vector<2x8x8x128xf32> to vector<128x128xf32>
    %117 = arith.truncf %116 : vector<128x128xf32> to vector<128x128xbf16>
    %c6 = arith.constant 6 : index
    %c0_145 = arith.constant 0 : index
    %c0_146 = arith.constant 0 : index
    %118 = vector.load %arg3[%c6, %c0_145, %c0_146] : memref<9x128x128xbf16, #tpu.memory_space<vmem>>, vector<1x128x128xbf16>
    %119 = vector.shape_cast %118 : vector<1x128x128xbf16> to vector<128x128xbf16>
    %cst_147 = arith.constant dense<0.000000e+00> : vector<128x128xf32>
    %120 = tpu.matmul %117, %119, %cst_147 {dimension_numbers = #tpu.dot_dimension_numbers<[1], [0], [0], [1], [0, 0, 1, 1], [], []>} : vector<128x128xbf16>, vector<128x128xbf16>, vector<128x128xf32> -> vector<128x128xf32>
    %121 = arith.addf %114, %120 : vector<128x128xf32>
    %c0_148 = arith.constant 0 : index
    %c2_149 = arith.constant 2 : index
    %c1_150 = arith.constant 1 : index
    %c0_151 = arith.constant 0 : index
    %122 = vector.load %arg11[%c0_148, %c2_149, %c1_150, %c0_151] : memref<2x10x10x128xf32, #tpu.memory_space<vmem>>, vector<2x8x8x128xf32>
    %123 = vector.shape_cast %122 : vector<2x8x8x128xf32> to vector<128x128xf32>
    %124 = arith.truncf %123 : vector<128x128xf32> to vector<128x128xbf16>
    %c7 = arith.constant 7 : index
    %c0_152 = arith.constant 0 : index
    %c0_153 = arith.constant 0 : index
    %125 = vector.load %arg3[%c7, %c0_152, %c0_153] : memref<9x128x128xbf16, #tpu.memory_space<vmem>>, vector<1x128x128xbf16>
    %126 = vector.shape_cast %125 : vector<1x128x128xbf16> to vector<128x128xbf16>
    %cst_154 = arith.constant dense<0.000000e+00> : vector<128x128xf32>
    %127 = tpu.matmul %124, %126, %cst_154 {dimension_numbers = #tpu.dot_dimension_numbers<[1], [0], [0], [1], [0, 0, 1, 1], [], []>} : vector<128x128xbf16>, vector<128x128xbf16>, vector<128x128xf32> -> vector<128x128xf32>
    %128 = arith.addf %121, %127 : vector<128x128xf32>
    %c0_155 = arith.constant 0 : index
    %c2_156 = arith.constant 2 : index
    %c2_157 = arith.constant 2 : index
    %c0_158 = arith.constant 0 : index
    %129 = vector.load %arg11[%c0_155, %c2_156, %c2_157, %c0_158] : memref<2x10x10x128xf32, #tpu.memory_space<vmem>>, vector<2x8x8x128xf32>
    %130 = vector.shape_cast %129 : vector<2x8x8x128xf32> to vector<128x128xf32>
    %131 = arith.truncf %130 : vector<128x128xf32> to vector<128x128xbf16>
    %c8_159 = arith.constant 8 : index
    %c0_160 = arith.constant 0 : index
    %c0_161 = arith.constant 0 : index
    %132 = vector.load %arg3[%c8_159, %c0_160, %c0_161] : memref<9x128x128xbf16, #tpu.memory_space<vmem>>, vector<1x128x128xbf16>
    %133 = vector.shape_cast %132 : vector<1x128x128xbf16> to vector<128x128xbf16>
    %cst_162 = arith.constant dense<0.000000e+00> : vector<128x128xf32>
    %134 = tpu.matmul %131, %133, %cst_162 {dimension_numbers = #tpu.dot_dimension_numbers<[1], [0], [0], [1], [0, 0, 1, 1], [], []>} : vector<128x128xbf16>, vector<128x128xbf16>, vector<128x128xf32> -> vector<128x128xf32>
    %135 = arith.addf %128, %134 : vector<128x128xf32>
    %136 = vector.shape_cast %135 : vector<128x128xf32> to vector<2x8x8x128xf32>
    %c0_163 = arith.constant 0 : index
    %c0_164 = arith.constant 0 : index
    %c0_165 = arith.constant 0 : index
    %c0_166 = arith.constant 0 : index
    %137 = vector.load %arg9[%c0_163, %c0_164, %c0_165, %c0_166] : memref<2x8x8x128xf32, #tpu.memory_space<vmem>>, vector<2x8x8x128xf32>
    tpu.vector_store %arg9[%c0_163, %c0_164, %c0_165, %c0_166], %136 {strides = array<i32>} : memref<2x8x8x128xf32, #tpu.memory_space<vmem>>, vector<2x8x8x128xf32>,
    return
  }
  func.func @transform_0(%arg0: i32) -> (i32, i32, i32, i32) {
    %c0_i32 = arith.constant 0 : i32
    %c0_i32_0 = arith.constant 0 : i32
    %c0_i32_1 = arith.constant 0 : i32
    %c0_i32_2 = arith.constant 0 : i32
    return %arg0, %c0_i32, %c0_i32_0, %c0_i32_1 : i32, i32, i32, i32
  }
  func.func @transform_1(%arg0: i32) -> (i32, i32, i32) {
    %c0_i32 = arith.constant 0 : i32
    %c0_i32_0 = arith.constant 0 : i32
    %c0_i32_1 = arith.constant 0 : i32
    %c0_i32_2 = arith.constant 0 : i32
    return %c0_i32, %c0_i32_0, %c0_i32_1 : i32, i32, i32
  }
  func.func @transform_2(%arg0: i32) -> (i32, i32, i32) {
    %c0_i32 = arith.constant 0 : i32
    %c0_i32_0 = arith.constant 0 : i32
    %c0_i32_1 = arith.constant 0 : i32
    %c0_i32_2 = arith.constant 0 : i32
    return %c0_i32, %c0_i32_0, %c0_i32_1 : i32, i32, i32
  }
  func.func @transform_3(%arg0: i32) -> (i32, i32) {
    %c0_i32 = arith.constant 0 : i32
    %c0_i32_0 = arith.constant 0 : i32
    %c0_i32_1 = arith.constant 0 : i32
    return %c0_i32, %c0_i32_0 : i32, i32
  }
  func.func @transform_4(%arg0: i32) -> (i32, i32) {
    %c0_i32 = arith.constant 0 : i32
    %c0_i32_0 = arith.constant 0 : i32
    %c0_i32_1 = arith.constant 0 : i32
    return %c0_i32, %c0_i32_0 : i32, i32
  }
  func.func @transform_5(%arg0: i32) -> (i32, i32) {
    %c0_i32 = arith.constant 0 : i32
    %c0_i32_0 = arith.constant 0 : i32
    %c0_i32_1 = arith.constant 0 : i32
    return %c0_i32, %c0_i32_0 : i32, i32
  }
  func.func @transform_6(%arg0: i32) -> (i32, i32) {
    %c0_i32 = arith.constant 0 : i32
    %c0_i32_0 = arith.constant 0 : i32
    %c0_i32_1 = arith.constant 0 : i32
    return %c0_i32, %c0_i32_0 : i32, i32
  }
  func.func @transform_7(%arg0: i32) -> (i32, i32) {
    %c0_i32 = arith.constant 0 : i32
    %c0_i32_0 = arith.constant 0 : i32
    %c0_i32_1 = arith.constant 0 : i32
    return %c0_i32, %c0_i32_0 : i32, i32
  }
  func.func @transform_8(%arg0: i32) -> (i32, i32, i32, i32) {
    %c0_i32 = arith.constant 0 : i32
    %c0_i32_0 = arith.constant 0 : i32
    %c0_i32_1 = arith.constant 0 : i32
    %c0_i32_2 = arith.constant 0 : i32
    return %arg0, %c0_i32, %c0_i32_0, %c0_i32_1 : i32, i32, i32, i32
  }
}

module attributes {stable_mosaic.version = 11 : i64} {
  func.func @kernel(%arg0: i32, %arg1: memref<2x8x8x128xf32, #tpu.memory_space<vmem>>, %arg2: memref<9x128x128xbf16, #tpu.memory_space<vmem>>, %arg3: memref<9x128x128xbf16, #tpu.memory_space<vmem>>, %arg4: memref<1x128xf32, #tpu.memory_space<vmem>>, %arg5: memref<1x128xf32, #tpu.memory_space<vmem>>, %arg6: memref<1x128xf32, #tpu.memory_space<vmem>>, %arg7: memref<1x128xf32, #tpu.memory_space<vmem>>, %arg8: memref<2x8x8x128xf32, #tpu.memory_space<vmem>>, %arg9: memref<2x10x10x128xf32, #tpu.memory_space<vmem>>, %arg10: memref<2x10x10x128xf32, #tpu.memory_space<vmem>>) attributes {dimension_semantics = [#tpu.dimension_semantics<parallel>], iteration_bounds = array<i64: 1>, scalar_prefetch = 0 : i64, scratch_operands = 2 : i64, tpu.core_type = #tpu.core_type<tc>, window_params = [{transform_indices = @transform_0, window_bounds = array<i64: 2, 8, 8, 128>}, {pipeline_mode = #tpu.pipeline_mode<synchronous>, transform_indices = @transform_1, window_bounds = array<i64: 9, 128, 128>}, {pipeline_mode = #tpu.pipeline_mode<synchronous>, transform_indices = @transform_2, window_bounds = array<i64: 9, 128, 128>}, {pipeline_mode = #tpu.pipeline_mode<synchronous>, transform_indices = @transform_3, window_bounds = array<i64: 1, 128>}, {pipeline_mode = #tpu.pipeline_mode<synchronous>, transform_indices = @transform_4, window_bounds = array<i64: 1, 128>}, {pipeline_mode = #tpu.pipeline_mode<synchronous>, transform_indices = @transform_5, window_bounds = array<i64: 1, 128>}, {pipeline_mode = #tpu.pipeline_mode<synchronous>, transform_indices = @transform_6, window_bounds = array<i64: 1, 128>}, {transform_indices = @transform_7, window_bounds = array<i64: 2, 8, 8, 128>}]} {
    %c0 = arith.constant 0 : index
    %c0_0 = arith.constant 0 : index
    %c0_1 = arith.constant 0 : index
    %c0_2 = arith.constant 0 : index
    %0 = vector.load %arg1[%c0, %c0_0, %c0_1, %c0_2] : memref<2x8x8x128xf32, #tpu.memory_space<vmem>>, vector<2x8x8x128xf32>
    %c0_3 = arith.constant 0 : index
    %c0_4 = arith.constant 0 : index
    %1 = vector.load %arg4[%c0_3, %c0_4] : memref<1x128xf32, #tpu.memory_space<vmem>>, vector<1x128xf32>
    %2 = vector.shape_cast %1 : vector<1x128xf32> to vector<1x1x1x128xf32>
    %c0_5 = arith.constant 0 : index
    %c0_6 = arith.constant 0 : index
    %3 = vector.load %arg5[%c0_5, %c0_6] : memref<1x128xf32, #tpu.memory_space<vmem>>, vector<1x128xf32>
    %4 = vector.shape_cast %3 : vector<1x128xf32> to vector<1x1x1x128xf32>
    %5 = vector.broadcast %2 : vector<1x1x1x128xf32> to vector<2x8x8x128xf32>
    %6 = arith.mulf %0, %5 : vector<2x8x8x128xf32>
    %7 = vector.broadcast %4 : vector<1x1x1x128xf32> to vector<2x8x8x128xf32>
    %8 = arith.addf %6, %7 : vector<2x8x8x128xf32>
    %cst = arith.constant 0.000000e+00 : f32
    %9 = vector.broadcast %cst : f32 to vector<2x8x8x128xf32>
    %10 = arith.maximumf %8, %9 : vector<2x8x8x128xf32>
    %cst_7 = arith.constant 0.000000e+00 : f32
    %11 = vector.broadcast %cst_7 : f32 to vector<2x1x10x128xf32>
    %cst_8 = arith.constant 0.000000e+00 : f32
    %12 = vector.broadcast %cst_8 : f32 to vector<2x10x1x128xf32>
    %c0_9 = arith.constant 0 : index
    %c0_10 = arith.constant 0 : index
    %c0_11 = arith.constant 0 : index
    %c0_12 = arith.constant 0 : index
    %13 = vector.load %arg9[%c0_9, %c0_10, %c0_11, %c0_12] : memref<2x10x10x128xf32, #tpu.memory_space<vmem>>, vector<2x1x10x128xf32>
    tpu.vector_store %arg9[%c0_9, %c0_10, %c0_11, %c0_12], %11 {strides = array<i32>} : memref<2x10x10x128xf32, #tpu.memory_space<vmem>>, vector<2x1x10x128xf32>,
    %c0_13 = arith.constant 0 : index
    %c9 = arith.constant 9 : index
    %c0_14 = arith.constant 0 : index
    %c0_15 = arith.constant 0 : index
    %14 = vector.load %arg9[%c0_13, %c9, %c0_14, %c0_15] : memref<2x10x10x128xf32, #tpu.memory_space<vmem>>, vector<2x1x10x128xf32>
    tpu.vector_store %arg9[%c0_13, %c9, %c0_14, %c0_15], %11 {strides = array<i32>} : memref<2x10x10x128xf32, #tpu.memory_space<vmem>>, vector<2x1x10x128xf32>,
    %c0_16 = arith.constant 0 : index
    %c0_17 = arith.constant 0 : index
    %c0_18 = arith.constant 0 : index
    %c0_19 = arith.constant 0 : index
    %15 = vector.load %arg9[%c0_16, %c0_17, %c0_18, %c0_19] : memref<2x10x10x128xf32, #tpu.memory_space<vmem>>, vector<2x10x1x128xf32>
    tpu.vector_store %arg9[%c0_16, %c0_17, %c0_18, %c0_19], %12 {strides = array<i32>} : memref<2x10x10x128xf32, #tpu.memory_space<vmem>>, vector<2x10x1x128xf32>,
    %c0_20 = arith.constant 0 : index
    %c0_21 = arith.constant 0 : index
    %c9_22 = arith.constant 9 : index
    %c0_23 = arith.constant 0 : index
    %16 = vector.load %arg9[%c0_20, %c0_21, %c9_22, %c0_23] : memref<2x10x10x128xf32, #tpu.memory_space<vmem>>, vector<2x10x1x128xf32>
    tpu.vector_store %arg9[%c0_20, %c0_21, %c9_22, %c0_23], %12 {strides = array<i32>} : memref<2x10x10x128xf32, #tpu.memory_space<vmem>>, vector<2x10x1x128xf32>,
    %c0_24 = arith.constant 0 : index
    %c1 = arith.constant 1 : index
    %c1_25 = arith.constant 1 : index
    %c0_26 = arith.constant 0 : index
    %17 = vector.load %arg9[%c0_24, %c1, %c1_25, %c0_26] : memref<2x10x10x128xf32, #tpu.memory_space<vmem>>, vector<2x8x8x128xf32>
    tpu.vector_store %arg9[%c0_24, %c1, %c1_25, %c0_26], %10 {strides = array<i32>} : memref<2x10x10x128xf32, #tpu.memory_space<vmem>>, vector<2x8x8x128xf32>,
    %c0_27 = arith.constant 0 : index
    %c0_28 = arith.constant 0 : index
    %c0_29 = arith.constant 0 : index
    %c0_30 = arith.constant 0 : index
    %18 = vector.load %arg9[%c0_27, %c0_28, %c0_29, %c0_30] : memref<2x10x10x128xf32, #tpu.memory_space<vmem>>, vector<2x8x8x128xf32>
    %19 = vector.shape_cast %18 : vector<2x8x8x128xf32> to vector<128x128xf32>
    %20 = arith.truncf %19 : vector<128x128xf32> to vector<128x128xbf16>
    %c0_31 = arith.constant 0 : index
    %c0_32 = arith.constant 0 : index
    %c0_33 = arith.constant 0 : index
    %21 = vector.load %arg2[%c0_31, %c0_32, %c0_33] : memref<9x128x128xbf16, #tpu.memory_space<vmem>>, vector<1x128x128xbf16>
    %22 = vector.shape_cast %21 : vector<1x128x128xbf16> to vector<128x128xbf16>
    %cst_34 = arith.constant dense<0.000000e+00> : vector<128x128xf32>
    %23 = tpu.matmul %20, %22, %cst_34 {dimension_numbers = #tpu.dot_dimension_numbers<[1], [0], [0], [1], [0, 0, 1, 1], [], []>} : vector<128x128xbf16>, vector<128x128xbf16>, vector<128x128xf32> -> vector<128x128xf32>
    %c0_35 = arith.constant 0 : index
    %c0_36 = arith.constant 0 : index
    %c1_37 = arith.constant 1 : index
    %c0_38 = arith.constant 0 : index
    %24 = vector.load %arg9[%c0_35, %c0_36, %c1_37, %c0_38] : memref<2x10x10x128xf32, #tpu.memory_space<vmem>>, vector<2x8x8x128xf32>
    %25 = vector.shape_cast %24 : vector<2x8x8x128xf32> to vector<128x128xf32>
    %26 = arith.truncf %25 : vector<128x128xf32> to vector<128x128xbf16>
    %c1_39 = arith.constant 1 : index
    %c0_40 = arith.constant 0 : index
    %c0_41 = arith.constant 0 : index
    %27 = vector.load %arg2[%c1_39, %c0_40, %c0_41] : memref<9x128x128xbf16, #tpu.memory_space<vmem>>, vector<1x128x128xbf16>
    %28 = vector.shape_cast %27 : vector<1x128x128xbf16> to vector<128x128xbf16>
    %cst_42 = arith.constant dense<0.000000e+00> : vector<128x128xf32>
    %29 = tpu.matmul %26, %28, %cst_42 {dimension_numbers = #tpu.dot_dimension_numbers<[1], [0], [0], [1], [0, 0, 1, 1], [], []>} : vector<128x128xbf16>, vector<128x128xbf16>, vector<128x128xf32> -> vector<128x128xf32>
    %30 = arith.addf %23, %29 : vector<128x128xf32>
    %c0_43 = arith.constant 0 : index
    %c0_44 = arith.constant 0 : index
    %c2 = arith.constant 2 : index
    %c0_45 = arith.constant 0 : index
    %31 = vector.load %arg9[%c0_43, %c0_44, %c2, %c0_45] : memref<2x10x10x128xf32, #tpu.memory_space<vmem>>, vector<2x8x8x128xf32>
    %32 = vector.shape_cast %31 : vector<2x8x8x128xf32> to vector<128x128xf32>
    %33 = arith.truncf %32 : vector<128x128xf32> to vector<128x128xbf16>
    %c2_46 = arith.constant 2 : index
    %c0_47 = arith.constant 0 : index
    %c0_48 = arith.constant 0 : index
    %34 = vector.load %arg2[%c2_46, %c0_47, %c0_48] : memref<9x128x128xbf16, #tpu.memory_space<vmem>>, vector<1x128x128xbf16>
    %35 = vector.shape_cast %34 : vector<1x128x128xbf16> to vector<128x128xbf16>
    %cst_49 = arith.constant dense<0.000000e+00> : vector<128x128xf32>
    %36 = tpu.matmul %33, %35, %cst_49 {dimension_numbers = #tpu.dot_dimension_numbers<[1], [0], [0], [1], [0, 0, 1, 1], [], []>} : vector<128x128xbf16>, vector<128x128xbf16>, vector<128x128xf32> -> vector<128x128xf32>
    %37 = arith.addf %30, %36 : vector<128x128xf32>
    %c0_50 = arith.constant 0 : index
    %c1_51 = arith.constant 1 : index
    %c0_52 = arith.constant 0 : index
    %c0_53 = arith.constant 0 : index
    %38 = vector.load %arg9[%c0_50, %c1_51, %c0_52, %c0_53] : memref<2x10x10x128xf32, #tpu.memory_space<vmem>>, vector<2x8x8x128xf32>
    %39 = vector.shape_cast %38 : vector<2x8x8x128xf32> to vector<128x128xf32>
    %40 = arith.truncf %39 : vector<128x128xf32> to vector<128x128xbf16>
    %c3 = arith.constant 3 : index
    %c0_54 = arith.constant 0 : index
    %c0_55 = arith.constant 0 : index
    %41 = vector.load %arg2[%c3, %c0_54, %c0_55] : memref<9x128x128xbf16, #tpu.memory_space<vmem>>, vector<1x128x128xbf16>
    %42 = vector.shape_cast %41 : vector<1x128x128xbf16> to vector<128x128xbf16>
    %cst_56 = arith.constant dense<0.000000e+00> : vector<128x128xf32>
    %43 = tpu.matmul %40, %42, %cst_56 {dimension_numbers = #tpu.dot_dimension_numbers<[1], [0], [0], [1], [0, 0, 1, 1], [], []>} : vector<128x128xbf16>, vector<128x128xbf16>, vector<128x128xf32> -> vector<128x128xf32>
    %44 = arith.addf %37, %43 : vector<128x128xf32>
    %c0_57 = arith.constant 0 : index
    %c1_58 = arith.constant 1 : index
    %c1_59 = arith.constant 1 : index
    %c0_60 = arith.constant 0 : index
    %45 = vector.load %arg9[%c0_57, %c1_58, %c1_59, %c0_60] : memref<2x10x10x128xf32, #tpu.memory_space<vmem>>, vector<2x8x8x128xf32>
    %46 = vector.shape_cast %45 : vector<2x8x8x128xf32> to vector<128x128xf32>
    %47 = arith.truncf %46 : vector<128x128xf32> to vector<128x128xbf16>
    %c4 = arith.constant 4 : index
    %c0_61 = arith.constant 0 : index
    %c0_62 = arith.constant 0 : index
    %48 = vector.load %arg2[%c4, %c0_61, %c0_62] : memref<9x128x128xbf16, #tpu.memory_space<vmem>>, vector<1x128x128xbf16>
    %49 = vector.shape_cast %48 : vector<1x128x128xbf16> to vector<128x128xbf16>
    %cst_63 = arith.constant dense<0.000000e+00> : vector<128x128xf32>
    %50 = tpu.matmul %47, %49, %cst_63 {dimension_numbers = #tpu.dot_dimension_numbers<[1], [0], [0], [1], [0, 0, 1, 1], [], []>} : vector<128x128xbf16>, vector<128x128xbf16>, vector<128x128xf32> -> vector<128x128xf32>
    %51 = arith.addf %44, %50 : vector<128x128xf32>
    %c0_64 = arith.constant 0 : index
    %c1_65 = arith.constant 1 : index
    %c2_66 = arith.constant 2 : index
    %c0_67 = arith.constant 0 : index
    %52 = vector.load %arg9[%c0_64, %c1_65, %c2_66, %c0_67] : memref<2x10x10x128xf32, #tpu.memory_space<vmem>>, vector<2x8x8x128xf32>
    %53 = vector.shape_cast %52 : vector<2x8x8x128xf32> to vector<128x128xf32>
    %54 = arith.truncf %53 : vector<128x128xf32> to vector<128x128xbf16>
    %c5 = arith.constant 5 : index
    %c0_68 = arith.constant 0 : index
    %c0_69 = arith.constant 0 : index
    %55 = vector.load %arg2[%c5, %c0_68, %c0_69] : memref<9x128x128xbf16, #tpu.memory_space<vmem>>, vector<1x128x128xbf16>
    %56 = vector.shape_cast %55 : vector<1x128x128xbf16> to vector<128x128xbf16>
    %cst_70 = arith.constant dense<0.000000e+00> : vector<128x128xf32>
    %57 = tpu.matmul %54, %56, %cst_70 {dimension_numbers = #tpu.dot_dimension_numbers<[1], [0], [0], [1], [0, 0, 1, 1], [], []>} : vector<128x128xbf16>, vector<128x128xbf16>, vector<128x128xf32> -> vector<128x128xf32>
    %58 = arith.addf %51, %57 : vector<128x128xf32>
    %c0_71 = arith.constant 0 : index
    %c2_72 = arith.constant 2 : index
    %c0_73 = arith.constant 0 : index
    %c0_74 = arith.constant 0 : index
    %59 = vector.load %arg9[%c0_71, %c2_72, %c0_73, %c0_74] : memref<2x10x10x128xf32, #tpu.memory_space<vmem>>, vector<2x8x8x128xf32>
    %60 = vector.shape_cast %59 : vector<2x8x8x128xf32> to vector<128x128xf32>
    %61 = arith.truncf %60 : vector<128x128xf32> to vector<128x128xbf16>
    %c6 = arith.constant 6 : index
    %c0_75 = arith.constant 0 : index
    %c0_76 = arith.constant 0 : index
    %62 = vector.load %arg2[%c6, %c0_75, %c0_76] : memref<9x128x128xbf16, #tpu.memory_space<vmem>>, vector<1x128x128xbf16>
    %63 = vector.shape_cast %62 : vector<1x128x128xbf16> to vector<128x128xbf16>
    %cst_77 = arith.constant dense<0.000000e+00> : vector<128x128xf32>
    %64 = tpu.matmul %61, %63, %cst_77 {dimension_numbers = #tpu.dot_dimension_numbers<[1], [0], [0], [1], [0, 0, 1, 1], [], []>} : vector<128x128xbf16>, vector<128x128xbf16>, vector<128x128xf32> -> vector<128x128xf32>
    %65 = arith.addf %58, %64 : vector<128x128xf32>
    %c0_78 = arith.constant 0 : index
    %c2_79 = arith.constant 2 : index
    %c1_80 = arith.constant 1 : index
    %c0_81 = arith.constant 0 : index
    %66 = vector.load %arg9[%c0_78, %c2_79, %c1_80, %c0_81] : memref<2x10x10x128xf32, #tpu.memory_space<vmem>>, vector<2x8x8x128xf32>
    %67 = vector.shape_cast %66 : vector<2x8x8x128xf32> to vector<128x128xf32>
    %68 = arith.truncf %67 : vector<128x128xf32> to vector<128x128xbf16>
    %c7 = arith.constant 7 : index
    %c0_82 = arith.constant 0 : index
    %c0_83 = arith.constant 0 : index
    %69 = vector.load %arg2[%c7, %c0_82, %c0_83] : memref<9x128x128xbf16, #tpu.memory_space<vmem>>, vector<1x128x128xbf16>
    %70 = vector.shape_cast %69 : vector<1x128x128xbf16> to vector<128x128xbf16>
    %cst_84 = arith.constant dense<0.000000e+00> : vector<128x128xf32>
    %71 = tpu.matmul %68, %70, %cst_84 {dimension_numbers = #tpu.dot_dimension_numbers<[1], [0], [0], [1], [0, 0, 1, 1], [], []>} : vector<128x128xbf16>, vector<128x128xbf16>, vector<128x128xf32> -> vector<128x128xf32>
    %72 = arith.addf %65, %71 : vector<128x128xf32>
    %c0_85 = arith.constant 0 : index
    %c2_86 = arith.constant 2 : index
    %c2_87 = arith.constant 2 : index
    %c0_88 = arith.constant 0 : index
    %73 = vector.load %arg9[%c0_85, %c2_86, %c2_87, %c0_88] : memref<2x10x10x128xf32, #tpu.memory_space<vmem>>, vector<2x8x8x128xf32>
    %74 = vector.shape_cast %73 : vector<2x8x8x128xf32> to vector<128x128xf32>
    %75 = arith.truncf %74 : vector<128x128xf32> to vector<128x128xbf16>
    %c8 = arith.constant 8 : index
    %c0_89 = arith.constant 0 : index
    %c0_90 = arith.constant 0 : index
    %76 = vector.load %arg2[%c8, %c0_89, %c0_90] : memref<9x128x128xbf16, #tpu.memory_space<vmem>>, vector<1x128x128xbf16>
    %77 = vector.shape_cast %76 : vector<1x128x128xbf16> to vector<128x128xbf16>
    %cst_91 = arith.constant dense<0.000000e+00> : vector<128x128xf32>
    %78 = tpu.matmul %75, %77, %cst_91 {dimension_numbers = #tpu.dot_dimension_numbers<[1], [0], [0], [1], [0, 0, 1, 1], [], []>} : vector<128x128xbf16>, vector<128x128xbf16>, vector<128x128xf32> -> vector<128x128xf32>
    %79 = arith.addf %72, %78 : vector<128x128xf32>
    %80 = vector.shape_cast %0 : vector<2x8x8x128xf32> to vector<128x128xf32>
    %c0_92 = arith.constant 0 : index
    %c0_93 = arith.constant 0 : index
    %81 = vector.load %arg6[%c0_92, %c0_93] : memref<1x128xf32, #tpu.memory_space<vmem>>, vector<1x128xf32>
    %82 = vector.broadcast %81 : vector<1x128xf32> to vector<128x128xf32>
    %83 = arith.mulf %79, %82 : vector<128x128xf32>
    %c0_94 = arith.constant 0 : index
    %c0_95 = arith.constant 0 : index
    %84 = vector.load %arg7[%c0_94, %c0_95] : memref<1x128xf32, #tpu.memory_space<vmem>>, vector<1x128xf32>
    %85 = vector.broadcast %84 : vector<1x128xf32> to vector<128x128xf32>
    %86 = arith.addf %83, %85 : vector<128x128xf32>
    %cst_96 = arith.constant 0.000000e+00 : f32
    %87 = vector.broadcast %cst_96 : f32 to vector<128x128xf32>
    %88 = arith.maximumf %86, %87 : vector<128x128xf32>
    %cst_97 = arith.constant 0.000000e+00 : f32
    %89 = vector.broadcast %cst_97 : f32 to vector<2x1x10x128xf32>
    %cst_98 = arith.constant 0.000000e+00 : f32
    %90 = vector.broadcast %cst_98 : f32 to vector<2x10x1x128xf32>
    %c0_99 = arith.constant 0 : index
    %c0_100 = arith.constant 0 : index
    %c0_101 = arith.constant 0 : index
    %c0_102 = arith.constant 0 : index
    %91 = vector.load %arg10[%c0_99, %c0_100, %c0_101, %c0_102] : memref<2x10x10x128xf32, #tpu.memory_space<vmem>>, vector<2x1x10x128xf32>
    tpu.vector_store %arg10[%c0_99, %c0_100, %c0_101, %c0_102], %89 {strides = array<i32>} : memref<2x10x10x128xf32, #tpu.memory_space<vmem>>, vector<2x1x10x128xf32>,
    %c0_103 = arith.constant 0 : index
    %c9_104 = arith.constant 9 : index
    %c0_105 = arith.constant 0 : index
    %c0_106 = arith.constant 0 : index
    %92 = vector.load %arg10[%c0_103, %c9_104, %c0_105, %c0_106] : memref<2x10x10x128xf32, #tpu.memory_space<vmem>>, vector<2x1x10x128xf32>
    tpu.vector_store %arg10[%c0_103, %c9_104, %c0_105, %c0_106], %89 {strides = array<i32>} : memref<2x10x10x128xf32, #tpu.memory_space<vmem>>, vector<2x1x10x128xf32>,
    %c0_107 = arith.constant 0 : index
    %c0_108 = arith.constant 0 : index
    %c0_109 = arith.constant 0 : index
    %c0_110 = arith.constant 0 : index
    %93 = vector.load %arg10[%c0_107, %c0_108, %c0_109, %c0_110] : memref<2x10x10x128xf32, #tpu.memory_space<vmem>>, vector<2x10x1x128xf32>
    tpu.vector_store %arg10[%c0_107, %c0_108, %c0_109, %c0_110], %90 {strides = array<i32>} : memref<2x10x10x128xf32, #tpu.memory_space<vmem>>, vector<2x10x1x128xf32>,
    %c0_111 = arith.constant 0 : index
    %c0_112 = arith.constant 0 : index
    %c9_113 = arith.constant 9 : index
    %c0_114 = arith.constant 0 : index
    %94 = vector.load %arg10[%c0_111, %c0_112, %c9_113, %c0_114] : memref<2x10x10x128xf32, #tpu.memory_space<vmem>>, vector<2x10x1x128xf32>
    tpu.vector_store %arg10[%c0_111, %c0_112, %c9_113, %c0_114], %90 {strides = array<i32>} : memref<2x10x10x128xf32, #tpu.memory_space<vmem>>, vector<2x10x1x128xf32>,
    %95 = vector.shape_cast %88 : vector<128x128xf32> to vector<2x8x8x128xf32>
    %c0_115 = arith.constant 0 : index
    %c1_116 = arith.constant 1 : index
    %c1_117 = arith.constant 1 : index
    %c0_118 = arith.constant 0 : index
    %96 = vector.load %arg10[%c0_115, %c1_116, %c1_117, %c0_118] : memref<2x10x10x128xf32, #tpu.memory_space<vmem>>, vector<2x8x8x128xf32>
    tpu.vector_store %arg10[%c0_115, %c1_116, %c1_117, %c0_118], %95 {strides = array<i32>} : memref<2x10x10x128xf32, #tpu.memory_space<vmem>>, vector<2x8x8x128xf32>,
    %c0_119 = arith.constant 0 : index
    %c0_120 = arith.constant 0 : index
    %c0_121 = arith.constant 0 : index
    %c0_122 = arith.constant 0 : index
    %97 = vector.load %arg10[%c0_119, %c0_120, %c0_121, %c0_122] : memref<2x10x10x128xf32, #tpu.memory_space<vmem>>, vector<2x8x8x128xf32>
    %98 = vector.shape_cast %97 : vector<2x8x8x128xf32> to vector<128x128xf32>
    %99 = arith.truncf %98 : vector<128x128xf32> to vector<128x128xbf16>
    %c0_123 = arith.constant 0 : index
    %c0_124 = arith.constant 0 : index
    %c0_125 = arith.constant 0 : index
    %100 = vector.load %arg3[%c0_123, %c0_124, %c0_125] : memref<9x128x128xbf16, #tpu.memory_space<vmem>>, vector<1x128x128xbf16>
    %101 = vector.shape_cast %100 : vector<1x128x128xbf16> to vector<128x128xbf16>
    %cst_126 = arith.constant dense<0.000000e+00> : vector<128x128xf32>
    %102 = tpu.matmul %99, %101, %cst_126 {dimension_numbers = #tpu.dot_dimension_numbers<[1], [0], [0], [1], [0, 0, 1, 1], [], []>} : vector<128x128xbf16>, vector<128x128xbf16>, vector<128x128xf32> -> vector<128x128xf32>
    %103 = arith.addf %80, %102 : vector<128x128xf32>
    %c0_127 = arith.constant 0 : index
    %c0_128 = arith.constant 0 : index
    %c1_129 = arith.constant 1 : index
    %c0_130 = arith.constant 0 : index
    %104 = vector.load %arg10[%c0_127, %c0_128, %c1_129, %c0_130] : memref<2x10x10x128xf32, #tpu.memory_space<vmem>>, vector<2x8x8x128xf32>
    %105 = vector.shape_cast %104 : vector<2x8x8x128xf32> to vector<128x128xf32>
    %106 = arith.truncf %105 : vector<128x128xf32> to vector<128x128xbf16>
    %c1_131 = arith.constant 1 : index
    %c0_132 = arith.constant 0 : index
    %c0_133 = arith.constant 0 : index
    %107 = vector.load %arg3[%c1_131, %c0_132, %c0_133] : memref<9x128x128xbf16, #tpu.memory_space<vmem>>, vector<1x128x128xbf16>
    %108 = vector.shape_cast %107 : vector<1x128x128xbf16> to vector<128x128xbf16>
    %cst_134 = arith.constant dense<0.000000e+00> : vector<128x128xf32>
    %109 = tpu.matmul %106, %108, %cst_134 {dimension_numbers = #tpu.dot_dimension_numbers<[1], [0], [0], [1], [0, 0, 1, 1], [], []>} : vector<128x128xbf16>, vector<128x128xbf16>, vector<128x128xf32> -> vector<128x128xf32>
    %110 = arith.addf %103, %109 : vector<128x128xf32>
    %c0_135 = arith.constant 0 : index
    %c0_136 = arith.constant 0 : index
    %c2_137 = arith.constant 2 : index
    %c0_138 = arith.constant 0 : index
    %111 = vector.load %arg10[%c0_135, %c0_136, %c2_137, %c0_138] : memref<2x10x10x128xf32, #tpu.memory_space<vmem>>, vector<2x8x8x128xf32>
    %112 = vector.shape_cast %111 : vector<2x8x8x128xf32> to vector<128x128xf32>
    %113 = arith.truncf %112 : vector<128x128xf32> to vector<128x128xbf16>
    %c2_139 = arith.constant 2 : index
    %c0_140 = arith.constant 0 : index
    %c0_141 = arith.constant 0 : index
    %114 = vector.load %arg3[%c2_139, %c0_140, %c0_141] : memref<9x128x128xbf16, #tpu.memory_space<vmem>>, vector<1x128x128xbf16>
    %115 = vector.shape_cast %114 : vector<1x128x128xbf16> to vector<128x128xbf16>
    %cst_142 = arith.constant dense<0.000000e+00> : vector<128x128xf32>
    %116 = tpu.matmul %113, %115, %cst_142 {dimension_numbers = #tpu.dot_dimension_numbers<[1], [0], [0], [1], [0, 0, 1, 1], [], []>} : vector<128x128xbf16>, vector<128x128xbf16>, vector<128x128xf32> -> vector<128x128xf32>
    %117 = arith.addf %110, %116 : vector<128x128xf32>
    %c0_143 = arith.constant 0 : index
    %c1_144 = arith.constant 1 : index
    %c0_145 = arith.constant 0 : index
    %c0_146 = arith.constant 0 : index
    %118 = vector.load %arg10[%c0_143, %c1_144, %c0_145, %c0_146] : memref<2x10x10x128xf32, #tpu.memory_space<vmem>>, vector<2x8x8x128xf32>
    %119 = vector.shape_cast %118 : vector<2x8x8x128xf32> to vector<128x128xf32>
    %120 = arith.truncf %119 : vector<128x128xf32> to vector<128x128xbf16>
    %c3_147 = arith.constant 3 : index
    %c0_148 = arith.constant 0 : index
    %c0_149 = arith.constant 0 : index
    %121 = vector.load %arg3[%c3_147, %c0_148, %c0_149] : memref<9x128x128xbf16, #tpu.memory_space<vmem>>, vector<1x128x128xbf16>
    %122 = vector.shape_cast %121 : vector<1x128x128xbf16> to vector<128x128xbf16>
    %cst_150 = arith.constant dense<0.000000e+00> : vector<128x128xf32>
    %123 = tpu.matmul %120, %122, %cst_150 {dimension_numbers = #tpu.dot_dimension_numbers<[1], [0], [0], [1], [0, 0, 1, 1], [], []>} : vector<128x128xbf16>, vector<128x128xbf16>, vector<128x128xf32> -> vector<128x128xf32>
    %124 = arith.addf %117, %123 : vector<128x128xf32>
    %c0_151 = arith.constant 0 : index
    %c1_152 = arith.constant 1 : index
    %c1_153 = arith.constant 1 : index
    %c0_154 = arith.constant 0 : index
    %125 = vector.load %arg10[%c0_151, %c1_152, %c1_153, %c0_154] : memref<2x10x10x128xf32, #tpu.memory_space<vmem>>, vector<2x8x8x128xf32>
    %126 = vector.shape_cast %125 : vector<2x8x8x128xf32> to vector<128x128xf32>
    %127 = arith.truncf %126 : vector<128x128xf32> to vector<128x128xbf16>
    %c4_155 = arith.constant 4 : index
    %c0_156 = arith.constant 0 : index
    %c0_157 = arith.constant 0 : index
    %128 = vector.load %arg3[%c4_155, %c0_156, %c0_157] : memref<9x128x128xbf16, #tpu.memory_space<vmem>>, vector<1x128x128xbf16>
    %129 = vector.shape_cast %128 : vector<1x128x128xbf16> to vector<128x128xbf16>
    %cst_158 = arith.constant dense<0.000000e+00> : vector<128x128xf32>
    %130 = tpu.matmul %127, %129, %cst_158 {dimension_numbers = #tpu.dot_dimension_numbers<[1], [0], [0], [1], [0, 0, 1, 1], [], []>} : vector<128x128xbf16>, vector<128x128xbf16>, vector<128x128xf32> -> vector<128x128xf32>
    %131 = arith.addf %124, %130 : vector<128x128xf32>
    %c0_159 = arith.constant 0 : index
    %c1_160 = arith.constant 1 : index
    %c2_161 = arith.constant 2 : index
    %c0_162 = arith.constant 0 : index
    %132 = vector.load %arg10[%c0_159, %c1_160, %c2_161, %c0_162] : memref<2x10x10x128xf32, #tpu.memory_space<vmem>>, vector<2x8x8x128xf32>
    %133 = vector.shape_cast %132 : vector<2x8x8x128xf32> to vector<128x128xf32>
    %134 = arith.truncf %133 : vector<128x128xf32> to vector<128x128xbf16>
    %c5_163 = arith.constant 5 : index
    %c0_164 = arith.constant 0 : index
    %c0_165 = arith.constant 0 : index
    %135 = vector.load %arg3[%c5_163, %c0_164, %c0_165] : memref<9x128x128xbf16, #tpu.memory_space<vmem>>, vector<1x128x128xbf16>
    %136 = vector.shape_cast %135 : vector<1x128x128xbf16> to vector<128x128xbf16>
    %cst_166 = arith.constant dense<0.000000e+00> : vector<128x128xf32>
    %137 = tpu.matmul %134, %136, %cst_166 {dimension_numbers = #tpu.dot_dimension_numbers<[1], [0], [0], [1], [0, 0, 1, 1], [], []>} : vector<128x128xbf16>, vector<128x128xbf16>, vector<128x128xf32> -> vector<128x128xf32>
    %138 = arith.addf %131, %137 : vector<128x128xf32>
    %c0_167 = arith.constant 0 : index
    %c2_168 = arith.constant 2 : index
    %c0_169 = arith.constant 0 : index
    %c0_170 = arith.constant 0 : index
    %139 = vector.load %arg10[%c0_167, %c2_168, %c0_169, %c0_170] : memref<2x10x10x128xf32, #tpu.memory_space<vmem>>, vector<2x8x8x128xf32>
    %140 = vector.shape_cast %139 : vector<2x8x8x128xf32> to vector<128x128xf32>
    %141 = arith.truncf %140 : vector<128x128xf32> to vector<128x128xbf16>
    %c6_171 = arith.constant 6 : index
    %c0_172 = arith.constant 0 : index
    %c0_173 = arith.constant 0 : index
    %142 = vector.load %arg3[%c6_171, %c0_172, %c0_173] : memref<9x128x128xbf16, #tpu.memory_space<vmem>>, vector<1x128x128xbf16>
    %143 = vector.shape_cast %142 : vector<1x128x128xbf16> to vector<128x128xbf16>
    %cst_174 = arith.constant dense<0.000000e+00> : vector<128x128xf32>
    %144 = tpu.matmul %141, %143, %cst_174 {dimension_numbers = #tpu.dot_dimension_numbers<[1], [0], [0], [1], [0, 0, 1, 1], [], []>} : vector<128x128xbf16>, vector<128x128xbf16>, vector<128x128xf32> -> vector<128x128xf32>
    %145 = arith.addf %138, %144 : vector<128x128xf32>
    %c0_175 = arith.constant 0 : index
    %c2_176 = arith.constant 2 : index
    %c1_177 = arith.constant 1 : index
    %c0_178 = arith.constant 0 : index
    %146 = vector.load %arg10[%c0_175, %c2_176, %c1_177, %c0_178] : memref<2x10x10x128xf32, #tpu.memory_space<vmem>>, vector<2x8x8x128xf32>
    %147 = vector.shape_cast %146 : vector<2x8x8x128xf32> to vector<128x128xf32>
    %148 = arith.truncf %147 : vector<128x128xf32> to vector<128x128xbf16>
    %c7_179 = arith.constant 7 : index
    %c0_180 = arith.constant 0 : index
    %c0_181 = arith.constant 0 : index
    %149 = vector.load %arg3[%c7_179, %c0_180, %c0_181] : memref<9x128x128xbf16, #tpu.memory_space<vmem>>, vector<1x128x128xbf16>
    %150 = vector.shape_cast %149 : vector<1x128x128xbf16> to vector<128x128xbf16>
    %cst_182 = arith.constant dense<0.000000e+00> : vector<128x128xf32>
    %151 = tpu.matmul %148, %150, %cst_182 {dimension_numbers = #tpu.dot_dimension_numbers<[1], [0], [0], [1], [0, 0, 1, 1], [], []>} : vector<128x128xbf16>, vector<128x128xbf16>, vector<128x128xf32> -> vector<128x128xf32>
    %152 = arith.addf %145, %151 : vector<128x128xf32>
    %c0_183 = arith.constant 0 : index
    %c2_184 = arith.constant 2 : index
    %c2_185 = arith.constant 2 : index
    %c0_186 = arith.constant 0 : index
    %153 = vector.load %arg10[%c0_183, %c2_184, %c2_185, %c0_186] : memref<2x10x10x128xf32, #tpu.memory_space<vmem>>, vector<2x8x8x128xf32>
    %154 = vector.shape_cast %153 : vector<2x8x8x128xf32> to vector<128x128xf32>
    %155 = arith.truncf %154 : vector<128x128xf32> to vector<128x128xbf16>
    %c8_187 = arith.constant 8 : index
    %c0_188 = arith.constant 0 : index
    %c0_189 = arith.constant 0 : index
    %156 = vector.load %arg3[%c8_187, %c0_188, %c0_189] : memref<9x128x128xbf16, #tpu.memory_space<vmem>>, vector<1x128x128xbf16>
    %157 = vector.shape_cast %156 : vector<1x128x128xbf16> to vector<128x128xbf16>
    %cst_190 = arith.constant dense<0.000000e+00> : vector<128x128xf32>
    %158 = tpu.matmul %155, %157, %cst_190 {dimension_numbers = #tpu.dot_dimension_numbers<[1], [0], [0], [1], [0, 0, 1, 1], [], []>} : vector<128x128xbf16>, vector<128x128xbf16>, vector<128x128xf32> -> vector<128x128xf32>
    %159 = arith.addf %152, %158 : vector<128x128xf32>
    %160 = vector.shape_cast %159 : vector<128x128xf32> to vector<2x8x8x128xf32>
    %c0_191 = arith.constant 0 : index
    %c0_192 = arith.constant 0 : index
    %c0_193 = arith.constant 0 : index
    %c0_194 = arith.constant 0 : index
    %161 = vector.load %arg8[%c0_191, %c0_192, %c0_193, %c0_194] : memref<2x8x8x128xf32, #tpu.memory_space<vmem>>, vector<2x8x8x128xf32>
    tpu.vector_store %arg8[%c0_191, %c0_192, %c0_193, %c0_194], %160 {strides = array<i32>} : memref<2x8x8x128xf32, #tpu.memory_space<vmem>>, vector<2x8x8x128xf32>,
    return
  }
  func.func @transform_0(%arg0: i32) -> (i32, i32, i32, i32) {
    %c0_i32 = arith.constant 0 : i32
    %c0_i32_0 = arith.constant 0 : i32
    %c0_i32_1 = arith.constant 0 : i32
    %c0_i32_2 = arith.constant 0 : i32
    return %arg0, %c0_i32, %c0_i32_0, %c0_i32_1 : i32, i32, i32, i32
  }
  func.func @transform_1(%arg0: i32) -> (i32, i32, i32) {
    %c0_i32 = arith.constant 0 : i32
    %c0_i32_0 = arith.constant 0 : i32
    %c0_i32_1 = arith.constant 0 : i32
    %c0_i32_2 = arith.constant 0 : i32
    return %c0_i32, %c0_i32_0, %c0_i32_1 : i32, i32, i32
  }
  func.func @transform_2(%arg0: i32) -> (i32, i32, i32) {
    %c0_i32 = arith.constant 0 : i32
    %c0_i32_0 = arith.constant 0 : i32
    %c0_i32_1 = arith.constant 0 : i32
    %c0_i32_2 = arith.constant 0 : i32
    return %c0_i32, %c0_i32_0, %c0_i32_1 : i32, i32, i32
  }
  func.func @transform_3(%arg0: i32) -> (i32, i32) {
    %c0_i32 = arith.constant 0 : i32
    %c0_i32_0 = arith.constant 0 : i32
    %c0_i32_1 = arith.constant 0 : i32
    return %c0_i32, %c0_i32_0 : i32, i32
  }
  func.func @transform_4(%arg0: i32) -> (i32, i32) {
    %c0_i32 = arith.constant 0 : i32
    %c0_i32_0 = arith.constant 0 : i32
    %c0_i32_1 = arith.constant 0 : i32
    return %c0_i32, %c0_i32_0 : i32, i32
  }
  func.func @transform_5(%arg0: i32) -> (i32, i32) {
    %c0_i32 = arith.constant 0 : i32
    %c0_i32_0 = arith.constant 0 : i32
    %c0_i32_1 = arith.constant 0 : i32
    return %c0_i32, %c0_i32_0 : i32, i32
  }
  func.func @transform_6(%arg0: i32) -> (i32, i32) {
    %c0_i32 = arith.constant 0 : i32
    %c0_i32_0 = arith.constant 0 : i32
    %c0_i32_1 = arith.constant 0 : i32
    return %c0_i32, %c0_i32_0 : i32, i32
  }
  func.func @transform_7(%arg0: i32) -> (i32, i32, i32, i32) {
    %c0_i32 = arith.constant 0 : i32
    %c0_i32_0 = arith.constant 0 : i32
    %c0_i32_1 = arith.constant 0 : i32
    %c0_i32_2 = arith.constant 0 : i32
    return %arg0, %c0_i32, %c0_i32_0, %c0_i32_1 : i32, i32, i32, i32
  }
}

</mosaic_0001>

<bundles_post_ra>
// kernel: _lambda_.3
= control target key start
LH: loop header
LB: loop body
LE: loop exit
PB: predicated region body
PF: predicated region fallthrough
CT: control target
= control target key end

     0   :  { %v5665_v2 = vmov 0.0   ;;  %s7060_s0 = inlined_call_operand.vmem [shape: f32[2,8,8,128], index: 0, kind: input, shape index: {}]   ;;  %s7061_s1 = inlined_call_operand.vmem [shape: bf16[9,128,128], index: 1, kind: input, shape index: {}]   ;;  %s7062_s2 = inlined_call_operand.vmem [shape: bf16[9,128,128], index: 2, kind: input, shape index: {}]   ;;  %s7063_s3 = inlined_call_operand.vmem [shape: f32[1,128], index: 3, kind: input, shape index: {}]   ;;  %s7064_s4 = inlined_call_operand.vmem [shape: f32[1,128], index: 4, kind: input, shape index: {}]   ;;  %s7065_s5 = inlined_call_operand.vmem [shape: f32[1,128], index: 5, kind: input, shape index: {}]   ;;  %s7066_s6 = inlined_call_operand.vmem [shape: f32[1,128], index: 6, kind: input, shape index: {}]   ;;  %s7067_s7 = inlined_call_operand.hbm [shape: f32[2,8,8,128], index: 7, kind: output, shape index: {}]  }
   0x1   :  { %v5712_v0 = vld [vmem:[%s7061_s1 + $0x40] sm:$0xff]   ;;  %v5717_v1 = vld [vmem:[%s7061_s1 + $0x48] sm:$0xff]   ;;  %106 = vst [vmem:[#allocation2] sm:$0xff] %v5665_v2  ;;  %107 = vst [vmem:[#allocation2 + $0x8] sm:$0x3] %v5665_v2 }
   0x2   :  { %108 = vst [vmem:[#allocation2 + $0xa0] sm:$0xff] %v5665_v2  ;;  %109 = vst [vmem:[#allocation2 + $0xa8] sm:$0x3] %v5665_v2  ;;  %4628 = vmatprep.subr.bf16.mxu0 %v5712_v0  ;;  %v5482_v3 = vld [vmem:[%s7061_s1 + $0x50] sm:$0xff]   ;;  %v5483_v4 = vld [vmem:[%s7061_s1 + $0x58] sm:$0xff]  }
   0x3   :  { %111 = vst [vmem:[#allocation2 + $0x90] sm:$0xff] %v5665_v2  ;;  %112 = vst [vmem:[#allocation2 + $0x98] sm:$0x3] %v5665_v2  ;;  %4629 = vmatpush3.bf16.msra.mxu0 %v5712_v0  ;;  %v28_v5 = vld [vmem:[%s7060_s0] sm:$0xff]  ;;  %v29_v9 = vld [vmem:[%s7060_s0 + $0x8] sm:$0xff] }
   0x4   :  { %113 = vst [vmem:[#allocation2 + $0x130] sm:$0xff] %v5665_v2  ;;  %114 = vst [vmem:[#allocation2 + $0x138] sm:$0x3] %v5665_v2  ;;  %4630 = vmatprep.subr.bf16.mxu0 %v5717_v1  ;;  %v5831_v6 = vld [vmem:[%s7063_s3] ss:$0 sm:$0xff]  ;;  %v30_v10 = vld [vmem:[%s7060_s0 + $0x10] sm:$0xff] }
   0x5   :  { %116 = vst [vmem:[#allocation2 + $0x10] sm:$0x1] %v5665_v2  ;;  %117 = vst [vmem:[#allocation2 + $0x20] sm:$0x1] %v5665_v2  ;;  %v5836_v7 = vld [vmem:[%s7064_s4] ss:$0 sm:$0xff]  ;;  %v52_v8 = vmul.f32 %v5831_v6, %v28_v5  ;;  %v53_v12 = vmul.f32 %v5831_v6, %v29_v9  ;;  %v54_v13 = vmul.f32 %v5831_v6, %v30_v10 }
   0x6   :  { %118 = vst [vmem:[#allocation2 + $0x30] sm:$0x1] %v5665_v2  ;;  %119 = vst [vmem:[#allocation2 + $0x40] sm:$0x1] %v5665_v2  ;;  %v5484_v11 = vld [vmem:[%s7061_s1 + $0x60] sm:$0xff]   ;;  %v31_v18 = vld [vmem:[%s7060_s0 + $0x18] sm:$0xff] }
   0x7   :  { %120 = vst [vmem:[#allocation2 + $0x50] sm:$0x1] %v5665_v2  ;;  %121 = vst [vmem:[#allocation2 + $0x60] sm:$0x1] %v5665_v2  ;;  %4631 = vmatpush3.bf16.msra.mxu0 %v5717_v1  ;;  %v74_v14 = vadd.f32 %v5836_v7, %v52_v8  ;;  %v75_v16 = vadd.f32 %v5836_v7, %v53_v12  ;;  %v76_v17 = vadd.f32 %v5836_v7, %v54_v13  ;;  %v32_v19 = vld [vmem:[%s7060_s0 + $0x20] sm:$0xff]  ;;  %v33_v20 = vld [vmem:[%s7060_s0 + $0x28] sm:$0xff] }
   0x8   :  { %122 = vst [vmem:[#allocation2 + $0x70] sm:$0x1] %v5665_v2  ;;  %123 = vst [vmem:[#allocation2 + $0x80] sm:$0x1] %v5665_v2  ;;  %4632 = vmatprep.subr.bf16.mxu0 %v5482_v3  ;;  %v212_v15 = vld [vmem:[#allocation2 + $0x1] sm:$0xff]  ;;  %v55_v22 = vmul.f32 %v5831_v6, %v31_v18  ;;  %v56_v23 = vmul.f32 %v5831_v6, %v32_v19  ;;  %v34_v24 = vld [vmem:[%s7060_s0 + $0x30] sm:$0xff]  ;;  %v57_v25 = vmul.f32 %v5831_v6, %v33_v20 }
   0x9   :  { %126 = vst [vmem:[#allocation2 + $0xb0] sm:$0x1] %v5665_v2  ;;  %127 = vst [vmem:[#allocation2 + $0xc0] sm:$0x1] %v5665_v2  ;;  %v5862_v21 = vmax.f32 %v74_v14, 0.0  ;;  %v5870_v26 = vmax.f32 %v75_v16, 0.0  ;;  %v58_v28 = vmul.f32 %v5831_v6, %v34_v24 }
   0xa   :  { %128 = vst [vmem:[#allocation2 + $0xd0] sm:$0x1] %v5665_v2  ;;  %129 = vst [vmem:[#allocation2 + $0xe0] sm:$0x1] %v5665_v2  ;;  %v5872_v27 = vmax.f32 %v76_v17, 0.0  ;;  %v5485_v29 = vld [vmem:[%s7061_s1 + $0x68] sm:$0xff]   ;;  %v77_v31 = vadd.f32 %v5836_v7, %v55_v22  ;;  %v78_v32 = vadd.f32 %v5836_v7, %v56_v23  ;;  %v79_v33 = vadd.f32 %v5836_v7, %v57_v25 }
   0xb   :  { %130 = vst [vmem:[#allocation2 + $0xf0] sm:$0x1] %v5665_v2  ;;  %131 = vst [vmem:[#allocation2 + $0x100] sm:$0x1] %v5665_v2  ;;  %4633 = vmatpush3.bf16.msra.mxu0 %v5482_v3  ;;  %v228_v30 = vpack.c.bf16 %v5862_v21, %v212_v15  ;;  %v36_v34 = vld [vmem:[%s7060_s0 + $0x40] sm:$0xff]  ;;  %v5889_v35 = vadd.f32 %v5836_v7, %v58_v28  ;;  %v37_v37 = vld [vmem:[%s7060_s0 + $0x48] sm:$0xff]  ;;  %v963_v10 = vpack.c.bf16 %v5870_v26, %v5862_v21 }
   0xc   :  { %132 = vst [vmem:[#allocation2 + $0x110] sm:$0x1] %v5665_v2  ;;  %133 = vst [vmem:[#allocation2 + $0x120] sm:$0x1] %v5665_v2  ;;  %4634 = vmatprep.subr.bf16.mxu0 %v5483_v4  ;;  %v60_v36 = vmul.f32 %v5831_v6, %v36_v34  ;;  %v38_v38 = vld [vmem:[%s7060_s0 + $0x50] sm:$0xff]  ;;  %v5898_v39 = vmax.f32 %v77_v31, 0.0  ;;  %v61_v42 = vmul.f32 %v5831_v6, %v37_v37 }
   0xd   :  { %136 = vst [vmem:[#allocation2 + $0x19] sm:$0x1] %v5665_v2  ;;  %137 = vst [vmem:[#allocation2 + $0x29] sm:$0x1] %v5665_v2  ;;  %4644 = vmatprep.mubr.bf16.mxu0 %v228_v30  ;;  %v5900_v40 = vmax.f32 %v78_v32, 0.0  ;;  %v5902_v41 = vmax.f32 %v79_v33, 0.0  ;;  %v62_v46 = vmul.f32 %v5831_v6, %v38_v38  ;;  %v229_v8 = vpack.c.bf16 %v5872_v27, %v5870_v26 }
   0xe   :  { %138 = vst [vmem:[#allocation2 + $0x39] sm:$0x1] %v5665_v2  ;;  %139 = vst [vmem:[#allocation2 + $0x49] sm:$0x1] %v5665_v2  ;;  %v5486_v43 = vld [vmem:[%s7061_s1 + $0x70] sm:$0xff]   ;;  %v96_v44 = vmax.f32 %v5889_v35, 0.0  ;;  %v82_v45 = vadd.f32 %v5836_v7, %v60_v36  ;;  %v83_v47 = vadd.f32 %v5836_v7, %v61_v42 }
   0xf   :  { %140 = vst [vmem:[#allocation2 + $0x59] sm:$0x1] %v5665_v2  ;;  %141 = vst [vmem:[#allocation2 + $0x69] sm:$0x1] %v5665_v2  ;;  %4635 = vmatpush3.bf16.msra.mxu0 %v5483_v4  ;;  %v39_v48 = vld [vmem:[%s7060_s0 + $0x58] sm:$0xff]  ;;  %v40_v49 = vld [vmem:[%s7060_s0 + $0x60] sm:$0xff]  ;;  %v84_v52 = vadd.f32 %v5836_v7, %v62_v46  ;;  %v230_v9 = vpack.c.bf16 %v5900_v40, %v5898_v39 }
  0x10   :  { %142 = vst [vmem:[#allocation2 + $0x79] sm:$0x1] %v5665_v2  ;;  %143 = vst [vmem:[#allocation2 + $0x89] sm:$0x1] %v5665_v2  ;;  %4636 = vmatprep.subr.bf16.mxu0 %v5484_v11  ;;  %v41_v50 = vld [vmem:[%s7060_s0 + $0x68] sm:$0xff]  ;;  %v5924_v51 = vmax.f32 %v82_v45, 0.0  ;;  %v63_v53 = vmul.f32 %v5831_v6, %v39_v48  ;;  %v64_v56 = vmul.f32 %v5831_v6, %v40_v49 }
  0x11   :  { %146 = vst [vmem:[#allocation2 + $0xb9] sm:$0x1] %v5665_v2  ;;  %147 = vst [vmem:[#allocation2 + $0xc9] sm:$0x1] %v5665_v2  ;;  %v42_v54 = vld [vmem:[%s7060_s0 + $0x70] sm:$0xff]  ;;  %v5931_v55 = vmax.f32 %v83_v47, 0.0  ;;  %v65_v57 = vmul.f32 %v5831_v6, %v41_v50  ;;  %v231_v15 = vpack.c.bf16 %v96_v44, %v5902_v41 }
  0x12   :  { %148 = vst [vmem:[#allocation2 + $0xd9] sm:$0x1] %v5665_v2  ;;  %149 = vst [vmem:[#allocation2 + $0xe9] sm:$0x1] %v5665_v2  ;;  %v66_v58 = vmul.f32 %v5831_v6, %v42_v54  ;;  %v5937_v59 = vmax.f32 %v84_v52, 0.0  ;;  %v85_v60 = vadd.f32 %v5836_v7, %v63_v53  ;;  %v86_v61 = vadd.f32 %v5836_v7, %v64_v56  ;;  %v5487_v0 = vld [vmem:[%s7061_s1 + $0x78] sm:$0xff]  }
  0x13   :  { %150 = vst [vmem:[#allocation2 + $0xf9] sm:$0x1] %v5665_v2  ;;  %151 = vst [vmem:[#allocation2 + $0x109] sm:$0x1] %v5665_v2  ;;  %4637 = vmatpush3.bf16.msra.mxu0 %v5484_v11  ;;  %v87_v62 = vadd.f32 %v5836_v7, %v65_v57  ;;  %v5488_v5 = vld [vmem:[%s7061_s1] sm:$0xff]   ;;  %v964_v11 = vpack.c.bf16 %v5898_v39, %v5872_v27  ;;  %v5489_v12 = vld [vmem:[%s7061_s1 + $0x8] sm:$0xff]  }
  0x14   :  { %152 = vst [vmem:[#allocation2 + $0x119] sm:$0x1] %v5665_v2  ;;  %153 = vst [vmem:[#allocation2 + $0x129] sm:$0x1] %v5665_v2  ;;  %4638 = vmatprep.subr.bf16.mxu0 %v5485_v29  ;;  %v88_v63 = vadd.f32 %v5836_v7, %v66_v58  ;;  %v5948_v1 = vmax.f32 %v85_v60, 0.0  ;;  %v5490_v13 = vld [vmem:[%s7061_s1 + $0x10] sm:$0xff]   ;;  %v233_v20 = vpack.c.bf16 %v5937_v59, %v5931_v55 }
  0x15   :  { %2020 = vst [vmem:[#allocation3] sm:$0xff] %v5665_v2  ;;  %2021 = vst [vmem:[#allocation3 + $0x8] sm:$0x3] %v5665_v2  ;;  %v5952_v3 = vmax.f32 %v87_v62, 0.0  ;;  %v220_v14 = vld [vmem:[#allocation2 + $0xa1] sm:$0xff]  ;;  %v5491_v18 = vld [vmem:[%s7061_s1 + $0x18] sm:$0xff]  }
  0x16   :  { %2022 = vst [vmem:[#allocation3 + $0xa0] sm:$0xff] %v5665_v2  ;;  %2023 = vst [vmem:[#allocation3 + $0xa8] sm:$0x3] %v5665_v2  ;;  %v5954_v4 = vmax.f32 %v88_v63, 0.0  ;;  %v232_v16 = vpack.c.bf16 %v5924_v51, %v220_v14  ;;  %v5492_v19 = vld [vmem:[%s7061_s1 + $0x20] sm:$0xff]   ;;  %v5493_v25 = vld [vmem:[%s7061_s1 + $0x28] sm:$0xff]  }
  0x17   :  { %2025 = vst [vmem:[#allocation3 + $0x90] sm:$0xff] %v5665_v2  ;;  %2026 = vst [vmem:[#allocation3 + $0x98] sm:$0x3] %v5665_v2  ;;  %4639 = vmatpush3.bf16.msra.mxu0 %v5485_v29  ;;  %v5494_v28 = vld [vmem:[%s7061_s1 + $0x30] sm:$0xff]   ;;  %v35_v30 = vld [vmem:[%s7060_s0 + $0x38] sm:$0xff] }
  0x18   :  { %2027 = vst [vmem:[#allocation3 + $0x130] sm:$0xff] %v5665_v2  ;;  %2028 = vst [vmem:[#allocation3 + $0x138] sm:$0x3] %v5665_v2  ;;  %4640 = vmatprep.subr.bf16.mxu0 %v5486_v43  ;;  %v59_v32 = vmul.f32 %v5831_v6, %v35_v30  ;;  %v6012_v33 = vpack.c.bf16 %v5954_v4, %v5952_v3  ;;  %v43_v36 = vld [vmem:[%s7060_s0 + $0x78] sm:$0xff]  ;;  %v5496_v46 = vld [vmem:[%s7061_s1 + $0x80] sm:$0xff]  }
  0x19   :  { %2030 = vst [vmem:[#allocation3 + $0x10] sm:$0x1] %v5665_v2  ;;  %2031 = vst [vmem:[#allocation3 + $0x20] sm:$0x1] %v5665_v2  ;;  %v5495_v38 = vld [vmem:[%s7061_s1 + $0x38] sm:$0xff]   ;;  %v5497_v60 = vld [vmem:[%s7061_s1 + $0x88] sm:$0xff]  }
  0x1a   :  { %2032 = vst [vmem:[#allocation3 + $0x30] sm:$0x1] %v5665_v2  ;;  %2033 = vst [vmem:[#allocation3 + $0x40] sm:$0x1] %v5665_v2  ;;  %v81_v34 = vadd.f32 %v5836_v7, %v59_v32  ;;  %v5498_v63 = vld [vmem:[%s7061_s1 + $0x90] sm:$0xff]   ;;  %v5504_v14 = vld [vmem:[%s7061_s1 + $0xc0] sm:$0xff]  }
  0x1b   :  { %2034 = vst [vmem:[#allocation3 + $0x50] sm:$0x1] %v5665_v2  ;;  %2035 = vst [vmem:[#allocation3 + $0x60] sm:$0x1] %v5665_v2  ;;  %4641 = vmatpush3.bf16.msra.mxu0 %v5486_v43  ;;  %v67_v43 = vmul.f32 %v5831_v6, %v43_v36  ;;  %v5506_v36 = vld [vmem:[%s7061_s1 + $0xd0] sm:$0xff]   ;;  %v5507_v37 = vld [vmem:[%s7061_s1 + $0xd8] sm:$0xff]  }
  0x1c   :  { %2036 = vst [vmem:[#allocation3 + $0x70] sm:$0x1] %v5665_v2  ;;  %2037 = vst [vmem:[#allocation3 + $0x80] sm:$0x1] %v5665_v2  ;;  %4642 = vmatprep.subr.bf16.mxu0 %v5487_v0  ;;  %v6024_v42 = vmax.f32 %v81_v34, 0.0  ;;  %v5512_v17 = vld [vmem:[%s7061_s1 + $0x100] sm:$0xff]  }
  0x1d   :  { %2040 = vst [vmem:[#allocation3 + $0xb0] sm:$0x1] %v5665_v2  ;;  %2041 = vst [vmem:[#allocation3 + $0xc0] sm:$0x1] %v5665_v2  ;;  %v89_v48 = vadd.f32 %v5836_v7, %v67_v43  ;;  %v5501_v43 = vld [vmem:[%s7061_s1 + $0xa8] sm:$0xff]  }
  0x1e   :  { %2042 = vst [vmem:[#allocation3 + $0xd0] sm:$0x1] %v5665_v2  ;;  %2043 = vst [vmem:[#allocation3 + $0xe0] sm:$0x1] %v5665_v2 }
  0x1f   :  { %2044 = vst [vmem:[#allocation3 + $0xf0] sm:$0x1] %v5665_v2  ;;  %2045 = vst [vmem:[#allocation3 + $0x100] sm:$0x1] %v5665_v2  ;;  %4643 = vmatpush3.bf16.msra.mxu0 %v5487_v0  ;;  %v6045_v52 = vmax.f32 %v89_v48, 0.0 }
  0x20   :  { %2046 = vst [vmem:[#allocation3 + $0x110] sm:$0x1] %v5665_v2  ;;  %2047 = vst [vmem:[#allocation3 + $0x120] sm:$0x1] %v5665_v2  ;;  %4660 = vmatprep.subr.bf16.mxu0 %v5488_v5 }
  0x21   :  { %2050 = vst [vmem:[#allocation3 + $0x19] sm:$0x1] %v5665_v2  ;;  %2051 = vst [vmem:[#allocation3 + $0x29] sm:$0x1] %v5665_v2 }
  0x22   :  { %2052 = vst [vmem:[#allocation3 + $0x39] sm:$0x1] %v5665_v2  ;;  %2053 = vst [vmem:[#allocation3 + $0x49] sm:$0x1] %v5665_v2  ;;  %4645 = vmatmul.mubr.bf16.vlgmr.msra.gmra.mrb[0].mxu0 %v229_v8 }
  0x23   :  { %2054 = vst [vmem:[#allocation3 + $0x59] sm:$0x1] %v5665_v2  ;;  %2055 = vst [vmem:[#allocation3 + $0x69] sm:$0x1] %v5665_v2  ;;  %4661 = vmatpush3.bf16.msra.mxu0 %v5488_v5  ;;  %4648 = vmatprep.mubr.bf16.mxu0 %v230_v9 }
  0x24   :  { %2056 = vst [vmem:[#allocation3 + $0x79] sm:$0x1] %v5665_v2  ;;  %2057 = vst [vmem:[#allocation3 + $0x89] sm:$0x1] %v5665_v2  ;;  %4662 = vmatprep.subr.bf16.mxu0 %v5489_v12 }
  0x25   :  { %2060 = vst [vmem:[#allocation3 + $0xb9] sm:$0x1] %v5665_v2  ;;  %2061 = vst [vmem:[#allocation3 + $0xc9] sm:$0x1] %v5665_v2 }
  0x26   :  { %2062 = vst [vmem:[#allocation3 + $0xd9] sm:$0x1] %v5665_v2  ;;  %2063 = vst [vmem:[#allocation3 + $0xe9] sm:$0x1] %v5665_v2 }
  0x27   :  { %2064 = vst [vmem:[#allocation3 + $0xf9] sm:$0x1] %v5665_v2  ;;  %2065 = vst [vmem:[#allocation3 + $0x109] sm:$0x1] %v5665_v2  ;;  %4663 = vmatpush3.bf16.msra.mxu0 %v5489_v12 }
  0x28   :  { %2066 = vst [vmem:[#allocation3 + $0x119] sm:$0x1] %v5665_v2  ;;  %2067 = vst [vmem:[#allocation3 + $0x129] sm:$0x1] %v5665_v2  ;;  %4664 = vmatprep.subr.bf16.mxu0 %v5490_v13 }
  0x29   :  { %135 = vst [vmem:[#allocation2 + $0x9] sm:$0x1] %v5665_v2  ;;  %115 = vst [vmem:[#allocation2] sm:$0x1] %v5665_v2 }
  0x2a   :  { %124 = vst [vmem:[#allocation2 + $0x90] sm:$0x1] %v5665_v2  ;;  %125 = vst [vmem:[#allocation2 + $0xa0] sm:$0x1] %v5665_v2  ;;  %4649 = vmatmul.mubr.bf16.gmra.mrb[4].mxu0 %v231_v15  ;;  %v5499_v15 = vld [vmem:[%s7061_s1 + $0x98] sm:$0xff]  }
  0x2b   :  { %134 = vst [vmem:[#allocation2 + $0x130] sm:$0x1] %v5665_v2  ;;  %144 = vst [vmem:[#allocation2 + $0x99] sm:$0x1] %v5665_v2  ;;  %4665 = vmatpush3.bf16.msra.mxu0 %v5490_v13  ;;  %4652 = vmatprep.mubr.bf16.mxu0 %v232_v16 }
  0x2c   :  { %145 = vst [vmem:[#allocation2 + $0xa9] sm:$0x1] %v5665_v2  ;;  %154 = vst [vmem:[#allocation2 + $0x139] sm:$0x1] %v5665_v2  ;;  %4666 = vmatprep.subr.bf16.mxu0 %v5491_v18 }
  0x2d   :  { %2029 = vst [vmem:[#allocation3] sm:$0x1] %v5665_v2  ;;  %2038 = vst [vmem:[#allocation3 + $0x90] sm:$0x1] %v5665_v2 }
  0x2e   :  { %2039 = vst [vmem:[#allocation3 + $0xa0] sm:$0x1] %v5665_v2  ;;  %2048 = vst [vmem:[#allocation3 + $0x130] sm:$0x1] %v5665_v2 }
  0x2f   :  { %2049 = vst [vmem:[#allocation3 + $0x9] sm:$0x1] %v5665_v2  ;;  %2058 = vst [vmem:[#allocation3 + $0x99] sm:$0x1] %v5665_v2  ;;  %4667 = vmatpush3.bf16.msra.mxu0 %v5491_v18 }
  0x30   :  { %2059 = vst [vmem:[#allocation3 + $0xa9] sm:$0x1] %v5665_v2  ;;  %2068 = vst [vmem:[#allocation3 + $0x139] sm:$0x1] %v5665_v2  ;;  %v5950_v2 = vmax.f32 %v86_v61, 0.0  ;;  %4668 = vmatprep.subr.bf16.mxu0 %v5492_v19  ;;  %v172_v29 = vld [vmem:[#allocation2] sm:$0xff] }
  0x31   :  { %156 = vst [vmem:[#allocation2 + $0x11] sm:$0xff] %v5862_v21  ;;  %157 = vst [vmem:[#allocation2 + $0x21] sm:$0xff] %v5870_v26  ;;  %v180_v0 = vld [vmem:[#allocation2 + $0xa0] sm:$0xff] }
  0x32   :  { %158 = vst [vmem:[#allocation2 + $0x31] sm:$0xff] %v5872_v27  ;;  %159 = vst [vmem:[#allocation2 + $0x41] sm:$0xff] %v5898_v39  ;;  %v5991_v22 = vpack.c.bf16 %v5950_v2, %v5948_v1  ;;  %4653 = vmatmul.mubr.bf16.gmra.mrb[8].mxu0 %v233_v20 }
  0x33   :  { %160 = vst [vmem:[#allocation2 + $0x51] sm:$0xff] %v5900_v40  ;;  %161 = vst [vmem:[#allocation2 + $0x61] sm:$0xff] %v5902_v41  ;;  %4669 = vmatpush3.bf16.msra.mxu0 %v5492_v19  ;;  %v5500_v19 = vld [vmem:[%s7061_s1 + $0xa0] sm:$0xff]  }
  0x34   :  { %162 = vst [vmem:[#allocation2 + $0x71] sm:$0xff] %v96_v44  ;;  %164 = vst [vmem:[#allocation2 + $0xb1] sm:$0xff] %v5924_v51  ;;  %4656 = vmatprep.mubr.bf16.mxu0 %v5991_v22  ;;  %4670 = vmatprep.subr.bf16.mxu0 %v5493_v25 }
  0x35   :  { %165 = vst [vmem:[#allocation2 + $0xc1] sm:$0xff] %v5931_v55  ;;  %166 = vst [vmem:[#allocation2 + $0xd1] sm:$0xff] %v5937_v59 }
  0x36   :  { %167 = vst [vmem:[#allocation2 + $0xe1] sm:$0xff] %v5948_v1  ;;  %168 = vst [vmem:[#allocation2 + $0xf1] sm:$0xff] %v5950_v2 }
  0x37   :  { %169 = vst [vmem:[#allocation2 + $0x101] sm:$0xff] %v5952_v3  ;;  %170 = vst [vmem:[#allocation2 + $0x111] sm:$0xff] %v5954_v4  ;;  %4671 = vmatpush3.bf16.msra.mxu0 %v5493_v25 }
  0x38   :  { %v6007_v31 = vld [vmem:[#allocation2 + $0x10] sm:$0xff]  ;;  %4672 = vmatprep.subr.bf16.mxu0 %v5494_v28  ;;  %v6027_v44 = vld [vmem:[#allocation2 + $0x20] sm:$0xff]  ;;  %163 = vst [vmem:[#allocation2 + $0x81] sm:$0xff] %v6024_v42  ;;  %171 = vst [vmem:[#allocation2 + $0x121] sm:$0xff] %v6045_v52 }
  0x39   :  { %v188_v35 = vpack.c.bf16 %v6007_v31, %v172_v29  ;;  %v6029_v45 = vld [vmem:[#allocation2 + $0x30] sm:$0xff]  ;;  %v6035_v47 = vld [vmem:[#allocation2 + $0x40] sm:$0xff]  ;;  %v761_v23 = vpack.c.bf16 %v6027_v44, %v6007_v31 }
  0x3a   :  { %4657 = vmatmul.mubr.bf16.gmra.mrb[12].mxu0 %v6012_v33  ;;  %v6039_v49 = vld [vmem:[#allocation2 + $0x50] sm:$0xff]  ;;  %v6043_v50 = vld [vmem:[#allocation2 + $0x22] sm:$0xff]  ;;  %v6051_v54 = vpack.c.bf16 %v6029_v45, %v6027_v44 }
  0x3b   :  { %4673 = vmatpush3.bf16.msra.mxu0 %v5494_v28  ;;  %4676 = vmatprep.mubr.bf16.mxu0 %v188_v35  ;;  %v6041_v6 = vld [vmem:[#allocation2 + $0x12] sm:$0xff]  ;;  %v6053_v56 = vld [vmem:[#allocation2 + $0x42] sm:$0xff]  ;;  %v6058_v7 = vpack.c.bf16 %v6039_v49, %v6035_v47 }
  0x3c   :  { %4674 = vmatprep.subr.bf16.mxu0 %v5495_v38  ;;  %v6047_v53 = vld [vmem:[#allocation2 + $0x32] sm:$0xff]  ;;  %v6067_v61 = vld [vmem:[#allocation2 + $0x60] sm:$0xff]  ;;  %v5513_v44 = vld [vmem:[%s7061_s1 + $0x108] sm:$0xff]  }
  0x3d   :  { %v6069_v62 = vld [vmem:[#allocation2 + $0x70] sm:$0xff]  ;;  %v6080_v9 = vld [vmem:[#allocation2 + $0x62] sm:$0xff]  ;;  %v763_v31 = vpack.c.bf16 %v6067_v61, %v6039_v49  ;;  %v5515_v49 = vld [vmem:[%s7061_s1 + $0x118] sm:$0xff]  }
  0x3e   :  { %v6076_v5 = vld [vmem:[#allocation2 + $0xb0] sm:$0xff]  ;;  %v6084_v12 = vpack.c.bf16 %v6069_v62, %v6067_v61  ;;  %v6092_v16 = vld [vmem:[#allocation2 + $0xc0] sm:$0xff] }
  0x3f   :  { %4675 = vmatpush3.bf16.msra.mxu0 %v5495_v38  ;;  %v6078_v8 = vld [vmem:[#allocation2 + $0x52] sm:$0xff]  ;;  %v192_v13 = vpack.c.bf16 %v6076_v5, %v180_v0  ;;  %v6100_v20 = vld [vmem:[#allocation2 + $0xe0] sm:$0xff] }
  0x40   :  { %4692 = vmatprep.subr.bf16.mxu0 %v5496_v46  ;;  %v6094_v18 = vld [vmem:[#allocation2 + $0xd0] sm:$0xff]  ;;  %v6106_v29 = vld [vmem:[#allocation2 + $0xc2] sm:$0xff] }
  0x41   :  { %v6102_v25 = vld [vmem:[#allocation2 + $0xf0] sm:$0xff]  ;;  %v6110_v32 = vld [vmem:[#allocation2 + $0xe2] sm:$0xff]  ;;  %v6114_v34 = vpack.c.bf16 %v6094_v18, %v6092_v16 }
  0x42   :  { %4677 = vmatmul.mubr.bf16.vlgmr.msra.gmra.mrb[0].mxu0 %v6051_v54  ;;  %v6104_v28 = vld [vmem:[#allocation2 + $0xb2] sm:$0xff]  ;;  %v6118_v35 = vpack.c.bf16 %v6102_v25, %v6100_v20 }
  0x43   :  { %4693 = vmatpush3.bf16.msra.mxu0 %v5496_v46  ;;  %4680 = vmatprep.mubr.bf16.mxu0 %v6058_v7  ;;  %v6108_v30 = vld [vmem:[#allocation2 + $0xd2] sm:$0xff]  ;;  %v6127_v46 = vld [vmem:[#allocation2 + $0x100] sm:$0xff] }
  0x44   :  { %4694 = vmatprep.subr.bf16.mxu0 %v5497_v60  ;;  %v6129_v48 = vld [vmem:[#allocation2 + $0x110] sm:$0xff]  ;;  %v6186_v24 = vpack.c.bf16 %v6108_v30, %v6106_v29 }
  0x45   :  { %v6136_v0 = vld [vmem:[#allocation2 + $0xf2] sm:$0xff] }
  0x47   :  { %4695 = vmatpush3.bf16.msra.mxu0 %v5497_v60  ;;  %v5502_v60 = vld [vmem:[%s7061_s1 + $0xb0] sm:$0xff]  }
  0x48   :  { %4696 = vmatprep.subr.bf16.mxu0 %v5498_v63 }
  0x4a   :  { %4681 = vmatmul.mubr.bf16.gmra.mrb[4].mxu0 %v6084_v12 }
  0x4b   :  { %4697 = vmatpush3.bf16.msra.mxu0 %v5498_v63  ;;  %4684 = vmatprep.mubr.bf16.mxu0 %v192_v13  ;;  %v543_v63 = vld [vmem:[#allocation2 + $0x2] sm:$0xff] }
  0x4c   :  { %4698 = vmatprep.subr.bf16.mxu0 %v5499_v15  ;;  %v6138_v13 = vld [vmem:[#allocation2 + $0x102] sm:$0xff]  ;;  %v559_v38 = vpack.c.bf16 %v6041_v6, %v543_v63  ;;  %v6160_v63 = vpack.c.bf16 %v6078_v8, %v6053_v56 }
  0x4f   :  { %4699 = vmatpush3.bf16.msra.mxu0 %v5499_v15  ;;  %v6142_v15 = vpack.c.bf16 %v6129_v48, %v6127_v46 }
  0x50   :  { %4700 = vmatprep.subr.bf16.mxu0 %v5500_v19 }
  0x52   :  { %4685 = vmatmul.mubr.bf16.gmra.mrb[8].mxu0 %v6114_v34 }
  0x53   :  { %4701 = vmatpush3.bf16.msra.mxu0 %v5500_v19  ;;  %4688 = vmatprep.mubr.bf16.mxu0 %v6118_v35  ;;  %v5503_v19 = vld [vmem:[%s7061_s1 + $0xb8] sm:$0xff]  }
  0x54   :  { %4702 = vmatprep.subr.bf16.mxu0 %v5501_v43 }
  0x57   :  { %4703 = vmatpush3.bf16.msra.mxu0 %v5501_v43  ;;  %v6156_v43 = vpack.c.bf16 %v6047_v53, %v6043_v50 }
  0x58   :  { %4704 = vmatprep.subr.bf16.mxu0 %v5502_v60 }
  0x5a   :  { %4689 = vmatmul.mubr.bf16.gmra.mrb[12].mxu0 %v6142_v15 }
  0x5b   :  { %4705 = vmatpush3.bf16.msra.mxu0 %v5502_v60  ;;  %4708 = vmatprep.mubr.bf16.mxu0 %v559_v38  ;;  %v5505_v60 = vld [vmem:[%s7061_s1 + $0xc8] sm:$0xff]   ;;  %v6165_v38 = vld [vmem:[#allocation2 + $0x72] sm:$0xff] }
  0x5c   :  { %4706 = vmatprep.subr.bf16.mxu0 %v5503_v19  ;;  %v6174_v58 = vpack.c.bf16 %v6165_v38, %v6080_v9 }
  0x5f   :  { %4707 = vmatpush3.bf16.msra.mxu0 %v5503_v19  ;;  %v551_v19 = vld [vmem:[#allocation2 + $0xa2] sm:$0xff] }
  0x60   :  { %4724 = vmatprep.subr.bf16.mxu0 %v5504_v14  ;;  %v563_v57 = vpack.c.bf16 %v6104_v28, %v551_v19 }
  0x62   :  { %4709 = vmatmul.mubr.bf16.vlgmr.msra.gmra.mrb[0].mxu0 %v6156_v43 }
  0x63   :  { %4725 = vmatpush3.bf16.msra.mxu0 %v5504_v14  ;;  %4712 = vmatprep.mubr.bf16.mxu0 %v6160_v63  ;;  %v5508_v14 = vld [vmem:[%s7061_s1 + $0xe0] sm:$0xff]  }
  0x64   :  { %4726 = vmatprep.subr.bf16.mxu0 %v5505_v60 }
  0x67   :  { %4727 = vmatpush3.bf16.msra.mxu0 %v5505_v60  ;;  %v6190_v60 = vpack.c.bf16 %v6136_v0, %v6110_v32 }
  0x68   :  { %4728 = vmatprep.subr.bf16.mxu0 %v5506_v36 }
  0x6a   :  { %4713 = vmatmul.mubr.bf16.gmra.mrb[4].mxu0 %v6174_v58 }
  0x6b   :  { %4729 = vmatpush3.bf16.msra.mxu0 %v5506_v36  ;;  %4716 = vmatprep.mubr.bf16.mxu0 %v563_v57  ;;  %v5509_v36 = vld [vmem:[%s7061_s1 + $0xe8] sm:$0xff]   ;;  %v6195_v57 = vld [vmem:[#allocation2 + $0x112] sm:$0xff] }
  0x6c   :  { %4730 = vmatprep.subr.bf16.mxu0 %v5507_v37  ;;  %v6204_v19 = vpack.c.bf16 %v6195_v57, %v6138_v13 }
  0x6f   :  { %4731 = vmatpush3.bf16.msra.mxu0 %v5507_v37  ;;  %v5510_v37 = vld [vmem:[%s7061_s1 + $0xf0] sm:$0xff]  }
  0x70   :  { %4732 = vmatprep.subr.bf16.mxu0 %v5508_v14 }
  0x72   :  { %4717 = vmatmul.mubr.bf16.gmra.mrb[8].mxu0 %v6186_v24 }
  0x73   :  { %4733 = vmatpush3.bf16.msra.mxu0 %v5508_v14  ;;  %4720 = vmatprep.mubr.bf16.mxu0 %v6190_v60  ;;  %v5511_v14 = vld [vmem:[%s7061_s1 + $0xf8] sm:$0xff]  }
  0x74   :  { %4734 = vmatprep.subr.bf16.mxu0 %v5509_v36 }
  0x77   :  { %4735 = vmatpush3.bf16.msra.mxu0 %v5509_v36  ;;  %v762_v36 = vpack.c.bf16 %v6035_v47, %v6029_v45  ;;  %v765_v47 = vpack.c.bf16 %v6092_v16, %v6076_v5 }
  0x78   :  { %4736 = vmatprep.subr.bf16.mxu0 %v5510_v37 }
  0x7a   :  { %4721 = vmatmul.mubr.bf16.gmra.mrb[12].mxu0 %v6204_v19 }
  0x7b   :  { %4737 = vmatpush3.bf16.msra.mxu0 %v5510_v37  ;;  %4740 = vmatprep.mubr.bf16.mxu0 %v761_v23  ;;  %v5514_v23 = vld [vmem:[%s7061_s1 + $0x110] sm:$0xff]   ;;  %v6225_v37 = vld [vmem:[#allocation2 + $0x80] sm:$0xff] }
  0x7c   :  { %4738 = vmatprep.subr.bf16.mxu0 %v5511_v14  ;;  %v764_v45 = vpack.c.bf16 %v6225_v37, %v6069_v62 }
  0x7f   :  { %4739 = vmatpush3.bf16.msra.mxu0 %v5511_v14 }
  0x80   :  { %4756 = vmatprep.subr.bf16.mxu0 %v5512_v17 }
  0x82   :  { %4741 = vmatmul.mubr.bf16.vlgmr.msra.gmra.mrb[0].mxu0 %v762_v36 }
  0x83   :  { %4757 = vmatpush3.bf16.msra.mxu0 %v5512_v17  ;;  %4744 = vmatprep.mubr.bf16.mxu0 %v763_v31  ;;  %v5516_v17 = vld [vmem:[%s7061_s1 + $0x120] sm:$0xff]  }
  0x84   :  { %4758 = vmatprep.subr.bf16.mxu0 %v5513_v44 }
  0x87   :  { %4759 = vmatpush3.bf16.msra.mxu0 %v5513_v44 }
  0x88   :  { %4760 = vmatprep.subr.bf16.mxu0 %v5514_v23 }
  0x8a   :  { %4745 = vmatmul.mubr.bf16.gmra.mrb[4].mxu0 %v764_v45 }
  0x8b   :  { %4761 = vmatpush3.bf16.msra.mxu0 %v5514_v23  ;;  %4748 = vmatprep.mubr.bf16.mxu0 %v765_v47 }
  0x8c   :  { %4762 = vmatprep.subr.bf16.mxu0 %v5515_v49 }
  0x8d   :  { %12 = vsyncpa [#allocation5], 0  ;;  %v766_v61 = vpack.c.bf16 %v6100_v20, %v6094_v18  ;;  %v767_v62 = vpack.c.bf16 %v6127_v46, %v6102_v25  ;;  %v5517_v5 = vld [vmem:[%s7061_s1 + $0x128] sm:$0xff]   ;;  %v6244_v16 = vld [vmem:[#allocation2 + $0x120] sm:$0xff]  ;;  %v7068_v21 = vpack.c.bf16 %v5902_v41, %v5900_v40  ;;  %v7069_v39 = vpack.c.bf16 %v5931_v55, %v5924_v51  ;;  %s5666_s11 = smov [#allocation4]  }
  0x8e   :  { %v5518_v14 = vld [vmem:[%s7061_s1 + $0x130] sm:$0xff]   ;;  %v768_v18 = vpack.c.bf16 %v6244_v16, %v6129_v48  ;;  %v5519_v20 = vld [vmem:[%s7061_s1 + $0x138] sm:$0xff]   ;;  %v5520_v25 = vld [vmem:[%s7061_s1 + $0x140] sm:$0xff]   ;;  %v7071_v51 = vpack.c.bf16 %v5952_v3, %v5950_v2  ;;  %v970_v36 = vpack.c.bf16 %v6045_v52, %v5954_v4  ;;  %v7072_v3 = vpack.c.bf16 %v6043_v50, %v6041_v6 }
  0x8f   :  { %4763 = vmatpush3.bf16.msra.mxu0 %v5515_v49  ;;  %v5521_v46 = vld [vmem:[%s7061_s1 + $0x148] sm:$0xff]   ;;  %v5522_v26 = vld [vmem:[%s7061_s1 + $0x150] sm:$0xff]   ;;  %v5523_v27 = vld [vmem:[%s7061_s1 + $0x158] sm:$0xff]   ;;  %v7073_v6 = vpack.c.bf16 %v6053_v56, %v6047_v53  ;;  %v7074_v50 = vpack.c.bf16 %v6080_v9, %v6078_v8  ;;  %v7075_v56 = vpack.c.bf16 %v6106_v29, %v6104_v28  ;;  %v7077_v28 = vpack.c.bf16 %v6138_v13, %v6136_v0 }
  0x90   :  { %4764 = vmatprep.subr.bf16.mxu0 %v5516_v17  ;;  %v5524_v40 = vld [vmem:[%s7061_s1 + $0x160] sm:$0xff]   ;;  %v5525_v41 = vld [vmem:[%s7061_s1 + $0x168] sm:$0xff]   ;;  %v5526_v55 = vld [vmem:[%s7061_s1 + $0x170] sm:$0xff]  }
  0x91   :  { %v5553_v2 = vld [vmem:[%s7062_s2 + $0x8] sm:$0xff]   ;;  %v5528_v4 = vld [vmem:[%s7061_s1 + $0x180] sm:$0xff]   ;;  %v5554_v31 = vld [vmem:[%s7062_s2 + $0x10] sm:$0xff]  }
  0x92   :  { %4749 = vmatmul.mubr.bf16.gmra.mrb[8].mxu0 %v766_v61  ;;  %v5529_v44 = vld [vmem:[%s7061_s1 + $0x188] sm:$0xff]   ;;  %v5530_v45 = vld [vmem:[%s7061_s1 + $0x190] sm:$0xff]   ;;  %v5531_v53 = vld [vmem:[%s7061_s1 + $0x198] sm:$0xff]  }
  0x93   :  { %4765 = vmatpush3.bf16.msra.mxu0 %v5516_v17  ;;  %4752 = vmatprep.mubr.bf16.mxu0 %v767_v62  ;;  %v6323_v23 = vld [vmem:[#allocation2 + $0x82] sm:$0xff]  ;;  %v5534_v49 = vld [vmem:[%s7061_s1 + $0x1b0] sm:$0xff]   ;;  %v5539_v61 = vld [vmem:[%s7061_s1 + $0x1d8] sm:$0xff]  }
  0x94   :  { %4766 = vmatprep.subr.bf16.mxu0 %v5517_v5  ;;  %v1168_v47 = vpack.c.bf16 %v6323_v23, %v6165_v38  ;;  %v5532_v8 = vld [vmem:[%s7061_s1 + $0x1a0] sm:$0xff]   ;;  %v5533_v9 = vld [vmem:[%s7061_s1 + $0x1a8] sm:$0xff]   ;;  %v7076_v38 = vpack.c.bf16 %v6110_v32, %v6108_v30  ;;  %v5535_v30 = vld [vmem:[%s7061_s1 + $0x1b8] sm:$0xff]  }
  0x95   :  { %v6348_v29 = vld [vmem:[#allocation2 + $0x122] sm:$0xff]  ;;  %v1359_v13 = vld [vmem:[#allocation2 + $0x90] sm:$0xff] }
  0x96   :  { %v1172_v17 = vpack.c.bf16 %v6348_v29, %v6195_v57  ;;  %v5536_v32 = vld [vmem:[%s7061_s1 + $0x1c0] sm:$0xff]   ;;  %v5537_v0 = vld [vmem:[%s7061_s1 + $0x1c8] sm:$0xff]   ;;  %v1371_v57 = vpack.c.bf16 %v1359_v13, %v6225_v37  ;;  %v1367_v37 = vld [vmem:[#allocation2 + $0x130] sm:$0xff] }
  0x97   :  { %4767 = vmatpush3.bf16.msra.mxu0 %v5517_v5  ;;  %v1554_v62 = vld [vmem:[#allocation2 + $0x21] sm:$0xff]  ;;  %v1555_v5 = vld [vmem:[#allocation2 + $0x31] sm:$0xff] }
  0x98   :  { %4768 = vmatprep.subr.bf16.mxu0 %v5518_v14 }
  0x9a   :  { %4753 = vmatmul.mubr.bf16.gmra.mrb[12].mxu0 %v768_v18  ;;  %v1570_v18 = vpack.c.bf16 %v1555_v5, %v1554_v62 }
  0x9b   :  { %4769 = vmatpush3.bf16.msra.mxu0 %v5518_v14  ;;  %4772 = vmatprep.mubr.bf16.mxu0 %v963_v10  ;;  %v5624_v10 = vld [vmem:[#allocation2 + $0x71] sm:$0xff]  ;;  %v1375_v14 = vpack.c.bf16 %v1367_v37, %v6244_v16 }
  0x9c   :  { %4770 = vmatprep.subr.bf16.mxu0 %v5519_v20  ;;  %v966_v48 = vpack.c.bf16 %v6024_v42, %v5624_v10  ;;  %v5545_v10 = vld [vmem:[%s7061_s1 + $0x208] sm:$0xff]  }
  0x9f   :  { %4771 = vmatpush3.bf16.msra.mxu0 %v5519_v20  ;;  %v1557_v20 = vld [vmem:[#allocation2 + $0x51] sm:$0xff] }
  0xa0   :  { %4788 = vmatprep.subr.bf16.mxu0 %v5520_v25 }
  0xa2   :  { %4773 = vmatmul.mubr.bf16.vlgmr.msra.gmra.mrb[0].mxu0 %v964_v11  ;;  %v7070_v11 = vpack.c.bf16 %v5948_v1, %v5937_v59  ;;  %v5527_v59 = vld [vmem:[%s7061_s1 + $0x178] sm:$0xff]   ;;  %v5552_v1 = vld [vmem:[%s7062_s2] sm:$0xff]  }
  0xa3   :  { %4789 = vmatpush3.bf16.msra.mxu0 %v5520_v25  ;;  %4776 = vmatprep.mubr.bf16.mxu0 %v7068_v21  ;;  %v5544_v25 = vld [vmem:[%s7061_s1 + $0x200] sm:$0xff]   ;;  %v1559_v21 = vld [vmem:[#allocation2 + $0x71] sm:$0xff] }
  0xa4   :  { %4790 = vmatprep.subr.bf16.mxu0 %v5521_v46  ;;  %4916 = vmatprep.subr.bf16.mxu1 %v5552_v1 }
  0xa5   :  { %4917 = vmatpush3.bf16.msra.mxu1 %v5552_v1 }
  0xa6   :  { %4918 = vmatprep.subr.bf16.mxu1 %v5553_v2 }
  0xa7   :  { %4791 = vmatpush3.bf16.msra.mxu0 %v5521_v46  ;;  %v1558_v46 = vld [vmem:[#allocation2 + $0x61] sm:$0xff] }
  0xa8   :  { %4792 = vmatprep.subr.bf16.mxu0 %v5522_v26 }
  0xa9   :  { %4919 = vmatpush3.bf16.msra.mxu1 %v5553_v2  ;;  %v5551_v2 = vld [vmem:[%s7061_s1 + $0x238] sm:$0xff]  }
  0xaa   :  { %4777 = vmatmul.mubr.bf16.gmra.mrb[4].mxu0 %v966_v48  ;;  %4920 = vmatprep.subr.bf16.mxu1 %v5554_v31  ;;  %v1561_v48 = vld [vmem:[#allocation2 + $0x91] sm:$0xff] }
  0xab   :  { %4793 = vmatpush3.bf16.msra.mxu0 %v5522_v26  ;;  %4780 = vmatprep.mubr.bf16.mxu0 %v7069_v39  ;;  %v1572_v26 = vpack.c.bf16 %v1559_v21, %v1558_v46  ;;  %v1562_v39 = vld [vmem:[#allocation2 + $0xc1] sm:$0xff] }
  0xac   :  { %4794 = vmatprep.subr.bf16.mxu0 %v5523_v27 }
  0xad   :  { %4921 = vmatpush3.bf16.msra.mxu1 %v5554_v31 }
  0xaf   :  { %4795 = vmatpush3.bf16.msra.mxu0 %v5523_v27  ;;  %v5546_v27 = vld [vmem:[%s7061_s1 + $0x210] sm:$0xff]  }
  0xb0   :  { %4796 = vmatprep.subr.bf16.mxu0 %v5524_v40 }
  0xb2   :  { %4781 = vmatmul.mubr.bf16.gmra.mrb[8].mxu0 %v7070_v11 }
  0xb3   :  { %4797 = vmatpush3.bf16.msra.mxu0 %v5524_v40  ;;  %4784 = vmatprep.mubr.bf16.mxu0 %v7071_v51  ;;  %v1563_v40 = vld [vmem:[#allocation2 + $0xd1] sm:$0xff] }
  0xb4   :  { %4798 = vmatprep.subr.bf16.mxu0 %v5525_v41  ;;  %v1574_v11 = vpack.c.bf16 %v1563_v40, %v1562_v39  ;;  %v5547_v51 = vld [vmem:[%s7061_s1 + $0x218] sm:$0xff]  }
  0xb7   :  { %4799 = vmatpush3.bf16.msra.mxu0 %v5525_v41  ;;  %v1573_v41 = vpack.c.bf16 %v1561_v48, %v6024_v42  ;;  %v5549_v42 = vld [vmem:[%s7061_s1 + $0x228] sm:$0xff]  }
  0xb8   :  { %4800 = vmatprep.subr.bf16.mxu0 %v5526_v55 }
  0xba   :  { %4785 = vmatmul.mubr.bf16.gmra.mrb[12].mxu0 %v970_v36  ;;  %v1569_v36 = vld [vmem:[#allocation2 + $0x131] sm:$0xff] }
  0xbb   :  { %4801 = vmatpush3.bf16.msra.mxu0 %v5526_v55  ;;  %4804 = vmatprep.mubr.bf16.mxu0 %v7072_v3  ;;  %v5548_v55 = vld [vmem:[%s7061_s1 + $0x220] sm:$0xff]   ;;  %v1577_v1 = vpack.c.bf16 %v1569_v36, %v6045_v52  ;;  %v1771_v52 = vld [vmem:[#allocation2 + $0x132] sm:$0xff] }
  0xbc   :  { %4802 = vmatprep.subr.bf16.mxu0 %v5527_v59  ;;  %v1779_v3 = vpack.c.bf16 %v1771_v52, %v6348_v29  ;;  %v5561_v52 = vld [vmem:[%s7062_s2 + $0x48] sm:$0xff]  }
  0xbf   :  { %4803 = vmatpush3.bf16.msra.mxu0 %v5527_v59  ;;  %v5550_v59 = vld [vmem:[%s7061_s1 + $0x230] sm:$0xff]  }
  0xc0   :  { %4820 = vmatprep.subr.bf16.mxu0 %v5528_v4 }
  0xc2   :  { %4805 = vmatmul.mubr.bf16.vlgmr.msra.gmra.mrb[0].mxu0 %v7073_v6 }
  0xc3   :  { %4821 = vmatpush3.bf16.msra.mxu0 %v5528_v4  ;;  %4808 = vmatprep.mubr.bf16.mxu0 %v7074_v50  ;;  %v6450_v4 = vld [vmem:[%s7065_s5] ss:$0 sm:$0xff] }
  0xc4   :  { %4822 = vmatprep.subr.bf16.mxu0 %v5529_v44 }
  0xc7   :  { %4823 = vmatpush3.bf16.msra.mxu0 %v5529_v44  ;;  %v6455_v44 = vld [vmem:[%s7066_s6] ss:$0 sm:$0xff] }
  0xc8   :  { %4824 = vmatprep.subr.bf16.mxu0 %v5530_v45 }
  0xca   :  { %4809 = vmatmul.mubr.bf16.gmra.mrb[4].mxu0 %v1168_v47 }
  0xcb   :  { %4825 = vmatpush3.bf16.msra.mxu0 %v5530_v45  ;;  %4812 = vmatprep.mubr.bf16.mxu0 %v7075_v56 }
  0xcc   :  { %4826 = vmatprep.subr.bf16.mxu0 %v5531_v53 }
  0xcf   :  { %4827 = vmatpush3.bf16.msra.mxu0 %v5531_v53 }
  0xd0   :  { %4828 = vmatprep.subr.bf16.mxu0 %v5532_v8 }
  0xd2   :  { %4813 = vmatmul.mubr.bf16.gmra.mrb[8].mxu0 %v7076_v38 }
  0xd3   :  { %4829 = vmatpush3.bf16.msra.mxu0 %v5532_v8  ;;  %4816 = vmatprep.mubr.bf16.mxu0 %v7077_v28 }
  0xd4   :  { %4830 = vmatprep.subr.bf16.mxu0 %v5533_v9 }
  0xd7   :  { %4831 = vmatpush3.bf16.msra.mxu0 %v5533_v9 }
  0xd8   :  { %4832 = vmatprep.subr.bf16.mxu0 %v5534_v49 }
  0xda   :  { %4817 = vmatmul.mubr.bf16.gmra.mrb[12].mxu0 %v1172_v17 }
  0xdb   :  { %4833 = vmatpush3.bf16.msra.mxu0 %v5534_v49  ;;  %4836 = vmatprep.mubr.bf16.mxu0 %v6051_v54  ;;  %v5538_v54 = vld [vmem:[%s7061_s1 + $0x1d0] sm:$0xff]  }
  0xdc   :  { %4834 = vmatprep.subr.bf16.mxu0 %v5535_v30 }
  0xdf   :  { %4835 = vmatpush3.bf16.msra.mxu0 %v5535_v30 }
  0xe0   :  { %4852 = vmatprep.subr.bf16.mxu0 %v5536_v32 }
  0xe2   :  { %4837 = vmatmul.mubr.bf16.vlgmr.msra.gmra.mrb[0].mxu0 %v6058_v7  ;;  %v5540_v7 = vld [vmem:[%s7061_s1 + $0x1e0] sm:$0xff]  }
  0xe3   :  { %4853 = vmatpush3.bf16.msra.mxu0 %v5536_v32  ;;  %4840 = vmatprep.mubr.bf16.mxu0 %v6084_v12  ;;  %v5541_v12 = vld [vmem:[%s7061_s1 + $0x1e8] sm:$0xff]  }
  0xe4   :  { %4854 = vmatprep.subr.bf16.mxu0 %v5537_v0 }
  0xe7   :  { %4855 = vmatpush3.bf16.msra.mxu0 %v5537_v0 }
  0xe8   :  { %4856 = vmatprep.subr.bf16.mxu0 %v5538_v54 }
  0xea   :  { %4841 = vmatmul.mubr.bf16.gmra.mrb[4].mxu0 %v1371_v57 }
  0xeb   :  { %4857 = vmatpush3.bf16.msra.mxu0 %v5538_v54  ;;  %4844 = vmatprep.mubr.bf16.mxu0 %v6114_v34  ;;  %v5542_v34 = vld [vmem:[%s7061_s1 + $0x1f0] sm:$0xff]  }
  0xec   :  { %4858 = vmatprep.subr.bf16.mxu0 %v5539_v61 }
  0xef   :  { %4859 = vmatpush3.bf16.msra.mxu0 %v5539_v61 }
  0xf0   :  { %4860 = vmatprep.subr.bf16.mxu0 %v5540_v7 }
  0xf2   :  { %4845 = vmatmul.mubr.bf16.gmra.mrb[8].mxu0 %v6118_v35  ;;  %v5543_v35 = vld [vmem:[%s7061_s1 + $0x1f8] sm:$0xff]   ;;  %s3925_s1 = sshll.u32 %s5666_s11, 4  ;;  %s3926_s1 = int_to_ptr.vmem [resolvable:$true] %s3925_s1 }
  0xf3   :  { %4861 = vmatpush3.bf16.msra.mxu0 %v5540_v7  ;;  %4848 = vmatprep.mubr.bf16.mxu0 %v6142_v15  ;;  %v1556_v15 = vld [vmem:[#allocation2 + $0x41] sm:$0xff]  ;;  %s5641_s17 = scalar_lea.vmem %s3926_s1, 2048  ;;  %p5646_p1 = scmp.lt.s32.totalorder %s3926_s1, %s3926_s1 }
  0xf4   :  { %4862 = vmatprep.subr.bf16.mxu0 %v5541_v12  ;;  %v1571_v16 = vpack.c.bf16 %v1557_v20, %v1556_v15  ;;  %v2086_v15 = vld [vmem:[#allocation3] sm:$0xff]  ;;  %p5642_p0 = scmp.ne.s32.totalorder %s3926_s1, %s5641_s17  ;;  %p5647_p2 = scmp.lt.s32.totalorder %s5641_s17, %s5641_s17 }
  0xf6   :  { %p5648_p3 = por %p5647_p2, %p5646_p1 }
  0xf7   :  { %4863 = vmatpush3.bf16.msra.mxu0 %v5541_v12 }
  0xf8   :  { %4864 = vmatprep.subr.bf16.mxu0 %v5542_v34  ;;  %p5649_p4 = pnand %p5648_p3, %p5642_p0 }
  0xfa   :  { %4849 = vmatmul.mubr.bf16.gmra.mrb[12].mxu0 %v1375_v14 }
  0xfb   :  { %4865 = vmatpush3.bf16.msra.mxu0 %v5542_v34  ;;  %4868 = vmatprep.mubr.bf16.mxu0 %v1570_v18 }
  0xfc   :  { %4866 = vmatprep.subr.bf16.mxu0 %v5543_v35 }
  0xff   :  { %4867 = vmatpush3.bf16.msra.mxu0 %v5543_v35 }
 0x100   :  { %4884 = vmatprep.subr.bf16.mxu0 %v5544_v25 }
 0x102   :  { %4869 = vmatmul.mubr.bf16.vlgmr.msra.gmra.mrb[0].mxu0 %v1571_v16 }
 0x103   :  { %4885 = vmatpush3.bf16.msra.mxu0 %v5544_v25  ;;  %4872 = vmatprep.mubr.bf16.mxu0 %v1572_v26 }
 0x104   :  { %4886 = vmatprep.subr.bf16.mxu0 %v5545_v10 }
 0x107   :  { %4887 = vmatpush3.bf16.msra.mxu0 %v5545_v10 }
 0x108   :  { %4888 = vmatprep.subr.bf16.mxu0 %v5546_v27 }
 0x10a   :  { %4873 = vmatmul.mubr.bf16.gmra.mrb[4].mxu0 %v1573_v41 }
 0x10b   :  { %4889 = vmatpush3.bf16.msra.mxu0 %v5546_v27  ;;  %4876 = vmatprep.mubr.bf16.mxu0 %v1574_v11 }
 0x10c   :  { %4890 = vmatprep.subr.bf16.mxu0 %v5547_v51 }
 0x10f   :  { %4891 = vmatpush3.bf16.msra.mxu0 %v5547_v51 }
 0x110   :  { %4892 = vmatprep.subr.bf16.mxu0 %v5548_v55 }
 0x112   :  { %4877 = vmatmul.mubr.bf16.gmra.mrb[8].mxu0 %v5991_v22  ;;  %v1763_v22 = vld [vmem:[#allocation2 + $0x92] sm:$0xff] }
 0x113   :  { %4893 = vmatpush3.bf16.msra.mxu0 %v5548_v55  ;;  %4880 = vmatprep.mubr.bf16.mxu0 %v6012_v33  ;;  %v1775_v33 = vpack.c.bf16 %v1763_v22, %v6323_v23 }
 0x114   :  { %4894 = vmatprep.subr.bf16.mxu0 %v5549_v42 }
 0x117   :  { %4895 = vmatpush3.bf16.msra.mxu0 %v5549_v42 }
 0x118   :  { %4896 = vmatprep.subr.bf16.mxu0 %v5550_v59 }
 0x11a   :  { %4881 = vmatmul.mubr.bf16.gmra.mrb[12].mxu0 %v1577_v1 }
 0x11b   :  { %4897 = vmatpush3.bf16.msra.mxu0 %v5550_v59  ;;  %4900 = vmatprep.mubr.bf16.mxu0 %v6156_v43  ;;  %v5555_v43 = vld [vmem:[%s7062_s2 + $0x18] sm:$0xff]  }
 0x11c   :  { %4898 = vmatprep.subr.bf16.mxu0 %v5551_v2  ;;  %4922 = vmatprep.subr.bf16.mxu1 %v5555_v43 }
 0x11d   :  { %4923 = vmatpush3.bf16.msra.mxu1 %v5555_v43 }
 0x11f   :  { %4899 = vmatpush3.bf16.msra.mxu0 %v5551_v2 }
 0x122   :  { %4901 = vmatmul.mubr.bf16.vlgmr.msra.gmra.mrb[0].mxu0 %v6160_v63  ;;  %v5558_v63 = vld [vmem:[%s7062_s2 + $0x30] sm:$0xff]  }
 0x123   :  { %4904 = vmatprep.mubr.bf16.mxu0 %v6174_v58  ;;  %v5556_v58 = vld [vmem:[%s7062_s2 + $0x20] sm:$0xff]  }
 0x124   :  { %4924 = vmatprep.subr.bf16.mxu1 %v5556_v58 }
 0x125   :  { %4925 = vmatpush3.bf16.msra.mxu1 %v5556_v58 }
 0x12a   :  { %4905 = vmatmul.mubr.bf16.gmra.mrb[4].mxu0 %v1775_v33 }
 0x12b   :  { %4908 = vmatprep.mubr.bf16.mxu0 %v6186_v24  ;;  %v5557_v24 = vld [vmem:[%s7062_s2 + $0x28] sm:$0xff]  }
 0x12c   :  { %4926 = vmatprep.subr.bf16.mxu1 %v5557_v24 }
 0x12d   :  { %4927 = vmatpush3.bf16.msra.mxu1 %v5557_v24 }
 0x12e   :  { %4928 = vmatprep.subr.bf16.mxu1 %v5558_v63 }
 0x131   :  { %4929 = vmatpush3.bf16.msra.mxu1 %v5558_v63 }
 0x132   :  { %4909 = vmatmul.mubr.bf16.gmra.mrb[8].mxu0 %v6190_v60  ;;  %v5559_v60 = vld [vmem:[%s7062_s2 + $0x38] sm:$0xff]  }
 0x133   :  { %4912 = vmatprep.mubr.bf16.mxu0 %v6204_v19  ;;  %4930 = vmatprep.subr.bf16.mxu1 %v5559_v60  ;;  %v6444_v19 = vld [vmem:[%s7062_s2 + $0x40] sm:$0xff]  }
 0x135   :  { %4931 = vmatpush3.bf16.msra.mxu1 %v5559_v60 }
 0x136   :  { %4948 = vmatprep.subr.bf16.mxu1 %v6444_v19 }
 0x13a   :  { %4913 = vmatmul.mubr.bf16.gmra.mrb[12].mxu0 %v1779_v3 }
 0x1f5   :  { %v4902_v31 = vpop.f32.mrb[0].mxu0 }
 0x1f6   :  { %v1967_v6 = vmul.f32 %v4902_v31, %v6450_v4  ;;  %v1879_v50 = vpop.f32.mrb[1].mxu0 }
 0x1f7   :  { %v1965_v23 = vmul.f32 %v6450_v4, %v1879_v50  ;;  %v4903_v45 = vpop.f32.mrb[2].mxu0 }
 0x1f8   :  { %v1990_v47 = vadd.f32 %v6455_v44, %v1967_v6  ;;  %v1968_v53 = vmul.f32 %v4903_v45, %v6450_v4  ;;  %v1882_v56 = vpop.f32.mrb[3].mxu0 }
 0x1f9   :  { %v1988_v8 = vadd.f32 %v6455_v44, %v1965_v23  ;;  %v1966_v9 = vmul.f32 %v6450_v4, %v1882_v56  ;;  %v2287_v23 = vld [vmem:[#allocation3 + $0x1] sm:$0xff] }
 0x1fa   :  { %v6463_v38 = vmax.f32 %v1990_v47, 0.0  ;;  %v1991_v28 = vadd.f32 %v6455_v44, %v1968_v53 }
 0x1fb   :  { %v6466_v29 = vmax.f32 %v1988_v8, 0.0  ;;  %v1989_v49 = vadd.f32 %v6455_v44, %v1966_v9  ;;  %v5562_v8 = vld [vmem:[%s7062_s2 + $0x50] sm:$0xff]  }
 0x1fc   :  { %2072 = vst [vmem:[#allocation3 + $0x31] sm:$0xff] %v6463_v38  ;;  %v6470_v17 = vmax.f32 %v1991_v28, 0.0 }
 0x1fd   :  { %2070 = vst [vmem:[#allocation3 + $0x11] sm:$0xff] %v6466_v29  ;;  %v6473_v30 = vmax.f32 %v1989_v49, 0.0  ;;  %v4906_v32 = vpop.f32.mrb[4].mxu0  ;;  %v2303_v54 = vpack.c.bf16 %v6466_v29, %v2287_v23  ;;  %v2295_v23 = vld [vmem:[#allocation3 + $0xa1] sm:$0xff] }
 0x1fe   :  { %2073 = vst [vmem:[#allocation3 + $0x41] sm:$0xff] %v6470_v17  ;;  %v1971_v0 = vmul.f32 %v4906_v32, %v6450_v4  ;;  %v1895_v13 = vpop.f32.mrb[5].mxu0 }
 0x1ff   :  { %2071 = vst [vmem:[#allocation3 + $0x21] sm:$0xff] %v6473_v30  ;;  %v1969_v57 = vmul.f32 %v6450_v4, %v1895_v13  ;;  %v4907_v61 = vpop.f32.mrb[6].mxu0  ;;  %v2304_v7 = vpack.c.bf16 %v6463_v38, %v6473_v30 }
 0x200   :  { %v1994_v37 = vadd.f32 %v6455_v44, %v1971_v0  ;;  %v1972_v34 = vmul.f32 %v4907_v61, %v6450_v4  ;;  %v1898_v62 = vpop.f32.mrb[7].mxu0 }
 0x201   :  { %v1992_v5 = vadd.f32 %v6455_v44, %v1969_v57  ;;  %v1970_v14 = vmul.f32 %v6450_v4, %v1898_v62 }
 0x202   :  { %v6489_v18 = vmax.f32 %v1994_v37, 0.0  ;;  %v1995_v35 = vadd.f32 %v6455_v44, %v1972_v34 }
 0x203   :  { %v6492_v20 = vmax.f32 %v1992_v5, 0.0  ;;  %v1993_v25 = vadd.f32 %v6455_v44, %v1970_v14  ;;  %v6498_v16 = vld [vmem:[#allocation3 + $0x30] sm:$0xff] }
 0x204   :  { %2076 = vst [vmem:[#allocation3 + $0x71] sm:$0xff] %v6489_v18  ;;  %v2011_v46 = vmax.f32 %v1995_v35, 0.0  ;;  %v6496_v21 = vld [vmem:[#allocation3 + $0x10] sm:$0xff]  ;;  %v5563_v35 = vld [vmem:[%s7062_s2 + $0x58] sm:$0xff]  }
 0x205   :  { %2074 = vst [vmem:[#allocation3 + $0x51] sm:$0xff] %v6492_v20  ;;  %v6501_v26 = vmax.f32 %v1993_v25, 0.0  ;;  %v4910_v10 = vpop.f32.mrb[8].mxu0  ;;  %v2102_v48 = vpack.c.bf16 %v6496_v21, %v2086_v15  ;;  %v6504_v27 = vld [vmem:[#allocation3 + $0x40] sm:$0xff]  ;;  %v2305_v39 = vpack.c.bf16 %v6492_v20, %v6470_v17  ;;  %v6508_v40 = vld [vmem:[#allocation3 + $0x32] sm:$0xff] }
 0x206   :  { %v6510_v41 = vld [vmem:[#allocation3 + $0x42] sm:$0xff]  ;;  %2077 = vst [vmem:[#allocation3 + $0x81] sm:$0xff] %v2011_v46  ;;  %v1975_v11 = vmul.f32 %v4910_v10, %v6450_v4  ;;  %v1911_v51 = vpop.f32.mrb[9].mxu0  ;;  %v2708_v36 = vpack.c.bf16 %v6504_v27, %v6498_v16  ;;  %v6520_v59 = vpack.c.bf16 %v2011_v46, %v6489_v18  ;;  %v6537_v63 = vld [vmem:[#allocation3 + $0x12] sm:$0xff] }
 0x207   :  { %v6513_v55 = vld [vmem:[#allocation3 + $0x20] sm:$0xff]  ;;  %2075 = vst [vmem:[#allocation3 + $0x61] sm:$0xff] %v6501_v26  ;;  %v1973_v2 = vmul.f32 %v6450_v4, %v1911_v51  ;;  %v4911_v22 = vpop.f32.mrb[10].mxu0  ;;  %4932 = vmatprep.mubr.bf16.mxu1 %v2102_v48  ;;  %v2306_v3 = vpack.c.bf16 %v6489_v18, %v6501_v26  ;;  %v5574_v18 = vld [vmem:[%s7062_s2 + $0xb0] sm:$0xff]  }
 0x208   :  { %v6515_v42 = vld [vmem:[#allocation3 + $0x22] sm:$0xff]  ;;  %v6528_v33 = vpack.c.bf16 %v6498_v16, %v6513_v55  ;;  %v1998_v43 = vadd.f32 %v6455_v44, %v1975_v11  ;;  %v1976_v58 = vmul.f32 %v4911_v22, %v6450_v4  ;;  %v1914_v24 = vpop.f32.mrb[11].mxu0  ;;  %v2707_v60 = vpack.c.bf16 %v6513_v55, %v6496_v21  ;;  %v5567_v22 = vld [vmem:[%s7062_s2 + $0x78] sm:$0xff]   ;;  %v5586_v21 = vld [vmem:[%s7062_s2 + $0x110] sm:$0xff]  }
 0x209   :  { %v1996_v6 = vadd.f32 %v6455_v44, %v1973_v2  ;;  %v1974_v50 = vmul.f32 %v6450_v4, %v1914_v24  ;;  %v2094_v24 = vld [vmem:[#allocation3 + $0xa0] sm:$0xff]  ;;  %v5587_v16 = vld [vmem:[%s7062_s2 + $0x118] sm:$0xff]  }
 0x20a   :  { %4933 = vmatmul.mubr.bf16.vlgmr.msra.gmra.mrb[0].mxu1 %v6528_v33  ;;  %v6548_v45 = vmax.f32 %v1998_v43, 0.0  ;;  %v1999_v47 = vadd.f32 %v6455_v44, %v1976_v58 }
 0x20b   :  { %4949 = vmatpush3.bf16.msra.mxu1 %v6444_v19  ;;  %v6552_v53 = vmax.f32 %v1996_v6, 0.0  ;;  %v1997_v56 = vadd.f32 %v6455_v44, %v1974_v50  ;;  %v6574_v61 = vld [vmem:[#allocation3 + $0x70] sm:$0xff] }
 0x20c   :  { %4950 = vmatprep.subr.bf16.mxu1 %v5561_v52  ;;  %2080 = vst [vmem:[#allocation3 + $0xd1] sm:$0xff] %v6548_v45  ;;  %v6559_v9 = vmax.f32 %v1999_v47, 0.0  ;;  %v6561_v28 = vld [vmem:[#allocation3 + $0x50] sm:$0xff] }
 0x20d   :  { %2078 = vst [vmem:[#allocation3 + $0xb1] sm:$0xff] %v6552_v53  ;;  %v6564_v49 = vmax.f32 %v1997_v56, 0.0  ;;  %v4914_v19 = vpop.f32.mrb[12].mxu0  ;;  %v6568_v32 = vpack.c.bf16 %v6561_v28, %v6504_v27  ;;  %v6594_v48 = vld [vmem:[#allocation3 + $0x52] sm:$0xff]  ;;  %v6810_v55 = vld [vmem:[#allocation3 + $0x80] sm:$0xff] }
 0x20e   :  { %2081 = vst [vmem:[#allocation3 + $0xe1] sm:$0xff] %v6559_v9  ;;  %v1979_v0 = vmul.f32 %v4914_v19, %v6450_v4  ;;  %v1927_v13 = vpop.f32.mrb[13].mxu0  ;;  %v6572_v57 = vld [vmem:[#allocation3 + $0x60] sm:$0xff] }
 0x20f   :  { %4951 = vmatpush3.bf16.msra.mxu1 %v5561_v52  ;;  %v6576_v37 = vld [vmem:[#allocation3 + $0x62] sm:$0xff]  ;;  %2079 = vst [vmem:[#allocation3 + $0xc1] sm:$0xff] %v6564_v49  ;;  %v1977_v62 = vmul.f32 %v6450_v4, %v1927_v13  ;;  %v4915_v5 = vpop.f32.mrb[14].mxu0  ;;  %4936 = vmatprep.mubr.bf16.mxu1 %v6568_v32  ;;  %v6585_v14 = vpack.c.bf16 %v6574_v61, %v6572_v57  ;;  %v5566_v52 = vld [vmem:[%s7062_s2 + $0x70] sm:$0xff]  }
 0x210   :  { %4952 = vmatprep.subr.bf16.mxu1 %v5562_v8  ;;  %v2308_v15 = vpack.c.bf16 %v6548_v45, %v6564_v49  ;;  %v2002_v25 = vadd.f32 %v6455_v44, %v1979_v0  ;;  %v1980_v46 = vmul.f32 %v4915_v5, %v6450_v4  ;;  %v1930_v10 = vpop.f32.mrb[15].mxu0  ;;  %v2709_v11 = vpack.c.bf16 %v6572_v57, %v6561_v28  ;;  %v5588_v27 = vld [vmem:[%s7062_s2 + $0x120] sm:$0xff]  }
 0x211   :  { %v2000_v51 = vadd.f32 %v6455_v44, %v1977_v62  ;;  %v1978_v2 = vmul.f32 %v6450_v4, %v1930_v10  ;;  %v5564_v4 = vld [vmem:[%s7062_s2 + $0x60] sm:$0xff]  }
 0x212   :  { %4937 = vmatmul.mubr.bf16.gmra.mrb[4].mxu1 %v6585_v14  ;;  %v6605_v43 = vmax.f32 %v2002_v25, 0.0  ;;  %v2003_v58 = vadd.f32 %v6455_v44, %v1980_v46  ;;  %v5568_v10 = vld [vmem:[%s7062_s2 + $0x80] sm:$0xff]  }
 0x213   :  { %4953 = vmatpush3.bf16.msra.mxu1 %v5562_v8  ;;  %v6608_v6 = vmax.f32 %v2000_v51, 0.0  ;;  %v2001_v50 = vadd.f32 %v6455_v44, %v1978_v2  ;;  %v6617_v19 = vld [vmem:[#allocation3 + $0xd0] sm:$0xff] }
 0x214   :  { %4954 = vmatprep.subr.bf16.mxu1 %v5563_v35  ;;  %2084 = vst [vmem:[#allocation3 + $0x111] sm:$0xff] %v6605_v43  ;;  %v2019_v47 = vmax.f32 %v2003_v58, 0.0  ;;  %v6615_v56 = vld [vmem:[#allocation3 + $0xb0] sm:$0xff] }
 0x215   :  { %2082 = vst [vmem:[#allocation3 + $0xf1] sm:$0xff] %v6608_v6  ;;  %v6620_v8 = vmax.f32 %v2001_v50, 0.0  ;;  %v2106_v0 = vpack.c.bf16 %v6615_v56, %v2094_v24  ;;  %v6623_v13 = vld [vmem:[#allocation3 + $0xe0] sm:$0xff]  ;;  %v2309_v44 = vpack.c.bf16 %v6608_v6, %v6559_v9  ;;  %v6627_v62 = vld [vmem:[#allocation3 + $0xd2] sm:$0xff] }
 0x216   :  { %v6629_v5 = vld [vmem:[#allocation3 + $0xe2] sm:$0xff]  ;;  %2085 = vst [vmem:[#allocation3 + $0x121] sm:$0xff] %v2019_v47  ;;  %v6638_v51 = vpack.c.bf16 %v2019_v47, %v6605_v43  ;;  %v6652_v50 = vld [vmem:[#allocation3 + $0xb2] sm:$0xff]  ;;  %v7078_v28 = vpack.c.bf16 %v6623_v13, %v6617_v19 }
 0x217   :  { %4955 = vmatpush3.bf16.msra.mxu1 %v5563_v35  ;;  %v6631_v25 = vld [vmem:[#allocation3 + $0xc0] sm:$0xff]  ;;  %2083 = vst [vmem:[#allocation3 + $0x101] sm:$0xff] %v6620_v8  ;;  %4940 = vmatprep.mubr.bf16.mxu1 %v2106_v0  ;;  %v5565_v35 = vld [vmem:[%s7062_s2 + $0x68] sm:$0xff]   ;;  %v2310_v24 = vpack.c.bf16 %v6605_v43, %v6620_v8 }
 0x218   :  { %v6633_v46 = vld [vmem:[#allocation3 + $0xc2] sm:$0xff]  ;;  %v6645_v58 = vpack.c.bf16 %v6617_v19, %v6631_v25  ;;  %4956 = vmatprep.subr.bf16.mxu1 %v5564_v4  ;;  %v2711_v47 = vpack.c.bf16 %v6631_v25, %v6615_v56  ;;  %v5591_v19 = vld [vmem:[%s7062_s2 + $0x138] sm:$0xff]  }
 0x219   :  { %v5592_v25 = vld [vmem:[%s7062_s2 + $0x140] sm:$0xff]  }
 0x21a   :  { %4941 = vmatmul.mubr.bf16.gmra.mrb[8].mxu1 %v6645_v58 }
 0x21b   :  { %4957 = vmatpush3.bf16.msra.mxu1 %v5564_v4  ;;  %v6672_v34 = vld [vmem:[#allocation3 + $0x110] sm:$0xff] }
 0x21c   :  { %4958 = vmatprep.subr.bf16.mxu1 %v5565_v35  ;;  %v6664_v43 = vld [vmem:[#allocation3 + $0xf0] sm:$0xff] }
 0x21d   :  { %v6668_v1 = vpack.c.bf16 %v6664_v43, %v6623_v13  ;;  %v6684_v31 = vld [vmem:[#allocation3 + $0xf2] sm:$0xff]  ;;  %v7080_v13 = vpack.c.bf16 %v6473_v30, %v6466_v29 }
 0x21e   :  { %v6670_v0 = vld [vmem:[#allocation3 + $0x100] sm:$0xff]  ;;  %v5594_v29 = vld [vmem:[%s7062_s2 + $0x150] sm:$0xff]   ;;  %v5595_v30 = vld [vmem:[%s7062_s2 + $0x158] sm:$0xff]  }
 0x21f   :  { %4959 = vmatpush3.bf16.msra.mxu1 %v5565_v35  ;;  %v6674_v2 = vld [vmem:[#allocation3 + $0x102] sm:$0xff]  ;;  %4944 = vmatprep.mubr.bf16.mxu1 %v6668_v1  ;;  %v6679_v4 = vpack.c.bf16 %v6672_v34, %v6670_v0  ;;  %v7079_v57 = vpack.c.bf16 %v6670_v0, %v6664_v43  ;;  %v7082_v0 = vpack.c.bf16 %v6501_v26, %v6492_v20 }
 0x220   :  { %4960 = vmatprep.subr.bf16.mxu1 %v5566_v52  ;;  %v3117_v12 = vpack.c.bf16 %v6674_v2, %v6684_v31  ;;  %v5569_v35 = vld [vmem:[%s7062_s2 + $0x88] sm:$0xff]   ;;  %v7084_v26 = vpack.c.bf16 %v6559_v9, %v6548_v45  ;;  %v7086_v45 = vpack.c.bf16 %v6515_v42, %v6537_v63  ;;  %v5600_v9 = vld [vmem:[%s7062_s2 + $0x180] sm:$0xff]  }
 0x221   :  { %v5597_v20 = vld [vmem:[%s7062_s2 + $0x168] sm:$0xff]  }
 0x222   :  { %4945 = vmatmul.mubr.bf16.gmra.mrb[12].mxu1 %v6679_v4 }
 0x223   :  { %4961 = vmatpush3.bf16.msra.mxu1 %v5566_v52  ;;  %4964 = vmatprep.mubr.bf16.mxu1 %v2303_v54  ;;  %v5570_v54 = vld [vmem:[%s7062_s2 + $0x90] sm:$0xff]   ;;  %v2307_v52 = vpack.c.bf16 %v6552_v53, %v2295_v23 }
 0x224   :  { %4962 = vmatprep.subr.bf16.mxu1 %v5567_v22  ;;  %v5578_v23 = vld [vmem:[%s7062_s2 + $0xd0] sm:$0xff]  }
 0x227   :  { %4963 = vmatpush3.bf16.msra.mxu1 %v5567_v22  ;;  %v5571_v22 = vld [vmem:[%s7062_s2 + $0x98] sm:$0xff]  }
 0x228   :  { %4980 = vmatprep.subr.bf16.mxu1 %v5568_v10 }
 0x22a   :  { %4965 = vmatmul.mubr.bf16.vlgmr.msra.gmra.mrb[0].mxu1 %v2304_v7  ;;  %v5572_v7 = vld [vmem:[%s7062_s2 + $0xa0] sm:$0xff]  }
 0x22b   :  { %4968 = vmatprep.mubr.bf16.mxu1 %v2305_v39  ;;  %4981 = vmatpush3.bf16.msra.mxu1 %v5568_v10  ;;  %v5573_v39 = vld [vmem:[%s7062_s2 + $0xa8] sm:$0xff]   ;;  %v5575_v10 = vld [vmem:[%s7062_s2 + $0xb8] sm:$0xff]  }
 0x22c   :  { %4982 = vmatprep.subr.bf16.mxu1 %v5569_v35 }
 0x22f   :  { %4983 = vmatpush3.bf16.msra.mxu1 %v5569_v35 }
 0x230   :  { %4984 = vmatprep.subr.bf16.mxu1 %v5570_v54 }
 0x232   :  { %4969 = vmatmul.mubr.bf16.gmra.mrb[4].mxu1 %v2306_v3  ;;  %v2489_v3 = vld [vmem:[#allocation3 + $0x2] sm:$0xff] }
 0x233   :  { %4972 = vmatprep.mubr.bf16.mxu1 %v2307_v52  ;;  %4985 = vmatpush3.bf16.msra.mxu1 %v5570_v54  ;;  %v2505_v35 = vpack.c.bf16 %v6537_v63, %v2489_v3  ;;  %v5577_v54 = vld [vmem:[%s7062_s2 + $0xc8] sm:$0xff]   ;;  %v6752_v52 = vld [vmem:[#allocation3 + $0x72] sm:$0xff]  ;;  %v5580_v3 = vld [vmem:[%s7062_s2 + $0xe0] sm:$0xff]  }
 0x234   :  { %4986 = vmatprep.subr.bf16.mxu1 %v5571_v22  ;;  %v6904_v63 = vld [vmem:[#allocation3 + $0x82] sm:$0xff] }
 0x235   :  { %v3114_v43 = vpack.c.bf16 %v6904_v63, %v6752_v52 }
 0x237   :  { %4987 = vmatpush3.bf16.msra.mxu1 %v5571_v22  ;;  %v2497_v22 = vld [vmem:[#allocation3 + $0xa2] sm:$0xff] }
 0x238   :  { %4988 = vmatprep.subr.bf16.mxu1 %v5572_v7 }
 0x23a   :  { %4973 = vmatmul.mubr.bf16.gmra.mrb[8].mxu1 %v2308_v15  ;;  %v5576_v15 = vld [vmem:[%s7062_s2 + $0xc0] sm:$0xff]  }
 0x23b   :  { %4976 = vmatprep.mubr.bf16.mxu1 %v2309_v44  ;;  %4989 = vmatpush3.bf16.msra.mxu1 %v5572_v7  ;;  %v6738_v44 = vpack.c.bf16 %v6508_v40, %v6515_v42  ;;  %v6756_v7 = vpack.c.bf16 %v6752_v52, %v6576_v37  ;;  %v5602_v42 = vld [vmem:[%s7062_s2 + $0x190] sm:$0xff]   ;;  %v7090_v52 = vpack.c.bf16 %v6629_v5, %v6627_v62 }
 0x23c   :  { %4990 = vmatprep.subr.bf16.mxu1 %v5573_v39 }
 0x23f   :  { %4991 = vmatpush3.bf16.msra.mxu1 %v5573_v39  ;;  %v5579_v39 = vld [vmem:[%s7062_s2 + $0xd8] sm:$0xff]  }
 0x240   :  { %4992 = vmatprep.subr.bf16.mxu1 %v5574_v18 }
 0x242   :  { %4977 = vmatmul.mubr.bf16.gmra.mrb[12].mxu1 %v2310_v24  ;;  %v6745_v24 = vpack.c.bf16 %v6594_v48, %v6510_v41 }
 0x243   :  { %4993 = vmatpush3.bf16.msra.mxu1 %v5574_v18  ;;  %4996 = vmatprep.mubr.bf16.mxu1 %v2505_v35  ;;  %v2509_v18 = vpack.c.bf16 %v6652_v50, %v2497_v22  ;;  %v5581_v35 = vld [vmem:[%s7062_s2 + $0xe8] sm:$0xff]  }
 0x244   :  { %4994 = vmatprep.subr.bf16.mxu1 %v5575_v10 }
 0x247   :  { %4995 = vmatpush3.bf16.msra.mxu1 %v5575_v10  ;;  %v6768_v10 = vpack.c.bf16 %v6627_v62, %v6633_v46  ;;  %v5607_v62 = vld [vmem:[%s7062_s2 + $0x1b8] sm:$0xff]  }
 0x248   :  { %5012 = vmatprep.subr.bf16.mxu1 %v5576_v15 }
 0x24a   :  { %4997 = vmatmul.mubr.bf16.vlgmr.msra.gmra.mrb[0].mxu1 %v6738_v44 }
 0x24b   :  { %5000 = vmatprep.mubr.bf16.mxu1 %v6745_v24  ;;  %5013 = vmatpush3.bf16.msra.mxu1 %v5576_v15  ;;  %v6775_v15 = vpack.c.bf16 %v6684_v31, %v6629_v5  ;;  %v5609_v31 = vld [vmem:[%s7062_s2 + $0x1c8] sm:$0xff]   ;;  %v3305_v5 = vld [vmem:[#allocation3 + $0x90] sm:$0xff] }
 0x24c   :  { %5014 = vmatprep.subr.bf16.mxu1 %v5577_v54 }
 0x24f   :  { %5015 = vmatpush3.bf16.msra.mxu1 %v5577_v54  ;;  %v5582_v54 = vld [vmem:[%s7062_s2 + $0xf0] sm:$0xff]  }
 0x250   :  { %5016 = vmatprep.subr.bf16.mxu1 %v5578_v23 }
 0x252   :  { %5001 = vmatmul.mubr.bf16.gmra.mrb[4].mxu1 %v6756_v7 }
 0x253   :  { %5004 = vmatprep.mubr.bf16.mxu1 %v2509_v18  ;;  %5017 = vmatpush3.bf16.msra.mxu1 %v5578_v23  ;;  %v6782_v23 = vld [vmem:[#allocation3 + $0x112] sm:$0xff]  ;;  %v5584_v18 = vld [vmem:[%s7062_s2 + $0x100] sm:$0xff]  }
 0x254   :  { %5018 = vmatprep.subr.bf16.mxu1 %v5579_v39  ;;  %v6786_v22 = vpack.c.bf16 %v6782_v23, %v6674_v2  ;;  %v3317_v2 = vpack.c.bf16 %v3305_v5, %v6810_v55  ;;  %v5631_v5 = vld [vmem:[%s7060_s0 + $0x38] sm:$0xff] }
 0x257   :  { %5019 = vmatpush3.bf16.msra.mxu1 %v5579_v39  ;;  %v5583_v39 = vld [vmem:[%s7062_s2 + $0xf8] sm:$0xff]  }
 0x258   :  { %5020 = vmatprep.subr.bf16.mxu1 %v5580_v3 }
 0x25a   :  { %5005 = vmatmul.mubr.bf16.gmra.mrb[8].mxu1 %v6768_v10 }
 0x25b   :  { %5008 = vmatprep.mubr.bf16.mxu1 %v6775_v15  ;;  %5021 = vmatpush3.bf16.msra.mxu1 %v5580_v3  ;;  %v5585_v3 = vld [vmem:[%s7062_s2 + $0x108] sm:$0xff]  }
 0x25c   :  { %5022 = vmatprep.subr.bf16.mxu1 %v5581_v35 }
 0x25f   :  { %5023 = vmatpush3.bf16.msra.mxu1 %v5581_v35 }
 0x260   :  { %5024 = vmatprep.subr.bf16.mxu1 %v5582_v54 }
 0x262   :  { %5009 = vmatmul.mubr.bf16.gmra.mrb[12].mxu1 %v6786_v22 }
 0x263   :  { %5025 = vmatpush3.bf16.msra.mxu1 %v5582_v54  ;;  %5028 = vmatprep.mubr.bf16.mxu1 %v2707_v60  ;;  %v2710_v60 = vpack.c.bf16 %v6810_v55, %v6574_v61  ;;  %v5590_v61 = vld [vmem:[%s7062_s2 + $0x130] sm:$0xff]   ;;  %v5611_v54 = vld [vmem:[%s7062_s2 + $0x1d8] sm:$0xff]  }
 0x264   :  { %5026 = vmatprep.subr.bf16.mxu1 %v5583_v39  ;;  %v3503_v55 = vld [vmem:[#allocation3 + $0x51] sm:$0xff] }
 0x267   :  { %5027 = vmatpush3.bf16.msra.mxu1 %v5583_v39  ;;  %v3500_v39 = vld [vmem:[#allocation3 + $0x21] sm:$0xff] }
 0x268   :  { %5044 = vmatprep.subr.bf16.mxu1 %v5584_v18 }
 0x26a   :  { %5029 = vmatmul.mubr.bf16.vlgmr.msra.gmra.mrb[0].mxu1 %v2708_v36  ;;  %v5589_v36 = vld [vmem:[%s7062_s2 + $0x128] sm:$0xff]  }
 0x26b   :  { %5032 = vmatprep.mubr.bf16.mxu1 %v2709_v11  ;;  %5045 = vmatpush3.bf16.msra.mxu1 %v5584_v18  ;;  %v6835_v11 = vld [vmem:[#allocation3 + $0x120] sm:$0xff] }
 0x26c   :  { %5046 = vmatprep.subr.bf16.mxu1 %v5585_v3  ;;  %v2714_v56 = vpack.c.bf16 %v6835_v11, %v6672_v34  ;;  %v5593_v34 = vld [vmem:[%s7062_s2 + $0x148] sm:$0xff]  }
 0x26f   :  { %5047 = vmatpush3.bf16.msra.mxu1 %v5585_v3  ;;  %v3501_v3 = vld [vmem:[#allocation3 + $0x31] sm:$0xff] }
 0x270   :  { %5048 = vmatprep.subr.bf16.mxu1 %v5586_v21 }
 0x272   :  { %5033 = vmatmul.mubr.bf16.gmra.mrb[4].mxu1 %v2710_v60  ;;  %v3504_v60 = vld [vmem:[#allocation3 + $0x61] sm:$0xff] }
 0x273   :  { %5036 = vmatprep.mubr.bf16.mxu1 %v2711_v47  ;;  %5049 = vmatpush3.bf16.msra.mxu1 %v5586_v21  ;;  %v7081_v47 = vpack.c.bf16 %v6470_v17, %v6463_v38  ;;  %v7083_v38 = vpack.c.bf16 %v6564_v49, %v6552_v53  ;;  %v5596_v17 = vld [vmem:[%s7062_s2 + $0x160] sm:$0xff]   ;;  %v5598_v53 = vld [vmem:[%s7062_s2 + $0x170] sm:$0xff]   ;;  %v5599_v49 = vld [vmem:[%s7062_s2 + $0x178] sm:$0xff]  }
 0x274   :  { %5050 = vmatprep.subr.bf16.mxu1 %v5587_v16  ;;  %v5615_v21 = vld [vmem:[%s7062_s2 + $0x1f8] sm:$0xff]  }
 0x277   :  { %5051 = vmatpush3.bf16.msra.mxu1 %v5587_v16  ;;  %v3502_v16 = vld [vmem:[#allocation3 + $0x41] sm:$0xff] }
 0x278   :  { %5052 = vmatprep.subr.bf16.mxu1 %v5588_v27 }
 0x27a   :  { %5037 = vmatmul.mubr.bf16.gmra.mrb[8].mxu1 %v7078_v28  ;;  %v5617_v28 = vld [vmem:[%s7062_s2 + $0x208] sm:$0xff]  }
 0x27b   :  { %5040 = vmatprep.mubr.bf16.mxu1 %v7079_v57  ;;  %5053 = vmatpush3.bf16.msra.mxu1 %v5588_v27  ;;  %v3517_v27 = vpack.c.bf16 %v3503_v55, %v3502_v16  ;;  %v5636_v16 = vld [vmem:[%s7060_s0 + $0x48] sm:$0xff] }
 0x27c   :  { %5054 = vmatprep.subr.bf16.mxu1 %v5589_v36 }
 0x27f   :  { %5055 = vmatpush3.bf16.msra.mxu1 %v5589_v36  ;;  %v3505_v36 = vld [vmem:[#allocation3 + $0x71] sm:$0xff] }
 0x280   :  { %5056 = vmatprep.subr.bf16.mxu1 %v5590_v61  ;;  %v3518_v57 = vpack.c.bf16 %v3505_v36, %v3504_v60 }
 0x282   :  { %5041 = vmatmul.mubr.bf16.gmra.mrb[12].mxu1 %v2714_v56  ;;  %v3507_v56 = vld [vmem:[#allocation3 + $0x91] sm:$0xff] }
 0x283   :  { %5057 = vmatpush3.bf16.msra.mxu1 %v5590_v61  ;;  %5060 = vmatprep.mubr.bf16.mxu1 %v7080_v13  ;;  %v5618_v61 = vld [vmem:[%s7062_s2 + $0x210] sm:$0xff]  }
 0x284   :  { %5058 = vmatprep.subr.bf16.mxu1 %v5591_v19 }
 0x287   :  { %5059 = vmatpush3.bf16.msra.mxu1 %v5591_v19  ;;  %v3508_v19 = vld [vmem:[#allocation3 + $0xc1] sm:$0xff] }
 0x288   :  { %5076 = vmatprep.subr.bf16.mxu1 %v5592_v25 }
 0x28a   :  { %5061 = vmatmul.mubr.bf16.vlgmr.msra.gmra.mrb[0].mxu1 %v7081_v47 }
 0x28b   :  { %5064 = vmatprep.mubr.bf16.mxu1 %v7082_v0  ;;  %5077 = vmatpush3.bf16.msra.mxu1 %v5592_v25  ;;  %v3509_v25 = vld [vmem:[#allocation3 + $0xd1] sm:$0xff]  ;;  %v5620_v0 = vld [vmem:[%s7062_s2 + $0x220] sm:$0xff]  }
 0x28c   :  { %5078 = vmatprep.subr.bf16.mxu1 %v5593_v34  ;;  %v3520_v47 = vpack.c.bf16 %v3509_v25, %v3508_v19 }
 0x28f   :  { %5079 = vmatpush3.bf16.msra.mxu1 %v5593_v34  ;;  %v5619_v34 = vld [vmem:[%s7062_s2 + $0x218] sm:$0xff]  }
 0x290   :  { %5080 = vmatprep.subr.bf16.mxu1 %v5594_v29 }
 0x292   :  { %5065 = vmatmul.mubr.bf16.gmra.mrb[4].mxu1 %v6520_v59  ;;  %v7085_v59 = vpack.c.bf16 %v6620_v8, %v6608_v6  ;;  %v5601_v6 = vld [vmem:[%s7062_s2 + $0x188] sm:$0xff]   ;;  %v7087_v8 = vpack.c.bf16 %v6510_v41, %v6508_v40  ;;  %v5603_v40 = vld [vmem:[%s7062_s2 + $0x198] sm:$0xff]   ;;  %v7089_v41 = vpack.c.bf16 %v6633_v46, %v6652_v50  ;;  %v5606_v46 = vld [vmem:[%s7062_s2 + $0x1b0] sm:$0xff]  }
 0x293   :  { %5068 = vmatprep.mubr.bf16.mxu1 %v7083_v38  ;;  %5081 = vmatpush3.bf16.msra.mxu1 %v5594_v29  ;;  %v6929_v50 = vld [vmem:[#allocation3 + $0x122] sm:$0xff]  ;;  %v3511_v29 = vld [vmem:[#allocation3 + $0xf1] sm:$0xff] }
 0x294   :  { %5082 = vmatprep.subr.bf16.mxu1 %v5595_v30  ;;  %v3118_v35 = vpack.c.bf16 %v6929_v50, %v6782_v23  ;;  %v3313_v23 = vld [vmem:[#allocation3 + $0x130] sm:$0xff]  ;;  %v3510_v38 = vld [vmem:[#allocation3 + $0xe1] sm:$0xff] }
 0x295   :  { %v3321_v18 = vpack.c.bf16 %v3313_v23, %v6835_v11  ;;  %v3506_v11 = vld [vmem:[#allocation3 + $0x81] sm:$0xff]  ;;  %v5633_v23 = vld [vmem:[%s7060_s0 + $0x50] sm:$0xff] }
 0x296   :  { %v3519_v13 = vpack.c.bf16 %v3507_v56, %v3506_v11  ;;  %v5638_v11 = vld [vmem:[%s7060_s0 + $0x60] sm:$0xff] }
 0x297   :  { %5083 = vmatpush3.bf16.msra.mxu1 %v5595_v30  ;;  %v3512_v30 = vld [vmem:[#allocation3 + $0x101] sm:$0xff] }
 0x298   :  { %5084 = vmatprep.subr.bf16.mxu1 %v5596_v17 }
 0x29a   :  { %5069 = vmatmul.mubr.bf16.gmra.mrb[8].mxu1 %v7084_v26  ;;  %v5621_v26 = vld [vmem:[%s7062_s2 + $0x228] sm:$0xff]  }
 0x29b   :  { %5072 = vmatprep.mubr.bf16.mxu1 %v7085_v59  ;;  %5085 = vmatpush3.bf16.msra.mxu1 %v5596_v17  ;;  %v3521_v17 = vpack.c.bf16 %v3511_v29, %v3510_v38 }
 0x29c   :  { %5086 = vmatprep.subr.bf16.mxu1 %v5597_v20 }
 0x29f   :  { %5087 = vmatpush3.bf16.msra.mxu1 %v5597_v20  ;;  %v3513_v20 = vld [vmem:[#allocation3 + $0x111] sm:$0xff] }
 0x2a0   :  { %5088 = vmatprep.subr.bf16.mxu1 %v5598_v53  ;;  %v3522_v59 = vpack.c.bf16 %v3513_v20, %v3512_v30 }
 0x2a2   :  { %5073 = vmatmul.mubr.bf16.gmra.mrb[12].mxu1 %v6638_v51  ;;  %v7088_v51 = vpack.c.bf16 %v6576_v37, %v6594_v48  ;;  %v5604_v37 = vld [vmem:[%s7062_s2 + $0x1a0] sm:$0xff]   ;;  %v5605_v48 = vld [vmem:[%s7062_s2 + $0x1a8] sm:$0xff]  }
 0x2a3   :  { %5089 = vmatpush3.bf16.msra.mxu1 %v5598_v53  ;;  %5092 = vmatprep.mubr.bf16.mxu1 %v7086_v45  ;;  %v5622_v53 = vld [vmem:[%s7062_s2 + $0x230] sm:$0xff]  }
 0x2a4   :  { %5090 = vmatprep.subr.bf16.mxu1 %v5599_v49  ;;  %v3515_v45 = vld [vmem:[#allocation3 + $0x131] sm:$0xff] }
 0x2a7   :  { %5091 = vmatpush3.bf16.msra.mxu1 %v5599_v49  ;;  %v3514_v49 = vld [vmem:[#allocation3 + $0x121] sm:$0xff] }
 0x2a8   :  { %5108 = vmatprep.subr.bf16.mxu1 %v5600_v9 }
 0x2aa   :  { %5093 = vmatmul.mubr.bf16.vlgmr.msra.gmra.mrb[0].mxu1 %v7087_v8  ;;  %v3709_v8 = vld [vmem:[#allocation3 + $0x92] sm:$0xff] }
 0x2ab   :  { %5096 = vmatprep.mubr.bf16.mxu1 %v7088_v51  ;;  %5109 = vmatpush3.bf16.msra.mxu1 %v5600_v9  ;;  %v3523_v9 = vpack.c.bf16 %v3515_v45, %v3514_v49  ;;  %v3721_v51 = vpack.c.bf16 %v3709_v8, %v6904_v63  ;;  %v5626_v63 = vld [vmem:[%s7060_s0] sm:$0xff] }
 0x2ac   :  { %5110 = vmatprep.subr.bf16.mxu1 %v5601_v6 }
 0x2af   :  { %5111 = vmatpush3.bf16.msra.mxu1 %v5601_v6  ;;  %v5623_v6 = vld [vmem:[%s7062_s2 + $0x238] sm:$0xff]  }
 0x2b0   :  { %5112 = vmatprep.subr.bf16.mxu1 %v5602_v42 }
 0x2b2   :  { %5097 = vmatmul.mubr.bf16.gmra.mrb[4].mxu1 %v3114_v43 }
 0x2b3   :  { %5100 = vmatprep.mubr.bf16.mxu1 %v7089_v41  ;;  %5113 = vmatpush3.bf16.msra.mxu1 %v5602_v42  ;;  %v3717_v42 = vld [vmem:[#allocation3 + $0x132] sm:$0xff] }
 0x2b4   :  { %5114 = vmatprep.subr.bf16.mxu1 %v5603_v40  ;;  %v3725_v43 = vpack.c.bf16 %v3717_v42, %v6929_v50  ;;  %v5629_v50 = vld [vmem:[%s7060_s0 + $0x30] sm:$0xff] }
 0x2b7   :  { %5115 = vmatpush3.bf16.msra.mxu1 %v5603_v40 }
 0x2b8   :  { %5116 = vmatprep.subr.bf16.mxu1 %v5604_v37 }
 0x2ba   :  { %5101 = vmatmul.mubr.bf16.gmra.mrb[8].mxu1 %v7090_v52 }
 0x2bb   :  { %5104 = vmatprep.mubr.bf16.mxu1 %v3117_v12  ;;  %5117 = vmatpush3.bf16.msra.mxu1 %v5604_v37  ;;  %v5608_v12 = vld [vmem:[%s7062_s2 + $0x1c0] sm:$0xff]  }
 0x2bc   :  { %5118 = vmatprep.subr.bf16.mxu1 %v5605_v48 }
 0x2bf   :  { %5119 = vmatpush3.bf16.msra.mxu1 %v5605_v48  ;;  %v5628_v48 = vld [vmem:[%s7060_s0 + $0x8] sm:$0xff] }
 0x2c0   :  { %5120 = vmatprep.subr.bf16.mxu1 %v5606_v46 }
 0x2c2   :  { %5105 = vmatmul.mubr.bf16.gmra.mrb[12].mxu1 %v3118_v35 }
 0x2c3   :  { %5121 = vmatpush3.bf16.msra.mxu1 %v5606_v46  ;;  %5124 = vmatprep.mubr.bf16.mxu1 %v6528_v33  ;;  %v5610_v33 = vld [vmem:[%s7062_s2 + $0x1d0] sm:$0xff]  }
 0x2c4   :  { %5122 = vmatprep.subr.bf16.mxu1 %v5607_v62 }
 0x2c7   :  { %5123 = vmatpush3.bf16.msra.mxu1 %v5607_v62 }
 0x2c8   :  { %5140 = vmatprep.subr.bf16.mxu1 %v5608_v12 }
 0x2ca   :  { %5125 = vmatmul.mubr.bf16.vlgmr.msra.gmra.mrb[0].mxu1 %v6568_v32  ;;  %v5612_v32 = vld [vmem:[%s7062_s2 + $0x1e0] sm:$0xff]  }
 0x2cb   :  { %5128 = vmatprep.mubr.bf16.mxu1 %v6585_v14  ;;  %5141 = vmatpush3.bf16.msra.mxu1 %v5608_v12  ;;  %v5613_v14 = vld [vmem:[%s7062_s2 + $0x1e8] sm:$0xff]   ;;  %v5630_v12 = vld [vmem:[%s7060_s0 + $0x20] sm:$0xff] }
 0x2cc   :  { %5142 = vmatprep.subr.bf16.mxu1 %v5609_v31 }
 0x2cf   :  { %5143 = vmatpush3.bf16.msra.mxu1 %v5609_v31 }
 0x2d0   :  { %5144 = vmatprep.subr.bf16.mxu1 %v5610_v33 }
 0x2d2   :  { %5129 = vmatmul.mubr.bf16.gmra.mrb[4].mxu1 %v3317_v2 }
 0x2d3   :  { %5132 = vmatprep.mubr.bf16.mxu1 %v6645_v58  ;;  %5145 = vmatpush3.bf16.msra.mxu1 %v5610_v33  ;;  %v5614_v58 = vld [vmem:[%s7062_s2 + $0x1f0] sm:$0xff]  }
 0x2d4   :  { %5146 = vmatprep.subr.bf16.mxu1 %v5611_v54 }
 0x2d7   :  { %5147 = vmatpush3.bf16.msra.mxu1 %v5611_v54 }
 0x2d8   :  { %5148 = vmatprep.subr.bf16.mxu1 %v5612_v32 }
 0x2da   :  { %5133 = vmatmul.mubr.bf16.gmra.mrb[8].mxu1 %v6668_v1  ;;  %v3516_v1 = vpack.c.bf16 %v3501_v3, %v3500_v39  ;;  %v5634_v3 = vld [vmem:[%s7060_s0 + $0x40] sm:$0xff] }
 0x2db   :  { %5136 = vmatprep.mubr.bf16.mxu1 %v6679_v4  ;;  %5149 = vmatpush3.bf16.msra.mxu1 %v5612_v32  ;;  %v5616_v4 = vld [vmem:[%s7062_s2 + $0x200] sm:$0xff]   ;;  %v5632_v32 = vld [vmem:[%s7060_s0 + $0x28] sm:$0xff] }
 0x2dc   :  { %5150 = vmatprep.subr.bf16.mxu1 %v5613_v14 }
 0x2df   :  { %5151 = vmatpush3.bf16.msra.mxu1 %v5613_v14 }
 0x2e0   :  { %5152 = vmatprep.subr.bf16.mxu1 %v5614_v58 }
 0x2e2   :  { %5137 = vmatmul.mubr.bf16.gmra.mrb[12].mxu1 %v3321_v18 }
 0x2e3   :  { %5153 = vmatpush3.bf16.msra.mxu1 %v5614_v58  ;;  %5156 = vmatprep.mubr.bf16.mxu1 %v3516_v1 }
 0x2e4   :  { %5154 = vmatprep.subr.bf16.mxu1 %v5615_v21 }
 0x2e7   :  { %5155 = vmatpush3.bf16.msra.mxu1 %v5615_v21 }
 0x2e8   :  { %5172 = vmatprep.subr.bf16.mxu1 %v5616_v4 }
 0x2ea   :  { %5157 = vmatmul.mubr.bf16.vlgmr.msra.gmra.mrb[0].mxu1 %v3517_v27 }
 0x2eb   :  { %5160 = vmatprep.mubr.bf16.mxu1 %v3518_v57  ;;  %5173 = vmatpush3.bf16.msra.mxu1 %v5616_v4  ;;  %v5635_v4 = vld [vmem:[%s7060_s0 + $0x58] sm:$0xff] }
 0x2ec   :  { %5174 = vmatprep.subr.bf16.mxu1 %v5617_v28 }
 0x2ef   :  { %5175 = vmatpush3.bf16.msra.mxu1 %v5617_v28  ;;  %v5637_v28 = vld [vmem:[%s7060_s0 + $0x70] sm:$0xff] }
 0x2f0   :  { %5176 = vmatprep.subr.bf16.mxu1 %v5618_v61 }
 0x2f2   :  { %5161 = vmatmul.mubr.bf16.gmra.mrb[4].mxu1 %v3519_v13  ;;  %v5639_v13 = vld [vmem:[%s7060_s0 + $0x78] sm:$0xff] }
 0x2f3   :  { %5164 = vmatprep.mubr.bf16.mxu1 %v3520_v47  ;;  %5177 = vmatpush3.bf16.msra.mxu1 %v5618_v61  ;;  %v5640_v47 = vld [vmem:[%s7060_s0 + $0x68] sm:$0xff] }
 0x2f4   :  { %5178 = vmatprep.subr.bf16.mxu1 %v5619_v34 }
 0x2f7   :  { %5179 = vmatpush3.bf16.msra.mxu1 %v5619_v34 }
 0x2f8   :  { %5180 = vmatprep.subr.bf16.mxu1 %v5620_v0 }
 0x2fa   :  { %5165 = vmatmul.mubr.bf16.gmra.mrb[8].mxu1 %v3521_v17 }
 0x2fb   :  { %5168 = vmatprep.mubr.bf16.mxu1 %v3522_v59  ;;  %5181 = vmatpush3.bf16.msra.mxu1 %v5620_v0 }
 0x2fc   :  { %5182 = vmatprep.subr.bf16.mxu1 %v5621_v26 }
 0x2ff   :  { %5183 = vmatpush3.bf16.msra.mxu1 %v5621_v26 }
 0x300   :  { %5184 = vmatprep.subr.bf16.mxu1 %v5622_v53 }
 0x302   :  { %5169 = vmatmul.mubr.bf16.gmra.mrb[12].mxu1 %v3523_v9 }
 0x303   :  { %5185 = vmatpush3.bf16.msra.mxu1 %v5622_v53  ;;  %5188 = vmatprep.mubr.bf16.mxu1 %v6738_v44 }
 0x304   :  { %5186 = vmatprep.subr.bf16.mxu1 %v5623_v6 }
 0x307   :  { %5187 = vmatpush3.bf16.msra.mxu1 %v5623_v6 }
 0x30a   :  { %5189 = vmatmul.mubr.bf16.vlgmr.msra.gmra.mrb[0].mxu1 %v6745_v24  ;;  %v5625_v24 = vld [vmem:[%s7060_s0 + $0x10] sm:$0xff] }
 0x30b   :  { %5192 = vmatprep.mubr.bf16.mxu1 %v6756_v7 }
 0x312   :  { %5193 = vmatmul.mubr.bf16.gmra.mrb[4].mxu1 %v3721_v51 }
 0x313   :  { %5196 = vmatprep.mubr.bf16.mxu1 %v6768_v10 }
 0x31a   :  { %5197 = vmatmul.mubr.bf16.gmra.mrb[8].mxu1 %v6775_v15  ;;  %v5627_v15 = vld [vmem:[%s7060_s0 + $0x18] sm:$0xff] }
 0x31b   :  { %5200 = vmatprep.mubr.bf16.mxu1 %v6786_v22 }
 0x322   :  { %5201 = vmatmul.mubr.bf16.gmra.mrb[12].mxu1 %v3725_v43 }
 0x3dd   :  { %v5190_v44 = vpop.f32.mrb[0].mxu1 }
 0x3de   :  { %v5204_v7 = vadd.f32 %v5625_v24, %v5190_v44  ;;  %v3825_v40 = vpop.f32.mrb[1].mxu1 }
 0x3df   :  { %v5205_v10 = vadd.f32 %v5626_v63, %v3825_v40  ;;  %v5191_v41 = vpop.f32.mrb[2].mxu1 }
 0x3e0   :  { %3906 = vst [vmem:[#allocation4 + $0x10] sm:$0xff] %v5204_v7  ;;  %v5206_v22 = vadd.f32 %v5627_v15, %v5191_v41  ;;  %v3828_v37 = vpop.f32.mrb[3].mxu1 }
 0x3e1   :  { %3904 = vst [vmem:[#allocation4] sm:$0xff] %v5205_v10  ;;  %v5207_v52 = vadd.f32 %v5628_v48, %v3828_v37 }
 0x3e2   :  { %3907 = vst [vmem:[#allocation4 + $0x18] sm:$0xff] %v5206_v22 }
 0x3e3   :  { %3905 = vst [vmem:[#allocation4 + $0x8] sm:$0xff] %v5207_v52 }
 0x3e5   :  { %v5194_v46 = vpop.f32.mrb[4].mxu1 }
 0x3e6   :  { %v5208_v35 = vadd.f32 %v5629_v50, %v5194_v46  ;;  %v3841_v62 = vpop.f32.mrb[5].mxu1 }
 0x3e7   :  { %v5209_v31 = vadd.f32 %v5630_v12, %v3841_v62  ;;  %v5195_v33 = vpop.f32.mrb[6].mxu1 }
 0x3e8   :  { %3910 = vst [vmem:[#allocation4 + $0x30] sm:$0xff] %v5208_v35  ;;  %v5210_v2 = vadd.f32 %v5631_v5, %v5195_v33  ;;  %v3844_v54 = vpop.f32.mrb[7].mxu1 }
 0x3e9   :  { %3908 = vst [vmem:[#allocation4 + $0x20] sm:$0xff] %v5209_v31  ;;  %v5211_v14 = vadd.f32 %v5632_v32, %v3844_v54 }
 0x3ea   :  { %3911 = vst [vmem:[#allocation4 + $0x38] sm:$0xff] %v5210_v2 }
 0x3eb   :  { %3909 = vst [vmem:[#allocation4 + $0x28] sm:$0xff] %v5211_v14 }
 0x3ed   :  { %v5198_v58 = vpop.f32.mrb[8].mxu1 }
 0x3ee   :  { %v5212_v39 = vadd.f32 %v5633_v23, %v5198_v58  ;;  %v3857_v18 = vpop.f32.mrb[9].mxu1 }
 0x3ef   :  { %v5213_v21 = vadd.f32 %v5634_v3, %v3857_v18  ;;  %v5199_v1 = vpop.f32.mrb[10].mxu1 }
 0x3f0   :  { %3914 = vst [vmem:[#allocation4 + $0x50] sm:$0xff] %v5212_v39  ;;  %v5214_v55 = vadd.f32 %v5635_v4, %v5199_v1  ;;  %v3860_v60 = vpop.f32.mrb[11].mxu1 }
 0x3f1   :  { %3912 = vst [vmem:[#allocation4 + $0x40] sm:$0xff] %v5213_v21  ;;  %v5215_v27 = vadd.f32 %v5636_v16, %v3860_v60 }
 0x3f2   :  { %3915 = vst [vmem:[#allocation4 + $0x58] sm:$0xff] %v5214_v55 }
 0x3f3   :  { %3913 = vst [vmem:[#allocation4 + $0x48] sm:$0xff] %v5215_v27 }
 0x3f5   :  { %v5202_v36 = vpop.f32.mrb[12].mxu1 }
 0x3f6   :  { %v5216_v57 = vadd.f32 %v5637_v28, %v5202_v36  ;;  %v3873_v61 = vpop.f32.mrb[13].mxu1 }
 0x3f7   :  { %v5217_v56 = vadd.f32 %v5638_v11, %v3873_v61  ;;  %v5203_v19 = vpop.f32.mrb[14].mxu1 }
 0x3f8   :  { %3918 = vst [vmem:[#allocation4 + $0x70] sm:$0xff] %v5216_v57  ;;  %v5218_v25 = vadd.f32 %v5639_v13, %v5203_v19  ;;  %v3876_v34 = vpop.f32.mrb[15].mxu1 }
 0x3f9   :  { %3916 = vst [vmem:[#allocation4 + $0x60] sm:$0xff] %v5217_v56  ;;  %v5219_v0 = vadd.f32 %v5640_v47, %v3876_v34 }
 0x3fa   :  { %3919 = vst [vmem:[#allocation4 + $0x78] sm:$0xff] %v5218_v25 }
 0x3fb   :  { %3917 = vst [vmem:[#allocation4 + $0x68] sm:$0xff] %v5219_v0 }
 0x3fc   :  { %5652 = shalt.err (!%p5649_p4)
}
 0x3fd   :  { %s5653_s20 = scalar_lea.hbm %s7067_s7, 2048 }
 0x3fe   :  { %p5654_p5 = scmp.ne.s32.totalorder %s7067_s7, %s5653_s20  ;;  %p5657_p6 = scmp.lt.u32.totalorder %s5653_s20, %s7067_s7 }
 0x400   :  { %p5659_p7 = pnand %p5657_p6, %p5654_p5 }
 0x402   :  { %5662 = shalt.err (!%p5659_p7)
}
 0x403   :  { %s5667_s22 = smov 128   ;;  %s5668_s23 = smov 8  }
 0x404   :  { %3931 = dma.vmem_to_hbm [thread:$0]  %s3926_s1, 2048, %s7067_s7, [#allocation5], %s5667_s22, %s5667_s22, %s5668_s23  }
 0x405   :  { %5663 = dma.done.wait [#allocation5], 2048  }
 0x406   :  { %5664 = vsyncadd [#allocation5], 4294965248 }
 0x407   :  { %3935 = vsyncpa [#allocation5], 1 }

// kernel: _lambda_.2
= control target key start
LH: loop header
LB: loop body
LE: loop exit
PB: predicated region body
PF: predicated region fallthrough
CT: control target
= control target key end

     0   :  { %v97_v1 = vlaneseq  ;;  %v7810_v2 = vmov 0.0   ;;  %vm1083_vm1 = vcmask 1046528   ;;  %s10448_s1 = inlined_call_operand.vmem [shape: bf16[4,512,128], index: 1, kind: input, shape index: {}]   ;;  %s10449_s0 = inlined_call_operand.vmem [shape: f32[2,8,8,512], index: 0, kind: input, shape index: {}]   ;;  %s10450_s4 = inlined_call_operand.vmem [shape: f32[1,512], index: 4, kind: input, shape index: {}]   ;;  %s10451_s5 = inlined_call_operand.vmem [shape: f32[1,512], index: 5, kind: input, shape index: {}]   ;;  %s10452_s2 = inlined_call_operand.vmem [shape: bf16[9,128,128], index: 2, kind: input, shape index: {}]   ;;  %s10453_s3 = inlined_call_operand.vmem [shape: bf16[128,128], index: 3, kind: input, shape index: {}]   ;;  %s10454_s6 = inlined_call_operand.vmem [shape: f32[1,128], index: 6, kind: input, shape index: {}]   ;;  %s10455_s7 = inlined_call_operand.vmem [shape: f32[1,128], index: 7, kind: input, shape index: {}]   ;;  %s10456_s8 = inlined_call_operand.vmem [shape: f32[2,8,8,128], index: 8, kind: output, shape index: {}]  }
   0x1   :  { %v7859_v0 = vld [vmem:[%s10448_s1 + $0x140] sm:$0xff]   ;;  %331 = vst [vmem:[#allocation2 + $0x8] sm:$0xff] %v7810_v2  ;;  %334 = vst [vmem:[#allocation2 + $0x20] sm:$0x1] %v7810_v2  ;;  %v7587_v4 = vld [vmem:[%s10448_s1 + $0x148] sm:$0xff]  }
   0x2   :  { %335 = vst [vmem:[#allocation2 + $0x28] sm:$0x1] %v7810_v2  ;;  %336 = vst [vmem:[#allocation2 + $0x30] sm:$0x1] %v7810_v2  ;;  %v7586_v3 = vld [vmem:[%s10448_s1 + $0x100] sm:$0xff]   ;;  %6432 = vmatprep.subr.bf16.mxu1 %v7859_v0  ;;  %vm7949_vm0 = vcmp.lt.s32.totalorder %v97_v1, 512 }
   0x3   :  { %337 = vst [vmem:[#allocation2 + $0x38] sm:$0x1] %v7810_v2  ;;  %330 = vst [vmem:[#allocation2] sm:$0xff] %v7810_v2  ;;  %6433 = vmatpush3.bf16.msra.mxu1 %v7586_v3  ;;  %v7588_v6 = vld [vmem:[%s10448_s1 + $0x108] sm:$0xff]   ;;  %v7589_v7 = vld [vmem:[%s10448_s1 + $0x150] sm:$0xff]   ;;  %v8074_v10 = vshrl.u32 %v97_v1, 7 }
   0x4   :  { %332 = vst [vmem:[#allocation2 + $0x10] sm:$0xff] %v7810_v2  ;;  %333 = vst [vmem:[#allocation2 + $0x18] sm:$0xff] %v7810_v2  ;;  %6434 = vmatprep.subr.bf16.mxu1 %v7587_v4  ;;  %v7590_v8 = vld [vmem:[%s10448_s1 + $0x110] sm:$0xff]   ;;  %v7591_v9 = vld [vmem:[%s10448_s1 + $0x158] sm:$0xff]  }
   0x5   :  { %338 = vst [vmem:[#allocation2 + $0x240] sm:$0xff] %v7810_v2  ;;  %339 = vst [vmem:[#allocation2 + $0x248] sm:$0xff] %v7810_v2  ;;  %v7592_v11 = vld [vmem:[%s10448_s1 + $0x118] sm:$0xff]   ;;  %v7593_v12 = vld [vmem:[%s10448_s1 + $0x160] sm:$0xff]   ;;  %v103_v13 = vsub.s32 1, %v8074_v10  ;;  %v99_v14 = vsub.s32 0, %v8074_v10 }
   0x6   :  { %340 = vst [vmem:[#allocation2 + $0x250] sm:$0xff] %v7810_v2  ;;  %341 = vst [vmem:[#allocation2 + $0x258] sm:$0xff] %v7810_v2  ;;  %v7594_v15 = vld [vmem:[%s10448_s1 + $0x120] sm:$0xff]   ;;  %v7595_v16 = vld [vmem:[%s10448_s1 + $0x168] sm:$0xff]  }
   0x7   :  { %342 = vst [vmem:[#allocation2 + $0x260] sm:$0x1] %v7810_v2  ;;  %343 = vst [vmem:[#allocation2 + $0x268] sm:$0x1] %v7810_v2  ;;  %6435 = vmatpush3.bf16.msra.mxu1 %v7588_v6  ;;  %v31_v17 = vld [vmem:[%s10449_s0 + $0x8] sm:$0xff]  ;;  %v30_v22 = vld [vmem:[%s10449_s0] sm:$0xff] }
   0x8   :  { %344 = vst [vmem:[#allocation2 + $0x270] sm:$0x1] %v7810_v2  ;;  %345 = vst [vmem:[#allocation2 + $0x278] sm:$0x1] %v7810_v2  ;;  %6436 = vmatprep.subr.bf16.mxu1 %v7589_v7  ;;  %v35_v18 = vld [vmem:[%s10449_s0 + $0x28] sm:$0xff]  ;;  %v34_v23 = vld [vmem:[%s10449_s0 + $0x20] sm:$0xff] }
   0x9   :  { %347 = vst [vmem:[#allocation2 + $0x200] sm:$0xff] %v7810_v2  ;;  %348 = vst [vmem:[#allocation2 + $0x208] sm:$0xff] %v7810_v2  ;;  %v8099_v19 = vld [vmem:[%s10450_s4] sm:$0xf]  ;;  %v7596_v27 = vld [vmem:[%s10448_s1 + $0x128] sm:$0xff]  }
   0xa   :  { %349 = vst [vmem:[#allocation2 + $0x210] sm:$0xff] %v7810_v2  ;;  %350 = vst [vmem:[#allocation2 + $0x218] sm:$0xff] %v7810_v2  ;;  %v8104_v20 = vld [vmem:[%s10451_s5] sm:$0xf]  ;;  %v8107_v21 = vrot.slane %v8099_v19, %v103_v13  ;;  %v8116_v24 = vrot.slane %v8099_v19, %v99_v14  ;;  %v7597_v32 = vld [vmem:[%s10448_s1 + $0x170] sm:$0xff]  }
   0xb   :  { %351 = vst [vmem:[#allocation2 + $0x220] sm:$0x1] %v7810_v2  ;;  %352 = vst [vmem:[#allocation2 + $0x228] sm:$0x1] %v7810_v2  ;;  %6437 = vmatpush3.bf16.msra.mxu1 %v7590_v8  ;;  %v8119_v25 = vrot.slane %v8104_v20, %v103_v13  ;;  %v8122_v26 = vrot.slane %v8104_v20, %v99_v14  ;;  %v39_v33 = vld [vmem:[%s10449_s0 + $0x48] sm:$0xff]  ;;  %v7598_v34 = vld [vmem:[%s10448_s1 + $0x130] sm:$0xff]  }
   0xc   :  { %353 = vst [vmem:[#allocation2 + $0x230] sm:$0x1] %v7810_v2  ;;  %354 = vst [vmem:[#allocation2 + $0x238] sm:$0x1] %v7810_v2  ;;  %6438 = vmatprep.subr.bf16.mxu1 %v7591_v9  ;;  %v118_v28 = vmul.f32 %v8107_v21, %v31_v17  ;;  %v122_v29 = vmul.f32 %v8107_v21, %v35_v18  ;;  %v117_v30 = vmul.f32 %v8116_v24, %v30_v22  ;;  %v43_v39 = vld [vmem:[%s10449_s0 + $0x68] sm:$0xff]  ;;  %v38_v40 = vld [vmem:[%s10449_s0 + $0x40] sm:$0xff] }
   0xd   :  { %355 = vst [vmem:[#allocation2 + $0x440] sm:$0xff] %v7810_v2  ;;  %356 = vst [vmem:[#allocation2 + $0x448] sm:$0xff] %v7810_v2  ;;  %v121_v31 = vmul.f32 %v8116_v24, %v34_v23  ;;  %v42_v41 = vld [vmem:[%s10449_s0 + $0x60] sm:$0xff]  ;;  %v7599_v42 = vld [vmem:[%s10448_s1 + $0x178] sm:$0xff]   ;;  %v126_v45 = vmul.f32 %v8107_v21, %v39_v33  ;;  %v130_v46 = vmul.f32 %v8107_v21, %v43_v39 }
   0xe   :  { %357 = vst [vmem:[#allocation2 + $0x450] sm:$0xff] %v7810_v2  ;;  %358 = vst [vmem:[#allocation2 + $0x458] sm:$0xff] %v7810_v2  ;;  %v203_v35 = vadd.f32 %v8119_v25, %v118_v28  ;;  %v207_v36 = vadd.f32 %v8119_v25, %v122_v29  ;;  %v202_v37 = vadd.f32 %v8122_v26, %v117_v30  ;;  %v7600_v58 = vld [vmem:[%s10448_s1 + $0x138] sm:$0xff]   ;;  %v47_v63 = vld [vmem:[%s10449_s0 + $0x88] sm:$0xff] }
   0xf   :  { %359 = vst [vmem:[#allocation2 + $0x460] sm:$0x1] %v7810_v2  ;;  %360 = vst [vmem:[#allocation2 + $0x468] sm:$0x1] %v7810_v2  ;;  %6439 = vmatpush3.bf16.msra.mxu1 %v7592_v11  ;;  %v206_v38 = vadd.f32 %v8122_v26, %v121_v31  ;;  %v125_v47 = vmul.f32 %v8116_v24, %v38_v40  ;;  %v129_v48 = vmul.f32 %v8116_v24, %v42_v41  ;;  %v51_v4 = vld [vmem:[%s10449_s0 + $0xa8] sm:$0xff]  ;;  %v46_v5 = vld [vmem:[%s10449_s0 + $0x80] sm:$0xff] }
  0x10   :  { %361 = vst [vmem:[#allocation2 + $0x470] sm:$0x1] %v7810_v2  ;;  %362 = vst [vmem:[#allocation2 + $0x478] sm:$0x1] %v7810_v2  ;;  %6440 = vmatprep.subr.bf16.mxu1 %v7593_v12  ;;  %v267_v49 = vmax.f32 %v203_v35, 0.0  ;;  %v271_v50 = vmax.f32 %v207_v36, 0.0  ;;  %v211_v53 = vadd.f32 %v8119_v25, %v126_v45  ;;  %v215_v54 = vadd.f32 %v8119_v25, %v130_v46 }
  0x11   :  { %3869 = vst [vmem:[#allocation3] sm:$0xff] %v7810_v2  ;;  %3870 = vst [vmem:[#allocation3 + $0x8] sm:$0x3] %v7810_v2  ;;  %v266_v51 = vmax.f32 %v202_v37, 0.0  ;;  %v270_v52 = vmax.f32 %v206_v38, 0.0  ;;  %v210_v55 = vadd.f32 %v8122_v26, %v125_v47  ;;  %v214_v56 = vadd.f32 %v8122_v26, %v129_v48  ;;  %v50_v9 = vld [vmem:[%s10449_s0 + $0xa0] sm:$0xff] }
  0x12   :  { %3871 = vst [vmem:[#allocation3 + $0xa0] sm:$0xff] %v7810_v2  ;;  %3872 = vst [vmem:[#allocation3 + $0xa8] sm:$0x3] %v7810_v2  ;;  %v506_v59 = vrot.slane %v267_v49, 7  ;;  %v507_v60 = vrot.slane %v271_v50, 7  ;;  %v275_v0 = vmax.f32 %v211_v53, 0.0  ;;  %v134_v7 = vmul.f32 %v8107_v21, %v47_v63 }
  0x13   :  { %3874 = vst [vmem:[#allocation3 + $0x90] sm:$0xff] %v7810_v2  ;;  %3875 = vst [vmem:[#allocation3 + $0x98] sm:$0x3] %v7810_v2  ;;  %6441 = vmatpush3.bf16.msra.mxu1 %v7594_v15  ;;  %v279_v1 = vmax.f32 %v215_v54, 0.0  ;;  %v278_v3 = vmax.f32 %v214_v56, 0.0  ;;  %v138_v8 = vmul.f32 %v8107_v21, %v51_v4  ;;  %v133_v11 = vmul.f32 %v8116_v24, %v46_v5  ;;  %v7601_v14 = vld [vmem:[%s10448_s1 + $0x1c0] sm:$0xff]  }
  0x14   :  { %3876 = vst [vmem:[#allocation3 + $0x130] sm:$0xff] %v7810_v2  ;;  %3877 = vst [vmem:[#allocation3 + $0x138] sm:$0x3] %v7810_v2  ;;  %6442 = vmatprep.subr.bf16.mxu1 %v7595_v16  ;;  %v508_v15 = vrot.slane %v275_v0, 7  ;;  %v137_v18 = vmul.f32 %v8116_v24, %v50_v9  ;;  %v219_v23 = vadd.f32 %v8119_v25, %v134_v7  ;;  %v59_v33 = vld [vmem:[%s10449_s0 + $0xe8] sm:$0xff]  ;;  %v54_v38 = vld [vmem:[%s10449_s0 + $0xc0] sm:$0xff] }
  0x15   :  { %3879 = vst [vmem:[#allocation3 + $0x10] sm:$0x1] %v7810_v2  ;;  %3880 = vst [vmem:[#allocation3 + $0x20] sm:$0x1] %v7810_v2  ;;  %v509_v16 = vrot.slane %v279_v1, 7  ;;  %v218_v28 = vadd.f32 %v8122_v26, %v133_v11  ;;  %v58_v39 = vld [vmem:[%s10449_s0 + $0xe0] sm:$0xff]  ;;  %v146_v45 = vmul.f32 %v8107_v21, %v59_v33  ;;  %v141_v46 = vmul.f32 %v8116_v24, %v54_v38 }
  0x16   :  { %3881 = vst [vmem:[#allocation3 + $0x30] sm:$0x1] %v7810_v2  ;;  %3882 = vst [vmem:[#allocation3 + $0x40] sm:$0x1] %v7810_v2  ;;  %v222_v29 = vadd.f32 %v8122_v26, %v137_v18  ;;  %v145_v47 = vmul.f32 %v8116_v24, %v58_v39  ;;  %v63_v1 = vld [vmem:[%s10449_s0 + $0x108] sm:$0xff] }
  0x17   :  { %3883 = vst [vmem:[#allocation3 + $0x50] sm:$0x1] %v7810_v2  ;;  %3884 = vst [vmem:[#allocation3 + $0x60] sm:$0x1] %v7810_v2  ;;  %6443 = vmatpush3.bf16.msra.mxu1 %v7596_v27  ;;  %v223_v27 = vadd.f32 %v8119_v25, %v138_v8  ;;  %v282_v36 = vmax.f32 %v218_v28, 0.0  ;;  %v8226_v56 = vadd.f32 %v8119_v25, %v146_v45  ;;  %v7604_v45 = vld [vmem:[%s10448_s1 + $0x188] sm:$0xff]  }
  0x18   :  { %3885 = vst [vmem:[#allocation3 + $0x70] sm:$0x1] %v7810_v2  ;;  %3886 = vst [vmem:[#allocation3 + $0x80] sm:$0x1] %v7810_v2  ;;  %6444 = vmatprep.subr.bf16.mxu1 %v7597_v32  ;;  %v55_v32 = vld [vmem:[%s10449_s0 + $0xc8] sm:$0xff] }
  0x19   :  { %3889 = vst [vmem:[#allocation3 + $0xb0] sm:$0x1] %v7810_v2  ;;  %3890 = vst [vmem:[#allocation3 + $0xc0] sm:$0x1] %v7810_v2  ;;  %v287_v35 = vmax.f32 %v223_v27, 0.0  ;;  %v142_v37 = vmul.f32 %v8107_v21, %v55_v32  ;;  %v295_v38 = vmax.f32 %v8226_v56, 0.0 }
  0x1a   :  { %3891 = vst [vmem:[#allocation3 + $0xd0] sm:$0x1] %v7810_v2  ;;  %3892 = vst [vmem:[#allocation3 + $0xe0] sm:$0x1] %v7810_v2 }
  0x1b   :  { %3893 = vst [vmem:[#allocation3 + $0xf0] sm:$0x1] %v7810_v2  ;;  %3894 = vst [vmem:[#allocation3 + $0x100] sm:$0x1] %v7810_v2  ;;  %6445 = vmatpush3.bf16.msra.mxu1 %v7598_v34  ;;  %v283_v34 = vmax.f32 %v219_v23, 0.0 }
  0x1c   :  { %3895 = vst [vmem:[#allocation3 + $0x110] sm:$0x1] %v7810_v2  ;;  %3896 = vst [vmem:[#allocation3 + $0x120] sm:$0x1] %v7810_v2  ;;  %6446 = vmatprep.subr.bf16.mxu1 %v7599_v42  ;;  %v286_v42 = vmax.f32 %v222_v29, 0.0  ;;  %v7602_v29 = vld [vmem:[%s10448_s1 + $0x180] sm:$0xff]  }
  0x1d   :  { %3899 = vst [vmem:[#allocation3 + $0x19] sm:$0x1] %v7810_v2  ;;  %3900 = vst [vmem:[#allocation3 + $0x29] sm:$0x1] %v7810_v2  ;;  %v510_v50 = vrot.slane %v283_v34, 7 }
  0x1e   :  { %3901 = vst [vmem:[#allocation3 + $0x39] sm:$0x1] %v7810_v2  ;;  %3902 = vst [vmem:[#allocation3 + $0x49] sm:$0x1] %v7810_v2 }
  0x1f   :  { %3903 = vst [vmem:[#allocation3 + $0x59] sm:$0x1] %v7810_v2  ;;  %3904 = vst [vmem:[#allocation3 + $0x69] sm:$0x1] %v7810_v2  ;;  %6447 = vmatpush3.bf16.msra.mxu1 %v7600_v58 }
  0x20   :  { %3905 = vst [vmem:[#allocation3 + $0x79] sm:$0x1] %v7810_v2  ;;  %3906 = vst [vmem:[#allocation3 + $0x89] sm:$0x1] %v7810_v2  ;;  %6496 = vmatprep.subr.bf16.mxu1 %v7601_v14 }
  0x21   :  { %3909 = vst [vmem:[#allocation3 + $0xb9] sm:$0x1] %v7810_v2  ;;  %3910 = vst [vmem:[#allocation3 + $0xc9] sm:$0x1] %v7810_v2 }
  0x22   :  { %3911 = vst [vmem:[#allocation3 + $0xd9] sm:$0x1] %v7810_v2  ;;  %3912 = vst [vmem:[#allocation3 + $0xe9] sm:$0x1] %v7810_v2 }
  0x23   :  { %3913 = vst [vmem:[#allocation3 + $0xf9] sm:$0x1] %v7810_v2  ;;  %3914 = vst [vmem:[#allocation3 + $0x109] sm:$0x1] %v7810_v2 }
  0x24   :  { %3915 = vst [vmem:[#allocation3 + $0x119] sm:$0x1] %v7810_v2  ;;  %3916 = vst [vmem:[#allocation3 + $0x129] sm:$0x1] %v7810_v2 }
  0x25   :  { %3878 = vst [vmem:[#allocation3] sm:$0x1] %v7810_v2  ;;  %3887 = vst [vmem:[#allocation3 + $0x90] sm:$0x1] %v7810_v2 }
  0x26   :  { %3888 = vst [vmem:[#allocation3 + $0xa0] sm:$0x1] %v7810_v2  ;;  %3897 = vst [vmem:[#allocation3 + $0x130] sm:$0x1] %v7810_v2 }
  0x27   :  { %3898 = vst [vmem:[#allocation3 + $0x9] sm:$0x1] %v7810_v2  ;;  %3907 = vst [vmem:[#allocation3 + $0x99] sm:$0x1] %v7810_v2 }
  0x28   :  { %3908 = vst [vmem:[#allocation3 + $0xa9] sm:$0x1] %v7810_v2  ;;  %3917 = vst [vmem:[#allocation3 + $0x139] sm:$0x1] %v7810_v2 }
  0x29   :  { %421 = vst.msk [vmem:[#allocation2 + $0x20] ss:$8 sm:$0xf] %vm7949_vm0, %v7810_v2  ;;  %424 = vst.msk [vmem:[#allocation2 + $0x60] ss:$8 sm:$0xf] %vm7949_vm0, %v7810_v2 }
  0x2a   :  { %370 = vst.msk [vmem:[#allocation2 + $0x40] ss:$8 sm:$0xf] %vm7949_vm0, %v7810_v2  ;;  %373 = vst.msk [vmem:[#allocation2 + $0x80] ss:$8 sm:$0xf] %vm7949_vm0, %v7810_v2 }
  0x2b   :  { %376 = vst.msk [vmem:[#allocation2 + $0xc0] ss:$8 sm:$0xf] %vm7949_vm0, %v7810_v2  ;;  %379 = vst.msk [vmem:[#allocation2 + $0x100] ss:$8 sm:$0xf] %vm7949_vm0, %v7810_v2 }
  0x2c   :  { %382 = vst.msk [vmem:[#allocation2 + $0x140] ss:$8 sm:$0xf] %vm7949_vm0, %v7810_v2  ;;  %385 = vst.msk [vmem:[#allocation2 + $0x180] ss:$8 sm:$0xf] %vm7949_vm0, %v7810_v2 }
  0x2d   :  { %388 = vst.msk [vmem:[#allocation2 + $0x1c0] ss:$8 sm:$0xf] %vm7949_vm0, %v7810_v2  ;;  %397 = vst.msk [vmem:[#allocation2 + $0x280] ss:$8 sm:$0xf] %vm7949_vm0, %v7810_v2 }
  0x2e   :  { %400 = vst.msk [vmem:[#allocation2 + $0x2c0] ss:$8 sm:$0xf] %vm7949_vm0, %v7810_v2  ;;  %403 = vst.msk [vmem:[#allocation2 + $0x300] ss:$8 sm:$0xf] %vm7949_vm0, %v7810_v2 }
  0x2f   :  { %406 = vst.msk [vmem:[#allocation2 + $0x340] ss:$8 sm:$0xf] %vm7949_vm0, %v7810_v2  ;;  %409 = vst.msk [vmem:[#allocation2 + $0x380] ss:$8 sm:$0xf] %vm7949_vm0, %v7810_v2 }
  0x30   :  { %412 = vst.msk [vmem:[#allocation2 + $0x3c0] ss:$8 sm:$0xf] %vm7949_vm0, %v7810_v2  ;;  %415 = vst.msk [vmem:[#allocation2 + $0x400] ss:$8 sm:$0xf] %vm7949_vm0, %v7810_v2 }
  0x31   :  { %427 = vst.msk [vmem:[#allocation2 + $0xa0] ss:$8 sm:$0xf] %vm7949_vm0, %v7810_v2  ;;  %430 = vst.msk [vmem:[#allocation2 + $0xe0] ss:$8 sm:$0xf] %vm7949_vm0, %v7810_v2 }
  0x32   :  { %433 = vst.msk [vmem:[#allocation2 + $0x120] ss:$8 sm:$0xf] %vm7949_vm0, %v7810_v2  ;;  %436 = vst.msk [vmem:[#allocation2 + $0x160] ss:$8 sm:$0xf] %vm7949_vm0, %v7810_v2 }
  0x33   :  { %439 = vst.msk [vmem:[#allocation2 + $0x1a0] ss:$8 sm:$0xf] %vm7949_vm0, %v7810_v2  ;;  %442 = vst.msk [vmem:[#allocation2 + $0x1e0] ss:$8 sm:$0xf] %vm7949_vm0, %v7810_v2 }
  0x34   :  { %451 = vst.msk [vmem:[#allocation2 + $0x2a0] ss:$8 sm:$0xf] %vm7949_vm0, %v7810_v2  ;;  %454 = vst.msk [vmem:[#allocation2 + $0x2e0] ss:$8 sm:$0xf] %vm7949_vm0, %v7810_v2 }
  0x35   :  { %457 = vst.msk [vmem:[#allocation2 + $0x320] ss:$8 sm:$0xf] %vm7949_vm0, %v7810_v2  ;;  %460 = vst.msk [vmem:[#allocation2 + $0x360] ss:$8 sm:$0xf] %vm7949_vm0, %v7810_v2 }
  0x36   :  { %463 = vst.msk [vmem:[#allocation2 + $0x3a0] ss:$8 sm:$0xf] %vm7949_vm0, %v7810_v2  ;;  %466 = vst.msk [vmem:[#allocation2 + $0x3e0] ss:$8 sm:$0xf] %vm7949_vm0, %v7810_v2 }
  0x37   :  { %469 = vst.msk [vmem:[#allocation2 + $0x420] ss:$8 sm:$0xf] %vm7949_vm0, %v7810_v2  ;;  %367 = vst.msk [vmem:[#allocation2] ss:$8 sm:$0xf] %vm7949_vm0, %v7810_v2 }
  0x38   :  { %391 = vst.msk [vmem:[#allocation2 + $0x200] ss:$8 sm:$0xf] %vm7949_vm0, %v7810_v2  ;;  %394 = vst.msk [vmem:[#allocation2 + $0x240] ss:$8 sm:$0xf] %vm7949_vm0, %v7810_v2 }
  0x39   :  { %418 = vst.msk [vmem:[#allocation2 + $0x440] ss:$8 sm:$0xf] %vm7949_vm0, %v7810_v2  ;;  %445 = vst.msk [vmem:[#allocation2 + $0x220] ss:$8 sm:$0xf] %vm7949_vm0, %v7810_v2 }
  0x3a   :  { %448 = vst.msk [vmem:[#allocation2 + $0x260] ss:$8 sm:$0xf] %vm7949_vm0, %v7810_v2  ;;  %472 = vst.msk [vmem:[#allocation2 + $0x460] ss:$8 sm:$0xf] %vm7949_vm0, %v7810_v2 }
  0x3b   :  { %v8156_v43 = vld [vmem:[#allocation2 + $0x20] sm:$0x1]  ;;  %474 = vst [vmem:[#allocation2] sm:$0xff] %v266_v51  ;;  %475 = vst [vmem:[#allocation2 + $0x40] sm:$0xff] %v270_v52  ;;  %v274_v2 = vmax.f32 %v210_v55, 0.0  ;;  %v511_v51 = vrot.slane %v287_v35, 7  ;;  %v227_v55 = vadd.f32 %v8119_v25, %v142_v37 }
  0x3c   :  { %v8158_v44 = vld [vmem:[#allocation2 + $0x60] sm:$0x1]  ;;  %v1085_v61 = vrot.slane %v8156_v43, 1  ;;  %538 = vst [vmem:[#allocation2 + $0x8] sm:$0xfe] %v506_v59  ;;  %477 = vst [vmem:[#allocation2 + $0xc0] sm:$0xff] %v278_v3  ;;  %v226_v43 = vadd.f32 %v8122_v26, %v141_v46 }
  0x3d   :  { %v8168_v57 = vld [vmem:[#allocation2 + $0xa0] sm:$0x1]  ;;  %539 = vst [vmem:[#allocation2 + $0x28] sm:$0x1] %v506_v59  ;;  %540 = vst [vmem:[#allocation2 + $0x48] sm:$0xfe] %v507_v60 }
  0x3e   :  { %v8174_v62 = vld [vmem:[#allocation2 + $0xe0] sm:$0x1]  ;;  %541 = vst [vmem:[#allocation2 + $0x68] sm:$0x1] %v507_v60  ;;  %v1097_v6 = vrot.slane %v8158_v44, 1  ;;  %476 = vst [vmem:[#allocation2 + $0x80] sm:$0xff] %v274_v2 }
  0x3f   :  { %v8192_v12 = vld [vmem:[#allocation2 + $0x120] sm:$0x1]  ;;  %v1109_v17 = vrot.slane %v8168_v57, 1  ;;  %v1121_v22 = vrot.slane %v8174_v62, 1  ;;  %542 = vst [vmem:[#allocation2 + $0x88] sm:$0xfe] %v508_v15 }
  0x40   :  { %v8194_v13 = vld [vmem:[#allocation2 + $0x160] sm:$0x1]  ;;  %543 = vst [vmem:[#allocation2 + $0xa8] sm:$0x1] %v508_v15  ;;  %544 = vst [vmem:[#allocation2 + $0xc8] sm:$0xfe] %v509_v16  ;;  %v230_v15 = vadd.f32 %v8122_v26, %v145_v47 }
  0x41   :  { %545 = vst [vmem:[#allocation2 + $0xe8] sm:$0x1] %v509_v16  ;;  %v1133_v30 = vrot.slane %v8192_v12, 1  ;;  %v1145_v31 = vrot.slane %v8194_v13, 1  ;;  %478 = vst [vmem:[#allocation2 + $0x100] sm:$0xff] %v282_v36  ;;  %v291_v7 = vmax.f32 %v227_v55, 0.0  ;;  %v150_v16 = vmul.f32 %v8107_v21, %v63_v1 }
  0x42   :  { %v827_v40 = vld [vmem:[#allocation2] sm:$0xfe]  ;;  %479 = vst [vmem:[#allocation2 + $0x140] sm:$0xff] %v286_v42  ;;  %546 = vst [vmem:[#allocation2 + $0x108] sm:$0xfe] %v510_v50  ;;  %v67_v35 = vld [vmem:[%s10449_s0 + $0x128] sm:$0xff] }
  0x43   :  { %v835_v41 = vld [vmem:[#allocation2 + $0x40] sm:$0xfe]  ;;  %v1084_v48 = vrot.slane %v827_v40, 1  ;;  %v828_v52 = vld [vmem:[#allocation2 + $0x8] sm:$0xfe]  ;;  %v512_v39 = vrot.slane %v291_v7, 7 }
  0x44   :  { %v1096_v49 = vrot.slane %v835_v41, 1  ;;  %v832_v53 = vld [vmem:[#allocation2 + $0x28] sm:$0x1]  ;;  %v836_v54 = vld [vmem:[#allocation2 + $0x48] sm:$0xfe]  ;;  %v1087_v59 = vrot.slane %v828_v52, 1 }
  0x45   :  { %v840_v58 = vld [vmem:[#allocation2 + $0x68] sm:$0x1]  ;;  %v1088_v60 = vrot.slane %v832_v53, 1  ;;  %v1099_v63 = vrot.slane %v836_v54, 1  ;;  %v1086_v0 = vsel %vm1083_vm1, %v1084_v48, %v1085_v61  ;;  %547 = vst [vmem:[#allocation2 + $0x128] sm:$0x1] %v510_v50  ;;  %v154_v53 = vmul.f32 %v8107_v21, %v67_v35 }
  0x46   :  { %548 = vst [vmem:[#allocation2 + $0x148] sm:$0xfe] %v511_v51  ;;  %549 = vst [vmem:[#allocation2 + $0x168] sm:$0x1] %v511_v51  ;;  %v1100_v2 = vrot.slane %v840_v58, 1  ;;  %v1098_v3 = vsel %vm1083_vm1, %v1096_v49, %v1097_v6  ;;  %v7603_v37 = vld [vmem:[%s10448_s1 + $0x1c8] sm:$0xff]   ;;  %v235_v54 = vadd.f32 %v8119_v25, %v150_v16 }
  0x47   :  { %v843_v4 = vld [vmem:[#allocation2 + $0x80] sm:$0xfe]  ;;  %v1089_v61 = vsel %vm1083_vm1, %v1087_v59, %v1088_v60  ;;  %v1340_v8 = vpack.c.bf16 %v1098_v3, %v1086_v0  ;;  %v844_v9 = vld [vmem:[#allocation2 + $0x88] sm:$0xfe]  ;;  %v848_v11 = vld [vmem:[#allocation2 + $0xa8] sm:$0x1] }
  0x48   :  { %v851_v5 = vld [vmem:[#allocation2 + $0xc0] sm:$0xfe]  ;;  %v852_v14 = vld [vmem:[#allocation2 + $0xc8] sm:$0xfe]  ;;  %v1101_v18 = vsel %vm1083_vm1, %v1099_v63, %v1100_v2  ;;  %v856_v44 = vld [vmem:[#allocation2 + $0xe8] sm:$0x1] }
  0x49   :  { %v1111_v23 = vrot.slane %v844_v9, 1  ;;  %v1112_v6 = vrot.slane %v848_v11, 1  ;;  %v1123_v27 = vrot.slane %v852_v14, 1  ;;  %v1341_v28 = vpack.c.bf16 %v1101_v18, %v1089_v61  ;;  %v859_v46 = vld [vmem:[#allocation2 + $0x100] sm:$0xfe]  ;;  %v71_v9 = vld [vmem:[%s10449_s0 + $0x148] sm:$0xff] }
  0x4a   :  { %v1124_v32 = vrot.slane %v856_v44, 1  ;;  %v1108_v33 = vrot.slane %v843_v4, 1  ;;  %v1120_v34 = vrot.slane %v851_v5, 1  ;;  %v290_v40 = vmax.f32 %v226_v43, 0.0  ;;  %v867_v47 = vld [vmem:[#allocation2 + $0x140] sm:$0xfe] }
  0x4b   :  { %v1113_v36 = vsel %vm1083_vm1, %v1111_v23, %v1112_v6  ;;  %1661 = vmatprep.mubr.bf16.mxu1 %v1341_v28  ;;  %v62_v48 = vld [vmem:[%s10449_s0 + $0x100] sm:$0xff]  ;;  %v860_v51 = vld [vmem:[#allocation2 + $0x108] sm:$0xfe]  ;;  %550 = vst [vmem:[#allocation2 + $0x188] sm:$0xfe] %v512_v39  ;;  %v1132_v60 = vrot.slane %v859_v46, 1  ;;  %v239_v4 = vadd.f32 %v8119_v25, %v154_v53 }
  0x4c   :  { %v1125_v41 = vsel %vm1083_vm1, %v1123_v27, %v1124_v32  ;;  %v1110_v42 = vsel %vm1083_vm1, %v1108_v33, %v1109_v17  ;;  %1662 = vmatmul.mubr.bf16.vlgmr.msra.gmra.mrb[0].mxu1 %v1340_v8  ;;  %v1122_v50 = vsel %vm1083_vm1, %v1120_v34, %v1121_v22  ;;  %v864_v57 = vld [vmem:[#allocation2 + $0x128] sm:$0x1]  ;;  %v7605_v17 = vld [vmem:[%s10448_s1 + $0x1d0] sm:$0xff]   ;;  %551 = vst [vmem:[#allocation2 + $0x1a8] sm:$0x1] %v512_v39  ;;  %480 = vst [vmem:[#allocation2 + $0x180] sm:$0xff] %v290_v40 }
  0x4d   :  { %v1345_v49 = vpack.c.bf16 %v1125_v41, %v1113_v36  ;;  %v868_v52 = vld [vmem:[#allocation2 + $0x148] sm:$0xfe]  ;;  %6497 = vmatpush3.bf16.msra.mxu1 %v7602_v29  ;;  %v872_v55 = vld [vmem:[#allocation2 + $0x168] sm:$0x1]  ;;  %v1135_v56 = vrot.slane %v860_v51, 1  ;;  %v1136_v62 = vrot.slane %v864_v57, 1  ;;  %v1344_v1 = vpack.c.bf16 %v1122_v50, %v1110_v42 }
  0x4e   :  { %v1147_v58 = vrot.slane %v868_v52, 1  ;;  %v66_v22 = vld [vmem:[%s10449_s0 + $0x120] sm:$0xff]  ;;  %6498 = vmatprep.subr.bf16.mxu1 %v7603_v37  ;;  %v1148_v59 = vrot.slane %v872_v55, 1  ;;  %v513_v63 = vrot.slane %v295_v38, 7  ;;  %v294_v0 = vmax.f32 %v230_v15, 0.0  ;;  %v7606_v43 = vld [vmem:[%s10448_s1 + $0x190] sm:$0xff]  }
  0x4f   :  { %1669 = vmatprep.mubr.bf16.mxu1 %v1345_v49  ;;  %v1137_v2 = vsel %vm1083_vm1, %v1135_v56, %v1136_v62  ;;  %v8275_v3 = vld [vmem:[#allocation2 + $0x1a0] sm:$0x1]  ;;  %v1144_v7 = vrot.slane %v867_v47, 1  ;;  %v299_v61 = vmax.f32 %v235_v54, 0.0  ;;  %v149_v8 = vmul.f32 %v8116_v24, %v62_v48  ;;  %v75_v18 = vld [vmem:[%s10449_s0 + $0x168] sm:$0xff]  ;;  %v7607_v6 = vld [vmem:[%s10448_s1 + $0x1d8] sm:$0xff]  }
  0x50   :  { %v1149_v5 = vsel %vm1083_vm1, %v1147_v58, %v1148_v59  ;;  %552 = vst [vmem:[#allocation2 + $0x1c8] sm:$0xfe] %v513_v63  ;;  %553 = vst [vmem:[#allocation2 + $0x1e8] sm:$0x1] %v513_v63  ;;  %v8286_v14 = vld [vmem:[#allocation2 + $0x1e0] sm:$0x1]  ;;  %v153_v16 = vmul.f32 %v8116_v24, %v66_v22  ;;  %v8295_v44 = vsel %vm1083_vm1, %v1132_v60, %v1133_v30 }
  0x51   :  { %481 = vst [vmem:[#allocation2 + $0x1c0] sm:$0xff] %v294_v0  ;;  %6499 = vmatpush3.bf16.msra.mxu1 %v7604_v45  ;;  %v1349_v11 = vpack.c.bf16 %v1149_v5, %v1137_v2  ;;  %v303_v15 = vmax.f32 %v239_v4, 0.0  ;;  %v1157_v23 = vrot.slane %v8275_v3, 1  ;;  %v514_v27 = vrot.slane %v299_v61, 7  ;;  %v70_v29 = vld [vmem:[%s10449_s0 + $0x140] sm:$0xff]  ;;  %v7608_v41 = vld [vmem:[%s10448_s1 + $0x198] sm:$0xff]  }
  0x52   :  { %6500 = vmatprep.subr.bf16.mxu1 %v7605_v17  ;;  %v234_v28 = vadd.f32 %v8122_v26, %v149_v8  ;;  %v876_v32 = vld [vmem:[#allocation2 + $0x188] sm:$0xfe]  ;;  %v238_v30 = vadd.f32 %v8122_v26, %v153_v16  ;;  %v158_v34 = vmul.f32 %v8107_v21, %v71_v9  ;;  %v162_v35 = vmul.f32 %v8107_v21, %v75_v18  ;;  %v7609_v46 = vld [vmem:[%s10448_s1 + $0x1e0] sm:$0xff]  }
  0x53   :  { %v880_v33 = vld [vmem:[#allocation2 + $0x1a8] sm:$0x1]  ;;  %v875_v12 = vld [vmem:[#allocation2 + $0x180] sm:$0xfe]  ;;  %v157_v36 = vmul.f32 %v8116_v24, %v70_v29  ;;  %v1146_v37 = vsel %vm1083_vm1, %v1144_v7, %v1145_v31  ;;  %v1159_v38 = vrot.slane %v876_v32, 1  ;;  %v515_v40 = vrot.slane %v303_v15, 7 }
  0x54   :  { %1670 = vmatmul.mubr.bf16.gmra.mrb[4].mxu1 %v1344_v1  ;;  %v1160_v39 = vrot.slane %v880_v33, 1  ;;  %554 = vst [vmem:[#allocation2 + $0x248] sm:$0xfe] %v514_v27  ;;  %555 = vst [vmem:[#allocation2 + $0x268] sm:$0x1] %v514_v27  ;;  %v298_v42 = vmax.f32 %v234_v28, 0.0  ;;  %v243_v13 = vadd.f32 %v8119_v25, %v158_v34  ;;  %v247_v31 = vadd.f32 %v8119_v25, %v162_v35 }
  0x55   :  { %1677 = vmatprep.mubr.bf16.mxu1 %v1349_v11  ;;  %6501 = vmatpush3.bf16.msra.mxu1 %v7606_v43  ;;  %v302_v45 = vmax.f32 %v238_v30, 0.0  ;;  %v74_v47 = vld [vmem:[%s10449_s0 + $0x160] sm:$0xff]  ;;  %v1156_v48 = vrot.slane %v875_v12, 1  ;;  %v1169_v49 = vrot.slane %v8286_v14, 1  ;;  %556 = vst [vmem:[#allocation2 + $0x288] sm:$0xfe] %v515_v40  ;;  %v242_v51 = vadd.f32 %v8122_v26, %v157_v36 }
  0x56   :  { %6502 = vmatprep.subr.bf16.mxu1 %v7607_v6  ;;  %557 = vst [vmem:[#allocation2 + $0x2a8] sm:$0x1] %v515_v40  ;;  %v161_v50 = vmul.f32 %v8116_v24, %v74_v47  ;;  %v1348_v57 = vpack.c.bf16 %v1146_v37, %v8295_v44  ;;  %482 = vst [vmem:[#allocation2 + $0x240] sm:$0xff] %v298_v42  ;;  %v1161_v54 = vsel %vm1083_vm1, %v1159_v38, %v1160_v39  ;;  %v8328_v62 = vld [vmem:[#allocation2 + $0x260] sm:$0x1]  ;;  %v7611_v1 = vld [vmem:[%s10448_s1 + $0x1e8] sm:$0xff]  }
  0x57   :  { %v884_v52 = vld [vmem:[#allocation2 + $0x1c8] sm:$0xfe]  ;;  %v888_v17 = vld [vmem:[#allocation2 + $0x1e8] sm:$0x1]  ;;  %483 = vst [vmem:[#allocation2 + $0x280] sm:$0xff] %v302_v45  ;;  %v7610_v58 = vld [vmem:[%s10448_s1 + $0x1a0] sm:$0xff]   ;;  %v8354_v14 = vsel %vm1083_vm1, %v1156_v48, %v1157_v23 }
  0x58   :  { %v883_v53 = vld [vmem:[#allocation2 + $0x1c0] sm:$0xfe]  ;;  %v1171_v55 = vrot.slane %v884_v52, 1  ;;  %v1172_v56 = vrot.slane %v888_v17, 1  ;;  %v307_v22 = vmax.f32 %v243_v13, 0.0  ;;  %v311_v60 = vmax.f32 %v247_v31, 0.0 }
  0x59   :  { %v1168_v59 = vrot.slane %v883_v53, 1  ;;  %6503 = vmatpush3.bf16.msra.mxu1 %v7608_v41  ;;  %v246_v63 = vadd.f32 %v8122_v26, %v161_v50  ;;  %v306_v0 = vmax.f32 %v242_v51, 0.0  ;;  %v107_v2 = vsub.s32 2, %v8074_v10  ;;  %v8339_v5 = vld [vmem:[#allocation2 + $0x2a0] sm:$0x1]  ;;  %v79_v43 = vld [vmem:[%s10449_s0 + $0x188] sm:$0xff] }
  0x5a   :  { %v1173_v4 = vsel %vm1083_vm1, %v1171_v55, %v1172_v56  ;;  %6504 = vmatprep.subr.bf16.mxu1 %v7609_v46  ;;  %v516_v7 = vrot.slane %v307_v22, 7  ;;  %v83_v61 = vld [vmem:[%s10449_s0 + $0x1a8] sm:$0xff]  ;;  %v78_v8 = vld [vmem:[%s10449_s0 + $0x180] sm:$0xff]  ;;  %v111_v9 = vsub.s32 3, %v8074_v10  ;;  %v517_v18 = vrot.slane %v311_v60, 7  ;;  %v7613_v37 = vld [vmem:[%s10448_s1 + $0x1f0] sm:$0xff]  }
  0x5b   :  { %v1353_v11 = vpack.c.bf16 %v1173_v4, %v1161_v54  ;;  %v892_v15 = vld [vmem:[#allocation2 + $0x248] sm:$0xfe]  ;;  %v896_v16 = vld [vmem:[#allocation2 + $0x268] sm:$0x1]  ;;  %v310_v44 = vmax.f32 %v246_v63, 0.0  ;;  %484 = vst [vmem:[#allocation2 + $0x2c0] sm:$0xff] %v306_v0  ;;  %v166_v3 = vmul.f32 %v8107_v21, %v79_v43  ;;  %v170_v23 = vmul.f32 %v8107_v21, %v83_v61 }
  0x5c   :  { %1678 = vmatmul.mubr.bf16.gmra.mrb[8].mxu1 %v1348_v57  ;;  %v1183_v6 = vrot.slane %v892_v15, 1  ;;  %v1184_v27 = vrot.slane %v896_v16, 1  ;;  %558 = vst [vmem:[#allocation2 + $0x2c8] sm:$0xfe] %v516_v7  ;;  %559 = vst [vmem:[#allocation2 + $0x2e8] sm:$0x1] %v516_v7  ;;  %v1170_v33 = vsel %vm1083_vm1, %v1168_v59, %v1169_v49  ;;  %v165_v35 = vmul.f32 %v8116_v24, %v78_v8 }
  0x5d   :  { %v8356_v28 = vld [vmem:[#allocation2 + $0x2e0] sm:$0x1]  ;;  %v7612_v29 = vld [vmem:[%s10448_s1 + $0x1a8] sm:$0xff]   ;;  %1685 = vmatprep.mubr.bf16.mxu1 %v1353_v11  ;;  %v1181_v34 = vrot.slane %v8328_v62, 1  ;;  %6505 = vmatpush3.bf16.msra.mxu1 %v7610_v58  ;;  %560 = vst [vmem:[#allocation2 + $0x308] sm:$0xfe] %v517_v18  ;;  %v251_v46 = vadd.f32 %v8119_v25, %v166_v3  ;;  %v255_v47 = vadd.f32 %v8119_v25, %v170_v23 }
  0x5e   :  { %v82_v32 = vld [vmem:[%s10449_s0 + $0x1a0] sm:$0xff]  ;;  %v900_v12 = vld [vmem:[#allocation2 + $0x288] sm:$0xfe]  ;;  %v904_v30 = vld [vmem:[#allocation2 + $0x2a8] sm:$0x1]  ;;  %485 = vst [vmem:[#allocation2 + $0x300] sm:$0xff] %v310_v44  ;;  %v1185_v38 = vsel %vm1083_vm1, %v1183_v6, %v1184_v27  ;;  %6506 = vmatprep.subr.bf16.mxu1 %v7611_v1  ;;  %v250_v48 = vadd.f32 %v8122_v26, %v165_v35  ;;  %v1352_v49 = vpack.c.bf16 %v1170_v33, %v8354_v14 }
  0x5f   :  { %561 = vst [vmem:[#allocation2 + $0x328] sm:$0x1] %v517_v18  ;;  %v169_v36 = vmul.f32 %v8116_v24, %v82_v32  ;;  %v1195_v39 = vrot.slane %v900_v12, 1  ;;  %v1196_v40 = vrot.slane %v904_v30, 1  ;;  %v891_v41 = vld [vmem:[#allocation2 + $0x240] sm:$0xfe]  ;;  %v8398_v22 = vrot.slane %v8099_v19, %v107_v2 }
  0x60   :  { %v899_v42 = vld [vmem:[#allocation2 + $0x280] sm:$0xfe]  ;;  %v8374_v45 = vld [vmem:[#allocation2 + $0x320] sm:$0x1]  ;;  %v1193_v13 = vrot.slane %v8339_v5, 1  ;;  %v1205_v31 = vrot.slane %v8356_v28, 1  ;;  %v8412_v44 = vrot.slane %v8099_v19, %v111_v9 }
  0x61   :  { %v1197_v50 = vsel %vm1083_vm1, %v1195_v39, %v1196_v40  ;;  %v315_v51 = vmax.f32 %v251_v46, 0.0  ;;  %v254_v57 = vadd.f32 %v8122_v26, %v169_v36  ;;  %v1180_v17 = vrot.slane %v891_v41, 1  ;;  %6507 = vmatpush3.bf16.msra.mxu1 %v7612_v29  ;;  %v8384_v55 = vld [vmem:[#allocation2 + $0x360] sm:$0x1]  ;;  %v7614_v56 = vld [vmem:[%s10448_s1 + $0x1b0] sm:$0xff]   ;;  %v87_v62 = vld [vmem:[%s10449_s0 + $0x1c8] sm:$0xff] }
  0x62   :  { %v1357_v52 = vpack.c.bf16 %v1197_v50, %v1185_v38  ;;  %v1192_v53 = vrot.slane %v899_v42, 1  ;;  %v319_v54 = vmax.f32 %v255_v47, 0.0  ;;  %v91_v58 = vld [vmem:[%s10449_s0 + $0x1e8] sm:$0xff]  ;;  %v8400_v59 = vld [vmem:[#allocation2 + $0x2c0] sm:$0xfe]  ;;  %v314_v63 = vmax.f32 %v250_v48, 0.0  ;;  %6508 = vmatprep.subr.bf16.mxu1 %v7613_v37 }
  0x63   :  { %v518_v60 = vrot.slane %v315_v51, 7  ;;  %v318_v0 = vmax.f32 %v254_v57, 0.0  ;;  %v86_v1 = vld [vmem:[%s10449_s0 + $0x1c0] sm:$0xff]  ;;  %v908_v4 = vld [vmem:[#allocation2 + $0x2c8] sm:$0xfe]  ;;  %v1217_v7 = vrot.slane %v8374_v45, 1  ;;  %v174_v61 = vmul.f32 %v8107_v21, %v87_v62 }
  0x64   :  { %v912_v5 = vld [vmem:[#allocation2 + $0x2e8] sm:$0x1]  ;;  %v519_v43 = vrot.slane %v319_v54, 7  ;;  %v178_v8 = vmul.f32 %v8107_v21, %v91_v58  ;;  %1686 = vmatmul.mubr.bf16.gmra.mrb[12].mxu1 %v1352_v49  ;;  %v916_v11 = vld [vmem:[#allocation2 + $0x308] sm:$0xfe]  ;;  %v1207_v15 = vrot.slane %v908_v4, 1  ;;  %v173_v18 = vmul.f32 %v8116_v24, %v86_v1 }
  0x65   :  { %v1208_v16 = vrot.slane %v912_v5, 1  ;;  %562 = vst [vmem:[#allocation2 + $0x348] sm:$0xfe] %v518_v60  ;;  %563 = vst [vmem:[#allocation2 + $0x368] sm:$0x1] %v518_v60  ;;  %1693 = vmatprep.mubr.bf16.mxu1 %v1357_v52  ;;  %v1182_v6 = vsel %vm1083_vm1, %v1180_v17, %v1181_v34  ;;  %v1194_v21 = vsel %vm1083_vm1, %v1192_v53, %v1193_v13  ;;  %v1219_v27 = vrot.slane %v916_v11, 1 }
  0x66   :  { %v920_v14 = vld [vmem:[#allocation2 + $0x328] sm:$0x1]  ;;  %486 = vst [vmem:[#allocation2 + $0x340] sm:$0xff] %v314_v63  ;;  %487 = vst [vmem:[#allocation2 + $0x380] sm:$0xff] %v318_v0  ;;  %6509 = vmatpush3.bf16.msra.mxu1 %v7614_v56  ;;  %v90_v3 = vld [vmem:[%s10449_s0 + $0x1e0] sm:$0xff]  ;;  %v1229_v19 = vrot.slane %v8384_v55, 1  ;;  %v259_v12 = vadd.f32 %v8119_v25, %v174_v61  ;;  %v263_v30 = vadd.f32 %v8119_v25, %v178_v8 }
  0x67   :  { %v1220_v29 = vrot.slane %v920_v14, 1  ;;  %564 = vst [vmem:[#allocation2 + $0x388] sm:$0xfe] %v519_v43  ;;  %565 = vst [vmem:[#allocation2 + $0x3a8] sm:$0x1] %v519_v43  ;;  %v1209_v23 = vsel %vm1083_vm1, %v1207_v15, %v1208_v16  ;;  %v7615_v34 = vld [vmem:[%s10448_s1 + $0x1f8] sm:$0xff]   ;;  %v177_v37 = vmul.f32 %v8116_v24, %v90_v3  ;;  %v258_v38 = vadd.f32 %v8122_v26, %v173_v18 }
  0x68   :  { %v915_v32 = vld [vmem:[#allocation2 + $0x300] sm:$0xfe]  ;;  %v8420_v33 = vld [vmem:[#allocation2 + $0x3a0] sm:$0x1]  ;;  %v1204_v36 = vrot.slane %v8400_v59, 1  ;;  %v7616_v39 = vld [vmem:[%s10448_s1 + $0x1b8] sm:$0xff]   ;;  %v1356_v40 = vpack.c.bf16 %v1194_v21, %v1182_v6  ;;  %6510 = vmatprep.subr.bf16.mxu1 %v7615_v34  ;;  %v8438_v25 = vrot.slane %v8104_v20, %v111_v9  ;;  %v8457_v17 = vrot.slane %v8104_v20, %v107_v2 }
  0x69   :  { %v1221_v35 = vsel %vm1083_vm1, %v1219_v27, %v1220_v29  ;;  %v323_v41 = vmax.f32 %v259_v12, 0.0  ;;  %v327_v42 = vmax.f32 %v263_v30, 0.0  ;;  %v1216_v13 = vrot.slane %v915_v32, 1  ;;  %v33_v48 = vld [vmem:[%s10449_s0 + $0x18] sm:$0xff]  ;;  %v32_v49 = vld [vmem:[%s10449_s0 + $0x10] sm:$0xff] }
  0x6a   :  { %v1361_v46 = vpack.c.bf16 %v1221_v35, %v1209_v23  ;;  %v262_v47 = vadd.f32 %v8122_v26, %v177_v37  ;;  %v322_v24 = vmax.f32 %v258_v38, 0.0  ;;  %6511 = vmatpush3.bf16.msra.mxu1 %v7616_v39  ;;  %v1241_v50 = vrot.slane %v8420_v33, 1  ;;  %v8448_v9 = vld [vmem:[#allocation2 + $0x3e0] sm:$0x1]  ;;  %v8471_v8 = vld [vmem:[#allocation2 + $0x18] sm:$0xfe] }
  0x6b   :  { %v520_v51 = vrot.slane %v323_v41, 7  ;;  %v521_v57 = vrot.slane %v327_v42, 7  ;;  %v120_v52 = vmul.f32 %v8412_v44, %v33_v48  ;;  %v7617_v26 = vld [vmem:[%s10448_s1 + $0x40] sm:$0xff]   ;;  %v119_v62 = vmul.f32 %v8398_v22, %v32_v49  ;;  %v8474_v45 = vld [vmem:[#allocation2 + $0x38] sm:$0x1]  ;;  %v36_v32 = vld [vmem:[%s10449_s0 + $0x30] sm:$0xff] }
  0x6c   :  { %v924_v53 = vld [vmem:[#allocation2 + $0x348] sm:$0xfe]  ;;  %v928_v54 = vld [vmem:[#allocation2 + $0x368] sm:$0x1]  ;;  %488 = vst [vmem:[#allocation2 + $0x3c0] sm:$0xff] %v322_v24  ;;  %1694 = vmatmul.mubr.bf16.gmra.mrb[16].mxu1 %v1356_v40  ;;  %v1206_v58 = vsel %vm1083_vm1, %v1204_v36, %v1205_v31  ;;  %6560 = vmatprep.subr.bf16.mxu1 %v7617_v26  ;;  %v1218_v20 = vsel %vm1083_vm1, %v1216_v13, %v1217_v7  ;;  %v326_v31 = vmax.f32 %v262_v47, 0.0 }
  0x6d   :  { %v923_v56 = vld [vmem:[#allocation2 + $0x340] sm:$0xfe]  ;;  %v1231_v63 = vrot.slane %v924_v53, 1  ;;  %v1232_v0 = vrot.slane %v928_v54, 1  ;;  %566 = vst [vmem:[#allocation2 + $0x3c8] sm:$0xfe] %v520_v51  ;;  %v205_v10 = vadd.f32 %v8438_v25, %v120_v52  ;;  %1701 = vmatprep.mubr.bf16.mxu1 %v1361_v46  ;;  %v204_v7 = vadd.f32 %v8457_v17, %v119_v62 }
  0x6e   :  { %v932_v59 = vld [vmem:[#allocation2 + $0x388] sm:$0xfe]  ;;  %v936_v60 = vld [vmem:[#allocation2 + $0x3a8] sm:$0x1]  ;;  %567 = vst [vmem:[#allocation2 + $0x3e8] sm:$0x1] %v520_v51  ;;  %v1360_v18 = vpack.c.bf16 %v1218_v20, %v1206_v58  ;;  %v123_v36 = vmul.f32 %v8398_v22, %v36_v32 }
  0x6f   :  { %568 = vst [vmem:[#allocation2 + $0x408] sm:$0xfe] %v521_v57  ;;  %569 = vst [vmem:[#allocation2 + $0x428] sm:$0x1] %v521_v57  ;;  %v1243_v2 = vrot.slane %v932_v59, 1  ;;  %v1244_v28 = vrot.slane %v936_v60, 1  ;;  %v1233_v4 = vsel %vm1083_vm1, %v1231_v63, %v1232_v0 }
  0x70   :  { %v931_v1 = vld [vmem:[#allocation2 + $0x380] sm:$0xfe]  ;;  %v8468_v5 = vld [vmem:[#allocation2 + $0x420] sm:$0x1]  ;;  %v1253_v43 = vrot.slane %v8448_v9, 1  ;;  %v269_v61 = vmax.f32 %v205_v10, 0.0 }
  0x71   :  { %v1245_v11 = vsel %vm1083_vm1, %v1243_v2, %v1244_v28  ;;  %v1228_v14 = vrot.slane %v923_v56, 1  ;;  %v1240_v15 = vrot.slane %v931_v1, 1  ;;  %489 = vst [vmem:[#allocation2 + $0x400] sm:$0xff] %v326_v31  ;;  %v37_v16 = vld [vmem:[%s10449_s0 + $0x38] sm:$0xff]  ;;  %v1265_v29 = vrot.slane %v8468_v5, 1  ;;  %v40_v35 = vld [vmem:[%s10449_s0 + $0x50] sm:$0xff] }
  0x72   :  { %v603_v6 = vrot.slane %v269_v61, 7  ;;  %v41_v21 = vld [vmem:[%s10449_s0 + $0x58] sm:$0xff]  ;;  %v1365_v27 = vpack.c.bf16 %v1245_v11, %v1233_v4  ;;  %v1093_v3 = vrot.slane %v8471_v8, 1  ;;  %v268_v23 = vmax.f32 %v204_v7, 0.0  ;;  %v8506_v9 = vld [vmem:[#allocation2 + $0x10] sm:$0xfe] }
  0x73   :  { %v939_v33 = vld [vmem:[#allocation2 + $0x3c0] sm:$0xfe]  ;;  %v1094_v12 = vrot.slane %v8474_v45, 1  ;;  %v124_v30 = vmul.f32 %v8412_v44, %v37_v16  ;;  %v128_v34 = vmul.f32 %v8412_v44, %v41_v21  ;;  %v1230_v37 = vsel %vm1083_vm1, %v1228_v14, %v1229_v19  ;;  %v45_v62 = vld [vmem:[%s10449_s0 + $0x78] sm:$0xff]  ;;  %v8518_v60 = vld [vmem:[#allocation2 + $0x30] sm:$0x1] }
  0x74   :  { %635 = vst [vmem:[#allocation2 + $0x58] sm:$0xfe] %v603_v6  ;;  %636 = vst [vmem:[#allocation2 + $0x78] sm:$0x1] %v603_v6  ;;  %v1242_v38 = vsel %vm1083_vm1, %v1240_v15, %v1241_v50  ;;  %v940_v39 = vld [vmem:[#allocation2 + $0x3c8] sm:$0xfe]  ;;  %v127_v42 = vmul.f32 %v8398_v22, %v40_v35  ;;  %1702 = vmatmul.mubr.bf16.gmra.mrb[20].mxu1 %v1360_v18  ;;  %v8503_v50 = vadd.f32 %v8457_v17, %v123_v36 }
  0x75   :  { %v944_v40 = vld [vmem:[#allocation2 + $0x3e8] sm:$0x1]  ;;  %571 = vst [vmem:[#allocation2 + $0x50] sm:$0xff] %v268_v23  ;;  %v1255_v13 = vrot.slane %v940_v39, 1  ;;  %v1252_v48 = vrot.slane %v939_v33, 1  ;;  %1709 = vmatprep.mubr.bf16.mxu1 %v1365_v27  ;;  %v209_v55 = vadd.f32 %v8438_v25, %v124_v30  ;;  %v213_v19 = vadd.f32 %v8438_v25, %v128_v34  ;;  %v49_v10 = vld [vmem:[%s10449_s0 + $0x98] sm:$0xff] }
  0x76   :  { %v948_v41 = vld [vmem:[#allocation2 + $0x408] sm:$0xfe]  ;;  %v952_v46 = vld [vmem:[#allocation2 + $0x428] sm:$0x1]  ;;  %v1256_v47 = vrot.slane %v944_v40, 1  ;;  %v8509_v52 = vadd.f32 %v8457_v17, %v127_v42  ;;  %v1364_v58 = vpack.c.bf16 %v1242_v38, %v1230_v37  ;;  %v272_v63 = vmax.f32 %v8503_v50, 0.0 }
  0x77   :  { %v1267_v24 = vrot.slane %v948_v41, 1  ;;  %v1268_v49 = vrot.slane %v952_v46, 1  ;;  %v273_v54 = vmax.f32 %v209_v55, 0.0  ;;  %v277_v56 = vmax.f32 %v213_v19, 0.0  ;;  %v8529_v11 = vld [vmem:[#allocation2 + $0x70] sm:$0x1] }
  0x78   :  { %v1257_v51 = vsel %vm1083_vm1, %v1255_v13, %v1256_v47  ;;  %v947_v57 = vld [vmem:[#allocation2 + $0x400] sm:$0xfe]  ;;  %v8516_v59 = vsel %vm1083_vm1, %v1252_v48, %v1253_v43  ;;  %v276_v0 = vmax.f32 %v8509_v52, 0.0  ;;  %v132_v4 = vmul.f32 %v8412_v44, %v45_v62  ;;  %572 = vst [vmem:[#allocation2 + $0x90] sm:$0xff] %v272_v63  ;;  %v44_v7 = vld [vmem:[%s10449_s0 + $0x70] sm:$0xff]  ;;  %v53_v35 = vld [vmem:[%s10449_s0 + $0xb8] sm:$0xff] }
  0x79   :  { %v1269_v26 = vsel %vm1083_vm1, %v1267_v24, %v1268_v49  ;;  %v1264_v53 = vrot.slane %v947_v57, 1  ;;  %v604_v1 = vrot.slane %v273_v54, 7  ;;  %v605_v31 = vrot.slane %v277_v56, 7  ;;  %v48_v16 = vld [vmem:[%s10449_s0 + $0x90] sm:$0xff]  ;;  %v57_v36 = vld [vmem:[%s10449_s0 + $0xd8] sm:$0xff] }
  0x7a   :  { %v1369_v20 = vpack.c.bf16 %v1269_v26, %v1257_v51  ;;  %573 = vst [vmem:[#allocation2 + $0xd0] sm:$0xff] %v276_v0  ;;  %v136_v14 = vmul.f32 %v8412_v44, %v49_v10  ;;  %v1090_v15 = vrot.slane %v8506_v9, 1  ;;  %v217_v45 = vadd.f32 %v8438_v25, %v132_v4  ;;  %v52_v41 = vld [vmem:[%s10449_s0 + $0xb0] sm:$0xff]  ;;  %v73_v52 = vld [vmem:[%s10449_s0 + $0x158] sm:$0xff] }
  0x7b   :  { %v838_v2 = vld [vmem:[#allocation2 + $0x58] sm:$0xfe]  ;;  %v842_v28 = vld [vmem:[#allocation2 + $0x78] sm:$0x1]  ;;  %v8527_v5 = vsel %vm1083_vm1, %v1264_v53, %v1265_v29  ;;  %637 = vst [vmem:[#allocation2 + $0x98] sm:$0xfe] %v604_v1  ;;  %v1095_v18 = vsel %vm1083_vm1, %v1093_v3, %v1094_v12  ;;  %v131_v27 = vmul.f32 %v8398_v22, %v44_v7  ;;  %v135_v29 = vmul.f32 %v8398_v22, %v48_v16 }
  0x7c   :  { %v1105_v43 = vrot.slane %v838_v2, 1  ;;  %v1106_v61 = vrot.slane %v842_v28, 1  ;;  %638 = vst [vmem:[#allocation2 + $0xb8] sm:$0x1] %v604_v1  ;;  %639 = vst [vmem:[#allocation2 + $0xd8] sm:$0xfe] %v605_v31  ;;  %1710 = vmatmul.mubr.bf16.gmra.mrb[24].mxu1 %v1364_v58  ;;  %v221_v21 = vadd.f32 %v8438_v25, %v136_v14  ;;  %v1368_v23 = vpack.c.bf16 %v8527_v5, %v8516_v59 }
  0x7d   :  { %640 = vst [vmem:[#allocation2 + $0xf8] sm:$0x1] %v605_v31  ;;  %v837_v6 = vld [vmem:[#allocation2 + $0x50] sm:$0xfe]  ;;  %1717 = vmatprep.mubr.bf16.mxu1 %v1369_v20  ;;  %v1091_v32 = vrot.slane %v8518_v60, 1  ;;  %v1103_v33 = vrot.slane %v8529_v11, 1  ;;  %v8556_v3 = vadd.f32 %v8457_v17, %v131_v27  ;;  %v8559_v12 = vadd.f32 %v8457_v17, %v135_v29 }
  0x7e   :  { %v281_v30 = vmax.f32 %v217_v45, 0.0  ;;  %v1107_v8 = vsel %vm1083_vm1, %v1105_v43, %v1106_v61  ;;  %v285_v34 = vmax.f32 %v221_v21, 0.0  ;;  %v1102_v37 = vrot.slane %v837_v6, 1  ;;  %v56_v42 = vld [vmem:[%s10449_s0 + $0xd0] sm:$0xff]  ;;  %v65_v11 = vld [vmem:[%s10449_s0 + $0x118] sm:$0xff] }
  0x7f   :  { %v140_v39 = vmul.f32 %v8412_v44, %v53_v35  ;;  %v144_v40 = vmul.f32 %v8412_v44, %v57_v36  ;;  %v8575_v46 = vld [vmem:[#allocation2 + $0xb0] sm:$0x1]  ;;  %v280_v47 = vmax.f32 %v8556_v3, 0.0  ;;  %v284_v24 = vmax.f32 %v8559_v12, 0.0  ;;  %v8592_v10 = vld [vmem:[#allocation2 + $0x90] sm:$0xfe] }
  0x80   :  { %v606_v38 = vrot.slane %v281_v30, 7  ;;  %v607_v13 = vrot.slane %v285_v34, 7  ;;  %v139_v48 = vmul.f32 %v8398_v22, %v52_v41  ;;  %v1343_v49 = vpack.c.bf16 %v1107_v8, %v1095_v18  ;;  %v8580_v55 = vld [vmem:[#allocation2 + $0xf0] sm:$0x1]  ;;  %v7619_v41 = vld [vmem:[%s10448_s1 + $0x48] sm:$0xff]   ;;  %v7631_v3 = vld [vmem:[%s10448_s1 + $0x78] sm:$0xff]  }
  0x81   :  { %v225_v19 = vadd.f32 %v8438_v25, %v140_v39  ;;  %v229_v51 = vadd.f32 %v8438_v25, %v144_v40  ;;  %v143_v57 = vmul.f32 %v8398_v22, %v56_v42  ;;  %574 = vst [vmem:[#allocation2 + $0x110] sm:$0xff] %v280_v47  ;;  %575 = vst [vmem:[#allocation2 + $0x150] sm:$0xff] %v284_v24  ;;  %v1115_v20 = vrot.slane %v8575_v46, 1  ;;  %v853_v7 = vld [vmem:[#allocation2 + $0xd0] sm:$0xfe] }
  0x82   :  { %641 = vst [vmem:[#allocation2 + $0x118] sm:$0xfe] %v606_v38  ;;  %642 = vst [vmem:[#allocation2 + $0x138] sm:$0x1] %v606_v38  ;;  %v846_v26 = vld [vmem:[#allocation2 + $0x98] sm:$0xfe]  ;;  %v8590_v56 = vadd.f32 %v8457_v17, %v139_v48  ;;  %v1092_v4 = vsel %vm1083_vm1, %v1090_v15, %v1091_v32  ;;  %v1104_v5 = vsel %vm1083_vm1, %v1102_v37, %v1103_v33 }
  0x83   :  { %v850_v53 = vld [vmem:[#allocation2 + $0xb8] sm:$0x1]  ;;  %v854_v54 = vld [vmem:[#allocation2 + $0xd8] sm:$0xfe]  ;;  %643 = vst [vmem:[#allocation2 + $0x158] sm:$0xfe] %v607_v13  ;;  %v8601_v43 = vadd.f32 %v8457_v17, %v143_v57  ;;  %v152_v34 = vmul.f32 %v8412_v44, %v65_v11 }
  0x84   :  { %644 = vst [vmem:[#allocation2 + $0x178] sm:$0x1] %v607_v13  ;;  %v858_v62 = vld [vmem:[#allocation2 + $0xf8] sm:$0x1]  ;;  %v1117_v58 = vrot.slane %v846_v26, 1  ;;  %v1118_v59 = vrot.slane %v850_v53, 1  ;;  %1718 = vmatmul.mubr.bf16.gmra.mrb[28].mxu1 %v1368_v23  ;;  %v1342_v23 = vpack.c.bf16 %v1104_v5, %v1092_v4 }
  0x85   :  { %v1129_v60 = vrot.slane %v854_v54, 1  ;;  %v1130_v2 = vrot.slane %v858_v62, 1  ;;  %v1127_v28 = vrot.slane %v8580_v55, 1  ;;  %v289_v1 = vmax.f32 %v225_v19, 0.0  ;;  %1758 = vmatprep.mubr.bf16.mxu1 %v1343_v49  ;;  %v8609_v16 = vld [vmem:[#allocation2 + $0x130] sm:$0x1] }
  0x86   :  { %v293_v31 = vmax.f32 %v229_v51, 0.0  ;;  %v288_v61 = vmax.f32 %v8590_v56, 0.0  ;;  %v1119_v14 = vsel %vm1083_vm1, %v1117_v58, %v1118_v59  ;;  %v8611_v9 = vld [vmem:[#allocation2 + $0x170] sm:$0x1]  ;;  %v292_v6 = vmax.f32 %v8601_v43, 0.0  ;;  %v7618_v32 = vld [vmem:[%s10448_s1] sm:$0xff]  }
  0x87   :  { %v1131_v45 = vsel %vm1083_vm1, %v1129_v60, %v1130_v2  ;;  %v608_v15 = vrot.slane %v289_v1, 7  ;;  %v8616_v21 = vld [vmem:[#allocation2 + $0x1b0] sm:$0x1]  ;;  %v1114_v33 = vrot.slane %v8592_v10, 1  ;;  %v1126_v37 = vrot.slane %v853_v7, 1  ;;  %v7620_v49 = vld [vmem:[%s10448_s1 + $0x8] sm:$0xff]  }
  0x88   :  { %v609_v18 = vrot.slane %v293_v31, 7  ;;  %576 = vst [vmem:[#allocation2 + $0x190] sm:$0xff] %v288_v61  ;;  %v8618_v27 = vld [vmem:[#allocation2 + $0x1f0] sm:$0x1]  ;;  %v1347_v36 = vpack.c.bf16 %v1131_v45, %v1119_v14  ;;  %577 = vst [vmem:[#allocation2 + $0x1d0] sm:$0xff] %v292_v6  ;;  %v237_v48 = vadd.f32 %v8438_v25, %v152_v34  ;;  %v1139_v55 = vrot.slane %v8609_v16, 1 }
  0x89   :  { %v64_v29 = vld [vmem:[%s10449_s0 + $0x110] sm:$0xff]  ;;  %v862_v30 = vld [vmem:[#allocation2 + $0x118] sm:$0xfe]  ;;  %v866_v8 = vld [vmem:[#allocation2 + $0x138] sm:$0x1]  ;;  %v1151_v19 = vrot.slane %v8611_v9, 1  ;;  %v1116_v60 = vsel %vm1083_vm1, %v1114_v33, %v1115_v20  ;;  %v1128_v10 = vsel %vm1083_vm1, %v1126_v37, %v1127_v28  ;;  %v8663_v16 = vpack.c.bf16 %v276_v0, %v272_v63 }
  0x8a   :  { %645 = vst [vmem:[#allocation2 + $0x198] sm:$0xfe] %v608_v15  ;;  %646 = vst [vmem:[#allocation2 + $0x1b8] sm:$0x1] %v608_v15  ;;  %v151_v35 = vmul.f32 %v8398_v22, %v64_v29  ;;  %v870_v38 = vld [vmem:[#allocation2 + $0x158] sm:$0xfe]  ;;  %v1346_v9 = vpack.c.bf16 %v1128_v10, %v1116_v60 }
  0x8b   :  { %647 = vst [vmem:[#allocation2 + $0x1d8] sm:$0xfe] %v609_v18  ;;  %648 = vst [vmem:[#allocation2 + $0x1f8] sm:$0x1] %v609_v18  ;;  %v874_v39 = vld [vmem:[#allocation2 + $0x178] sm:$0x1] }
  0x8c   :  { %v1141_v40 = vrot.slane %v862_v30, 1  ;;  %v1142_v42 = vrot.slane %v866_v8, 1  ;;  %v1153_v46 = vrot.slane %v870_v38, 1  ;;  %v1154_v13 = vrot.slane %v874_v39, 1  ;;  %v8641_v57 = vld [vmem:[#allocation2 + $0x258] sm:$0xfe]  ;;  %1759 = vmatmul.mubr.bf16.vlgmr.msra.gmra.mrb[32].mxu1 %v1342_v23 }
  0x8d   :  { %v1163_v51 = vrot.slane %v8616_v21, 1  ;;  %v236_v26 = vadd.f32 %v8457_v17, %v151_v35  ;;  %v861_v53 = vld [vmem:[#allocation2 + $0x110] sm:$0xfe]  ;;  %v1175_v58 = vrot.slane %v8618_v27, 1  ;;  %v301_v59 = vmax.f32 %v237_v48, 0.0  ;;  %6561 = vmatpush3.bf16.msra.mxu1 %v7618_v32  ;;  %1766 = vmatprep.mubr.bf16.mxu1 %v1347_v36  ;;  %v69_v1 = vld [vmem:[%s10449_s0 + $0x138] sm:$0xff] }
  0x8e   :  { %v869_v54 = vld [vmem:[#allocation2 + $0x150] sm:$0xfe]  ;;  %6562 = vmatprep.subr.bf16.mxu1 %v7619_v41  ;;  %v1143_v31 = vsel %vm1083_vm1, %v1141_v40, %v1142_v42  ;;  %v1155_v4 = vsel %vm1083_vm1, %v1153_v46, %v1154_v13  ;;  %v8655_v11 = vld [vmem:[#allocation2 + $0x278] sm:$0x1]  ;;  %v1189_v14 = vrot.slane %v8641_v57, 1  ;;  %v156_v28 = vmul.f32 %v8412_v44, %v69_v1  ;;  %v7628_v21 = vld [vmem:[%s10448_s1 + $0x28] sm:$0xff]  }
  0x8f   :  { %v7621_v62 = vld [vmem:[%s10448_s1 + $0x50] sm:$0xff]   ;;  %v300_v2 = vmax.f32 %v236_v26, 0.0  ;;  %v611_v5 = vrot.slane %v301_v59, 7  ;;  %v1138_v15 = vrot.slane %v861_v53, 1  ;;  %v1150_v18 = vrot.slane %v869_v54, 1  ;;  %v7623_v34 = vld [vmem:[%s10448_s1 + $0x58] sm:$0xff]  }
  0x90   :  { %v8665_v23 = vld [vmem:[#allocation2 + $0x250] sm:$0xfe]  ;;  %v1351_v32 = vpack.c.bf16 %v1155_v4, %v1143_v31  ;;  %v241_v63 = vadd.f32 %v8438_v25, %v156_v28  ;;  %v1190_v35 = vrot.slane %v8655_v11, 1  ;;  %v160_v36 = vmul.f32 %v8412_v44, %v73_v52  ;;  %v7624_v40 = vld [vmem:[%s10448_s1 + $0x18] sm:$0xff]   ;;  %v8726_v52 = vld [vmem:[#allocation2 + $0x270] sm:$0x1] }
  0x91   :  { %v878_v45 = vld [vmem:[#allocation2 + $0x198] sm:$0xfe]  ;;  %v882_v7 = vld [vmem:[#allocation2 + $0x1b8] sm:$0x1]  ;;  %579 = vst [vmem:[#allocation2 + $0x290] sm:$0xff] %v300_v2  ;;  %6563 = vmatpush3.bf16.msra.mxu1 %v7620_v49  ;;  %v7622_v33 = vld [vmem:[%s10448_s1 + $0x10] sm:$0xff]   ;;  %v1140_v48 = vsel %vm1083_vm1, %v1138_v15, %v1139_v55  ;;  %v1152_v49 = vsel %vm1083_vm1, %v1150_v18, %v1151_v19 }
  0x92   :  { %v886_v20 = vld [vmem:[#allocation2 + $0x1d8] sm:$0xfe]  ;;  %v890_v29 = vld [vmem:[#allocation2 + $0x1f8] sm:$0x1]  ;;  %651 = vst [vmem:[#allocation2 + $0x298] sm:$0xfe] %v611_v5  ;;  %6564 = vmatprep.subr.bf16.mxu1 %v7621_v62  ;;  %v245_v53 = vadd.f32 %v8438_v25, %v160_v36  ;;  %v1350_v18 = vpack.c.bf16 %v1152_v49, %v1140_v48  ;;  %v8741_v36 = vsel %vm1083_vm1, %v1189_v14, %v1190_v35 }
  0x93   :  { %652 = vst [vmem:[#allocation2 + $0x2b8] sm:$0x1] %v611_v5  ;;  %v1165_v30 = vrot.slane %v878_v45, 1  ;;  %v1166_v50 = vrot.slane %v882_v7, 1  ;;  %v1177_v0 = vrot.slane %v886_v20, 1  ;;  %v1178_v8 = vrot.slane %v890_v29, 1 }
  0x94   :  { %v68_v37 = vld [vmem:[%s10449_s0 + $0x130] sm:$0xff]  ;;  %v1186_v41 = vrot.slane %v8665_v23, 1  ;;  %v305_v42 = vmax.f32 %v241_v63, 0.0  ;;  %1767 = vmatmul.mubr.bf16.gmra.mrb[36].mxu1 %v1346_v9  ;;  %v77_v55 = vld [vmem:[%s10449_s0 + $0x178] sm:$0xff]  ;;  %v7625_v2 = vld [vmem:[%s10448_s1 + $0x60] sm:$0xff]   ;;  %v309_v1 = vmax.f32 %v245_v53, 0.0 }
  0x95   :  { %v72_v38 = vld [vmem:[%s10449_s0 + $0x150] sm:$0xff]  ;;  %v155_v46 = vmul.f32 %v8398_v22, %v68_v37  ;;  %1774 = vmatprep.mubr.bf16.mxu1 %v1351_v32  ;;  %6565 = vmatpush3.bf16.msra.mxu1 %v7622_v33  ;;  %v1167_v54 = vsel %vm1083_vm1, %v1165_v30, %v1166_v50  ;;  %v81_v19 = vld [vmem:[%s10449_s0 + $0x198] sm:$0xff]  ;;  %v1179_v10 = vsel %vm1083_vm1, %v1177_v0, %v1178_v8  ;;  %v7626_v32 = vld [vmem:[%s10448_s1 + $0x20] sm:$0xff]  }
  0x96   :  { %v877_v39 = vld [vmem:[#allocation2 + $0x190] sm:$0xfe]  ;;  %v159_v13 = vmul.f32 %v8398_v22, %v72_v38  ;;  %v612_v62 = vrot.slane %v305_v42, 7  ;;  %6566 = vmatprep.subr.bf16.mxu1 %v7623_v34  ;;  %v164_v31 = vmul.f32 %v8412_v44, %v77_v55  ;;  %v168_v4 = vmul.f32 %v8412_v44, %v81_v19  ;;  %v7627_v63 = vld [vmem:[%s10448_s1 + $0x68] sm:$0xff]   ;;  %v7632_v23 = vld [vmem:[%s10448_s1 + $0x38] sm:$0xff]  }
  0x97   :  { %v885_v26 = vld [vmem:[#allocation2 + $0x1d0] sm:$0xfe]  ;;  %v8696_v59 = vadd.f32 %v8457_v17, %v155_v46  ;;  %v1162_v45 = vrot.slane %v877_v39, 1  ;;  %v613_v33 = vrot.slane %v309_v1, 7  ;;  %v1355_v50 = vpack.c.bf16 %v1179_v10, %v1167_v54  ;;  %v8743_v39 = vld [vmem:[#allocation2 + $0x2b0] sm:$0x1] }
  0x98   :  { %v8699_v60 = vadd.f32 %v8457_v17, %v159_v13  ;;  %v76_v5 = vld [vmem:[%s10449_s0 + $0x170] sm:$0xff]  ;;  %653 = vst [vmem:[#allocation2 + $0x2d8] sm:$0xfe] %v612_v62  ;;  %654 = vst [vmem:[#allocation2 + $0x2f8] sm:$0x1] %v612_v62  ;;  %v1174_v29 = vrot.slane %v885_v26, 1  ;;  %v249_v0 = vadd.f32 %v8438_v25, %v164_v31  ;;  %v253_v8 = vadd.f32 %v8438_v25, %v168_v4 }
  0x99   :  { %v80_v11 = vld [vmem:[%s10449_s0 + $0x190] sm:$0xff]  ;;  %v902_v7 = vld [vmem:[#allocation2 + $0x298] sm:$0xfe]  ;;  %v304_v28 = vmax.f32 %v8696_v59, 0.0  ;;  %v163_v9 = vmul.f32 %v8398_v22, %v76_v5  ;;  %6567 = vmatpush3.bf16.msra.mxu1 %v7624_v40  ;;  %655 = vst [vmem:[#allocation2 + $0x318] sm:$0xfe] %v613_v33  ;;  %v1164_v57 = vsel %vm1083_vm1, %v1162_v45, %v1163_v51 }
  0x9a   :  { %v906_v20 = vld [vmem:[#allocation2 + $0x2b8] sm:$0x1]  ;;  %v167_v15 = vmul.f32 %v8398_v22, %v80_v11  ;;  %v308_v30 = vmax.f32 %v8699_v60, 0.0  ;;  %v1201_v37 = vrot.slane %v902_v7, 1  ;;  %6568 = vmatprep.subr.bf16.mxu1 %v7625_v2  ;;  %656 = vst [vmem:[#allocation2 + $0x338] sm:$0x1] %v613_v33  ;;  %v1176_v48 = vsel %vm1083_vm1, %v1174_v29, %v1175_v58 }
  0x9b   :  { %580 = vst [vmem:[#allocation2 + $0x2d0] sm:$0xff] %v304_v28  ;;  %v8736_v34 = vadd.f32 %v8457_v17, %v163_v9  ;;  %v1202_v38 = vrot.slane %v906_v20, 1  ;;  %v313_v42 = vmax.f32 %v249_v0, 0.0  ;;  %v317_v14 = vmax.f32 %v253_v8, 0.0  ;;  %v85_v46 = vld [vmem:[%s10449_s0 + $0x1b8] sm:$0xff]  ;;  %v84_v53 = vld [vmem:[%s10449_s0 + $0x1b0] sm:$0xff] }
  0x9c   :  { %581 = vst [vmem:[#allocation2 + $0x310] sm:$0xff] %v308_v30  ;;  %v8748_v40 = vadd.f32 %v8457_v17, %v167_v15  ;;  %v89_v13 = vld [vmem:[%s10449_s0 + $0x1d8] sm:$0xff]  ;;  %1775 = vmatmul.mubr.bf16.gmra.mrb[40].mxu1 %v1350_v18  ;;  %v172_v49 = vmul.f32 %v8412_v44, %v85_v46  ;;  %v88_v27 = vld [vmem:[%s10449_s0 + $0x1d0] sm:$0xff]  ;;  %v171_v55 = vmul.f32 %v8398_v22, %v84_v53  ;;  %v1187_v2 = vrot.slane %v8726_v52, 1 }
  0x9d   :  { %v312_v35 = vmax.f32 %v8736_v34, 0.0  ;;  %v176_v26 = vmul.f32 %v8412_v44, %v89_v13  ;;  %1782 = vmatprep.mubr.bf16.mxu1 %v1355_v50  ;;  %v901_v58 = vld [vmem:[#allocation2 + $0x290] sm:$0xfe]  ;;  %6569 = vmatpush3.bf16.msra.mxu1 %v7626_v32  ;;  %v614_v54 = vrot.slane %v313_v42, 7  ;;  %v615_v62 = vrot.slane %v317_v14, 7 }
  0x9e   :  { %v316_v51 = vmax.f32 %v8748_v40, 0.0  ;;  %v175_v19 = vmul.f32 %v8398_v22, %v88_v27  ;;  %v1203_v10 = vsel %vm1083_vm1, %v1201_v37, %v1202_v38  ;;  %6570 = vmatprep.subr.bf16.mxu1 %v7627_v63  ;;  %v7629_v31 = vld [vmem:[%s10448_s1 + $0x70] sm:$0xff]   ;;  %v257_v4 = vadd.f32 %v8438_v25, %v172_v49  ;;  %v7633_v49 = vld [vmem:[%s10448_s1 + $0xc0] sm:$0xff]  }
  0x9f   :  { %582 = vst [vmem:[#allocation2 + $0x350] sm:$0xff] %v312_v35  ;;  %v910_v1 = vld [vmem:[#allocation2 + $0x2d8] sm:$0xfe]  ;;  %v261_v5 = vadd.f32 %v8438_v25, %v176_v26  ;;  %v1354_v11 = vpack.c.bf16 %v1176_v48, %v1164_v57  ;;  %v1199_v45 = vrot.slane %v8743_v39, 1  ;;  %v914_v7 = vld [vmem:[#allocation2 + $0x2f8] sm:$0x1]  ;;  %v8790_v20 = vadd.f32 %v8457_v17, %v171_v55 }
  0xa0   :  { %583 = vst [vmem:[#allocation2 + $0x390] sm:$0xff] %v316_v51  ;;  %657 = vst [vmem:[#allocation2 + $0x358] sm:$0xfe] %v614_v54  ;;  %v8793_v9 = vadd.f32 %v8457_v17, %v175_v19  ;;  %v1198_v15 = vrot.slane %v901_v58, 1  ;;  %v321_v18 = vmax.f32 %v257_v4, 0.0  ;;  %v8799_v32 = vpack.c.bf16 %v284_v24, %v280_v47  ;;  %v7630_v0 = vld [vmem:[%s10448_s1 + $0x30] sm:$0xff]  }
  0xa1   :  { %658 = vst [vmem:[#allocation2 + $0x378] sm:$0x1] %v614_v54  ;;  %659 = vst [vmem:[#allocation2 + $0x398] sm:$0xfe] %v615_v62  ;;  %v325_v29 = vmax.f32 %v261_v5, 0.0  ;;  %v1359_v33 = vpack.c.bf16 %v1203_v10, %v8741_v36  ;;  %v1213_v63 = vrot.slane %v910_v1, 1  ;;  %6571 = vmatpush3.bf16.msra.mxu1 %v7628_v21  ;;  %v1188_v42 = vsel %vm1083_vm1, %v1186_v41, %v1187_v2 }
  0xa2   :  { %660 = vst [vmem:[#allocation2 + $0x3b8] sm:$0x1] %v615_v62  ;;  %v918_v50 = vld [vmem:[#allocation2 + $0x318] sm:$0xfe]  ;;  %v922_v52 = vld [vmem:[#allocation2 + $0x338] sm:$0x1]  ;;  %6572 = vmatprep.subr.bf16.mxu1 %v7629_v31  ;;  %v1200_v14 = vsel %vm1083_vm1, %v1198_v15, %v1199_v45  ;;  %v8830_v26 = vpack.c.bf16 %v292_v6, %v288_v61 }
  0xa3   :  { %v1214_v8 = vrot.slane %v914_v7, 1  ;;  %v1225_v37 = vrot.slane %v918_v50, 1  ;;  %v1226_v38 = vrot.slane %v922_v52, 1  ;;  %v616_v12 = vrot.slane %v321_v18, 7  ;;  %v913_v39 = vld [vmem:[#allocation2 + $0x2f0] sm:$0x1] }
  0xa4   :  { %v617_v47 = vrot.slane %v325_v29, 7  ;;  %v320_v24 = vmax.f32 %v8790_v20, 0.0  ;;  %v324_v36 = vmax.f32 %v8793_v9, 0.0  ;;  %1783 = vmatmul.mubr.bf16.gmra.mrb[44].mxu1 %v1354_v11  ;;  %v921_v57 = vld [vmem:[#allocation2 + $0x330] sm:$0x1]  ;;  %v1358_v54 = vpack.c.bf16 %v1200_v14, %v1188_v42  ;;  %v667_v40 = vld [vmem:[#allocation2] sm:$0xff] }
  0xa5   :  { %1790 = vmatprep.mubr.bf16.mxu1 %v1359_v33  ;;  %v909_v46 = vld [vmem:[#allocation2 + $0x2d0] sm:$0xfe]  ;;  %6573 = vmatpush3.bf16.msra.mxu1 %v7630_v0  ;;  %661 = vst [vmem:[#allocation2 + $0x3d8] sm:$0xfe] %v616_v12  ;;  %662 = vst [vmem:[#allocation2 + $0x3f8] sm:$0x1] %v616_v12  ;;  %v1215_v41 = vsel %vm1083_vm1, %v1213_v63, %v1214_v8  ;;  %v1227_v13 = vsel %vm1083_vm1, %v1225_v37, %v1226_v38 }
  0xa6   :  { %663 = vst [vmem:[#allocation2 + $0x418] sm:$0xfe] %v617_v47  ;;  %664 = vst [vmem:[#allocation2 + $0x438] sm:$0x1] %v617_v47  ;;  %v917_v48 = vld [vmem:[#allocation2 + $0x310] sm:$0xfe]  ;;  %6574 = vmatprep.subr.bf16.mxu1 %v7631_v3  ;;  %v1363_v19 = vpack.c.bf16 %v1227_v13, %v1215_v41  ;;  %v8861_v34 = vpack.c.bf16 %v324_v36, %v320_v24 }
  0xa7   :  { %584 = vst [vmem:[#allocation2 + $0x3d0] sm:$0xff] %v320_v24  ;;  %585 = vst [vmem:[#allocation2 + $0x410] sm:$0xff] %v324_v36  ;;  %v926_v21 = vld [vmem:[#allocation2 + $0x358] sm:$0xfe]  ;;  %v1211_v62 = vrot.slane %v913_v39, 1  ;;  %v1223_v55 = vrot.slane %v921_v57, 1  ;;  %v8840_v57 = vpack.c.bf16 %v308_v30, %v304_v28 }
  0xa8   :  { %v930_v53 = vld [vmem:[#allocation2 + $0x378] sm:$0x1]  ;;  %v934_v27 = vld [vmem:[#allocation2 + $0x398] sm:$0xfe]  ;;  %v1210_v10 = vrot.slane %v909_v46, 1  ;;  %v1222_v2 = vrot.slane %v917_v48, 1 }
  0xa9   :  { %v938_v58 = vld [vmem:[#allocation2 + $0x3b8] sm:$0x1]  ;;  %v929_v1 = vld [vmem:[#allocation2 + $0x370] sm:$0x1]  ;;  %6575 = vmatpush3.bf16.msra.mxu1 %v7632_v23  ;;  %v1237_v31 = vrot.slane %v926_v21, 1  ;;  %v1238_v4 = vrot.slane %v930_v53, 1 }
  0xaa   :  { %v1249_v5 = vrot.slane %v934_v27, 1  ;;  %v1250_v11 = vrot.slane %v938_v58, 1  ;;  %6624 = vmatprep.subr.bf16.mxu1 %v7633_v49  ;;  %v1212_v56 = vsel %vm1083_vm1, %v1210_v10, %v1211_v62  ;;  %v1224_v43 = vsel %vm1083_vm1, %v1222_v2, %v1223_v55  ;;  %v925_v61 = vld [vmem:[#allocation2 + $0x350] sm:$0xfe]  ;;  %v937_v6 = vld [vmem:[#allocation2 + $0x3b0] sm:$0x1] }
  0xab   :  { %v1235_v45 = vrot.slane %v929_v1, 1  ;;  %v1239_v7 = vsel %vm1083_vm1, %v1237_v31, %v1238_v4  ;;  %v933_v18 = vld [vmem:[#allocation2 + $0x390] sm:$0xfe]  ;;  %v1362_v63 = vpack.c.bf16 %v1224_v43, %v1212_v56  ;;  %v1234_v0 = vrot.slane %v925_v61, 1  ;;  %v945_v46 = vld [vmem:[#allocation2 + $0x3f0] sm:$0x1] }
  0xac   :  { %1791 = vmatmul.mubr.bf16.gmra.mrb[48].mxu1 %v1358_v54  ;;  %v1251_v15 = vsel %vm1083_vm1, %v1249_v5, %v1250_v11  ;;  %v942_v29 = vld [vmem:[#allocation2 + $0x3d8] sm:$0xfe]  ;;  %v946_v33 = vld [vmem:[#allocation2 + $0x3f8] sm:$0x1]  ;;  %v1247_v8 = vrot.slane %v937_v6, 1  ;;  %v1246_v38 = vrot.slane %v933_v18, 1  ;;  %v8850_v27 = vpack.c.bf16 %v316_v51, %v312_v35 }
  0xad   :  { %1798 = vmatprep.mubr.bf16.mxu1 %v1363_v19  ;;  %v950_v50 = vld [vmem:[#allocation2 + $0x418] sm:$0xfe]  ;;  %v954_v52 = vld [vmem:[#allocation2 + $0x438] sm:$0x1]  ;;  %v1367_v37 = vpack.c.bf16 %v1251_v15, %v1239_v7  ;;  %v1261_v3 = vrot.slane %v942_v29, 1  ;;  %v1262_v12 = vrot.slane %v946_v33, 1  ;;  %v1236_v42 = vsel %vm1083_vm1, %v1234_v0, %v1235_v45 }
  0xae   :  { %v1273_v47 = vrot.slane %v950_v50, 1  ;;  %v1274_v39 = vrot.slane %v954_v52, 1  ;;  %v1248_v14 = vsel %vm1083_vm1, %v1246_v38, %v1247_v8  ;;  %v941_v13 = vld [vmem:[#allocation2 + $0x3d0] sm:$0xfe]  ;;  %v953_v21 = vld [vmem:[#allocation2 + $0x430] sm:$0x1] }
  0xaf   :  { %v1263_v23 = vsel %vm1083_vm1, %v1261_v3, %v1262_v12  ;;  %v949_v48 = vld [vmem:[#allocation2 + $0x410] sm:$0xfe]  ;;  %v1366_v49 = vpack.c.bf16 %v1248_v14, %v1236_v42  ;;  %v1259_v59 = vrot.slane %v945_v46, 1  ;;  %v1258_v60 = vrot.slane %v941_v13, 1  ;;  %v668_v62 = vld [vmem:[#allocation2 + $0x8] sm:$0xff]  ;;  %v8863_v35 = vld [vmem:[#allocation2 + $0x40] sm:$0xff] }
  0xb0   :  { %v1275_v41 = vsel %vm1083_vm1, %v1273_v47, %v1274_v39  ;;  %v1270_v28 = vrot.slane %v949_v48, 1  ;;  %v1271_v30 = vrot.slane %v953_v21, 1  ;;  %v8854_v55 = vld [vmem:[#allocation2 + $0x48] sm:$0xff]  ;;  %v8870_v2 = vld [vmem:[%s10448_s1 + $0x240] sm:$0xff]   ;;  %v731_v36 = vpack.c.bf16 %v8863_v35, %v667_v40  ;;  %v8925_v33 = vld [vmem:[%s10448_s1 + $0x250] sm:$0xff]  }
  0xb1   :  { %v1371_v53 = vpack.c.bf16 %v1275_v41, %v1263_v23  ;;  %v1260_v58 = vsel %vm1083_vm1, %v1258_v60, %v1259_v59  ;;  %v732_v10 = vpack.c.bf16 %v8854_v55, %v668_v62  ;;  %v8865_v51 = vld [vmem:[#allocation2 + $0x88] sm:$0xff]  ;;  %v8879_v20 = vld [vmem:[%s10448_s1 + $0x200] sm:$0xff]   ;;  %6688 = vmatprep.subr.bf16.mxu0 %v8870_v2  ;;  %v7637_v52 = vld [vmem:[%s10448_s1 + $0xd0] sm:$0xff]  }
  0xb2   :  { %v1272_v54 = vsel %vm1083_vm1, %v1270_v28, %v1271_v30  ;;  %v8872_v1 = vld [vmem:[#allocation2 + $0xc8] sm:$0xff]  ;;  %v7634_v9 = vld [vmem:[%s10448_s1 + $0x80] sm:$0xff]   ;;  %6689 = vmatpush3.bf16.msra.mxu0 %v8879_v20  ;;  %v8938_v0 = vld [vmem:[%s10448_s1 + $0x210] sm:$0xff]  }
  0xb3   :  { %v1370_v19 = vpack.c.bf16 %v1272_v54, %v1260_v58  ;;  %v8874_v31 = vld [vmem:[#allocation2 + $0x288] sm:$0xff]  ;;  %v736_v11 = vpack.c.bf16 %v8872_v1, %v8865_v51  ;;  %v8899_v56 = vld [vmem:[#allocation2 + $0x280] sm:$0xff]  ;;  %v7638_v8 = vld [vmem:[%s10448_s1 + $0x90] sm:$0xff]  }
  0xb4   :  { %1799 = vmatmul.mubr.bf16.gmra.mrb[52].mxu1 %v1362_v63  ;;  %v8887_v24 = vld [vmem:[%s10448_s1 + $0x248] sm:$0xff]   ;;  %v8901_v43 = vld [vmem:[#allocation2 + $0x2c0] sm:$0xff]  ;;  %v7639_v47 = vld [vmem:[%s10448_s1 + $0xd8] sm:$0xff]  }
  0xb5   :  { %1806 = vmatprep.mubr.bf16.mxu1 %v1367_v37  ;;  %v7635_v4 = vld [vmem:[%s10448_s1 + $0xc8] sm:$0xff]   ;;  %6690 = vmatprep.subr.bf16.mxu0 %v8887_v24  ;;  %v2289_v45 = vpack.c.bf16 %v8901_v43, %v8899_v56  ;;  %v8913_v7 = vld [vmem:[#allocation2 + $0x80] sm:$0xff]  ;;  %v8947_v37 = vld [vmem:[%s10448_s1 + $0x258] sm:$0xff]  }
  0xb6   :  { %v8894_v5 = vld [vmem:[#allocation2 + $0x2c8] sm:$0xff]  ;;  %v8915_v15 = vld [vmem:[#allocation2 + $0xc0] sm:$0xff]  ;;  %v8969_v46 = vld [vmem:[%s10448_s1 + $0x218] sm:$0xff]  }
  0xb7   :  { %v2290_v61 = vpack.c.bf16 %v8894_v5, %v8874_v31  ;;  %v8909_v6 = vld [vmem:[%s10448_s1 + $0x208] sm:$0xff]   ;;  %v735_v38 = vpack.c.bf16 %v8915_v15, %v8913_v7  ;;  %v8959_v39 = vld [vmem:[#allocation2 + $0x300] sm:$0xff]  ;;  %v9083_v23 = vld [vmem:[#allocation2 + $0x98] sm:$0xff] }
  0xb8   :  { %v7636_v18 = vld [vmem:[%s10448_s1 + $0x88] sm:$0xff]   ;;  %6691 = vmatpush3.bf16.msra.mxu0 %v8909_v6  ;;  %v8961_v42 = vld [vmem:[#allocation2 + $0x340] sm:$0xff] }
  0xb9   :  { %v8920_v29 = vld [vmem:[#allocation2 + $0x108] sm:$0xff]  ;;  %6692 = vmatprep.subr.bf16.mxu0 %v8925_v33  ;;  %v8973_v41 = vld [vmem:[#allocation2 + $0x100] sm:$0xff] }
  0xba   :  { %v8928_v50 = vld [vmem:[#allocation2 + $0x148] sm:$0xff]  ;;  %v8975_v13 = vld [vmem:[#allocation2 + $0x140] sm:$0xff] }
  0xbb   :  { %v8933_v63 = vld [vmem:[#allocation2 + $0x308] sm:$0xff]  ;;  %v740_v12 = vpack.c.bf16 %v8928_v50, %v8920_v29  ;;  %v8987_v59 = vld [vmem:[%s10448_s1 + $0x260] sm:$0xff]   ;;  %v739_v62 = vpack.c.bf16 %v8975_v13, %v8973_v41 }
  0xbc   :  { %1807 = vmatmul.mubr.bf16.gmra.mrb[56].mxu1 %v1366_v49  ;;  %v8951_v3 = vld [vmem:[#allocation2 + $0x348] sm:$0xff]  ;;  %6693 = vmatpush3.bf16.msra.mxu0 %v8938_v0  ;;  %v7640_v49 = vld [vmem:[%s10448_s1 + $0x98] sm:$0xff]   ;;  %v8998_v28 = vld [vmem:[%s10448_s1 + $0x220] sm:$0xff]   ;;  %v752_v14 = vpack.c.bf16 %v8933_v63, %v8894_v5 }
  0xbd   :  { %1814 = vmatprep.mubr.bf16.mxu1 %v1371_v53  ;;  %6694 = vmatprep.subr.bf16.mxu0 %v8947_v37  ;;  %v8977_v48 = vld [vmem:[#allocation2 + $0x188] sm:$0xff]  ;;  %v7641_v53 = vld [vmem:[%s10448_s1 + $0xe0] sm:$0xff]  }
  0xbe   :  { %v8979_v21 = vld [vmem:[#allocation2 + $0x1c8] sm:$0xff]  ;;  %v7642_v30 = vld [vmem:[%s10448_s1 + $0xa0] sm:$0xff]  }
  0xbf   :  { %v8993_v60 = vld [vmem:[#allocation2 + $0x388] sm:$0xff]  ;;  %v9004_v58 = vld [vmem:[#allocation2 + $0x380] sm:$0xff]  ;;  %v744_v40 = vpack.c.bf16 %v8979_v21, %v8977_v48 }
  0xc0   :  { %6695 = vmatpush3.bf16.msra.mxu0 %v8969_v46  ;;  %v9009_v54 = vld [vmem:[%s10448_s1 + $0x268] sm:$0xff]  }
  0xc1   :  { %6696 = vmatprep.subr.bf16.mxu0 %v8987_v59  ;;  %v2849_v5 = vld [vmem:[#allocation2 + $0x2e8] sm:$0x1] }
  0xc4   :  { %1815 = vmatmul.mubr.bf16.gmra.mrb[60].mxu1 %v1370_v19  ;;  %v7643_v19 = vld [vmem:[%s10448_s1 + $0xe8] sm:$0xff]   ;;  %6697 = vmatpush3.bf16.msra.mxu0 %v8998_v28 }
  0xc5   :  { %2047 = vmatprep.mubr.bf16.mxu1 %v732_v10  ;;  %v9016_v10 = vld [vmem:[#allocation2 + $0x3c8] sm:$0xff]  ;;  %6698 = vmatprep.subr.bf16.mxu0 %v9009_v54 }
  0xcc   :  { %2048 = vmatmul.mubr.bf16.vlgmr.msra.gmra.mrb[64].mxu1 %v731_v36  ;;  %v699_v36 = vld [vmem:[#allocation2 + $0x240] sm:$0xff] }
  0xcd   :  { %6625 = vmatpush3.bf16.msra.mxu1 %v7634_v9  ;;  %2055 = vmatprep.mubr.bf16.mxu1 %v736_v11  ;;  %v9021_v9 = vld [vmem:[#allocation2 + $0x3c0] sm:$0xff]  ;;  %v9074_v11 = vld [vmem:[%s10448_s1 + $0x238] sm:$0xff]  }
  0xce   :  { %6626 = vmatprep.subr.bf16.mxu1 %v7635_v4  ;;  %v9029_v4 = vld [vmem:[%s10448_s1 + $0x228] sm:$0xff]  }
  0xcf   :  { %6699 = vmatpush3.bf16.msra.mxu0 %v9029_v4 }
  0xd1   :  { %6627 = vmatpush3.bf16.msra.mxu1 %v7636_v18  ;;  %v9033_v18 = vld [vmem:[#allocation2 + $0x180] sm:$0xff] }
  0xd2   :  { %6628 = vmatprep.subr.bf16.mxu1 %v7637_v52  ;;  %v9035_v52 = vld [vmem:[#allocation2 + $0x1c0] sm:$0xff] }
  0xd4   :  { %2056 = vmatmul.mubr.bf16.gmra.mrb[68].mxu1 %v735_v38  ;;  %v700_v38 = vld [vmem:[#allocation2 + $0x248] sm:$0xff] }
  0xd5   :  { %2063 = vmatprep.mubr.bf16.mxu1 %v740_v12  ;;  %6629 = vmatpush3.bf16.msra.mxu1 %v7638_v8  ;;  %v7644_v8 = vld [vmem:[%s10448_s1 + $0xa8] sm:$0xff]   ;;  %v9043_v12 = vld [vmem:[%s10448_s1 + $0x270] sm:$0xff]  }
  0xd6   :  { %6630 = vmatprep.subr.bf16.mxu1 %v7639_v47  ;;  %v7645_v47 = vld [vmem:[%s10448_s1 + $0xf0] sm:$0xff]   ;;  %6700 = vmatprep.subr.bf16.mxu0 %v9043_v12 }
  0xd9   :  { %6631 = vmatpush3.bf16.msra.mxu1 %v7640_v49  ;;  %v9052_v49 = vld [vmem:[%s10448_s1 + $0x230] sm:$0xff]  }
  0xda   :  { %6632 = vmatprep.subr.bf16.mxu1 %v7641_v53  ;;  %v9058_v53 = vld [vmem:[%s10448_s1 + $0x278] sm:$0xff]   ;;  %6701 = vmatpush3.bf16.msra.mxu0 %v9052_v49 }
  0xdb   :  { %6702 = vmatprep.subr.bf16.mxu0 %v9058_v53 }
  0xdc   :  { %2064 = vmatmul.mubr.bf16.gmra.mrb[72].mxu1 %v739_v62  ;;  %v7646_v62 = vld [vmem:[%s10448_s1 + $0xb0] sm:$0xff]  }
  0xdd   :  { %2071 = vmatprep.mubr.bf16.mxu1 %v744_v40  ;;  %6633 = vmatpush3.bf16.msra.mxu1 %v7642_v30  ;;  %v743_v30 = vpack.c.bf16 %v9035_v52, %v9033_v18  ;;  %v7647_v40 = vld [vmem:[%s10448_s1 + $0xf8] sm:$0xff]  }
  0xde   :  { %6634 = vmatprep.subr.bf16.mxu1 %v7643_v19  ;;  %v748_v19 = vpack.c.bf16 %v8874_v31, %v700_v38  ;;  %6703 = vmatpush3.bf16.msra.mxu0 %v9074_v11  ;;  %v9080_v38 = vld [vmem:[#allocation2 + $0x58] sm:$0xff]  ;;  %v7667_v31 = vld [vmem:[%s10448_s1 + $0x2c8] sm:$0xff]  }
  0xe1   :  { %6635 = vmatpush3.bf16.msra.mxu1 %v7644_v8  ;;  %v7648_v8 = vld [vmem:[%s10448_s1 + $0xb8] sm:$0xff]  }
  0xe2   :  { %6636 = vmatprep.subr.bf16.mxu1 %v7645_v47  ;;  %v747_v47 = vpack.c.bf16 %v8899_v56, %v699_v36  ;;  %v9094_v36 = vld [vmem:[#allocation2 + $0xd8] sm:$0xff]  ;;  %v7669_v56 = vld [vmem:[%s10448_s1 + $0x2d0] sm:$0xff]  }
  0xe4   :  { %2072 = vmatmul.mubr.bf16.gmra.mrb[76].mxu1 %v743_v30  ;;  %v2274_v30 = vpack.c.bf16 %v8865_v51, %v8854_v55  ;;  %v61_v55 = vld [vmem:[%s10449_s0 + $0xf8] sm:$0xff]  ;;  %v756_v51 = vpack.c.bf16 %v8993_v60, %v8951_v3 }
  0xe5   :  { %2079 = vmatprep.mubr.bf16.mxu1 %v748_v19  ;;  %6637 = vmatpush3.bf16.msra.mxu1 %v7646_v62  ;;  %v2273_v19 = vpack.c.bf16 %v8913_v7, %v8863_v35  ;;  %v2278_v35 = vpack.c.bf16 %v8920_v29, %v8872_v1  ;;  %v148_v7 = vmul.f32 %v8412_v44, %v61_v55  ;;  %v9115_v62 = vld [vmem:[#allocation2 + $0x158] sm:$0xff] }
  0xe6   :  { %6638 = vmatprep.subr.bf16.mxu1 %v7647_v40  ;;  %2594 = vmatprep.mubr.bf16.mxu0 %v2274_v30  ;;  %v9096_v40 = vld [vmem:[#allocation2 + $0x118] sm:$0xff]  ;;  %v9113_v30 = vld [vmem:[#allocation2 + $0x408] sm:$0xff]  ;;  %v755_v55 = vpack.c.bf16 %v9004_v58, %v8961_v42 }
  0xe7   :  { %2595 = vmatmul.mubr.bf16.vlgmr.msra.gmra.mrb[0].mxu0 %v2273_v19  ;;  %v9117_v1 = vld [vmem:[#allocation2 + $0x198] sm:$0xff] }
  0xe8   :  { %2602 = vmatprep.mubr.bf16.mxu0 %v2278_v35  ;;  %v60_v35 = vld [vmem:[%s10449_s0 + $0xf0] sm:$0xff] }
  0xe9   :  { %6639 = vmatpush3.bf16.msra.mxu1 %v7648_v8  ;;  %v751_v8 = vpack.c.bf16 %v8959_v39, %v8901_v43 }
  0xea   :  { %7424 = vmatprep.subr.bf16.mxu1 %v8870_v2 }
  0xec   :  { %2080 = vmatmul.mubr.bf16.gmra.mrb[80].mxu1 %v747_v47  ;;  %v233_v47 = vadd.f32 %v8438_v25, %v148_v7  ;;  %v147_v7 = vmul.f32 %v8398_v22, %v60_v35  ;;  %v7689_v35 = vld [vmem:[%s10448_s1 + $0x340] sm:$0xff]  }
  0xed   :  { %2087 = vmatprep.mubr.bf16.mxu1 %v752_v14  ;;  %v2277_v14 = vpack.c.bf16 %v8973_v41, %v8915_v15  ;;  %v760_v15 = vpack.c.bf16 %v9113_v30, %v9016_v10  ;;  %v2282_v41 = vpack.c.bf16 %v8977_v48, %v8928_v50  ;;  %v670_v50 = vld [vmem:[#allocation2 + $0x18] sm:$0xff]  ;;  %6816 = vmatprep.subr.bf16.mxu0 %v7689_v35  ;;  %v7696_v35 = vld [vmem:[%s10448_s1 + $0x310] sm:$0xff]  }
  0xee   :  { %v297_v19 = vmax.f32 %v233_v47, 0.0  ;;  %v9136_v48 = vadd.f32 %v8457_v17, %v147_v7 }
  0xef   :  { %2603 = vmatmul.mubr.bf16.gmra.mrb[4].mxu0 %v2277_v14  ;;  %v9133_v14 = vld [vmem:[#allocation2 + $0x400] sm:$0xff] }
  0xf0   :  { %v610_v29 = vrot.slane %v297_v19, 7  ;;  %2610 = vmatprep.mubr.bf16.mxu0 %v2282_v41  ;;  %v759_v47 = vpack.c.bf16 %v9133_v14, %v9021_v9  ;;  %v734_v19 = vpack.c.bf16 %v9080_v38, %v670_v50  ;;  %v9154_v50 = vld [vmem:[#allocation2 + $0x2d8] sm:$0xff] }
  0xf2   :  { %649 = vst [vmem:[#allocation2 + $0x218] sm:$0xfe] %v610_v29  ;;  %650 = vst [vmem:[#allocation2 + $0x238] sm:$0x1] %v610_v29 }
  0xf4   :  { %2088 = vmatmul.mubr.bf16.gmra.mrb[84].mxu1 %v751_v8 }
  0xf5   :  { %2095 = vmatprep.mubr.bf16.mxu1 %v756_v51  ;;  %v2281_v51 = vpack.c.bf16 %v9033_v18, %v8975_v13  ;;  %v2238_v13 = vld [vmem:[#allocation2 + $0x208] sm:$0xff]  ;;  %v10458_v18 = vmax.f32 %v9136_v48, 0.0 }
  0xf6   :  { %v2286_v29 = vpack.c.bf16 %v2238_v13, %v8979_v21  ;;  %v9152_v21 = vld [vmem:[#allocation2 + $0x298] sm:$0xff] }
  0xf7   :  { %2611 = vmatmul.mubr.bf16.gmra.mrb[8].mxu0 %v2281_v51  ;;  %578 = vst [vmem:[#allocation2 + $0x210] sm:$0xff] %v10458_v18  ;;  %v9146_v51 = vld [vmem:[#allocation2 + $0x50] sm:$0xff] }
  0xf8   :  { %2618 = vmatprep.mubr.bf16.mxu0 %v2286_v29  ;;  %v7694_v29 = vld [vmem:[%s10448_s1 + $0x308] sm:$0xff]  }
  0xfc   :  { %2096 = vmatmul.mubr.bf16.gmra.mrb[88].mxu1 %v755_v55  ;;  %v2237_v55 = vld [vmem:[#allocation2 + $0x200] sm:$0xff] }
  0xfd   :  { %2103 = vmatprep.mubr.bf16.mxu1 %v760_v15  ;;  %v2285_v41 = vpack.c.bf16 %v2237_v55, %v9035_v52  ;;  %v669_v15 = vld [vmem:[#allocation2 + $0x10] sm:$0xff]  ;;  %v7690_v52 = vld [vmem:[%s10448_s1 + $0x300] sm:$0xff]   ;;  %v9171_v55 = vld [vmem:[#allocation2 + $0x318] sm:$0xff] }
  0xfe   :  { %v733_v7 = vpack.c.bf16 %v9146_v51, %v669_v15  ;;  %6817 = vmatpush3.bf16.msra.mxu0 %v7690_v52  ;;  %v9176_v15 = vld [vmem:[#allocation2 + $0x358] sm:$0xff] }
  0xff   :  { %2619 = vmatmul.mubr.bf16.gmra.mrb[12].mxu0 %v2285_v41  ;;  %v7695_v41 = vld [vmem:[%s10448_s1 + $0x350] sm:$0xff]  }
 0x104   :  { %2104 = vmatmul.mubr.bf16.gmra.mrb[92].mxu1 %v759_v47  ;;  %v738_v47 = vpack.c.bf16 %v9094_v36, %v9083_v23 }
 0x105   :  { %2144 = vmatprep.mubr.bf16.mxu1 %v734_v19  ;;  %v7693_v19 = vld [vmem:[%s10448_s1 + $0x348] sm:$0xff]  }
 0x106   :  { %6818 = vmatprep.subr.bf16.mxu0 %v7693_v19 }
 0x107   :  { %6819 = vmatpush3.bf16.msra.mxu0 %v7694_v29 }
 0x108   :  { %6820 = vmatprep.subr.bf16.mxu0 %v7695_v41 }
 0x10b   :  { %6821 = vmatpush3.bf16.msra.mxu0 %v7696_v35 }
 0x10c   :  { %2145 = vmatmul.mubr.bf16.vlgmr.msra.gmra.mrb[96].mxu1 %v733_v7 }
 0x10d   :  { %7432 = vmatpush3.bf16.msra.mxu1 %v8879_v20  ;;  %2152 = vmatprep.mubr.bf16.mxu1 %v738_v47  ;;  %v93_v20 = vld [vmem:[%s10449_s0 + $0x1f8] sm:$0xff] }
 0x10e   :  { %7425 = vmatprep.subr.bf16.mxu1 %v8887_v24  ;;  %v742_v24 = vpack.c.bf16 %v9115_v62, %v9096_v40  ;;  %v180_v52 = vmul.f32 %v8412_v44, %v93_v20  ;;  %v7699_v47 = vld [vmem:[%s10448_s1 + $0x358] sm:$0xff]  }
 0x10f   :  { %v9200_v44 = vld [vmem:[#allocation2 + $0x1d8] sm:$0xff]  ;;  %6822 = vmatprep.subr.bf16.mxu0 %v7699_v47 }
 0x110   :  { %v265_v19 = vadd.f32 %v8438_v25, %v180_v52  ;;  %v7701_v25 = vld [vmem:[%s10448_s1 + $0x360] sm:$0xff]   ;;  %v746_v41 = vpack.c.bf16 %v9200_v44, %v9117_v1 }
 0x111   :  { %7433 = vmatpush3.bf16.msra.mxu1 %v8909_v6  ;;  %v7700_v6 = vld [vmem:[%s10448_s1 + $0x318] sm:$0xff]  }
 0x112   :  { %7426 = vmatprep.subr.bf16.mxu1 %v8925_v33  ;;  %v329_v29 = vmax.f32 %v265_v19, 0.0  ;;  %6823 = vmatpush3.bf16.msra.mxu0 %v7700_v6  ;;  %v2773_v6 = vld [vmem:[#allocation2 + $0x48] sm:$0xfe] }
 0x113   :  { %6824 = vmatprep.subr.bf16.mxu0 %v7701_v25 }
 0x114   :  { %2153 = vmatmul.mubr.bf16.gmra.mrb[100].mxu1 %v8663_v16  ;;  %v618_v33 = vrot.slane %v329_v29, 7  ;;  %v7702_v16 = vld [vmem:[%s10448_s1 + $0x320] sm:$0xff]   ;;  %v2777_v29 = vld [vmem:[#allocation2 + $0x68] sm:$0x1] }
 0x115   :  { %2160 = vmatprep.mubr.bf16.mxu1 %v742_v24  ;;  %7434 = vmatpush3.bf16.msra.mxu1 %v8938_v0  ;;  %v7705_v0 = vld [vmem:[%s10448_s1 + $0x368] sm:$0xff]  }
 0x116   :  { %7427 = vmatprep.subr.bf16.mxu1 %v8947_v37  ;;  %665 = vst [vmem:[#allocation2 + $0x458] sm:$0xfe] %v618_v33  ;;  %666 = vst [vmem:[#allocation2 + $0x478] sm:$0x1] %v618_v33  ;;  %6825 = vmatpush3.bf16.msra.mxu0 %v7702_v16  ;;  %v92_v37 = vld [vmem:[%s10449_s0 + $0x1f0] sm:$0xff]  ;;  %v7711_v33 = vld [vmem:[%s10448_s1 + $0x378] sm:$0xff]  }
 0x117   :  { %v179_v35 = vmul.f32 %v8398_v22, %v92_v37  ;;  %6826 = vmatprep.subr.bf16.mxu0 %v7705_v0  ;;  %v7708_v22 = vld [vmem:[%s10448_s1 + $0x330] sm:$0xff]   ;;  %v2781_v16 = vld [vmem:[#allocation2 + $0x88] sm:$0xfe]  ;;  %v3031_v0 = vrot.slane %v2773_v6, 1 }
 0x118   :  { %v3043_v37 = vrot.slane %v2781_v16, 1 }
 0x119   :  { %7435 = vmatpush3.bf16.msra.mxu1 %v8969_v46  ;;  %v7706_v46 = vld [vmem:[%s10448_s1 + $0x328] sm:$0xff]   ;;  %v9227_v20 = vadd.f32 %v8457_v17, %v179_v35  ;;  %v2772_v35 = vld [vmem:[#allocation2 + $0x40] sm:$0xfe] }
 0x11a   :  { %7428 = vmatprep.subr.bf16.mxu1 %v8987_v59  ;;  %v702_v59 = vld [vmem:[#allocation2 + $0x258] sm:$0xff]  ;;  %6827 = vmatpush3.bf16.msra.mxu0 %v7706_v46 }
 0x11b   :  { %v750_v19 = vpack.c.bf16 %v9152_v21, %v702_v59  ;;  %v701_v59 = vld [vmem:[#allocation2 + $0x250] sm:$0xff] }
 0x11c   :  { %2161 = vmatmul.mubr.bf16.gmra.mrb[104].mxu1 %v8799_v32  ;;  %v7707_v32 = vld [vmem:[%s10448_s1 + $0x370] sm:$0xff]  }
 0x11d   :  { %2168 = vmatprep.mubr.bf16.mxu1 %v746_v41  ;;  %7436 = vmatpush3.bf16.msra.mxu1 %v8998_v28  ;;  %v10457_v28 = vmax.f32 %v9227_v20, 0.0  ;;  %v2785_v41 = vld [vmem:[#allocation2 + $0xa8] sm:$0x1] }
 0x11e   :  { %7429 = vmatprep.subr.bf16.mxu1 %v9009_v54  ;;  %6828 = vmatprep.subr.bf16.mxu0 %v7707_v32  ;;  %v3044_v46 = vrot.slane %v2785_v41, 1  ;;  %v3028_v32 = vrot.slane %v2772_v35, 1  ;;  %v7793_v35 = vld [vmem:[#allocation2 + $0x290] sm:$0xff] }
 0x11f   :  { %v6448_v24 = vpop.f32.mrb[0].mxu1  ;;  %586 = vst [vmem:[#allocation2 + $0x450] sm:$0xff] %v10457_v28  ;;  %6829 = vmatpush3.bf16.msra.mxu0 %v7708_v22 }
 0x120   :  { %v6449_v52 = vpop.f32.mrb[1].mxu1  ;;  %6830 = vmatprep.subr.bf16.mxu0 %v7711_v33  ;;  %v3045_v22 = vsel %vm1083_vm1, %v3043_v37, %v3044_v46 }
 0x121   :  { %v9236_v47 = vadd.f32 %v6449_v52, %v6448_v24  ;;  %v6451_v54 = vpop.f32.mrb[2].mxu1  ;;  %7437 = vmatpush3.bf16.msra.mxu1 %v9029_v4  ;;  %v7712_v4 = vld [vmem:[%s10448_s1 + $0x338] sm:$0xff]   ;;  %v2776_v24 = vld [vmem:[#allocation2 + $0x60] sm:$0x1] }
 0x122   :  { %v6452_v17 = vpop.f32.mrb[3].mxu1  ;;  %7430 = vmatprep.subr.bf16.mxu1 %v9043_v12  ;;  %v3032_v12 = vrot.slane %v2777_v29, 1  ;;  %v3029_v6 = vrot.slane %v2776_v24, 1  ;;  %v2789_v24 = vld [vmem:[#allocation2 + $0xc8] sm:$0xfe] }
 0x123   :  { %v9243_v25 = vadd.f32 %v6452_v17, %v6451_v54  ;;  %v2780_v54 = vld [vmem:[#allocation2 + $0x80] sm:$0xfe]  ;;  %v2784_v17 = vld [vmem:[#allocation2 + $0xa0] sm:$0x1]  ;;  %6831 = vmatpush3.bf16.msra.mxu0 %v7712_v4 }
 0x124   :  { %2169 = vmatmul.mubr.bf16.gmra.mrb[108].mxu1 %v8830_v26  ;;  %v7665_v26 = vld [vmem:[%s10448_s1 + $0x2c0] sm:$0xff]   ;;  %v3033_v52 = vsel %vm1083_vm1, %v3031_v0, %v3032_v12  ;;  %v3041_v16 = vrot.slane %v2784_v17, 1  ;;  %v3030_v28 = vsel %vm1083_vm1, %v3028_v32, %v3029_v6  ;;  %v754_v0 = vpack.c.bf16 %v9171_v55, %v9154_v50  ;;  %v2793_v32 = vld [vmem:[#allocation2 + $0xe8] sm:$0x1] }
 0x125   :  { %2176 = vmatprep.mubr.bf16.mxu1 %v750_v19  ;;  %7438 = vmatpush3.bf16.msra.mxu1 %v9052_v49  ;;  %v3285_v29 = vpack.c.bf16 %v3045_v22, %v3033_v52  ;;  %v3040_v49 = vrot.slane %v2780_v54, 1  ;;  %v2797_v52 = vld [vmem:[#allocation2 + $0x108] sm:$0xfe]  ;;  %v2801_v22 = vld [vmem:[#allocation2 + $0x128] sm:$0x1]  ;;  %v3055_v54 = vrot.slane %v2789_v24, 1 }
 0x126   :  { %7431 = vmatprep.subr.bf16.mxu1 %v9058_v53  ;;  %v749_v53 = vpack.c.bf16 %v7793_v35, %v701_v59  ;;  %v9268_v59 = vld [vmem:[#allocation2 + $0x398] sm:$0xff]  ;;  %v3056_v17 = vrot.slane %v2793_v32, 1  ;;  %v3068_v6 = vrot.slane %v2801_v22, 1 }
 0x127   :  { %v6454_v19 = vpop.f32.mrb[4].mxu1  ;;  %3605 = vmatprep.mubr.bf16.mxu0 %v3285_v29  ;;  %v3042_v12 = vsel %vm1083_vm1, %v3040_v49, %v3041_v16  ;;  %v2792_v29 = vld [vmem:[#allocation2 + $0xe0] sm:$0x1]  ;;  %v758_v24 = vpack.c.bf16 %v9268_v59, %v9176_v15 }
 0x128   :  { %v6455_v41 = vpop.f32.mrb[5].mxu1  ;;  %v3284_v37 = vpack.c.bf16 %v3042_v12, %v3030_v28  ;;  %v3057_v28 = vsel %vm1083_vm1, %v3055_v54, %v3056_v17  ;;  %v2800_v16 = vld [vmem:[#allocation2 + $0x120] sm:$0x1] }
 0x129   :  { %v9260_v7 = vadd.f32 %v6455_v41, %v6454_v19  ;;  %v6457_v33 = vpop.f32.mrb[6].mxu1  ;;  %7439 = vmatpush3.bf16.msra.mxu1 %v9074_v11  ;;  %v3067_v11 = vrot.slane %v2797_v52, 1  ;;  %v2788_v19 = vld [vmem:[#allocation2 + $0xc0] sm:$0xfe] }
 0x12a   :  { %v6458_v4 = vpop.f32.mrb[7].mxu1  ;;  %6752 = vmatprep.subr.bf16.mxu1 %v7665_v26  ;;  %3606 = vmatmul.mubr.bf16.vlgmr.msra.gmra.mrb[16].mxu0 %v3284_v37  ;;  %v2796_v26 = vld [vmem:[#allocation2 + $0x100] sm:$0xfe]  ;;  %v3052_v41 = vrot.slane %v2788_v19, 1 }
 0x12b   :  { %v9266_v46 = vadd.f32 %v6458_v4, %v6457_v33  ;;  %v3053_v33 = vrot.slane %v2792_v29, 1  ;;  %v3064_v12 = vrot.slane %v2796_v26, 1  ;;  %v2805_v29 = vld [vmem:[#allocation2 + $0x148] sm:$0xfe]  ;;  %v2817_v26 = vld [vmem:[#allocation2 + $0x1a8] sm:$0x1] }
 0x12c   :  { %2177 = vmatmul.mubr.bf16.gmra.mrb[112].mxu1 %v749_v53  ;;  %v3069_v53 = vsel %vm1083_vm1, %v3067_v11, %v3068_v6  ;;  %v9281_v11 = vld [vmem:[#allocation2 + $0x3d8] sm:$0xff] }
 0x12d   :  { %2184 = vmatprep.mubr.bf16.mxu1 %v754_v0  ;;  %v3065_v0 = vrot.slane %v2800_v16, 1  ;;  %v3289_v32 = vpack.c.bf16 %v3069_v53, %v3057_v28  ;;  %v3054_v22 = vsel %vm1083_vm1, %v3052_v41, %v3053_v33  ;;  %v9283_v6 = vld [vmem:[#allocation2 + $0x418] sm:$0xff]  ;;  %v2813_v28 = vld [vmem:[#allocation2 + $0x188] sm:$0xfe]  ;;  %v3079_v16 = vrot.slane %v2805_v29, 1 }
 0x12e   :  { %v3091_v53 = vrot.slane %v2813_v28, 1  ;;  %v3092_v33 = vrot.slane %v2817_v26, 1  ;;  %v2816_v29 = vld [vmem:[#allocation2 + $0x1a0] sm:$0x1] }
 0x12f   :  { %v6460_v49 = vpop.f32.mrb[8].mxu1  ;;  %v3066_v54 = vsel %vm1083_vm1, %v3064_v12, %v3065_v0  ;;  %3613 = vmatprep.mubr.bf16.mxu0 %v3289_v32  ;;  %v2804_v12 = vld [vmem:[#allocation2 + $0x140] sm:$0xfe]  ;;  %v3089_v18 = vrot.slane %v2816_v29, 1 }
 0x130   :  { %v6461_v35 = vpop.f32.mrb[9].mxu1  ;;  %v3288_v19 = vpack.c.bf16 %v3066_v54, %v3054_v22  ;;  %v2812_v32 = vld [vmem:[#allocation2 + $0x180] sm:$0xfe] }
 0x131   :  { %v9272_v4 = vadd.f32 %v6461_v35, %v6460_v49  ;;  %v6463_v37 = vpop.f32.mrb[10].mxu1  ;;  %v2809_v49 = vld [vmem:[#allocation2 + $0x168] sm:$0x1]  ;;  %v3088_v13 = vrot.slane %v2812_v32, 1  ;;  %v2820_v29 = vld [vmem:[#allocation2 + $0x1c0] sm:$0xfe] }
 0x132   :  { %v6464_v52 = vpop.f32.mrb[11].mxu1  ;;  %3614 = vmatmul.mubr.bf16.gmra.mrb[20].mxu0 %v3288_v19  ;;  %v3080_v41 = vrot.slane %v2809_v49, 1  ;;  %v3093_v19 = vsel %vm1083_vm1, %v3091_v53, %v3092_v33  ;;  %v2829_v33 = vld [vmem:[#allocation2 + $0x208] sm:$0xfe] }
 0x133   :  { %v9278_v17 = vadd.f32 %v6464_v52, %v6463_v37  ;;  %v3076_v52 = vrot.slane %v2804_v12, 1  ;;  %v2825_v12 = vld [vmem:[#allocation2 + $0x1e8] sm:$0x1] }
 0x134   :  { %2185 = vmatmul.mubr.bf16.gmra.mrb[116].mxu1 %v8840_v57  ;;  %v762_v57 = vpack.c.bf16 %v9283_v6, %v9281_v11  ;;  %v3081_v37 = vsel %vm1083_vm1, %v3079_v16, %v3080_v41  ;;  %v3090_v16 = vsel %vm1083_vm1, %v3088_v13, %v3089_v18  ;;  %v3104_v32 = vrot.slane %v2825_v12, 1 }
 0x135   :  { %2192 = vmatprep.mubr.bf16.mxu1 %v758_v24  ;;  %v2808_v24 = vld [vmem:[#allocation2 + $0x160] sm:$0x1]  ;;  %v3293_v26 = vpack.c.bf16 %v3093_v19, %v3081_v37  ;;  %v3100_v18 = vrot.slane %v2820_v29, 1  ;;  %v2841_v29 = vld [vmem:[#allocation2 + $0x2a8] sm:$0x1] }
 0x136   :  { %v3077_v49 = vrot.slane %v2808_v24, 1 }
 0x137   :  { %v6466_v35 = vpop.f32.mrb[12].mxu1  ;;  %3621 = vmatprep.mubr.bf16.mxu0 %v3293_v26  ;;  %v2832_v26 = vld [vmem:[#allocation2 + $0x220] sm:$0x1] }
 0x138   :  { %v6467_v0 = vpop.f32.mrb[13].mxu1  ;;  %v3078_v2 = vsel %vm1083_vm1, %v3076_v52, %v3077_v49  ;;  %v2824_v49 = vld [vmem:[#allocation2 + $0x1e0] sm:$0x1] }
 0x139   :  { %v9288_v22 = vadd.f32 %v6467_v0, %v6466_v35  ;;  %v6469_v54 = vpop.f32.mrb[14].mxu1  ;;  %v3292_v41 = vpack.c.bf16 %v3090_v16, %v3078_v2  ;;  %v2821_v35 = vld [vmem:[#allocation2 + $0x1c8] sm:$0xfe]  ;;  %v2833_v0 = vld [vmem:[#allocation2 + $0x228] sm:$0x1]  ;;  %v3101_v16 = vrot.slane %v2824_v49, 1 }
 0x13a   :  { %v6470_v28 = vpop.f32.mrb[15].mxu1  ;;  %v3103_v24 = vrot.slane %v2821_v35, 1  ;;  %v3116_v19 = vrot.slane %v2833_v0, 1 }
 0x13b   :  { %v9291_v8 = vadd.f32 %v6470_v28, %v6469_v54  ;;  %3622 = vmatmul.mubr.bf16.gmra.mrb[24].mxu0 %v3292_v41  ;;  %v3115_v54 = vrot.slane %v2829_v33, 1  ;;  %v2828_v28 = vld [vmem:[#allocation2 + $0x200] sm:$0xfe]  ;;  %v3113_v33 = vrot.slane %v2832_v26, 1  ;;  %v2840_v26 = vld [vmem:[#allocation2 + $0x2a0] sm:$0x1] }
 0x13c   :  { %2193 = vmatmul.mubr.bf16.gmra.mrb[120].mxu1 %v8850_v27  ;;  %v3105_v2 = vsel %vm1083_vm1, %v3103_v24, %v3104_v32  ;;  %v3112_v41 = vrot.slane %v2828_v28, 1  ;;  %v7666_v32 = vld [vmem:[%s10448_s1 + $0x280] sm:$0xff]  }
 0x13d   :  { %2200 = vmatprep.mubr.bf16.mxu1 %v762_v57  ;;  %v3117_v57 = vsel %vm1083_vm1, %v3115_v54, %v3116_v19  ;;  %v2837_v54 = vld [vmem:[#allocation2 + $0x288] sm:$0xfe] }
 0x13e   :  { %v3297_v12 = vpack.c.bf16 %v3117_v57, %v3105_v2  ;;  %v3114_v0 = vsel %vm1083_vm1, %v3112_v41, %v3113_v33  ;;  %v3140_v2 = vrot.slane %v2849_v5, 1  ;;  %v2836_v57 = vld [vmem:[#allocation2 + $0x280] sm:$0xfe]  ;;  %v2848_v33 = vld [vmem:[#allocation2 + $0x2e0] sm:$0x1]  ;;  %v7670_v5 = vld [vmem:[%s10448_s1 + $0x290] sm:$0xff]  }
 0x13f   :  { %v6472_v53 = vpop.f32.mrb[16].mxu1 }
 0x140   :  { %v6473_v37 = vpop.f32.mrb[17].mxu1  ;;  %3629 = vmatprep.mubr.bf16.mxu0 %v3297_v12  ;;  %v2844_v12 = vld [vmem:[#allocation2 + $0x2c0] sm:$0xfe] }
 0x141   :  { %v9296_v52 = vadd.f32 %v6473_v37, %v6472_v53  ;;  %v6475_v27 = vpop.f32.mrb[18].mxu1  ;;  %v3102_v53 = vsel %vm1083_vm1, %v3100_v18, %v3101_v16 }
 0x142   :  { %v6476_v13 = vpop.f32.mrb[19].mxu1  ;;  %v3296_v24 = vpack.c.bf16 %v3114_v0, %v3102_v53  ;;  %v3124_v53 = vrot.slane %v2836_v57, 1  ;;  %v3125_v0 = vrot.slane %v2840_v26, 1  ;;  %v7671_v57 = vld [vmem:[%s10448_s1 + $0x2d8] sm:$0xff]   ;;  %v2865_v26 = vld [vmem:[#allocation2 + $0x368] sm:$0x1] }
 0x143   :  { %v9300_v35 = vadd.f32 %v6476_v13, %v6475_v27  ;;  %v3127_v27 = vrot.slane %v2837_v54, 1  ;;  %v3137_v54 = vrot.slane %v2848_v33, 1 }
 0x144   :  { %2201 = vmatmul.mubr.bf16.gmra.mrb[124].mxu1 %v8861_v34  ;;  %3630 = vmatmul.mubr.bf16.gmra.mrb[28].mxu0 %v3296_v24  ;;  %v2845_v34 = vld [vmem:[#allocation2 + $0x2c8] sm:$0xfe] }
 0x145   :  { %2626 = vmatprep.mubr.bf16.mxu1 %v2290_v61  ;;  %v3128_v61 = vrot.slane %v2841_v29, 1  ;;  %v3139_v18 = vrot.slane %v2845_v34, 1  ;;  %v10461_v29 = vpack.c.bf16 %v8951_v3, %v8933_v63  ;;  %v2853_v63 = vld [vmem:[#allocation2 + $0x308] sm:$0xfe] }
 0x147   :  { %v6478_v37 = vpop.f32.mrb[20].mxu1  ;;  %v3129_v41 = vsel %vm1083_vm1, %v3127_v27, %v3128_v61  ;;  %v3141_v24 = vsel %vm1083_vm1, %v3139_v18, %v3140_v2  ;;  %v3126_v27 = vsel %vm1083_vm1, %v3124_v53, %v3125_v0  ;;  %v2861_v18 = vld [vmem:[#allocation2 + $0x348] sm:$0xfe]  ;;  %v3164_v53 = vrot.slane %v2865_v26, 1  ;;  %v2852_v0 = vld [vmem:[#allocation2 + $0x300] sm:$0xfe] }
 0x148   :  { %v6479_v19 = vpop.f32.mrb[21].mxu1  ;;  %v3301_v34 = vpack.c.bf16 %v3141_v24, %v3129_v41  ;;  %v2856_v24 = vld [vmem:[#allocation2 + $0x320] sm:$0x1] }
 0x149   :  { %v9311_v49 = vadd.f32 %v6479_v19, %v6478_v37  ;;  %v6481_v28 = vpop.f32.mrb[22].mxu1  ;;  %v3136_v37 = vrot.slane %v2844_v12, 1  ;;  %v7668_v19 = vld [vmem:[%s10448_s1 + $0x288] sm:$0xff]   ;;  %v3163_v12 = vrot.slane %v2861_v18, 1 }
 0x14a   :  { %v6482_v13 = vpop.f32.mrb[23].mxu1  ;;  %3637 = vmatprep.mubr.bf16.mxu0 %v3301_v34  ;;  %v3148_v34 = vrot.slane %v2852_v0, 1 }
 0x14b   :  { %v9316_v16 = vadd.f32 %v6482_v13, %v6481_v28  ;;  %v3138_v43 = vsel %vm1083_vm1, %v3136_v37, %v3137_v54  ;;  %v3151_v13 = vrot.slane %v2853_v63, 1  ;;  %v10462_v37 = vpack.c.bf16 %v8961_v42, %v8959_v39  ;;  %v7673_v42 = vld [vmem:[%s10448_s1 + $0x2e0] sm:$0xff]  }
 0x14c   :  { %2627 = vmatmul.mubr.bf16.vlgmr.msra.gmra.mrb[128].mxu1 %v2289_v45 }
 0x14d   :  { %6753 = vmatpush3.bf16.msra.mxu1 %v7666_v32  ;;  %2634 = vmatprep.mubr.bf16.mxu1 %v10461_v29  ;;  %v3300_v32 = vpack.c.bf16 %v3138_v43, %v3126_v27  ;;  %v2864_v29 = vld [vmem:[#allocation2 + $0x360] sm:$0x1]  ;;  %v3149_v27 = vrot.slane %v2856_v24, 1  ;;  %v10463_v43 = vpack.c.bf16 %v9016_v10, %v8993_v60  ;;  %v7676_v24 = vld [vmem:[%s10448_s1 + $0x2a8] sm:$0xff]  }
 0x14e   :  { %6754 = vmatprep.subr.bf16.mxu1 %v7667_v31  ;;  %v2857_v31 = vld [vmem:[#allocation2 + $0x328] sm:$0x1]  ;;  %v3161_v39 = vrot.slane %v2864_v29, 1 }
 0x14f   :  { %v6484_v45 = vpop.f32.mrb[24].mxu1  ;;  %3638 = vmatmul.mubr.bf16.gmra.mrb[32].mxu0 %v3300_v32  ;;  %v3152_v41 = vrot.slane %v2857_v31, 1 }
 0x150   :  { %v6485_v28 = vpop.f32.mrb[25].mxu1 }
 0x151   :  { %v9337_v3 = vadd.f32 %v6485_v28, %v6484_v45  ;;  %v6487_v61 = vpop.f32.mrb[26].mxu1  ;;  %6755 = vmatpush3.bf16.msra.mxu1 %v7668_v19  ;;  %v3153_v54 = vsel %vm1083_vm1, %v3151_v13, %v3152_v41  ;;  %v2860_v19 = vld [vmem:[#allocation2 + $0x340] sm:$0xfe]  ;;  %v3165_v45 = vsel %vm1083_vm1, %v3163_v12, %v3164_v53  ;;  %v2270_v28 = vld [vmem:[#allocation2 + $0x448] sm:$0xff] }
 0x152   :  { %v6488_v2 = vpop.f32.mrb[27].mxu1  ;;  %6756 = vmatprep.subr.bf16.mxu1 %v7669_v56  ;;  %v7672_v56 = vld [vmem:[%s10448_s1 + $0x298] sm:$0xff]   ;;  %v3160_v32 = vrot.slane %v2860_v19, 1  ;;  %v3305_v63 = vpack.c.bf16 %v3165_v45, %v3153_v54  ;;  %v7675_v41 = vld [vmem:[%s10448_s1 + $0x2e8] sm:$0xff]   ;;  %v2872_v45 = vld [vmem:[#allocation2 + $0x3a0] sm:$0x1] }
 0x153   :  { %v9342_v33 = vadd.f32 %v6488_v2, %v6487_v61  ;;  %v7674_v2 = vld [vmem:[%s10448_s1 + $0x2a0] sm:$0xff]   ;;  %v2869_v12 = vld [vmem:[#allocation2 + $0x388] sm:$0xfe]  ;;  %v2873_v53 = vld [vmem:[#allocation2 + $0x3a8] sm:$0x1] }
 0x154   :  { %2635 = vmatmul.mubr.bf16.gmra.mrb[132].mxu1 %v10462_v37  ;;  %v3162_v31 = vsel %vm1083_vm1, %v3160_v32, %v3161_v39  ;;  %3645 = vmatprep.mubr.bf16.mxu0 %v3305_v63  ;;  %v2269_v37 = vld [vmem:[#allocation2 + $0x440] sm:$0xff]  ;;  %v2877_v54 = vld [vmem:[#allocation2 + $0x3c8] sm:$0xfe]  ;;  %v2881_v19 = vld [vmem:[#allocation2 + $0x3e8] sm:$0x1]  ;;  %v3175_v29 = vrot.slane %v2869_v12, 1 }
 0x155   :  { %6757 = vmatpush3.bf16.msra.mxu1 %v7670_v5  ;;  %2642 = vmatprep.mubr.bf16.mxu1 %v10463_v43  ;;  %v3150_v5 = vsel %vm1083_vm1, %v3148_v34, %v3149_v27  ;;  %v10464_v34 = vpack.c.bf16 %v9021_v9, %v9004_v58  ;;  %v3187_v27 = vrot.slane %v2877_v54, 1  ;;  %v2868_v43 = vld [vmem:[#allocation2 + $0x380] sm:$0xfe]  ;;  %v3173_v63 = vrot.slane %v2872_v45, 1 }
 0x156   :  { %6758 = vmatprep.subr.bf16.mxu1 %v7671_v57  ;;  %v3304_v60 = vpack.c.bf16 %v3162_v31, %v3150_v5  ;;  %v2302_v57 = vpack.c.bf16 %v2270_v28, %v9113_v30  ;;  %v3176_v30 = vrot.slane %v2873_v53, 1  ;;  %v2876_v39 = vld [vmem:[#allocation2 + $0x3c0] sm:$0xfe]  ;;  %v3172_v28 = vrot.slane %v2868_v43, 1  ;;  %v7677_v5 = vld [vmem:[%s10448_s1 + $0x2f0] sm:$0xff]  }
 0x157   :  { %v6490_v61 = vpop.f32.mrb[28].mxu1  ;;  %v3184_v9 = vrot.slane %v2876_v39, 1  ;;  %v2897_v43 = vld [vmem:[#allocation2 + $0x468] sm:$0x1]  ;;  %v10465_v39 = vpack.c.bf16 %v9083_v23, %v9080_v38 }
 0x158   :  { %v6491_v18 = vpop.f32.mrb[29].mxu1  ;;  %3646 = vmatmul.mubr.bf16.gmra.mrb[36].mxu0 %v3304_v60  ;;  %v3177_v32 = vsel %vm1083_vm1, %v3175_v29, %v3176_v30  ;;  %v3174_v60 = vsel %vm1083_vm1, %v3172_v28, %v3173_v63  ;;  %v2885_v30 = vld [vmem:[#allocation2 + $0x408] sm:$0xfe]  ;;  %v3212_v28 = vrot.slane %v2897_v43, 1  ;;  %v2884_v63 = vld [vmem:[#allocation2 + $0x400] sm:$0xfe] }
 0x159   :  { %v9360_v10 = vadd.f32 %v6491_v18, %v6490_v61  ;;  %v6493_v13 = vpop.f32.mrb[30].mxu1  ;;  %6759 = vmatpush3.bf16.msra.mxu1 %v7672_v56  ;;  %v3188_v56 = vrot.slane %v2881_v19, 1  ;;  %v7679_v19 = vld [vmem:[%s10448_s1 + $0x2f8] sm:$0xff]   ;;  %v3199_v45 = vrot.slane %v2885_v30, 1  ;;  %v7684_v43 = vld [vmem:[%s10448_s1 + $0x388] sm:$0xff]  }
 0x15a   :  { %v6494_v26 = vpop.f32.mrb[31].mxu1  ;;  %6760 = vmatprep.subr.bf16.mxu1 %v7673_v42  ;;  %v2880_v42 = vld [vmem:[#allocation2 + $0x3e0] sm:$0x1] }
 0x15b   :  { %v9369_v0 = vadd.f32 %v6494_v26, %v6493_v13  ;;  %v3189_v58 = vsel %vm1083_vm1, %v3187_v27, %v3188_v56  ;;  %v3185_v61 = vrot.slane %v2880_v42, 1  ;;  %v7681_v27 = vld [vmem:[%s10448_s1 + $0x3c0] sm:$0xff]   ;;  %v2893_v56 = vld [vmem:[#allocation2 + $0x448] sm:$0xfe] }
 0x15c   :  { %2643 = vmatmul.mubr.bf16.gmra.mrb[136].mxu1 %v10464_v34  ;;  %v3309_v18 = vpack.c.bf16 %v3189_v58, %v3177_v32  ;;  %v2889_v34 = vld [vmem:[#allocation2 + $0x428] sm:$0x1]  ;;  %v3211_v42 = vrot.slane %v2893_v56, 1  ;;  %v2223_v56 = vld [vmem:[#allocation2 + $0x110] sm:$0xff] }
 0x15d   :  { %6761 = vmatpush3.bf16.msra.mxu1 %v7674_v2  ;;  %2650 = vmatprep.mubr.bf16.mxu1 %v2302_v57  ;;  %v2301_v2 = vpack.c.bf16 %v2269_v37, %v9133_v14  ;;  %v3186_v57 = vsel %vm1083_vm1, %v3184_v9, %v3185_v61  ;;  %v2215_v37 = vld [vmem:[#allocation2 + $0x90] sm:$0xff]  ;;  %v3200_v32 = vrot.slane %v2889_v34, 1  ;;  %v2892_v9 = vld [vmem:[#allocation2 + $0x440] sm:$0xfe]  ;;  %v2896_v61 = vld [vmem:[#allocation2 + $0x460] sm:$0x1]  ;;  %v10466_v34 = vpack.c.bf16 %v9096_v40, %v9094_v36 }
 0x15e   :  { %6762 = vmatprep.subr.bf16.mxu1 %v7675_v41  ;;  %v7678_v41 = vld [vmem:[%s10448_s1 + $0x2b0] sm:$0xff]   ;;  %3653 = vmatprep.mubr.bf16.mxu0 %v3309_v18  ;;  %v3308_v53 = vpack.c.bf16 %v3186_v57, %v3174_v60  ;;  %v2275_v23 = vpack.c.bf16 %v2215_v37, %v9146_v51 }
 0x15f   :  { %v6512_v31 = vpop.f32.mrb[32].mxu1  ;;  %v3201_v58 = vsel %vm1083_vm1, %v3199_v45, %v3200_v32  ;;  %v7686_v36 = vld [vmem:[%s10448_s1 + $0x390] sm:$0xff]  }
 0x160   :  { %v6513_v13 = vpop.f32.mrb[33].mxu1  ;;  %3654 = vmatmul.mubr.bf16.gmra.mrb[40].mxu0 %v3308_v53  ;;  %v7682_v53 = vld [vmem:[%s10448_s1 + $0x380] sm:$0xff]  }
 0x161   :  { %v6514_v26 = vadd.f32 %v6513_v13, %v6512_v31  ;;  %v6515_v12 = vpop.f32.mrb[34].mxu1  ;;  %6763 = vmatpush3.bf16.msra.mxu1 %v7676_v24  ;;  %v7680_v24 = vld [vmem:[%s10448_s1 + $0x2b8] sm:$0xff]   ;;  %v3196_v31 = vrot.slane %v2884_v63, 1  ;;  %v3208_v13 = vrot.slane %v2892_v9, 1  ;;  %v10467_v9 = vpack.c.bf16 %v9117_v1, %v9115_v62  ;;  %v7692_v1 = vld [vmem:[%s10448_s1 + $0x3a0] sm:$0xff]  }
 0x162   :  { %v6516_v54 = vpop.f32.mrb[35].mxu1  ;;  %6764 = vmatprep.subr.bf16.mxu1 %v7677_v5  ;;  %v2888_v5 = vld [vmem:[#allocation2 + $0x420] sm:$0x1] }
 0x163   :  { %v9392_v29 = vadd.f32 %v6514_v26, %v9236_v47  ;;  %v6517_v14 = vadd.f32 %v6516_v54, %v6515_v12  ;;  %v3197_v18 = vrot.slane %v2888_v5, 1 }
 0x164   :  { %2651 = vmatmul.mubr.bf16.gmra.mrb[140].mxu1 %v2301_v2  ;;  %v3209_v2 = vrot.slane %v2896_v61, 1  ;;  %v2227_v61 = vld [vmem:[#allocation2 + $0x150] sm:$0xff] }
 0x165   :  { %v9401_v47 = vadd.f32 %v6517_v14, %v9243_v25  ;;  %6765 = vmatpush3.bf16.msra.mxu1 %v7678_v41  ;;  %2691 = vmatprep.mubr.bf16.mxu1 %v10465_v39  ;;  %v3213_v25 = vsel %vm1083_vm1, %v3211_v42, %v3212_v28  ;;  %v3198_v26 = vsel %vm1083_vm1, %v3196_v31, %v3197_v18  ;;  %v7683_v14 = vld [vmem:[%s10448_s1 + $0x3c8] sm:$0xff]   ;;  %v7687_v28 = vld [vmem:[%s10448_s1 + $0x3d8] sm:$0xff]   ;;  %v2231_v31 = vld [vmem:[#allocation2 + $0x190] sm:$0xff] }
 0x166   :  { %6766 = vmatprep.subr.bf16.mxu1 %v7679_v19  ;;  %v3313_v38 = vpack.c.bf16 %v3213_v25, %v3201_v58  ;;  %v3210_v54 = vsel %vm1083_vm1, %v3208_v13, %v3209_v2  ;;  %v7688_v18 = vld [vmem:[%s10448_s1 + $0x398] sm:$0xff]   ;;  %v2283_v13 = vpack.c.bf16 %v2231_v31, %v2227_v61  ;;  %v2251_v61 = vld [vmem:[#allocation2 + $0x310] sm:$0xff] }
 0x167   :  { %v6518_v60 = vpop.f32.mrb[36].mxu1  ;;  %v3312_v51 = vpack.c.bf16 %v3210_v54, %v3198_v26  ;;  %v7703_v54 = vld [vmem:[%s10448_s1 + $0x3f0] sm:$0xff]  }
 0x168   :  { %v6519_v57 = vpop.f32.mrb[37].mxu1  ;;  %3661 = vmatprep.mubr.bf16.mxu0 %v3313_v38  ;;  %v7697_v38 = vld [vmem:[%s10448_s1 + $0x3e8] sm:$0xff]   ;;  %v2255_v31 = vld [vmem:[#allocation2 + $0x350] sm:$0xff] }
 0x169   :  { %v6520_v12 = vadd.f32 %v6519_v57, %v6518_v60  ;;  %v6521_v41 = vpop.f32.mrb[38].mxu1  ;;  %6767 = vmatpush3.bf16.msra.mxu1 %v7680_v24  ;;  %3662 = vmatmul.mubr.bf16.gmra.mrb[44].mxu0 %v3312_v51  ;;  %v2240_v60 = vld [vmem:[#allocation2 + $0x218] sm:$0xff] }
 0x16a   :  { %v6522_v19 = vpop.f32.mrb[39].mxu1  ;;  %6880 = vmatprep.subr.bf16.mxu1 %v7681_v27  ;;  %v2219_v27 = vld [vmem:[#allocation2 + $0xd0] sm:$0xff]  ;;  %v2288_v62 = vpack.c.bf16 %v2240_v60, %v9200_v44 }
 0x16b   :  { %v9418_v37 = vadd.f32 %v6520_v12, %v9260_v7  ;;  %v6523_v30 = vadd.f32 %v6522_v19, %v6521_v41  ;;  %v7685_v7 = vld [vmem:[%s10448_s1 + $0x3d0] sm:$0xff]  }
 0x16c   :  { %2692 = vmatmul.mubr.bf16.vlgmr.msra.gmra.mrb[144].mxu1 %v2275_v23  ;;  %v2235_v44 = vld [vmem:[#allocation2 + $0x1d0] sm:$0xff] }
 0x16d   :  { %v9421_v24 = vadd.f32 %v6523_v30, %v9266_v46  ;;  %6881 = vmatpush3.bf16.msra.mxu1 %v7682_v53  ;;  %2699 = vmatprep.mubr.bf16.mxu1 %v10466_v34  ;;  %v2279_v46 = vpack.c.bf16 %v2223_v56, %v2219_v27  ;;  %v7698_v53 = vld [vmem:[%s10448_s1 + $0x3a8] sm:$0xff]   ;;  %v7704_v34 = vld [vmem:[%s10448_s1 + $0x3b0] sm:$0xff]   ;;  %v7709_v56 = vld [vmem:[%s10448_s1 + $0x3f8] sm:$0xff]  }
 0x16e   :  { %6882 = vmatprep.subr.bf16.mxu1 %v7683_v14  ;;  %v10468_v14 = vmax.f32 %v9136_v48, 0.0 }
 0x16f   :  { %v6524_v45 = vpop.f32.mrb[40].mxu1 }
 0x170   :  { %v6525_v32 = vpop.f32.mrb[41].mxu1  ;;  %v2287_v51 = vpack.c.bf16 %v10468_v14, %v2235_v44  ;;  %v2787_v44 = vld [vmem:[#allocation2 + $0xb8] sm:$0x1] }
 0x171   :  { %v6526_v39 = vadd.f32 %v6525_v32, %v6524_v45  ;;  %v6527_v42 = vpop.f32.mrb[42].mxu1  ;;  %6883 = vmatpush3.bf16.msra.mxu1 %v7684_v43  ;;  %v10469_v45 = vpack.c.bf16 %v9154_v50, %v9152_v21  ;;  %v2243_v32 = vld [vmem:[#allocation2 + $0x290] sm:$0xff] }
 0x172   :  { %v6528_v40 = vpop.f32.mrb[43].mxu1  ;;  %6884 = vmatprep.subr.bf16.mxu1 %v7685_v7 }
 0x173   :  { %v9439_v63 = vadd.f32 %v6526_v39, %v9272_v4  ;;  %v6529_v5 = vadd.f32 %v6528_v40, %v6527_v42  ;;  %v7691_v4 = vld [vmem:[%s10448_s1 + $0x3e0] sm:$0xff]   ;;  %v7710_v39 = vld [vmem:[%s10448_s1 + $0x3b8] sm:$0xff]  }
 0x174   :  { %2700 = vmatmul.mubr.bf16.gmra.mrb[148].mxu1 %v2279_v46  ;;  %v2247_v46 = vld [vmem:[#allocation2 + $0x2d0] sm:$0xff] }
 0x175   :  { %v9442_v58 = vadd.f32 %v6529_v5, %v9278_v17  ;;  %2707 = vmatprep.mubr.bf16.mxu1 %v10467_v9  ;;  %6885 = vmatpush3.bf16.msra.mxu1 %v7686_v36  ;;  %v2291_v36 = vpack.c.bf16 %v2247_v46, %v2243_v32  ;;  %v10470_v9 = vpack.c.bf16 %v9176_v15, %v9171_v55  ;;  %v2259_v55 = vld [vmem:[#allocation2 + $0x390] sm:$0xff] }
 0x176   :  { %6886 = vmatprep.subr.bf16.mxu1 %v7687_v28  ;;  %v2263_v15 = vld [vmem:[#allocation2 + $0x3d0] sm:$0xff] }
 0x177   :  { %v6530_v25 = vpop.f32.mrb[44].mxu1  ;;  %v2786_v46 = vld [vmem:[#allocation2 + $0xb0] sm:$0x1] }
 0x178   :  { %v6531_v17 = vpop.f32.mrb[45].mxu1 }
 0x179   :  { %v6532_v2 = vadd.f32 %v6531_v17, %v6530_v25  ;;  %v6533_v57 = vpop.f32.mrb[46].mxu1  ;;  %6887 = vmatpush3.bf16.msra.mxu1 %v7688_v18 }
 0x17a   :  { %v6534_v23 = vpop.f32.mrb[47].mxu1  ;;  %6888 = vmatprep.subr.bf16.mxu1 %v7691_v4  ;;  %v2295_v4 = vpack.c.bf16 %v2255_v31, %v2251_v61 }
 0x17b   :  { %v9461_v26 = vadd.f32 %v6532_v2, %v9288_v22  ;;  %v6535_v12 = vadd.f32 %v6534_v23, %v6533_v57  ;;  %v2779_v23 = vld [vmem:[#allocation2 + $0x78] sm:$0x1] }
 0x17c   :  { %2708 = vmatmul.mubr.bf16.gmra.mrb[152].mxu1 %v2283_v13  ;;  %v3038_v14 = vrot.slane %v2779_v23, 1  ;;  %v2794_v23 = vld [vmem:[#allocation2 + $0xf0] sm:$0x1] }
 0x17d   :  { %v9464_v41 = vadd.f32 %v6535_v12, %v9291_v8  ;;  %2715 = vmatprep.mubr.bf16.mxu1 %v2288_v62  ;;  %6889 = vmatpush3.bf16.msra.mxu1 %v7692_v1  ;;  %v2272_v62 = vld [vmem:[#allocation2 + $0x458] sm:$0xff] }
 0x17e   :  { %6890 = vmatprep.subr.bf16.mxu1 %v7697_v38  ;;  %v2775_v1 = vld [vmem:[#allocation2 + $0x58] sm:$0xfe] }
 0x17f   :  { %v6536_v19 = vpop.f32.mrb[48].mxu1  ;;  %v2783_v12 = vld [vmem:[#allocation2 + $0x98] sm:$0xfe] }
 0x180   :  { %v6537_v22 = vpop.f32.mrb[49].mxu1 }
 0x181   :  { %v6538_v30 = vadd.f32 %v6537_v22, %v6536_v19  ;;  %v6539_v8 = vpop.f32.mrb[50].mxu1  ;;  %6891 = vmatpush3.bf16.msra.mxu1 %v7698_v53  ;;  %v3037_v22 = vrot.slane %v2775_v1, 1  ;;  %v2790_v1 = vld [vmem:[#allocation2 + $0xd0] sm:$0xfe] }
 0x182   :  { %v6540_v27 = vpop.f32.mrb[51].mxu1  ;;  %6892 = vmatprep.subr.bf16.mxu1 %v7703_v54 }
 0x183   :  { %v9481_v43 = vadd.f32 %v6538_v30, %v9296_v52  ;;  %v6541_v7 = vadd.f32 %v6540_v27, %v6539_v8 }
 0x184   :  { %2716 = vmatmul.mubr.bf16.gmra.mrb[156].mxu1 %v2287_v51  ;;  %v3050_v51 = vrot.slane %v2787_v44, 1 }
 0x185   :  { %v9484_v48 = vadd.f32 %v6541_v7, %v9300_v35  ;;  %2723 = vmatprep.mubr.bf16.mxu1 %v10469_v45  ;;  %6893 = vmatpush3.bf16.msra.mxu1 %v7704_v34  ;;  %v2267_v34 = vld [vmem:[#allocation2 + $0x410] sm:$0xff] }
 0x186   :  { %6894 = vmatprep.subr.bf16.mxu1 %v7709_v56  ;;  %v2774_v56 = vld [vmem:[#allocation2 + $0x50] sm:$0xfe]  ;;  %v2778_v7 = vld [vmem:[#allocation2 + $0x70] sm:$0x1] }
 0x187   :  { %v6542_v42 = vpop.f32.mrb[52].mxu1  ;;  %v2782_v45 = vld [vmem:[#allocation2 + $0x90] sm:$0xfe] }
 0x188   :  { %v6543_v52 = vpop.f32.mrb[53].mxu1 }
 0x189   :  { %v6544_v40 = vadd.f32 %v6543_v52, %v6542_v42  ;;  %v6545_v28 = vpop.f32.mrb[54].mxu1  ;;  %6895 = vmatpush3.bf16.msra.mxu1 %v7710_v39  ;;  %v2791_v39 = vld [vmem:[#allocation2 + $0xd8] sm:$0xfe]  ;;  %v2795_v42 = vld [vmem:[#allocation2 + $0xf8] sm:$0x1] }
 0x18a   :  { %v6546_v35 = vpop.f32.mrb[55].mxu1 }
 0x18b   :  { %v9493_v5 = vadd.f32 %v6544_v40, %v9311_v49  ;;  %v6547_v21 = vadd.f32 %v6546_v35, %v6545_v28  ;;  %v2300_v49 = vpack.c.bf16 %v9281_v11, %v9268_v59  ;;  %v2299_v59 = vpack.c.bf16 %v2263_v15, %v2259_v55 }
 0x18c   :  { %2724 = vmatmul.mubr.bf16.gmra.mrb[160].mxu1 %v2291_v36  ;;  %v2803_v36 = vld [vmem:[#allocation2 + $0x138] sm:$0x1]  ;;  %v10471_v28 = vmax.f32 %v9227_v20, 0.0 }
 0x18d   :  { %v9496_v50 = vadd.f32 %v6547_v21, %v9316_v16  ;;  %2731 = vmatprep.mubr.bf16.mxu1 %v10470_v9  ;;  %v3035_v21 = vrot.slane %v2778_v7, 1 }
 0x18e   :  { %v2303_v35 = vpack.c.bf16 %v10471_v28, %v2267_v34  ;;  %v2810_v28 = vld [vmem:[#allocation2 + $0x170] sm:$0x1] }
 0x18f   :  { %v6548_v18 = vpop.f32.mrb[56].mxu1 }
 0x190   :  { %v6549_v60 = vpop.f32.mrb[57].mxu1 }
 0x191   :  { %v6550_v25 = vadd.f32 %v6549_v60, %v6548_v18  ;;  %v6551_v17 = vpop.f32.mrb[58].mxu1  ;;  %v3046_v18 = vrot.slane %v2782_v45, 1  ;;  %v3047_v60 = vrot.slane %v2786_v46, 1 }
 0x192   :  { %v6552_v13 = vpop.f32.mrb[59].mxu1 }
 0x193   :  { %v9504_v2 = vadd.f32 %v6550_v25, %v9337_v3  ;;  %v6553_v16 = vadd.f32 %v6552_v13, %v6551_v17  ;;  %v2304_v3 = vpack.c.bf16 %v2272_v62, %v9283_v6  ;;  %v3039_v6 = vsel %vm1083_vm1, %v3037_v22, %v3038_v14 }
 0x194   :  { %2732 = vmatmul.mubr.bf16.gmra.mrb[164].mxu1 %v2295_v4  ;;  %v3061_v25 = vrot.slane %v2791_v39, 1  ;;  %v3062_v17 = vrot.slane %v2795_v42, 1  ;;  %v3074_v13 = vrot.slane %v2803_v36, 1  ;;  %v3048_v62 = vsel %vm1083_vm1, %v3046_v18, %v3047_v60  ;;  %v2831_v18 = vld [vmem:[#allocation2 + $0x218] sm:$0xfe] }
 0x195   :  { %v9507_v57 = vadd.f32 %v6553_v16, %v9342_v33  ;;  %2739 = vmatprep.mubr.bf16.mxu1 %v2300_v49  ;;  %v3049_v33 = vrot.slane %v2783_v12, 1  ;;  %v3058_v22 = vrot.slane %v2790_v1, 1  ;;  %v3059_v14 = vrot.slane %v2794_v23, 1  ;;  %v2835_v60 = vld [vmem:[#allocation2 + $0x238] sm:$0x1] }
 0x196   :  { %v3063_v12 = vsel %vm1083_vm1, %v3061_v25, %v3062_v17  ;;  %v3083_v17 = vrot.slane %v2810_v28, 1 }
 0x197   :  { %v6554_v38 = vpop.f32.mrb[60].mxu1  ;;  %v3051_v32 = vsel %vm1083_vm1, %v3049_v33, %v3050_v51 }
 0x198   :  { %v6555_v53 = vpop.f32.mrb[61].mxu1  ;;  %v3287_v31 = vpack.c.bf16 %v3051_v32, %v3039_v6 }
 0x199   :  { %v6556_v11 = vadd.f32 %v6555_v53, %v6554_v38  ;;  %v6557_v54 = vpop.f32.mrb[62].mxu1  ;;  %v2798_v38 = vld [vmem:[#allocation2 + $0x110] sm:$0xfe]  ;;  %v2802_v53 = vld [vmem:[#allocation2 + $0x130] sm:$0x1] }
 0x19a   :  { %v6558_v19 = vpop.f32.mrb[63].mxu1  ;;  %v3070_v34 = vrot.slane %v2798_v38, 1 }
 0x19b   :  { %v9511_v30 = vadd.f32 %v6556_v11, %v9360_v10  ;;  %v6559_v8 = vadd.f32 %v6558_v19, %v6557_v54  ;;  %v2799_v10 = vld [vmem:[#allocation2 + $0x118] sm:$0xfe] }
 0x19c   :  { %2740 = vmatmul.mubr.bf16.gmra.mrb[168].mxu1 %v2299_v59  ;;  %v3073_v49 = vrot.slane %v2799_v10, 1  ;;  %v2811_v59 = vld [vmem:[#allocation2 + $0x178] sm:$0x1]  ;;  %v2815_v54 = vld [vmem:[#allocation2 + $0x198] sm:$0xfe]  ;;  %v3060_v10 = vsel %vm1083_vm1, %v3058_v22, %v3059_v14 }
 0x19d   :  { %v9514_v27 = vadd.f32 %v6559_v8, %v9369_v0  ;;  %2747 = vmatprep.mubr.bf16.mxu1 %v2304_v3  ;;  %v3034_v0 = vrot.slane %v2774_v56, 1  ;;  %v2819_v3 = vld [vmem:[#allocation2 + $0x1b8] sm:$0x1]  ;;  %v3071_v56 = vrot.slane %v2802_v53, 1  ;;  %v3086_v6 = vrot.slane %v2811_v59, 1 }
 0x19e   :  { %v3075_v44 = vsel %vm1083_vm1, %v3073_v49, %v3074_v13  ;;  %v3097_v32 = vrot.slane %v2815_v54, 1  ;;  %v3098_v46 = vrot.slane %v2819_v3, 1  ;;  %v2822_v3 = vld [vmem:[#allocation2 + $0x1d0] sm:$0xfe] }
 0x19f   :  { %v6576_v52 = vpop.f32.mrb[64].mxu1  ;;  %v3036_v15 = vsel %vm1083_vm1, %v3034_v0, %v3035_v21  ;;  %v3291_v8 = vpack.c.bf16 %v3075_v44, %v3063_v12  ;;  %v3072_v36 = vsel %vm1083_vm1, %v3070_v34, %v3071_v56  ;;  %v3121_v12 = vrot.slane %v2831_v18, 1  ;;  %v2847_v34 = vld [vmem:[#allocation2 + $0x2d8] sm:$0xfe]  ;;  %v2851_v56 = vld [vmem:[#allocation2 + $0x2f8] sm:$0x1] }
 0x1a0   :  { %v6577_v40 = vpop.f32.mrb[65].mxu1  ;;  %v3286_v19 = vpack.c.bf16 %v3048_v62, %v3036_v15  ;;  %v3099_v21 = vsel %vm1083_vm1, %v3097_v32, %v3098_v46  ;;  %v3122_v44 = vrot.slane %v2835_v60, 1  ;;  %v2838_v60 = vld [vmem:[#allocation2 + $0x290] sm:$0xfe] }
 0x1a1   :  { %v6578_v9 = vadd.f32 %v6577_v40, %v6576_v52  ;;  %v6579_v61 = vpop.f32.mrb[66].mxu1  ;;  %v2806_v40 = vld [vmem:[#allocation2 + $0x150] sm:$0xfe] }
 0x1a2   :  { %v6580_v4 = vpop.f32.mrb[67].mxu1  ;;  %v3082_v25 = vrot.slane %v2806_v40, 1  ;;  %v3123_v14 = vsel %vm1083_vm1, %v3121_v12, %v3122_v44 }
 0x1a3   :  { %v9521_v16 = vadd.f32 %v6578_v9, %v9392_v29  ;;  %v6581_v55 = vadd.f32 %v6580_v4, %v6579_v61  ;;  %v2807_v29 = vld [vmem:[#allocation2 + $0x158] sm:$0xfe]  ;;  %v2818_v9 = vld [vmem:[#allocation2 + $0x1b0] sm:$0x1]  ;;  %v2827_v61 = vld [vmem:[#allocation2 + $0x1f8] sm:$0x1]  ;;  %v3290_v4 = vpack.c.bf16 %v3072_v36, %v3060_v10 }
 0x1a4   :  { %2748 = vmatmul.mubr.bf16.gmra.mrb[172].mxu1 %v2303_v35  ;;  %v3085_v45 = vrot.slane %v2807_v29, 1  ;;  %v2814_v35 = vld [vmem:[#allocation2 + $0x190] sm:$0xfe]  ;;  %v3095_v62 = vrot.slane %v2818_v9, 1  ;;  %v3110_v38 = vrot.slane %v2827_v61, 1 }
 0x1a5   :  { %v9524_v20 = vadd.f32 %v6581_v55, %v9401_v47  ;;  %3702 = vmatprep.mubr.bf16.mxu1 %v3287_v31  ;;  %v3094_v15 = vrot.slane %v2814_v35, 1 }
 0x1a6   :  { %v3087_v0 = vsel %vm1083_vm1, %v3085_v45, %v3086_v6  ;;  %v3106_v45 = vrot.slane %v2822_v3, 1 }
 0x1a7   :  { %v6582_v11 = vpop.f32.mrb[68].mxu1  ;;  %v3295_v55 = vpack.c.bf16 %v3099_v21, %v3087_v0  ;;  %v3096_v54 = vsel %vm1083_vm1, %v3094_v15, %v3095_v62  ;;  %v3145_v0 = vrot.slane %v2847_v34, 1  ;;  %v3146_v21 = vrot.slane %v2851_v56, 1  ;;  %v2863_v15 = vld [vmem:[#allocation2 + $0x358] sm:$0xfe] }
 0x1a8   :  { %v6583_v47 = vpop.f32.mrb[69].mxu1  ;;  %v2867_v62 = vld [vmem:[#allocation2 + $0x378] sm:$0x1] }
 0x1a9   :  { %v6584_v33 = vadd.f32 %v6583_v47, %v6582_v11  ;;  %v6585_v51 = vpop.f32.mrb[70].mxu1  ;;  %v3084_v11 = vsel %vm1083_vm1, %v3082_v25, %v3083_v17  ;;  %v2826_v47 = vld [vmem:[#allocation2 + $0x1f0] sm:$0x1]  ;;  %v3147_v17 = vsel %vm1083_vm1, %v3145_v0, %v3146_v21  ;;  %v2879_v21 = vld [vmem:[#allocation2 + $0x3d8] sm:$0xfe] }
 0x1aa   :  { %v6586_v7 = vpop.f32.mrb[71].mxu1  ;;  %v3107_v6 = vrot.slane %v2826_v47, 1 }
 0x1ab   :  { %v9531_v39 = vadd.f32 %v6584_v33, %v9418_v37  ;;  %v6587_v42 = vadd.f32 %v6586_v7, %v6585_v51  ;;  %v2823_v37 = vld [vmem:[#allocation2 + $0x1d8] sm:$0xfe]  ;;  %v2834_v33 = vld [vmem:[#allocation2 + $0x230] sm:$0x1]  ;;  %v2843_v51 = vld [vmem:[#allocation2 + $0x2b8] sm:$0x1]  ;;  %v3294_v7 = vpack.c.bf16 %v3096_v54, %v3084_v11 }
 0x1ac   :  { %3703 = vmatmul.mubr.bf16.vlgmr.msra.gmra.mrb[176].mxu1 %v3286_v19  ;;  %v3109_v23 = vrot.slane %v2823_v37, 1  ;;  %v2830_v19 = vld [vmem:[#allocation2 + $0x210] sm:$0xfe]  ;;  %v3119_v36 = vrot.slane %v2834_v33, 1  ;;  %v3134_v35 = vrot.slane %v2843_v51, 1  ;;  %v3169_v51 = vrot.slane %v2863_v15, 1 }
 0x1ad   :  { %v9534_v52 = vadd.f32 %v6587_v42, %v9421_v24  ;;  %3710 = vmatprep.mubr.bf16.mxu1 %v3291_v8  ;;  %v3118_v10 = vrot.slane %v2830_v19, 1 }
 0x1ae   :  { %v3111_v22 = vsel %vm1083_vm1, %v3109_v23, %v3110_v38  ;;  %v3130_v38 = vrot.slane %v2838_v60, 1 }
 0x1af   :  { %v6588_v31 = vpop.f32.mrb[72].mxu1  ;;  %v3299_v42 = vpack.c.bf16 %v3123_v14, %v3111_v22  ;;  %v3120_v18 = vsel %vm1083_vm1, %v3118_v10, %v3119_v36  ;;  %v2862_v10 = vld [vmem:[#allocation2 + $0x350] sm:$0xfe] }
 0x1b0   :  { %v6589_v24 = vpop.f32.mrb[73].mxu1 }
 0x1b1   :  { %v6590_v49 = vadd.f32 %v6589_v24, %v6588_v31  ;;  %v6591_v13 = vpop.f32.mrb[74].mxu1  ;;  %v3108_v31 = vsel %vm1083_vm1, %v3106_v45, %v3107_v6  ;;  %v2842_v24 = vld [vmem:[#allocation2 + $0x2b0] sm:$0x1] }
 0x1b2   :  { %v6592_v1 = vpop.f32.mrb[75].mxu1  ;;  %v3298_v23 = vpack.c.bf16 %v3120_v18, %v3108_v31  ;;  %v3131_v12 = vrot.slane %v2842_v24, 1 }
 0x1b3   :  { %v9541_v53 = vadd.f32 %v6590_v49, %v9439_v63  ;;  %v6593_v29 = vadd.f32 %v6592_v1, %v6591_v13  ;;  %v2839_v63 = vld [vmem:[#allocation2 + $0x298] sm:$0xfe]  ;;  %v2850_v49 = vld [vmem:[#allocation2 + $0x2f0] sm:$0x1]  ;;  %v2859_v13 = vld [vmem:[#allocation2 + $0x338] sm:$0x1] }
 0x1b4   :  { %3711 = vmatmul.mubr.bf16.gmra.mrb[180].mxu1 %v3290_v4  ;;  %v3133_v28 = vrot.slane %v2839_v63, 1  ;;  %v2846_v4 = vld [vmem:[#allocation2 + $0x2d0] sm:$0xfe]  ;;  %v3143_v47 = vrot.slane %v2850_v49, 1  ;;  %v3158_v63 = vrot.slane %v2859_v13, 1  ;;  %v3132_v6 = vsel %vm1083_vm1, %v3130_v38, %v3131_v12 }
 0x1b5   :  { %v9544_v59 = vadd.f32 %v6593_v29, %v9442_v58  ;;  %3718 = vmatprep.mubr.bf16.mxu1 %v3295_v55  ;;  %v3142_v44 = vrot.slane %v2846_v4, 1  ;;  %v3166_v4 = vrot.slane %v2862_v10, 1 }
 0x1b6   :  { %v3135_v25 = vsel %vm1083_vm1, %v3133_v28, %v3134_v35  ;;  %v2871_v28 = vld [vmem:[#allocation2 + $0x398] sm:$0xfe]  ;;  %v2875_v35 = vld [vmem:[#allocation2 + $0x3b8] sm:$0x1] }
 0x1b7   :  { %v6594_v8 = vpop.f32.mrb[76].mxu1  ;;  %v3303_v3 = vpack.c.bf16 %v3147_v17, %v3135_v25 }
 0x1b8   :  { %v6595_v58 = vpop.f32.mrb[77].mxu1 }
 0x1b9   :  { %v6596_v32 = vadd.f32 %v6595_v58, %v6594_v8  ;;  %v6597_v46 = vpop.f32.mrb[78].mxu1  ;;  %v3170_v8 = vrot.slane %v2867_v62, 1 }
 0x1ba   :  { %v6598_v40 = vpop.f32.mrb[79].mxu1 }
 0x1bb   :  { %v9551_v9 = vadd.f32 %v6596_v32, %v9461_v26  ;;  %v6599_v37 = vadd.f32 %v6598_v40, %v6597_v46  ;;  %v2855_v26 = vld [vmem:[#allocation2 + $0x318] sm:$0xfe]  ;;  %v3144_v32 = vsel %vm1083_vm1, %v3142_v44, %v3143_v47  ;;  %v2854_v46 = vld [vmem:[#allocation2 + $0x310] sm:$0xfe]  ;;  %v2866_v40 = vld [vmem:[#allocation2 + $0x370] sm:$0x1] }
 0x1bc   :  { %3719 = vmatmul.mubr.bf16.gmra.mrb[184].mxu1 %v3294_v7  ;;  %v3157_v33 = vrot.slane %v2855_v26, 1  ;;  %v3302_v18 = vpack.c.bf16 %v3144_v32, %v3132_v6  ;;  %v3154_v60 = vrot.slane %v2854_v46, 1  ;;  %v3167_v13 = vrot.slane %v2866_v40, 1  ;;  %v2895_v6 = vld [vmem:[#allocation2 + $0x458] sm:$0xfe] }
 0x1bd   :  { %v9554_v61 = vadd.f32 %v6599_v37, %v9464_v41  ;;  %3726 = vmatprep.mubr.bf16.mxu1 %v3299_v42  ;;  %v6704_v41 = vpop.f32.mrb[0].mxu0  ;;  %v2858_v42 = vld [vmem:[#allocation2 + $0x330] sm:$0x1]  ;;  %v2883_v37 = vld [vmem:[#allocation2 + $0x3f8] sm:$0x1] }
 0x1be   :  { %v6705_v29 = vpop.f32.mrb[1].mxu0  ;;  %v3159_v36 = vsel %vm1083_vm1, %v3157_v33, %v3158_v63  ;;  %v3155_v24 = vrot.slane %v2858_v42, 1  ;;  %v3194_v38 = vrot.slane %v2883_v37, 1  ;;  %v3168_v47 = vsel %vm1083_vm1, %v3166_v4, %v3167_v13  ;;  %v2878_v33 = vld [vmem:[#allocation2 + $0x3d0] sm:$0xfe] }
 0x1bf   :  { %v6600_v55 = vpop.f32.mrb[80].mxu1  ;;  %v9560_v19 = vadd.f32 %v6705_v29, %v6704_v41  ;;  %v6707_v22 = vpop.f32.mrb[2].mxu0  ;;  %v3181_v41 = vrot.slane %v2871_v28, 1  ;;  %v2899_v32 = vld [vmem:[#allocation2 + $0x478] sm:$0x1] }
 0x1c0   :  { %v6601_v1 = vpop.f32.mrb[81].mxu1  ;;  %v6708_v34 = vpop.f32.mrb[3].mxu0  ;;  %v3218_v4 = vrot.slane %v2899_v32, 1 }
 0x1c1   :  { %v6602_v11 = vadd.f32 %v6601_v1, %v6600_v55  ;;  %v6603_v54 = vpop.f32.mrb[82].mxu1  ;;  %v9565_v7 = vadd.f32 %v6708_v34, %v6707_v22  ;;  %v3182_v1 = vrot.slane %v2875_v35, 1  ;;  %v2870_v22 = vld [vmem:[#allocation2 + $0x390] sm:$0xfe]  ;;  %v2891_v34 = vld [vmem:[#allocation2 + $0x438] sm:$0x1] }
 0x1c2   :  { %v6604_v14 = vpop.f32.mrb[83].mxu1  ;;  %v3178_v10 = vrot.slane %v2870_v22, 1 }
 0x1c3   :  { %v9563_v56 = vadd.f32 %v6602_v11, %v9481_v43  ;;  %v6605_v58 = vadd.f32 %v6604_v14, %v6603_v54  ;;  %v3171_v43 = vsel %vm1083_vm1, %v3169_v51, %v3170_v8  ;;  %v2874_v14 = vld [vmem:[#allocation2 + $0x3b0] sm:$0x1]  ;;  %v3183_v63 = vsel %vm1083_vm1, %v3181_v41, %v3182_v1  ;;  %v2887_v8 = vld [vmem:[#allocation2 + $0x418] sm:$0xfe]  ;;  %v2886_v41 = vld [vmem:[#allocation2 + $0x410] sm:$0xfe] }
 0x1c4   :  { %3727 = vmatmul.mubr.bf16.gmra.mrb[188].mxu1 %v3298_v23  ;;  %v3307_v26 = vpack.c.bf16 %v3171_v43, %v3159_v36  ;;  %v3193_v23 = vrot.slane %v2879_v21, 1  ;;  %v2882_v51 = vld [vmem:[#allocation2 + $0x3f0] sm:$0x1]  ;;  %v3179_v36 = vrot.slane %v2874_v14, 1  ;;  %v3190_v43 = vrot.slane %v2878_v33, 1 }
 0x1c5   :  { %v9568_v45 = vadd.f32 %v6605_v58, %v9484_v48  ;;  %3734 = vmatprep.mubr.bf16.mxu1 %v3303_v3  ;;  %v6710_v48 = vpop.f32.mrb[4].mxu0  ;;  %v3156_v3 = vsel %vm1083_vm1, %v3154_v60, %v3155_v24  ;;  %v3191_v21 = vrot.slane %v2882_v51, 1  ;;  %v3206_v60 = vrot.slane %v2891_v34, 1  ;;  %v2890_v1 = vld [vmem:[#allocation2 + $0x430] sm:$0x1] }
 0x1c6   :  { %v6711_v25 = vpop.f32.mrb[5].mxu0  ;;  %v3306_v42 = vpack.c.bf16 %v3168_v47, %v3156_v3  ;;  %v3217_v24 = vrot.slane %v2895_v6, 1  ;;  %v3202_v14 = vrot.slane %v2886_v41, 1 }
 0x1c7   :  { %v6606_v0 = vpop.f32.mrb[84].mxu1  ;;  %v9574_v55 = vadd.f32 %v6711_v25, %v6710_v48  ;;  %v6713_v15 = vpop.f32.mrb[6].mxu0 }
 0x1c8   :  { %v6607_v31 = vpop.f32.mrb[85].mxu1  ;;  %v6714_v12 = vpop.f32.mrb[7].mxu0 }
 0x1c9   :  { %v6608_v17 = vadd.f32 %v6607_v31, %v6606_v0  ;;  %v6609_v49 = vpop.f32.mrb[86].mxu1  ;;  %v9579_v11 = vadd.f32 %v6714_v12, %v6713_v15  ;;  %v3180_v15 = vsel %vm1083_vm1, %v3178_v10, %v3179_v36  ;;  %v2898_v12 = vld [vmem:[#allocation2 + $0x470] sm:$0x1] }
 0x1ca   :  { %v6610_v62 = vpop.f32.mrb[87].mxu1  ;;  %v3215_v34 = vrot.slane %v2898_v12, 1 }
 0x1cb   :  { %v9577_v44 = vadd.f32 %v6608_v17, %v9493_v5  ;;  %v6611_v29 = vadd.f32 %v6610_v62, %v6609_v49  ;;  %v3195_v5 = vsel %vm1083_vm1, %v3193_v23, %v3194_v38  ;;  %v3192_v62 = vsel %vm1083_vm1, %v3190_v43, %v3191_v21  ;;  %v2894_v23 = vld [vmem:[#allocation2 + $0x450] sm:$0xfe] }
 0x1cc   :  { %3735 = vmatmul.mubr.bf16.gmra.mrb[192].mxu1 %v3302_v18  ;;  %v3311_v0 = vpack.c.bf16 %v3195_v5, %v3183_v63  ;;  %v3205_v18 = vrot.slane %v2887_v8, 1  ;;  %v3310_v22 = vpack.c.bf16 %v3192_v62, %v3180_v15  ;;  %v3214_v33 = vrot.slane %v2894_v23, 1 }
 0x1cd   :  { %v9582_v54 = vadd.f32 %v6611_v29, %v9496_v50  ;;  %3742 = vmatprep.mubr.bf16.mxu1 %v3307_v26  ;;  %v6716_v50 = vpop.f32.mrb[8].mxu0 }
 0x1ce   :  { %v6717_v40 = vpop.f32.mrb[9].mxu0  ;;  %v3207_v38 = vsel %vm1083_vm1, %v3205_v18, %v3206_v60 }
 0x1cf   :  { %v6612_v58 = vpop.f32.mrb[88].mxu1  ;;  %v9588_v37 = vadd.f32 %v6717_v40, %v6716_v50  ;;  %v6719_v48 = vpop.f32.mrb[10].mxu0  ;;  %v3216_v40 = vsel %vm1083_vm1, %v3214_v33, %v3215_v34 }
 0x1d0   :  { %v6613_v46 = vpop.f32.mrb[89].mxu1  ;;  %v6720_v25 = vpop.f32.mrb[11].mxu0 }
 0x1d1   :  { %v6614_v28 = vadd.f32 %v6613_v46, %v6612_v58  ;;  %v6615_v35 = vpop.f32.mrb[90].mxu1  ;;  %v9593_v26 = vadd.f32 %v6720_v25, %v6719_v48 }
 0x1d2   :  { %v6616_v31 = vpop.f32.mrb[91].mxu1  ;;  %v6722_v3 = vpop.f32.mrb[12].mxu0 }
 0x1d3   :  { %v9591_v17 = vadd.f32 %v6614_v28, %v9504_v2  ;;  %v6617_v49 = vadd.f32 %v6616_v31, %v6615_v35  ;;  %v3219_v2 = vsel %vm1083_vm1, %v3217_v24, %v3218_v4  ;;  %v6723_v63 = vpop.f32.mrb[13].mxu0 }
 0x1d4   :  { %3743 = vmatmul.mubr.bf16.gmra.mrb[196].mxu1 %v3306_v42  ;;  %v3315_v8 = vpack.c.bf16 %v3219_v2, %v3207_v38  ;;  %v9602_v58 = vadd.f32 %v6723_v63, %v6722_v3  ;;  %v6725_v6 = vpop.f32.mrb[14].mxu0 }
 0x1d5   :  { %v9596_v13 = vadd.f32 %v6617_v49, %v9507_v57  ;;  %3750 = vmatprep.mubr.bf16.mxu1 %v3311_v0  ;;  %v3203_v57 = vrot.slane %v2890_v1, 1  ;;  %v6726_v50 = vpop.f32.mrb[15].mxu0 }
 0x1d6   :  { %v9607_v10 = vadd.f32 %v6726_v50, %v6725_v6 }
 0x1d7   :  { %v6618_v29 = vpop.f32.mrb[92].mxu1  ;;  %v3204_v43 = vsel %vm1083_vm1, %v3202_v14, %v3203_v57 }
 0x1d8   :  { %v6619_v47 = vpop.f32.mrb[93].mxu1  ;;  %v3314_v0 = vpack.c.bf16 %v3216_v40, %v3204_v43 }
 0x1d9   :  { %v6620_v5 = vadd.f32 %v6619_v47, %v6618_v29  ;;  %v6621_v51 = vpop.f32.mrb[94].mxu1 }
 0x1da   :  { %v6622_v32 = vpop.f32.mrb[95].mxu1 }
 0x1db   :  { %v9605_v46 = vadd.f32 %v6620_v5, %v9511_v30  ;;  %v6623_v42 = vadd.f32 %v6622_v32, %v6621_v51  ;;  %v7714_v5 = vld [vmem:[%s10452_s2 + $0x8] sm:$0xff]  }
 0x1dc   :  { %3751 = vmatmul.mubr.bf16.gmra.mrb[200].mxu1 %v3310_v22 }
 0x1dd   :  { %v9610_v36 = vadd.f32 %v6623_v42, %v9514_v27  ;;  %3758 = vmatprep.mubr.bf16.mxu1 %v3315_v8 }
 0x1df   :  { %v6640_v28 = vpop.f32.mrb[96].mxu1 }
 0x1e0   :  { %v6641_v35 = vpop.f32.mrb[97].mxu1 }
 0x1e1   :  { %v6642_v21 = vadd.f32 %v6641_v35, %v6640_v28  ;;  %v6643_v48 = vpop.f32.mrb[98].mxu1  ;;  %v7715_v35 = vld [vmem:[%s10452_s2 + $0x10] sm:$0xff]  }
 0x1e2   :  { %v6644_v31 = vpop.f32.mrb[99].mxu1 }
 0x1e3   :  { %v9615_v30 = vadd.f32 %v6642_v21, %v9521_v16  ;;  %v6645_v18 = vadd.f32 %v6644_v31, %v6643_v48 }
 0x1e4   :  { %3759 = vmatmul.mubr.bf16.gmra.mrb[204].mxu1 %v3314_v0 }
 0x1e5   :  { %v9618_v60 = vadd.f32 %v6645_v18, %v9524_v20 }
 0x1e7   :  { %v6646_v27 = vpop.f32.mrb[100].mxu1 }
 0x1e8   :  { %v6647_v24 = vpop.f32.mrb[101].mxu1 }
 0x1e9   :  { %v6648_v4 = vadd.f32 %v6647_v24, %v6646_v27  ;;  %v6649_v25 = vpop.f32.mrb[102].mxu1 }
 0x1ea   :  { %v6650_v49 = vpop.f32.mrb[103].mxu1 }
 0x1eb   :  { %v9621_v15 = vadd.f32 %v6648_v4, %v9531_v39  ;;  %v6651_v62 = vadd.f32 %v6650_v49, %v6649_v25  ;;  %v7713_v39 = vld [vmem:[%s10452_s2] sm:$0xff]  }
 0x1ec   :  { %7104 = vmatprep.subr.bf16.mxu0 %v7713_v39 }
 0x1ed   :  { %v9624_v41 = vadd.f32 %v6651_v62, %v9534_v52  ;;  %7105 = vmatpush3.bf16.msra.mxu0 %v7713_v39 }
 0x1ee   :  { %7106 = vmatprep.subr.bf16.mxu0 %v7714_v5 }
 0x1ef   :  { %v6652_v1 = vpop.f32.mrb[104].mxu1 }
 0x1f0   :  { %v6653_v16 = vpop.f32.mrb[105].mxu1 }
 0x1f1   :  { %v6654_v23 = vadd.f32 %v6653_v16, %v6652_v1  ;;  %v6655_v38 = vpop.f32.mrb[106].mxu1  ;;  %7107 = vmatpush3.bf16.msra.mxu0 %v7714_v5  ;;  %v7719_v5 = vld [vmem:[%s10452_s2 + $0x30] sm:$0xff]  }
 0x1f2   :  { %v6656_v2 = vpop.f32.mrb[107].mxu1  ;;  %7108 = vmatprep.subr.bf16.mxu0 %v7715_v35 }
 0x1f3   :  { %v9627_v20 = vadd.f32 %v6654_v23, %v9541_v53  ;;  %v6657_v12 = vadd.f32 %v6656_v2, %v6655_v38  ;;  %v7717_v23 = vld [vmem:[%s10452_s2 + $0x20] sm:$0xff]  }
 0x1f5   :  { %v9630_v29 = vadd.f32 %v6657_v12, %v9544_v59  ;;  %7109 = vmatpush3.bf16.msra.mxu0 %v7715_v35 }
 0x1f7   :  { %v6658_v3 = vpop.f32.mrb[108].mxu1 }
 0x1f8   :  { %v6659_v47 = vpop.f32.mrb[109].mxu1 }
 0x1f9   :  { %v6660_v52 = vadd.f32 %v6659_v47, %v6658_v3  ;;  %v6661_v22 = vpop.f32.mrb[110].mxu1  ;;  %v7718_v3 = vld [vmem:[%s10452_s2 + $0x28] sm:$0xff]  }
 0x1fa   :  { %v6662_v14 = vpop.f32.mrb[111].mxu1 }
 0x1fb   :  { %v9636_v57 = vadd.f32 %v6660_v52, %v9551_v9  ;;  %v6663_v33 = vadd.f32 %v6662_v14, %v6661_v22 }
 0x1fd   :  { %v9639_v53 = vadd.f32 %v6663_v33, %v9554_v61  ;;  %v6832_v63 = vpop.f32.mrb[16].mxu0 }
 0x1fe   :  { %v6833_v8 = vpop.f32.mrb[17].mxu0 }
 0x1ff   :  { %v6664_v59 = vpop.f32.mrb[112].mxu1  ;;  %v9644_v32 = vadd.f32 %v6833_v8, %v6832_v63  ;;  %v6835_v50 = vpop.f32.mrb[18].mxu0 }
 0x200   :  { %v6665_v51 = vpop.f32.mrb[113].mxu1  ;;  %v6836_v42 = vpop.f32.mrb[19].mxu0 }
 0x201   :  { %v6666_v34 = vadd.f32 %v6665_v51, %v6664_v59  ;;  %v6667_v6 = vpop.f32.mrb[114].mxu1  ;;  %v9649_v40 = vadd.f32 %v6836_v42, %v6835_v50  ;;  %v7720_v50 = vld [vmem:[%s10452_s2 + $0x38] sm:$0xff]  }
 0x202   :  { %v6668_v9 = vpop.f32.mrb[115].mxu1 }
 0x203   :  { %v9647_v61 = vadd.f32 %v6666_v34, %v9563_v56  ;;  %v6669_v43 = vadd.f32 %v6668_v9, %v6667_v6  ;;  %v7716_v56 = vld [vmem:[%s10452_s2 + $0x18] sm:$0xff]  }
 0x204   :  { %7110 = vmatprep.subr.bf16.mxu0 %v7716_v56 }
 0x205   :  { %v9652_v28 = vadd.f32 %v6669_v43, %v9568_v45  ;;  %v6838_v48 = vpop.f32.mrb[20].mxu0  ;;  %7111 = vmatpush3.bf16.msra.mxu0 %v7716_v56 }
 0x206   :  { %v6839_v27 = vpop.f32.mrb[21].mxu0  ;;  %7112 = vmatprep.subr.bf16.mxu0 %v7717_v23 }
 0x207   :  { %v6670_v0 = vpop.f32.mrb[116].mxu1  ;;  %v9660_v4 = vadd.f32 %v6839_v27, %v6838_v48  ;;  %v6841_v45 = vpop.f32.mrb[22].mxu0 }
 0x208   :  { %v6671_v21 = vpop.f32.mrb[117].mxu1  ;;  %v6842_v62 = vpop.f32.mrb[23].mxu0 }
 0x209   :  { %v6672_v31 = vadd.f32 %v6671_v21, %v6670_v0  ;;  %v6673_v18 = vpop.f32.mrb[118].mxu1  ;;  %v9665_v1 = vadd.f32 %v6842_v62, %v6841_v45  ;;  %7113 = vmatpush3.bf16.msra.mxu0 %v7717_v23 }
 0x20a   :  { %v6674_v24 = vpop.f32.mrb[119].mxu1  ;;  %7114 = vmatprep.subr.bf16.mxu0 %v7718_v3 }
 0x20b   :  { %v9663_v25 = vadd.f32 %v6672_v31, %v9577_v44  ;;  %v6675_v49 = vadd.f32 %v6674_v24, %v6673_v18 }
 0x20d   :  { %v9668_v16 = vadd.f32 %v6675_v49, %v9582_v54  ;;  %7115 = vmatpush3.bf16.msra.mxu0 %v7718_v3 }
 0x20e   :  { %v6844_v39 = vpop.f32.mrb[24].mxu0  ;;  %7116 = vmatprep.subr.bf16.mxu0 %v7719_v5 }
 0x20f   :  { %v6676_v38 = vpop.f32.mrb[120].mxu1  ;;  %v6845_v22 = vpop.f32.mrb[25].mxu0 }
 0x210   :  { %v6677_v2 = vpop.f32.mrb[121].mxu1  ;;  %v9679_v14 = vadd.f32 %v6845_v22, %v6844_v39  ;;  %v6847_v33 = vpop.f32.mrb[26].mxu0 }
 0x211   :  { %v6678_v12 = vadd.f32 %v6677_v2, %v6676_v38  ;;  %v6679_v44 = vpop.f32.mrb[122].mxu1  ;;  %v6848_v63 = vpop.f32.mrb[27].mxu0  ;;  %7117 = vmatpush3.bf16.msra.mxu0 %v7719_v5 }
 0x212   :  { %v6680_v47 = vpop.f32.mrb[123].mxu1  ;;  %v9687_v51 = vadd.f32 %v6848_v63, %v6847_v33  ;;  %7118 = vmatprep.subr.bf16.mxu0 %v7720_v50 }
 0x213   :  { %v9677_v52 = vadd.f32 %v6678_v12, %v9591_v17  ;;  %v6681_v54 = vadd.f32 %v6680_v47, %v6679_v44 }
 0x215   :  { %v9682_v59 = vadd.f32 %v6681_v54, %v9596_v13  ;;  %7119 = vmatpush3.bf16.msra.mxu0 %v7720_v50 }
 0x217   :  { %v6682_v8 = vpop.f32.mrb[124].mxu1  ;;  %v6850_v43 = vpop.f32.mrb[28].mxu0 }
 0x218   :  { %v6683_v17 = vpop.f32.mrb[125].mxu1  ;;  %v6851_v35 = vpop.f32.mrb[29].mxu0 }
 0x219   :  { %v6684_v34 = vadd.f32 %v6683_v17, %v6682_v8  ;;  %v6685_v6 = vpop.f32.mrb[126].mxu1  ;;  %v9698_v21 = vadd.f32 %v6851_v35, %v6850_v43  ;;  %v6853_v48 = vpop.f32.mrb[30].mxu0 }
 0x21a   :  { %v6686_v9 = vpop.f32.mrb[127].mxu1  ;;  %v6854_v31 = vpop.f32.mrb[31].mxu0 }
 0x21b   :  { %v9693_v13 = vadd.f32 %v6684_v34, %v9605_v46  ;;  %v6687_v42 = vadd.f32 %v6686_v9, %v6685_v6  ;;  %v9700_v27 = vadd.f32 %v6854_v31, %v6853_v48  ;;  %v9725_v48 = vld [vmem:[%s10453_s3] sm:$0xff]  }
 0x21c   :  { %7136 = vmatprep.subr.bf16.mxu0 %v9725_v48 }
 0x21d   :  { %v9696_v0 = vadd.f32 %v6687_v42, %v9610_v36 }
 0x21f   :  { %v6728_v18 = vpop.f32.mrb[128].mxu1 }
 0x220   :  { %v6729_v56 = vpop.f32.mrb[129].mxu1 }
 0x221   :  { %v9702_v24 = vadd.f32 %v6729_v56, %v6728_v18  ;;  %v6731_v46 = vpop.f32.mrb[130].mxu1 }
 0x222   :  { %v6732_v45 = vpop.f32.mrb[131].mxu1  ;;  %v6856_v62 = vpop.f32.mrb[32].mxu0 }
 0x223   :  { %v9704_v49 = vadd.f32 %v6732_v45, %v6731_v46  ;;  %v6857_v23 = vpop.f32.mrb[33].mxu0 }
 0x224   :  { %v9706_v38 = vadd.f32 %v6857_v23, %v6856_v62  ;;  %v6859_v36 = vpop.f32.mrb[34].mxu0 }
 0x225   :  { %v6860_v12 = vpop.f32.mrb[35].mxu0 }
 0x226   :  { %v9708_v3 = vadd.f32 %v6860_v12, %v6859_v36 }
 0x227   :  { %v6734_v2 = vpop.f32.mrb[132].mxu1 }
 0x228   :  { %v6735_v44 = vpop.f32.mrb[133].mxu1 }
 0x229   :  { %v9710_v47 = vadd.f32 %v6735_v44, %v6734_v2  ;;  %v6737_v39 = vpop.f32.mrb[134].mxu1 }
 0x22a   :  { %v6738_v54 = vpop.f32.mrb[135].mxu1 }
 0x22b   :  { %v9712_v22 = vadd.f32 %v6738_v54, %v6737_v39  ;;  %v6862_v33 = vpop.f32.mrb[36].mxu0 }
 0x22c   :  { %v6863_v63 = vpop.f32.mrb[37].mxu0 }
 0x22d   :  { %v9714_v8 = vadd.f32 %v6863_v63, %v6862_v33  ;;  %v6865_v17 = vpop.f32.mrb[38].mxu0 }
 0x22e   :  { %v6866_v6 = vpop.f32.mrb[39].mxu0 }
 0x22f   :  { %v6740_v5 = vpop.f32.mrb[136].mxu1  ;;  %v9718_v42 = vadd.f32 %v6866_v6, %v6865_v17 }
 0x230   :  { %v6741_v34 = vpop.f32.mrb[137].mxu1 }
 0x231   :  { %v9716_v50 = vadd.f32 %v6741_v34, %v6740_v5  ;;  %v6743_v9 = vpop.f32.mrb[138].mxu1 }
 0x232   :  { %v6744_v43 = vpop.f32.mrb[139].mxu1 }
 0x233   :  { %v9720_v35 = vadd.f32 %v6744_v43, %v6743_v9  ;;  %v6868_v31 = vpop.f32.mrb[40].mxu0 }
 0x234   :  { %v6869_v56 = vpop.f32.mrb[41].mxu0 }
 0x235   :  { %v9728_v45 = vadd.f32 %v6869_v56, %v6868_v31  ;;  %v6871_v62 = vpop.f32.mrb[42].mxu0 }
 0x236   :  { %v6872_v2 = vpop.f32.mrb[43].mxu0 }
 0x237   :  { %v6746_v18 = vpop.f32.mrb[140].mxu1  ;;  %v9732_v44 = vadd.f32 %v6872_v2, %v6871_v62 }
 0x238   :  { %v6747_v46 = vpop.f32.mrb[141].mxu1 }
 0x239   :  { %v9730_v23 = vadd.f32 %v6747_v46, %v6746_v18  ;;  %v6749_v36 = vpop.f32.mrb[142].mxu1  ;;  %10472 = vst [vmem:[#allocation4_spill] sm:$0xff] %v9732_v44 }
 0x23a   :  { %v6750_v12 = vpop.f32.mrb[143].mxu1 }
 0x23b   :  { %v9734_v39 = vadd.f32 %v6750_v12, %v6749_v36 }
 0x23c   :  { %v6874_v33 = vpop.f32.mrb[44].mxu0 }
 0x23d   :  { %v6875_v5 = vpop.f32.mrb[45].mxu0 }
 0x23e   :  { %v9736_v6 = vadd.f32 %v6875_v5, %v6874_v33  ;;  %v6877_v9 = vpop.f32.mrb[46].mxu0 }
 0x23f   :  { %v6768_v54 = vpop.f32.mrb[144].mxu1  ;;  %v6878_v31 = vpop.f32.mrb[47].mxu0 }
 0x240   :  { %v6769_v63 = vpop.f32.mrb[145].mxu1  ;;  %10473 = vst [vmem:[#allocation5_spill] sm:$0xff] %v9736_v6  ;;  %v9739_v46 = vadd.f32 %v6878_v31, %v6877_v9 }
 0x241   :  { %v6770_v17 = vadd.f32 %v6769_v63, %v6768_v54  ;;  %v6771_v34 = vpop.f32.mrb[146].mxu1 }
 0x242   :  { %v6772_v43 = vpop.f32.mrb[147].mxu1 }
 0x243   :  { %v2694_v18 = vadd.f32 %v6770_v17, %v9560_v19  ;;  %v6773_v56 = vadd.f32 %v6772_v43, %v6771_v34 }
 0x245   :  { %v9742_v62 = vadd.f32 %v2694_v18, %v9615_v30  ;;  %v2697_v36 = vadd.f32 %v6773_v56, %v9565_v7 }
 0x247   :  { %v9746_v2 = vadd.f32 %v2697_v36, %v9618_v60  ;;  %v6774_v12 = vpop.f32.mrb[148].mxu1 }
 0x248   :  { %v6775_v54 = vpop.f32.mrb[149].mxu1 }
 0x249   :  { %v6776_v33 = vadd.f32 %v6775_v54, %v6774_v12  ;;  %v6777_v63 = vpop.f32.mrb[150].mxu1 }
 0x24a   :  { %v6778_v5 = vpop.f32.mrb[151].mxu1 }
 0x24b   :  { %v2702_v6 = vadd.f32 %v6776_v33, %v9574_v55  ;;  %v6779_v44 = vadd.f32 %v6778_v5, %v6777_v63 }
 0x24d   :  { %v9750_v19 = vadd.f32 %v2702_v6, %v9621_v15  ;;  %v2705_v17 = vadd.f32 %v6779_v44, %v9579_v11 }
 0x24f   :  { %v9754_v30 = vadd.f32 %v2705_v17, %v9624_v41  ;;  %v6780_v7 = vpop.f32.mrb[152].mxu1 }
 0x250   :  { %v6781_v34 = vpop.f32.mrb[153].mxu1 }
 0x251   :  { %v6782_v60 = vadd.f32 %v6781_v34, %v6780_v7  ;;  %v6783_v9 = vpop.f32.mrb[154].mxu1 }
 0x252   :  { %v6784_v43 = vpop.f32.mrb[155].mxu1 }
 0x253   :  { %v2710_v31 = vadd.f32 %v6782_v60, %v9588_v37  ;;  %v6785_v18 = vadd.f32 %v6784_v43, %v6783_v9 }
 0x255   :  { %v9758_v56 = vadd.f32 %v2710_v31, %v9627_v20  ;;  %v2713_v55 = vadd.f32 %v6785_v18, %v9593_v26 }
 0x257   :  { %v9762_v15 = vadd.f32 %v2713_v55, %v9630_v29  ;;  %v6786_v11 = vpop.f32.mrb[156].mxu1 }
 0x258   :  { %v6787_v44 = vpop.f32.mrb[157].mxu1 }
 0x259   :  { %v6788_v41 = vadd.f32 %v6787_v44, %v6786_v11  ;;  %v6789_v6 = vpop.f32.mrb[158].mxu1 }
 0x25a   :  { %v6790_v36 = vpop.f32.mrb[159].mxu1 }
 0x25b   :  { %v2718_v12 = vadd.f32 %v6788_v41, %v9602_v58  ;;  %v6791_v54 = vadd.f32 %v6790_v36, %v6789_v6 }
 0x25d   :  { %v9766_v33 = vadd.f32 %v2718_v12, %v9636_v57  ;;  %v2721_v37 = vadd.f32 %v6791_v54, %v9607_v10 }
 0x25f   :  { %v9770_v20 = vadd.f32 %v2721_v37, %v9639_v53  ;;  %v6792_v26 = vpop.f32.mrb[160].mxu1 }
 0x260   :  { %v6793_v63 = vpop.f32.mrb[161].mxu1 }
 0x261   :  { %v6794_v29 = vadd.f32 %v6793_v63, %v6792_v26  ;;  %v6795_v5 = vpop.f32.mrb[162].mxu1 }
 0x262   :  { %v6796_v17 = vpop.f32.mrb[163].mxu1 }
 0x263   :  { %v2726_v7 = vadd.f32 %v6794_v29, %v9702_v24  ;;  %v6797_v34 = vadd.f32 %v6796_v17, %v6795_v5 }
 0x265   :  { %v9774_v60 = vadd.f32 %v2726_v7, %v9647_v61  ;;  %v2729_v58 = vadd.f32 %v6797_v34, %v9704_v49 }
 0x267   :  { %v9778_v57 = vadd.f32 %v2729_v58, %v9652_v28  ;;  %v6798_v10 = vpop.f32.mrb[164].mxu1 }
 0x268   :  { %v6799_v9 = vpop.f32.mrb[165].mxu1 }
 0x269   :  { %v6800_v53 = vadd.f32 %v6799_v9, %v6798_v10  ;;  %v6801_v43 = vpop.f32.mrb[166].mxu1 }
 0x26a   :  { %v6802_v31 = vpop.f32.mrb[167].mxu1 }
 0x26b   :  { %v2734_v18 = vadd.f32 %v6800_v53, %v9710_v47  ;;  %v6803_v55 = vadd.f32 %v6802_v31, %v6801_v43 }
 0x26d   :  { %v9782_v11 = vadd.f32 %v2734_v18, %v9663_v25  ;;  %v2737_v24 = vadd.f32 %v6803_v55, %v9712_v22 }
 0x26f   :  { %v9786_v61 = vadd.f32 %v2737_v24, %v9668_v16  ;;  %v6804_v49 = vpop.f32.mrb[168].mxu1 }
 0x270   :  { %v6805_v44 = vpop.f32.mrb[169].mxu1 }
 0x271   :  { %v6806_v28 = vadd.f32 %v6805_v44, %v6804_v49  ;;  %v6807_v41 = vpop.f32.mrb[170].mxu1 }
 0x272   :  { %v6808_v6 = vpop.f32.mrb[171].mxu1 }
 0x273   :  { %v2742_v36 = vadd.f32 %v6806_v28, %v9716_v50  ;;  %v6809_v12 = vadd.f32 %v6808_v6, %v6807_v41 }
 0x275   :  { %v9790_v54 = vadd.f32 %v2742_v36, %v9677_v52  ;;  %v2745_v47 = vadd.f32 %v6809_v12, %v9720_v35 }
 0x277   :  { %v9794_v25 = vadd.f32 %v2745_v47, %v9682_v59  ;;  %v6810_v22 = vpop.f32.mrb[172].mxu1 }
 0x278   :  { %v6811_v37 = vpop.f32.mrb[173].mxu1 }
 0x279   :  { %v6812_v16 = vadd.f32 %v6811_v37, %v6810_v22  ;;  %v6813_v26 = vpop.f32.mrb[174].mxu1 }
 0x27a   :  { %v6814_v63 = vpop.f32.mrb[175].mxu1 }
 0x27b   :  { %v2750_v29 = vadd.f32 %v6812_v16, %v9730_v23  ;;  %v6815_v5 = vadd.f32 %v6814_v63, %v6813_v26  ;;  %v9808_v23 = vld [vmem:[%s10454_s6] ss:$0 sm:$0xff] }
 0x27d   :  { %v9798_v17 = vadd.f32 %v2750_v29, %v9693_v13  ;;  %v2753_v50 = vadd.f32 %v6815_v5, %v9734_v39  ;;  %v3935_v5 = vld [vmem:[#allocation3] sm:$0xff] }
 0x27f   :  { %v9802_v52 = vadd.f32 %v2753_v50, %v9696_v0  ;;  %v6896_v35 = vpop.f32.mrb[176].mxu1  ;;  %v9815_v0 = vld [vmem:[%s10455_s7] ss:$0 sm:$0xff] }
 0x280   :  { %v6897_v7 = vpop.f32.mrb[177].mxu1 }
 0x281   :  { %v6898_v59 = vadd.f32 %v6897_v7, %v6896_v35  ;;  %v6899_v34 = vpop.f32.mrb[178].mxu1 }
 0x282   :  { %v6900_v58 = vpop.f32.mrb[179].mxu1 }
 0x283   :  { %v3705_v10 = vadd.f32 %v6898_v59, %v9644_v32  ;;  %v6901_v9 = vadd.f32 %v6900_v58, %v6899_v34 }
 0x285   :  { %v3767_v13 = vadd.f32 %v3705_v10, %v9742_v62  ;;  %v3708_v39 = vadd.f32 %v6901_v9, %v9649_v40 }
 0x287   :  { %v3814_v53 = vmul.f32 %v9808_v23, %v3767_v13  ;;  %v3768_v43 = vadd.f32 %v3708_v39, %v9746_v2  ;;  %v6902_v32 = vpop.f32.mrb[180].mxu1 }
 0x288   :  { %v6903_v31 = vpop.f32.mrb[181].mxu1 }
 0x289   :  { %v9820_v18 = vadd.f32 %v9815_v0, %v3814_v53  ;;  %v3815_v55 = vmul.f32 %v9808_v23, %v3768_v43  ;;  %v6904_v24 = vadd.f32 %v6903_v31, %v6902_v32  ;;  %v6905_v62 = vpop.f32.mrb[182].mxu1 }
 0x28a   :  { %v6906_v49 = vpop.f32.mrb[183].mxu1 }
 0x28b   :  { %v3853_v40 = vmax.f32 %v9820_v18, 0.0  ;;  %v3838_v44 = vadd.f32 %v9815_v0, %v3815_v55  ;;  %v3713_v28 = vadd.f32 %v6904_v24, %v9660_v4  ;;  %v6907_v41 = vadd.f32 %v6906_v49, %v6905_v62  ;;  %v7739_v18 = vld [vmem:[%s10452_s2 + $0x90] sm:$0xff]  }
 0x28d   :  { %3919 = vst [vmem:[#allocation3 + $0x11] sm:$0xff] %v3853_v40  ;;  %v3854_v2 = vmax.f32 %v3838_v44, 0.0  ;;  %v3769_v6 = vadd.f32 %v3713_v28, %v9750_v19  ;;  %v3716_v36 = vadd.f32 %v6907_v41, %v9665_v1 }
 0x28f   :  { %3920 = vst [vmem:[#allocation3 + $0x21] sm:$0xff] %v3854_v2  ;;  %v3816_v12 = vmul.f32 %v9808_v23, %v3769_v6  ;;  %v3770_v47 = vadd.f32 %v3716_v36, %v9754_v30  ;;  %v6908_v22 = vpop.f32.mrb[184].mxu1 }
 0x290   :  { %v6909_v37 = vpop.f32.mrb[185].mxu1 }
 0x291   :  { %v3839_v16 = vadd.f32 %v9815_v0, %v3816_v12  ;;  %v3817_v4 = vmul.f32 %v9808_v23, %v3770_v47  ;;  %v6910_v26 = vadd.f32 %v6909_v37, %v6908_v22  ;;  %v6911_v63 = vpop.f32.mrb[186].mxu1 }
 0x292   :  { %v6912_v29 = vpop.f32.mrb[187].mxu1 }
 0x293   :  { %v3855_v50 = vmax.f32 %v3839_v16, 0.0  ;;  %v3840_v19 = vadd.f32 %v9815_v0, %v3817_v4  ;;  %v3721_v1 = vadd.f32 %v6910_v26, %v9679_v14  ;;  %v6913_v35 = vadd.f32 %v6912_v29, %v6911_v63 }
 0x294   :  { %v9836_v7 = vld [vmem:[#allocation3 + $0x10] sm:$0xff] }
 0x295   :  { %3921 = vst [vmem:[#allocation3 + $0x31] sm:$0xff] %v3855_v50  ;;  %v3856_v30 = vmax.f32 %v3840_v19, 0.0  ;;  %v3771_v59 = vadd.f32 %v3721_v1, %v9758_v56  ;;  %v3724_v34 = vadd.f32 %v6913_v35, %v9687_v51  ;;  %v3951_v58 = vpack.c.bf16 %v9836_v7, %v3935_v5  ;;  %v9845_v13 = vld [vmem:[#allocation3 + $0x12] sm:$0xff]  ;;  %v7796_v19 = vld [vmem:[#allocation2 + $0x80] sm:$0xff] }
 0x296   :  { %v9841_v10 = vld [vmem:[#allocation3 + $0x20] sm:$0xff]  ;;  %v9843_v9 = vpack.c.bf16 %v3855_v50, %v3854_v2 }
 0x297   :  { %v9847_v39 = vld [vmem:[#allocation3 + $0x22] sm:$0xff]  ;;  %3922 = vst [vmem:[#allocation3 + $0x41] sm:$0xff] %v3856_v30  ;;  %v3818_v14 = vmul.f32 %v9808_v23, %v3771_v59  ;;  %v3772_v53 = vadd.f32 %v3724_v34, %v9762_v15  ;;  %v6914_v43 = vpop.f32.mrb[188].mxu1  ;;  %7120 = vmatprep.mubr.bf16.mxu0 %v3951_v58  ;;  %v7723_v58 = vld [vmem:[%s10453_s3 + $0x10] sm:$0xff]  }
 0x298   :  { %v6915_v32 = vpop.f32.mrb[189].mxu1  ;;  %v9875_v37 = vld [vmem:[#allocation3 + $0x21] sm:$0xff] }
 0x299   :  { %v3841_v31 = vadd.f32 %v9815_v0, %v3818_v14  ;;  %v3819_v55 = vmul.f32 %v9808_v23, %v3772_v53  ;;  %v6916_v24 = vadd.f32 %v6915_v32, %v6914_v43  ;;  %v6917_v62 = vpop.f32.mrb[190].mxu1 }
 0x29a   :  { %v6918_v49 = vpop.f32.mrb[191].mxu1 }
 0x29b   :  { %v9857_v44 = vmax.f32 %v3841_v31, 0.0  ;;  %v3842_v15 = vadd.f32 %v9815_v0, %v3819_v55  ;;  %v3729_v28 = vadd.f32 %v6916_v24, %v9698_v21  ;;  %v6919_v41 = vadd.f32 %v6918_v49, %v6917_v62  ;;  %v7722_v21 = vld [vmem:[%s10453_s3 + $0x8] sm:$0xff]  }
 0x29c   :  { %v9861_v2 = vld [vmem:[#allocation3 + $0x30] sm:$0xff] }
 0x29d   :  { %v9863_v6 = vld [vmem:[#allocation3 + $0x31] sm:$0xff]  ;;  %3923 = vst [vmem:[#allocation3 + $0x51] sm:$0xff] %v9857_v44  ;;  %v9866_v36 = vmax.f32 %v3842_v15, 0.0  ;;  %v3773_v12 = vadd.f32 %v3729_v28, %v9766_v33  ;;  %v3732_v47 = vadd.f32 %v6919_v41, %v9700_v27  ;;  %v3952_v22 = vpack.c.bf16 %v9861_v2, %v9841_v10 }
 0x29e   :  { %v9877_v16 = vld [vmem:[#allocation3 + $0x40] sm:$0xff]  ;;  %v9880_v4 = vpack.c.bf16 %v9857_v44, %v3856_v30  ;;  %v9889_v5 = vld [vmem:[#allocation3 + $0x32] sm:$0xff] }
 0x29f   :  { %v9882_v26 = vld [vmem:[#allocation3 + $0x42] sm:$0xff]  ;;  %3924 = vst [vmem:[#allocation3 + $0x61] sm:$0xff] %v9866_v36  ;;  %v3820_v27 = vmul.f32 %v9808_v23, %v3773_v12  ;;  %v3774_v63 = vadd.f32 %v3732_v47, %v9770_v20  ;;  %v6920_v29 = vpop.f32.mrb[192].mxu1  ;;  %7121 = vmatmul.mubr.bf16.vlgmr.msra.gmra.mrb[48].mxu0 %v3952_v22  ;;  %v7724_v15 = vld [vmem:[%s10453_s3 + $0x18] sm:$0xff]  }
 0x2a0   :  { %v6921_v1 = vpop.f32.mrb[193].mxu1  ;;  %7137 = vmatpush3.bf16.msra.mxu0 %v9725_v48 }
 0x2a1   :  { %v3843_v30 = vadd.f32 %v9815_v0, %v3820_v27  ;;  %v3821_v20 = vmul.f32 %v9808_v23, %v3774_v63  ;;  %v6922_v59 = vadd.f32 %v6921_v1, %v6920_v29  ;;  %v6923_v34 = vpop.f32.mrb[194].mxu1  ;;  %7138 = vmatprep.subr.bf16.mxu0 %v7722_v21 }
 0x2a2   :  { %v6924_v14 = vpop.f32.mrb[195].mxu1 }
 0x2a3   :  { %v9903_v53 = vmax.f32 %v3843_v30, 0.0  ;;  %v3844_v43 = vadd.f32 %v9815_v0, %v3821_v20  ;;  %v3737_v48 = vadd.f32 %v6922_v59, %v9706_v38  ;;  %v6925_v32 = vadd.f32 %v6924_v14, %v6923_v34  ;;  %v7725_v20 = vld [vmem:[%s10453_s3 + $0x20] sm:$0xff]  }
 0x2a4   :  { %v9907_v31 = vld [vmem:[#allocation3 + $0x50] sm:$0xff]  ;;  %7139 = vmatpush3.bf16.msra.mxu0 %v7722_v21 }
 0x2a5   :  { %3925 = vst [vmem:[#allocation3 + $0x71] sm:$0xff] %v9903_v53  ;;  %v3860_v55 = vmax.f32 %v3844_v43, 0.0  ;;  %v3775_v24 = vadd.f32 %v3737_v48, %v9774_v60  ;;  %v3740_v62 = vadd.f32 %v6925_v32, %v9708_v3  ;;  %v3953_v49 = vpack.c.bf16 %v9907_v31, %v9877_v16  ;;  %7140 = vmatprep.subr.bf16.mxu0 %v7723_v58  ;;  %v9925_v47 = vld [vmem:[#allocation3 + $0x52] sm:$0xff] }
 0x2a6   :  { %v9917_v38 = vld [vmem:[#allocation3 + $0x60] sm:$0xff]  ;;  %v4284_v28 = vpack.c.bf16 %v9903_v53, %v9866_v36 }
 0x2a7   :  { %v9921_v41 = vld [vmem:[#allocation3 + $0x62] sm:$0xff]  ;;  %3926 = vst [vmem:[#allocation3 + $0x81] sm:$0xff] %v3860_v55  ;;  %v3822_v60 = vmul.f32 %v9808_v23, %v3775_v24  ;;  %v3776_v3 = vadd.f32 %v3740_v62, %v9778_v57  ;;  %v6926_v12 = vpop.f32.mrb[196].mxu1  ;;  %7124 = vmatprep.mubr.bf16.mxu0 %v3953_v49  ;;  %v9930_v21 = vpack.c.bf16 %v3860_v55, %v9903_v53  ;;  %v7743_v53 = vld [vmem:[%s10452_s2 + $0xb0] sm:$0xff]  }
 0x2a8   :  { %v6927_v27 = vpop.f32.mrb[197].mxu1  ;;  %7141 = vmatpush3.bf16.msra.mxu0 %v7723_v58 }
 0x2a9   :  { %v3845_v29 = vadd.f32 %v9815_v0, %v3822_v60  ;;  %v3823_v1 = vmul.f32 %v9808_v23, %v3776_v3  ;;  %v6928_v57 = vadd.f32 %v6927_v27, %v6926_v12  ;;  %v6929_v30 = vpop.f32.mrb[198].mxu1  ;;  %7142 = vmatprep.subr.bf16.mxu0 %v7724_v15 }
 0x2aa   :  { %v6930_v59 = vpop.f32.mrb[199].mxu1 }
 0x2ab   :  { %v9939_v34 = vmax.f32 %v3845_v29, 0.0  ;;  %v3846_v14 = vadd.f32 %v9815_v0, %v3823_v1  ;;  %v3745_v58 = vadd.f32 %v6928_v57, %v9714_v8  ;;  %v6931_v43 = vadd.f32 %v6930_v59, %v6929_v30  ;;  %v7726_v8 = vld [vmem:[%s10453_s3 + $0x28] sm:$0xff]   ;;  %v7727_v1 = vld [vmem:[%s10453_s3 + $0x30] sm:$0xff]  }
 0x2ac   :  { %v9943_v48 = vld [vmem:[#allocation3 + $0x70] sm:$0xff]  ;;  %7143 = vmatpush3.bf16.msra.mxu0 %v7724_v15 }
 0x2ad   :  { %3927 = vst [vmem:[#allocation3 + $0xb1] sm:$0xff] %v9939_v34  ;;  %v9946_v32 = vmax.f32 %v3846_v14, 0.0  ;;  %v3777_v55 = vadd.f32 %v3745_v58, %v9782_v11  ;;  %v3748_v24 = vadd.f32 %v6931_v43, %v9718_v42  ;;  %v3954_v62 = vpack.c.bf16 %v9943_v48, %v9917_v38  ;;  %7144 = vmatprep.subr.bf16.mxu0 %v7725_v20 }
 0x2af   :  { %3928 = vst [vmem:[#allocation3 + $0xc1] sm:$0xff] %v9946_v32  ;;  %v3824_v49 = vmul.f32 %v9808_v23, %v3777_v55  ;;  %v3778_v15 = vadd.f32 %v3748_v24, %v9786_v61  ;;  %v6932_v60 = vpop.f32.mrb[200].mxu1  ;;  %7125 = vmatmul.mubr.bf16.gmra.mrb[52].mxu0 %v3954_v62  ;;  %v3943_v61 = vld [vmem:[#allocation3 + $0xa0] sm:$0xff] }
 0x2b0   :  { %v6933_v42 = vpop.f32.mrb[201].mxu1  ;;  %7145 = vmatpush3.bf16.msra.mxu0 %v7725_v20  ;;  %v10474_v24 = vld [vmem:[#allocation4_spill] sm:$0xff] }
 0x2b1   :  { %v3847_v3 = vadd.f32 %v9815_v0, %v3824_v49  ;;  %v3825_v12 = vmul.f32 %v9808_v23, %v3778_v15  ;;  %v6934_v27 = vadd.f32 %v6933_v42, %v6932_v60  ;;  %v6935_v29 = vpop.f32.mrb[202].mxu1  ;;  %7146 = vmatprep.subr.bf16.mxu0 %v7726_v8  ;;  %v7728_v15 = vld [vmem:[%s10453_s3 + $0x38] sm:$0xff]  }
 0x2b2   :  { %v6936_v57 = vpop.f32.mrb[203].mxu1 }
 0x2b3   :  { %v9965_v30 = vmax.f32 %v3847_v3, 0.0  ;;  %v3848_v59 = vadd.f32 %v9815_v0, %v3825_v12  ;;  %v3753_v14 = vadd.f32 %v6934_v27, %v9728_v45  ;;  %v6937_v20 = vadd.f32 %v6936_v57, %v6935_v29  ;;  %v7799_v27 = vld [vmem:[#allocation2 + $0x140] sm:$0xff] }
 0x2b4   :  { %v9969_v58 = vld [vmem:[#allocation3 + $0xb0] sm:$0xff]  ;;  %7147 = vmatpush3.bf16.msra.mxu0 %v7726_v8 }
 0x2b5   :  { %3929 = vst [vmem:[#allocation3 + $0xd1] sm:$0xff] %v9965_v30  ;;  %v9972_v43 = vmax.f32 %v3848_v59, 0.0  ;;  %v3779_v55 = vadd.f32 %v3753_v14, %v9790_v54  ;;  %v3756_v62 = vadd.f32 %v6937_v20, %v10474_v24  ;;  %v3955_v49 = vpack.c.bf16 %v9969_v58, %v3943_v61  ;;  %7148 = vmatprep.subr.bf16.mxu0 %v7727_v1  ;;  %v9989_v12 = vld [vmem:[#allocation3 + $0xb2] sm:$0xff] }
 0x2b6   :  { %v9980_v45 = vld [vmem:[#allocation3 + $0xc0] sm:$0xff]  ;;  %v4286_v8 = vpack.c.bf16 %v9965_v30, %v9946_v32 }
 0x2b7   :  { %v9984_v60 = vld [vmem:[#allocation3 + $0xc2] sm:$0xff]  ;;  %3930 = vst [vmem:[#allocation3 + $0xe1] sm:$0xff] %v9972_v43  ;;  %v3826_v54 = vmul.f32 %v9808_v23, %v3779_v55  ;;  %v3780_v42 = vadd.f32 %v3756_v62, %v9794_v25  ;;  %v6938_v3 = vpop.f32.mrb[204].mxu1  ;;  %7128 = vmatprep.mubr.bf16.mxu0 %v3955_v49 }
 0x2b8   :  { %v6939_v57 = vpop.f32.mrb[205].mxu1  ;;  %7149 = vmatpush3.bf16.msra.mxu0 %v7727_v1  ;;  %v7729_v55 = vld [vmem:[%s10452_s2 + $0x40] sm:$0xff]   ;;  %v10475_v1 = vld [vmem:[#allocation5_spill] sm:$0xff] }
 0x2b9   :  { %v3849_v59 = vadd.f32 %v9815_v0, %v3826_v54  ;;  %v3827_v14 = vmul.f32 %v9808_v23, %v3780_v42  ;;  %v6940_v25 = vadd.f32 %v6939_v57, %v6938_v3  ;;  %v6941_v20 = vpop.f32.mrb[206].mxu1  ;;  %7150 = vmatprep.subr.bf16.mxu0 %v7728_v15 }
 0x2ba   :  { %v6942_v24 = vpop.f32.mrb[207].mxu1 }
 0x2bb   :  { %v10002_v62 = vmax.f32 %v3849_v59, 0.0  ;;  %v3850_v49 = vadd.f32 %v9815_v0, %v3827_v14  ;;  %v3761_v33 = vadd.f32 %v6940_v25, %v10475_v1  ;;  %v6943_v63 = vadd.f32 %v6942_v24, %v6941_v20 }
 0x2bc   :  { %v10006_v61 = vld [vmem:[#allocation3 + $0xd0] sm:$0xff]  ;;  %7151 = vmatpush3.bf16.msra.mxu0 %v7728_v15 }
 0x2bd   :  { %3931 = vst [vmem:[#allocation3 + $0xf1] sm:$0xff] %v10002_v62  ;;  %v10009_v54 = vmax.f32 %v3850_v49, 0.0  ;;  %v3781_v42 = vadd.f32 %v3761_v33, %v9798_v17  ;;  %v3764_v3 = vadd.f32 %v6943_v63, %v9739_v46  ;;  %v10015_v57 = vpack.c.bf16 %v10006_v61, %v9980_v45  ;;  %7168 = vmatprep.subr.bf16.mxu0 %v7729_v55  ;;  %v10027_v46 = vld [vmem:[#allocation3 + $0xd2] sm:$0xff]  ;;  %v7795_v63 = vld [vmem:[#allocation2 + $0x40] sm:$0xff] }
 0x2be   :  { %v10017_v59 = vld [vmem:[#allocation3 + $0xe0] sm:$0xff]  ;;  %v4287_v14 = vpack.c.bf16 %v10002_v62, %v9972_v43 }
 0x2bf   :  { %v10021_v25 = vld [vmem:[#allocation3 + $0xe2] sm:$0xff]  ;;  %3932 = vst [vmem:[#allocation3 + $0x101] sm:$0xff] %v10009_v54  ;;  %v3828_v15 = vmul.f32 %v9808_v23, %v3781_v42  ;;  %v3782_v17 = vadd.f32 %v3764_v3, %v9802_v52  ;;  %7129 = vmatmul.mubr.bf16.gmra.mrb[56].mxu0 %v10015_v57 }
 0x2c1   :  { %v3851_v24 = vadd.f32 %v9815_v0, %v3828_v15  ;;  %v3829_v49 = vmul.f32 %v9808_v23, %v3782_v17 }
 0x2c3   :  { %v10037_v1 = vmax.f32 %v3851_v24, 0.0  ;;  %v3852_v52 = vadd.f32 %v9815_v0, %v3829_v49  ;;  %v7797_v0 = vld [vmem:[#allocation2 + $0xc0] sm:$0xff]  ;;  %v7730_v24 = vld [vmem:[%s10452_s2 + $0x48] sm:$0xff]  }
 0x2c4   :  { %v10040_v42 = vld [vmem:[#allocation3 + $0xf0] sm:$0xff]  ;;  %v3784_v33 = vpack.c.bf16 %v7797_v0, %v7796_v19  ;;  %v7802_v19 = vld [vmem:[#allocation2 + $0x240] sm:$0xff] }
 0x2c5   :  { %3933 = vst [vmem:[#allocation3 + $0x111] sm:$0xff] %v10037_v1  ;;  %v3868_v3 = vmax.f32 %v3852_v52, 0.0  ;;  %v10045_v35 = vpack.c.bf16 %v10040_v42, %v10017_v59  ;;  %v4288_v20 = vpack.c.bf16 %v10037_v1, %v10009_v54  ;;  %v10051_v15 = vld [vmem:[#allocation3 + $0xf2] sm:$0xff]  ;;  %v7794_v52 = vld [vmem:[#allocation2] sm:$0xff] }
 0x2c6   :  { %v10049_v56 = vld [vmem:[#allocation3 + $0x100] sm:$0xff]  ;;  %v3783_v29 = vpack.c.bf16 %v7795_v63, %v7794_v52  ;;  %v7731_v63 = vld [vmem:[%s10452_s2 + $0x50] sm:$0xff]  }
 0x2c7   :  { %v10053_v23 = vld [vmem:[#allocation3 + $0x102] sm:$0xff]  ;;  %3934 = vst [vmem:[#allocation3 + $0x121] sm:$0xff] %v3868_v3  ;;  %7132 = vmatprep.mubr.bf16.mxu0 %v10045_v35  ;;  %v10059_v17 = vpack.c.bf16 %v3868_v3, %v10037_v1  ;;  %v7747_v1 = vld [vmem:[%s10452_s2 + $0xd0] sm:$0xff]  }
 0x2c8   :  { %v7798_v3 = vld [vmem:[#allocation2 + $0x100] sm:$0xff] }
 0x2c9   :  { %v3785_v22 = vpack.c.bf16 %v7799_v27, %v7798_v3  ;;  %v7800_v52 = vld [vmem:[#allocation2 + $0x180] sm:$0xff]  ;;  %v7732_v27 = vld [vmem:[%s10452_s2 + $0x58] sm:$0xff]  }
 0x2ca   :  { %v7803_v0 = vld [vmem:[#allocation2 + $0x280] sm:$0xff] }
 0x2cb   :  { %v3787_v51 = vpack.c.bf16 %v7803_v0, %v7802_v19  ;;  %v7734_v19 = vld [vmem:[%s10452_s2 + $0x68] sm:$0xff]  }
 0x2cc   :  { %v10063_v49 = vld [vmem:[#allocation3 + $0x110] sm:$0xff] }
 0x2cd   :  { %v10067_v11 = vpack.c.bf16 %v10063_v49, %v10049_v56 }
 0x2cf   :  { %7133 = vmatmul.mubr.bf16.gmra.mrb[60].mxu0 %v10067_v11 }
 0x2d0   :  { %7152 = vmatprep.mubr.bf16.mxu0 %v3783_v29  ;;  %v7801_v29 = vld [vmem:[#allocation2 + $0x1c0] sm:$0xff] }
 0x2d1   :  { %v3786_v50 = vpack.c.bf16 %v7801_v29, %v7800_v52  ;;  %v7807_v52 = vld [vmem:[#allocation2 + $0x380] sm:$0xff] }
 0x2d7   :  { %7153 = vmatmul.mubr.bf16.vlgmr.msra.gmra.mrb[48].mxu0 %v3784_v33  ;;  %v7805_v33 = vld [vmem:[#allocation2 + $0x300] sm:$0xff] }
 0x2d8   :  { %7169 = vmatpush3.bf16.msra.mxu0 %v7729_v55  ;;  %7156 = vmatprep.mubr.bf16.mxu0 %v3785_v22  ;;  %v7733_v22 = vld [vmem:[%s10452_s2 + $0x60] sm:$0xff]  }
 0x2d9   :  { %7170 = vmatprep.subr.bf16.mxu0 %v7730_v24  ;;  %v7804_v55 = vld [vmem:[#allocation2 + $0x2c0] sm:$0xff] }
 0x2da   :  { %v3788_v3 = vpack.c.bf16 %v7805_v33, %v7804_v55  ;;  %v7736_v55 = vld [vmem:[%s10452_s2 + $0x78] sm:$0xff]  }
 0x2dc   :  { %7171 = vmatpush3.bf16.msra.mxu0 %v7730_v24  ;;  %v7806_v24 = vld [vmem:[#allocation2 + $0x340] sm:$0xff] }
 0x2dd   :  { %7172 = vmatprep.subr.bf16.mxu0 %v7731_v63  ;;  %v3789_v29 = vpack.c.bf16 %v7807_v52, %v7806_v24  ;;  %v7740_v24 = vld [vmem:[%s10452_s2 + $0x98] sm:$0xff]  }
 0x2df   :  { %7157 = vmatmul.mubr.bf16.gmra.mrb[52].mxu0 %v3786_v50  ;;  %v7808_v50 = vld [vmem:[#allocation2 + $0x3c0] sm:$0xff] }
 0x2e0   :  { %7173 = vmatpush3.bf16.msra.mxu0 %v7731_v63  ;;  %7160 = vmatprep.mubr.bf16.mxu0 %v3787_v51  ;;  %v7735_v51 = vld [vmem:[%s10452_s2 + $0x70] sm:$0xff]   ;;  %v7809_v63 = vld [vmem:[#allocation2 + $0x400] sm:$0xff] }
 0x2e1   :  { %7174 = vmatprep.subr.bf16.mxu0 %v7732_v27  ;;  %v3790_v0 = vpack.c.bf16 %v7809_v63, %v7808_v50  ;;  %v10152_v50 = vld [vmem:[#allocation3 + $0x72] sm:$0xff]  ;;  %v4475_v63 = vld [vmem:[#allocation3 + $0xa2] sm:$0xff] }
 0x2e4   :  { %7175 = vmatpush3.bf16.msra.mxu0 %v7732_v27  ;;  %v4265_v27 = vld [vmem:[#allocation3 + $0x1] sm:$0xff] }
 0x2e5   :  { %7176 = vmatprep.subr.bf16.mxu0 %v7733_v22  ;;  %v4281_v33 = vpack.c.bf16 %v3853_v40, %v4265_v27  ;;  %v4273_v40 = vld [vmem:[#allocation3 + $0xa1] sm:$0xff]  ;;  %v7748_v27 = vld [vmem:[%s10452_s2 + $0xd8] sm:$0xff]  }
 0x2e6   :  { %v4285_v52 = vpack.c.bf16 %v9939_v34, %v4273_v40  ;;  %v7751_v40 = vld [vmem:[%s10452_s2 + $0xf0] sm:$0xff]  }
 0x2e7   :  { %7161 = vmatmul.mubr.bf16.gmra.mrb[56].mxu0 %v3788_v3  ;;  %v7738_v3 = vld [vmem:[%s10452_s2 + $0x88] sm:$0xff]  }
 0x2e8   :  { %7177 = vmatpush3.bf16.msra.mxu0 %v7733_v22  ;;  %7164 = vmatprep.mubr.bf16.mxu0 %v3789_v29  ;;  %v7737_v22 = vld [vmem:[%s10452_s2 + $0x80] sm:$0xff]   ;;  %v7744_v29 = vld [vmem:[%s10452_s2 + $0xb8] sm:$0xff]  }
 0x2e9   :  { %7178 = vmatprep.subr.bf16.mxu0 %v7734_v19 }
 0x2ec   :  { %7179 = vmatpush3.bf16.msra.mxu0 %v7734_v19 }
 0x2ed   :  { %7180 = vmatprep.subr.bf16.mxu0 %v7735_v51 }
 0x2ef   :  { %7165 = vmatmul.mubr.bf16.gmra.mrb[60].mxu0 %v3790_v0  ;;  %v10156_v0 = vpack.c.bf16 %v10152_v50, %v9921_v41 }
 0x2f0   :  { %7181 = vmatpush3.bf16.msra.mxu0 %v7735_v51  ;;  %7184 = vmatprep.mubr.bf16.mxu0 %v4281_v33  ;;  %v7746_v51 = vld [vmem:[%s10452_s2 + $0xc8] sm:$0xff]   ;;  %v7749_v33 = vld [vmem:[%s10452_s2 + $0xe0] sm:$0xff]  }
 0x2f1   :  { %7182 = vmatprep.subr.bf16.mxu0 %v7736_v55 }
 0x2f4   :  { %7183 = vmatpush3.bf16.msra.mxu0 %v7736_v55  ;;  %v4487_v55 = vpack.c.bf16 %v9989_v12, %v4475_v63  ;;  %v4871_v63 = vld [vmem:[#allocation3 + $0x11] sm:$0xff] }
 0x2f5   :  { %7200 = vmatprep.subr.bf16.mxu0 %v7737_v22 }
 0x2f7   :  { %7185 = vmatmul.mubr.bf16.vlgmr.msra.gmra.mrb[48].mxu0 %v9843_v9  ;;  %v7741_v9 = vld [vmem:[%s10452_s2 + $0xa0] sm:$0xff]  }
 0x2f8   :  { %7188 = vmatprep.mubr.bf16.mxu0 %v9880_v4  ;;  %7201 = vmatpush3.bf16.msra.mxu0 %v7737_v22  ;;  %v7742_v4 = vld [vmem:[%s10452_s2 + $0xa8] sm:$0xff]   ;;  %v10168_v22 = vpack.c.bf16 %v10027_v46, %v9984_v60 }
 0x2f9   :  { %7202 = vmatprep.subr.bf16.mxu0 %v7738_v3 }
 0x2fc   :  { %7203 = vmatpush3.bf16.msra.mxu0 %v7738_v3  ;;  %v7750_v3 = vld [vmem:[%s10452_s2 + $0xe8] sm:$0xff]  }
 0x2fd   :  { %7204 = vmatprep.subr.bf16.mxu0 %v7739_v18 }
 0x2ff   :  { %7189 = vmatmul.mubr.bf16.gmra.mrb[52].mxu0 %v4284_v28  ;;  %v4467_v28 = vld [vmem:[#allocation3 + $0x2] sm:$0xff] }
 0x300   :  { %7192 = vmatprep.mubr.bf16.mxu0 %v4285_v52  ;;  %7205 = vmatpush3.bf16.msra.mxu0 %v7739_v18  ;;  %v4483_v19 = vpack.c.bf16 %v9845_v13, %v4467_v28  ;;  %v10175_v18 = vpack.c.bf16 %v10051_v15, %v10021_v25  ;;  %v7754_v28 = vld [vmem:[%s10452_s2 + $0x108] sm:$0xff]  }
 0x301   :  { %7206 = vmatprep.subr.bf16.mxu0 %v7740_v24 }
 0x304   :  { %7207 = vmatpush3.bf16.msra.mxu0 %v7740_v24  ;;  %v10182_v24 = vld [vmem:[#allocation3 + $0x112] sm:$0xff] }
 0x305   :  { %7208 = vmatprep.subr.bf16.mxu0 %v7741_v9  ;;  %v10186_v52 = vpack.c.bf16 %v10182_v24, %v10053_v23 }
 0x307   :  { %7193 = vmatmul.mubr.bf16.gmra.mrb[56].mxu0 %v4286_v8  ;;  %v7745_v8 = vld [vmem:[%s10452_s2 + $0xc0] sm:$0xff]  }
 0x308   :  { %7196 = vmatprep.mubr.bf16.mxu0 %v4287_v14  ;;  %7209 = vmatpush3.bf16.msra.mxu0 %v7741_v9  ;;  %v10138_v14 = vpack.c.bf16 %v9889_v5, %v9847_v39  ;;  %v7752_v9 = vld [vmem:[%s10452_s2 + $0xf8] sm:$0xff]  }
 0x309   :  { %7210 = vmatprep.subr.bf16.mxu0 %v7742_v4 }
 0x30c   :  { %7211 = vmatpush3.bf16.msra.mxu0 %v7742_v4  ;;  %v10476_v4 = vpack.c.bf16 %v9841_v10, %v9836_v7  ;;  %v7755_v7 = vld [vmem:[%s10452_s2 + $0x110] sm:$0xff]   ;;  %v10210_v10 = vld [vmem:[#allocation3 + $0x80] sm:$0xff] }
 0x30d   :  { %7212 = vmatprep.subr.bf16.mxu0 %v7743_v53 }
 0x30f   :  { %7197 = vmatmul.mubr.bf16.gmra.mrb[60].mxu0 %v4288_v20  ;;  %v10145_v20 = vpack.c.bf16 %v9925_v47, %v9882_v26 }
 0x310   :  { %7213 = vmatpush3.bf16.msra.mxu0 %v7743_v53  ;;  %7216 = vmatprep.mubr.bf16.mxu0 %v4483_v19  ;;  %v7753_v53 = vld [vmem:[%s10452_s2 + $0x100] sm:$0xff]   ;;  %v10478_v19 = vpack.c.bf16 %v9917_v38, %v9907_v31  ;;  %v7758_v38 = vld [vmem:[%s10452_s2 + $0x128] sm:$0xff]  }
 0x311   :  { %7214 = vmatprep.subr.bf16.mxu0 %v7744_v29  ;;  %v7757_v31 = vld [vmem:[%s10452_s2 + $0x120] sm:$0xff]  }
 0x314   :  { %7215 = vmatpush3.bf16.msra.mxu0 %v7744_v29  ;;  %v10477_v29 = vpack.c.bf16 %v9877_v16, %v9861_v2  ;;  %v7756_v2 = vld [vmem:[%s10452_s2 + $0x118] sm:$0xff]   ;;  %v10479_v16 = vpack.c.bf16 %v9980_v45, %v9969_v58  ;;  %v10481_v58 = vpack.c.bf16 %v10049_v56, %v10040_v42  ;;  %v7759_v45 = vld [vmem:[%s10452_s2 + $0x130] sm:$0xff]   ;;  %v4887_v56 = vpack.c.bf16 %v9875_v37, %v4871_v63  ;;  %v10246_v42 = vld [vmem:[#allocation3 + $0x41] sm:$0xff] }
 0x315   :  { %7232 = vmatprep.subr.bf16.mxu0 %v7745_v8  ;;  %v5291_v63 = vld [vmem:[#allocation3 + $0x130] sm:$0xff] }
 0x317   :  { %7217 = vmatmul.mubr.bf16.vlgmr.msra.gmra.mrb[48].mxu0 %v10138_v14 }
 0x318   :  { %7220 = vmatprep.mubr.bf16.mxu0 %v10145_v20  ;;  %7233 = vmatpush3.bf16.msra.mxu0 %v7745_v8  ;;  %v4688_v8 = vpack.c.bf16 %v10210_v10, %v9943_v48  ;;  %v10480_v48 = vpack.c.bf16 %v10017_v59, %v10006_v61  ;;  %v7760_v61 = vld [vmem:[%s10452_s2 + $0x138] sm:$0xff]   ;;  %v7761_v59 = vld [vmem:[%s10452_s2 + $0x140] sm:$0xff]  }
 0x319   :  { %7234 = vmatprep.subr.bf16.mxu0 %v7746_v51 }
 0x31c   :  { %7235 = vmatpush3.bf16.msra.mxu0 %v7746_v51  ;;  %v10235_v51 = vld [vmem:[#allocation3 + $0x120] sm:$0xff] }
 0x31d   :  { %7236 = vmatprep.subr.bf16.mxu0 %v7747_v1 }
 0x31f   :  { %7221 = vmatmul.mubr.bf16.gmra.mrb[52].mxu0 %v10156_v0 }
 0x320   :  { %7224 = vmatprep.mubr.bf16.mxu0 %v4487_v55  ;;  %7237 = vmatpush3.bf16.msra.mxu0 %v7747_v1  ;;  %v4692_v1 = vpack.c.bf16 %v10235_v51, %v10063_v49  ;;  %v4888_v49 = vpack.c.bf16 %v10246_v42, %v9863_v6  ;;  %v10482_v55 = vpack.c.bf16 %v9866_v36, %v9857_v44  ;;  %v7765_v44 = vld [vmem:[%s10452_s2 + $0x160] sm:$0xff]   ;;  %v7766_v36 = vld [vmem:[%s10452_s2 + $0x168] sm:$0xff]  }
 0x321   :  { %7238 = vmatprep.subr.bf16.mxu0 %v7748_v27 }
 0x324   :  { %7239 = vmatpush3.bf16.msra.mxu0 %v7748_v27  ;;  %v7762_v27 = vld [vmem:[%s10452_s2 + $0x148] sm:$0xff]  }
 0x325   :  { %7240 = vmatprep.subr.bf16.mxu0 %v7749_v33 }
 0x327   :  { %7225 = vmatmul.mubr.bf16.gmra.mrb[56].mxu0 %v10168_v22 }
 0x328   :  { %7228 = vmatprep.mubr.bf16.mxu0 %v10175_v18  ;;  %7241 = vmatpush3.bf16.msra.mxu0 %v7749_v33  ;;  %v7763_v33 = vld [vmem:[%s10452_s2 + $0x150] sm:$0xff]  }
 0x329   :  { %7242 = vmatprep.subr.bf16.mxu0 %v7750_v3 }
 0x32c   :  { %7243 = vmatpush3.bf16.msra.mxu0 %v7750_v3  ;;  %v7764_v3 = vld [vmem:[%s10452_s2 + $0x158] sm:$0xff]  }
 0x32d   :  { %7244 = vmatprep.subr.bf16.mxu0 %v7751_v40 }
 0x32f   :  { %7229 = vmatmul.mubr.bf16.gmra.mrb[60].mxu0 %v10186_v52 }
 0x330   :  { %7245 = vmatpush3.bf16.msra.mxu0 %v7751_v40  ;;  %7248 = vmatprep.mubr.bf16.mxu0 %v10476_v4  ;;  %v10483_v40 = vpack.c.bf16 %v9946_v32, %v9939_v34  ;;  %v7767_v34 = vld [vmem:[%s10452_s2 + $0x170] sm:$0xff]   ;;  %v7768_v32 = vld [vmem:[%s10452_s2 + $0x178] sm:$0xff]  }
 0x331   :  { %7246 = vmatprep.subr.bf16.mxu0 %v7752_v9 }
 0x334   :  { %7247 = vmatpush3.bf16.msra.mxu0 %v7752_v9  ;;  %v10484_v9 = vpack.c.bf16 %v9972_v43, %v9965_v30  ;;  %v10486_v30 = vpack.c.bf16 %v9847_v39, %v9845_v13  ;;  %v7769_v43 = vld [vmem:[%s10452_s2 + $0x180] sm:$0xff]   ;;  %v7771_v13 = vld [vmem:[%s10452_s2 + $0x190] sm:$0xff]  }
 0x335   :  { %7264 = vmatprep.subr.bf16.mxu0 %v7753_v53  ;;  %v10303_v39 = vld [vmem:[#allocation3 + $0x82] sm:$0xff] }
 0x336   :  { %v5092_v4 = vpack.c.bf16 %v10303_v39, %v10152_v50  ;;  %v10490_v50 = vpack.c.bf16 %v10021_v25, %v10027_v46  ;;  %v5276_v25 = vld [vmem:[#allocation3 + $0x20] sm:$0xff]  ;;  %v7776_v46 = vld [vmem:[%s10452_s2 + $0x1b8] sm:$0xff]  }
 0x337   :  { %7249 = vmatmul.mubr.bf16.vlgmr.msra.gmra.mrb[48].mxu0 %v10477_v29 }
 0x338   :  { %7252 = vmatprep.mubr.bf16.mxu0 %v10478_v19  ;;  %7265 = vmatpush3.bf16.msra.mxu0 %v7753_v53  ;;  %v10328_v53 = vld [vmem:[#allocation3 + $0x122] sm:$0xff]  ;;  %v5279_v19 = vld [vmem:[#allocation3 + $0x50] sm:$0xff] }
 0x339   :  { %7266 = vmatprep.subr.bf16.mxu0 %v7754_v28  ;;  %v5096_v29 = vpack.c.bf16 %v10328_v53, %v10182_v24 }
 0x33c   :  { %7267 = vmatpush3.bf16.msra.mxu0 %v7754_v28  ;;  %v5277_v28 = vld [vmem:[#allocation3 + $0x30] sm:$0xff] }
 0x33d   :  { %7268 = vmatprep.subr.bf16.mxu0 %v7755_v7 }
 0x33f   :  { %7253 = vmatmul.mubr.bf16.gmra.mrb[52].mxu0 %v4688_v8  ;;  %v5278_v8 = vld [vmem:[#allocation3 + $0x40] sm:$0xff] }
 0x340   :  { %7256 = vmatprep.mubr.bf16.mxu0 %v10479_v16  ;;  %7269 = vmatpush3.bf16.msra.mxu0 %v7755_v7  ;;  %v5281_v7 = vld [vmem:[#allocation3 + $0x70] sm:$0xff]  ;;  %v5293_v24 = vpack.c.bf16 %v5279_v19, %v5278_v8  ;;  %v7778_v16 = vld [vmem:[%s10452_s2 + $0x1c8] sm:$0xff]  }
 0x341   :  { %7270 = vmatprep.subr.bf16.mxu0 %v7756_v2 }
 0x344   :  { %7271 = vmatpush3.bf16.msra.mxu0 %v7756_v2  ;;  %v5280_v2 = vld [vmem:[#allocation3 + $0x60] sm:$0xff] }
 0x345   :  { %7272 = vmatprep.subr.bf16.mxu0 %v7757_v31 }
 0x347   :  { %7257 = vmatmul.mubr.bf16.gmra.mrb[56].mxu0 %v10480_v48  ;;  %v5283_v48 = vld [vmem:[#allocation3 + $0x90] sm:$0xff] }
 0x348   :  { %7260 = vmatprep.mubr.bf16.mxu0 %v10481_v58  ;;  %7273 = vmatpush3.bf16.msra.mxu0 %v7757_v31  ;;  %v5294_v31 = vpack.c.bf16 %v5281_v7, %v5280_v2  ;;  %v5295_v58 = vpack.c.bf16 %v5283_v48, %v10210_v10  ;;  %v7782_v10 = vld [vmem:[%s10452_s2 + $0x1e8] sm:$0xff]  }
 0x349   :  { %7274 = vmatprep.subr.bf16.mxu0 %v7758_v38 }
 0x34c   :  { %7275 = vmatpush3.bf16.msra.mxu0 %v7758_v38  ;;  %v7779_v38 = vld [vmem:[%s10452_s2 + $0x1d0] sm:$0xff]  }
 0x34d   :  { %7276 = vmatprep.subr.bf16.mxu0 %v7759_v45 }
 0x34f   :  { %7261 = vmatmul.mubr.bf16.gmra.mrb[60].mxu0 %v4692_v1  ;;  %v7781_v1 = vld [vmem:[%s10452_s2 + $0x1e0] sm:$0xff]  }
 0x350   :  { %7277 = vmatpush3.bf16.msra.mxu0 %v7759_v45  ;;  %7280 = vmatprep.mubr.bf16.mxu0 %v4887_v56  ;;  %v7780_v45 = vld [vmem:[%s10452_s2 + $0x1d8] sm:$0xff]  }
 0x351   :  { %7278 = vmatprep.subr.bf16.mxu0 %v7760_v61  ;;  %v7784_v56 = vld [vmem:[%s10452_s2 + $0x1f8] sm:$0xff]  }
 0x354   :  { %7279 = vmatpush3.bf16.msra.mxu0 %v7760_v61  ;;  %v5299_v61 = vpack.c.bf16 %v5291_v63, %v10235_v51 }
 0x355   :  { %7296 = vmatprep.subr.bf16.mxu0 %v7761_v59 }
 0x357   :  { %7281 = vmatmul.mubr.bf16.vlgmr.msra.gmra.mrb[48].mxu0 %v4888_v49  ;;  %v5483_v49 = vld [vmem:[#allocation3 + $0x71] sm:$0xff] }
 0x358   :  { %7284 = vmatprep.mubr.bf16.mxu0 %v10482_v55  ;;  %7297 = vmatpush3.bf16.msra.mxu0 %v7761_v59  ;;  %v5481_v59 = vld [vmem:[#allocation3 + $0x51] sm:$0xff]  ;;  %v7786_v55 = vld [vmem:[%s10452_s2 + $0x208] sm:$0xff]  }
 0x359   :  { %7298 = vmatprep.subr.bf16.mxu0 %v7762_v27  ;;  %v5495_v51 = vpack.c.bf16 %v5481_v59, %v10246_v42 }
 0x35c   :  { %7299 = vmatpush3.bf16.msra.mxu0 %v7762_v27  ;;  %v5482_v27 = vld [vmem:[#allocation3 + $0x61] sm:$0xff] }
 0x35d   :  { %7300 = vmatprep.subr.bf16.mxu0 %v7763_v33 }
 0x35f   :  { %7285 = vmatmul.mubr.bf16.gmra.mrb[52].mxu0 %v9930_v21  ;;  %v10485_v21 = vpack.c.bf16 %v10009_v54, %v10002_v62  ;;  %v7770_v62 = vld [vmem:[%s10452_s2 + $0x188] sm:$0xff]   ;;  %v10487_v54 = vpack.c.bf16 %v9882_v26, %v9889_v5  ;;  %v7772_v26 = vld [vmem:[%s10452_s2 + $0x198] sm:$0xff]   ;;  %v10489_v5 = vpack.c.bf16 %v9984_v60, %v9989_v12  ;;  %v10491_v60 = vpack.c.bf16 %v10053_v23, %v10051_v15  ;;  %v7775_v12 = vld [vmem:[%s10452_s2 + $0x1b0] sm:$0xff]  }
 0x360   :  { %7288 = vmatprep.mubr.bf16.mxu0 %v10483_v40  ;;  %7301 = vmatpush3.bf16.msra.mxu0 %v7763_v33  ;;  %v5292_v15 = vpack.c.bf16 %v5277_v28, %v5276_v25  ;;  %v7777_v23 = vld [vmem:[%s10452_s2 + $0x1c0] sm:$0xff]   ;;  %v5496_v33 = vpack.c.bf16 %v5483_v49, %v5482_v27  ;;  %v5487_v40 = vld [vmem:[#allocation3 + $0xd1] sm:$0xff] }
 0x361   :  { %7302 = vmatprep.subr.bf16.mxu0 %v7764_v3 }
 0x364   :  { %7303 = vmatpush3.bf16.msra.mxu0 %v7764_v3  ;;  %v5485_v3 = vld [vmem:[#allocation3 + $0x91] sm:$0xff] }
 0x365   :  { %7304 = vmatprep.subr.bf16.mxu0 %v7765_v44 }
 0x367   :  { %7289 = vmatmul.mubr.bf16.gmra.mrb[56].mxu0 %v10484_v9 }
 0x368   :  { %7292 = vmatprep.mubr.bf16.mxu0 %v10485_v21  ;;  %7305 = vmatpush3.bf16.msra.mxu0 %v7765_v44  ;;  %v5486_v44 = vld [vmem:[#allocation3 + $0xc1] sm:$0xff] }
 0x369   :  { %7306 = vmatprep.subr.bf16.mxu0 %v7766_v36  ;;  %v5498_v9 = vpack.c.bf16 %v5487_v40, %v5486_v44  ;;  %v7789_v21 = vld [vmem:[%s10452_s2 + $0x220] sm:$0xff]  }
 0x36c   :  { %7307 = vmatpush3.bf16.msra.mxu0 %v7766_v36  ;;  %v7788_v36 = vld [vmem:[%s10452_s2 + $0x218] sm:$0xff]  }
 0x36d   :  { %7308 = vmatprep.subr.bf16.mxu0 %v7767_v34 }
 0x36f   :  { %7293 = vmatmul.mubr.bf16.gmra.mrb[60].mxu0 %v10059_v17  ;;  %v10488_v17 = vpack.c.bf16 %v9921_v41, %v9925_v47  ;;  %v7773_v41 = vld [vmem:[%s10452_s2 + $0x1a0] sm:$0xff]   ;;  %v7774_v47 = vld [vmem:[%s10452_s2 + $0x1a8] sm:$0xff]  }
 0x370   :  { %7309 = vmatpush3.bf16.msra.mxu0 %v7767_v34  ;;  %7312 = vmatprep.mubr.bf16.mxu0 %v10486_v30  ;;  %v5489_v34 = vld [vmem:[#allocation3 + $0xf1] sm:$0xff]  ;;  %v5488_v30 = vld [vmem:[#allocation3 + $0xe1] sm:$0xff] }
 0x371   :  { %7310 = vmatprep.subr.bf16.mxu0 %v7768_v32 }
 0x374   :  { %7311 = vmatpush3.bf16.msra.mxu0 %v7768_v32  ;;  %v5491_v32 = vld [vmem:[#allocation3 + $0x111] sm:$0xff] }
 0x375   :  { %7328 = vmatprep.subr.bf16.mxu0 %v7769_v43 }
 0x377   :  { %7313 = vmatmul.mubr.bf16.vlgmr.msra.gmra.mrb[48].mxu0 %v10487_v54  ;;  %v7790_v54 = vld [vmem:[%s10452_s2 + $0x228] sm:$0xff]  }
 0x378   :  { %7316 = vmatprep.mubr.bf16.mxu0 %v10488_v17  ;;  %7329 = vmatpush3.bf16.msra.mxu0 %v7769_v43  ;;  %v5499_v43 = vpack.c.bf16 %v5489_v34, %v5488_v30 }
 0x379   :  { %7330 = vmatprep.subr.bf16.mxu0 %v7770_v62 }
 0x37c   :  { %7331 = vmatpush3.bf16.msra.mxu0 %v7770_v62  ;;  %v5490_v62 = vld [vmem:[#allocation3 + $0x101] sm:$0xff] }
 0x37d   :  { %7332 = vmatprep.subr.bf16.mxu0 %v7771_v13  ;;  %v5500_v17 = vpack.c.bf16 %v5491_v32, %v5490_v62 }
 0x37f   :  { %7317 = vmatmul.mubr.bf16.gmra.mrb[52].mxu0 %v5092_v4  ;;  %v5492_v4 = vld [vmem:[#allocation3 + $0x121] sm:$0xff] }
 0x380   :  { %7320 = vmatprep.mubr.bf16.mxu0 %v10489_v5  ;;  %7333 = vmatpush3.bf16.msra.mxu0 %v7771_v13  ;;  %v7791_v13 = vld [vmem:[%s10452_s2 + $0x230] sm:$0xff]  }
 0x381   :  { %7334 = vmatprep.subr.bf16.mxu0 %v7772_v26 }
 0x384   :  { %7335 = vmatpush3.bf16.msra.mxu0 %v7772_v26  ;;  %v5493_v26 = vld [vmem:[#allocation3 + $0x131] sm:$0xff] }
 0x385   :  { %7336 = vmatprep.subr.bf16.mxu0 %v7773_v41  ;;  %v5501_v5 = vpack.c.bf16 %v5493_v26, %v5492_v4 }
 0x387   :  { %7321 = vmatmul.mubr.bf16.gmra.mrb[56].mxu0 %v10490_v50 }
 0x388   :  { %7324 = vmatprep.mubr.bf16.mxu0 %v10491_v60  ;;  %7337 = vmatpush3.bf16.msra.mxu0 %v7773_v41  ;;  %v7792_v41 = vld [vmem:[%s10452_s2 + $0x238] sm:$0xff]  }
 0x389   :  { %7338 = vmatprep.subr.bf16.mxu0 %v7774_v47  ;;  %v5695_v60 = vld [vmem:[#allocation3 + $0x132] sm:$0xff] }
 0x38c   :  { %7339 = vmatpush3.bf16.msra.mxu0 %v7774_v47  ;;  %v5687_v47 = vld [vmem:[#allocation3 + $0x92] sm:$0xff] }
 0x38d   :  { %7340 = vmatprep.subr.bf16.mxu0 %v7775_v12  ;;  %v5699_v50 = vpack.c.bf16 %v5687_v47, %v10303_v39 }
 0x38f   :  { %7325 = vmatmul.mubr.bf16.gmra.mrb[60].mxu0 %v5096_v29 }
 0x390   :  { %7341 = vmatpush3.bf16.msra.mxu0 %v7775_v12  ;;  %7344 = vmatprep.mubr.bf16.mxu0 %v5292_v15  ;;  %v5703_v12 = vpack.c.bf16 %v5695_v60, %v10328_v53 }
 0x391   :  { %7342 = vmatprep.subr.bf16.mxu0 %v7776_v46 }
 0x394   :  { %7343 = vmatpush3.bf16.msra.mxu0 %v7776_v46 }
 0x395   :  { %7360 = vmatprep.subr.bf16.mxu0 %v7777_v23 }
 0x397   :  { %7345 = vmatmul.mubr.bf16.vlgmr.msra.gmra.mrb[48].mxu0 %v5293_v24 }
 0x398   :  { %7348 = vmatprep.mubr.bf16.mxu0 %v5294_v31  ;;  %7361 = vmatpush3.bf16.msra.mxu0 %v7777_v23 }
 0x399   :  { %7362 = vmatprep.subr.bf16.mxu0 %v7778_v16 }
 0x39c   :  { %7363 = vmatpush3.bf16.msra.mxu0 %v7778_v16 }
 0x39d   :  { %7364 = vmatprep.subr.bf16.mxu0 %v7779_v38 }
 0x39f   :  { %7349 = vmatmul.mubr.bf16.gmra.mrb[52].mxu0 %v5295_v58 }
 0x3a0   :  { %7352 = vmatprep.mubr.bf16.mxu0 %v10015_v57  ;;  %7365 = vmatpush3.bf16.msra.mxu0 %v7779_v38  ;;  %v7783_v57 = vld [vmem:[%s10452_s2 + $0x1f0] sm:$0xff]  }
 0x3a1   :  { %7366 = vmatprep.subr.bf16.mxu0 %v7780_v45 }
 0x3a4   :  { %7367 = vmatpush3.bf16.msra.mxu0 %v7780_v45 }
 0x3a5   :  { %7368 = vmatprep.subr.bf16.mxu0 %v7781_v1 }
 0x3a7   :  { %7353 = vmatmul.mubr.bf16.gmra.mrb[56].mxu0 %v10045_v35  ;;  %v10492_v35 = vpack.c.bf16 %v9863_v6, %v9875_v37  ;;  %v7787_v6 = vld [vmem:[%s10452_s2 + $0x210] sm:$0xff]   ;;  %v5484_v37 = vld [vmem:[#allocation3 + $0x81] sm:$0xff] }
 0x3a8   :  { %7356 = vmatprep.mubr.bf16.mxu0 %v10067_v11  ;;  %7369 = vmatpush3.bf16.msra.mxu0 %v7781_v1  ;;  %v7785_v11 = vld [vmem:[%s10452_s2 + $0x200] sm:$0xff]   ;;  %v5497_v42 = vpack.c.bf16 %v5485_v3, %v5484_v37 }
 0x3a9   :  { %7370 = vmatprep.subr.bf16.mxu0 %v7782_v10 }
 0x3ac   :  { %7371 = vmatpush3.bf16.msra.mxu0 %v7782_v10 }
 0x3ad   :  { %7372 = vmatprep.subr.bf16.mxu0 %v7783_v57 }
 0x3af   :  { %7357 = vmatmul.mubr.bf16.gmra.mrb[60].mxu0 %v5299_v61 }
 0x3b0   :  { %7373 = vmatpush3.bf16.msra.mxu0 %v7783_v57  ;;  %7376 = vmatprep.mubr.bf16.mxu0 %v10492_v35 }
 0x3b1   :  { %7374 = vmatprep.subr.bf16.mxu0 %v7784_v56 }
 0x3b4   :  { %7375 = vmatpush3.bf16.msra.mxu0 %v7784_v56 }
 0x3b5   :  { %7392 = vmatprep.subr.bf16.mxu0 %v7785_v11 }
 0x3b7   :  { %7377 = vmatmul.mubr.bf16.vlgmr.msra.gmra.mrb[48].mxu0 %v5495_v51 }
 0x3b8   :  { %7380 = vmatprep.mubr.bf16.mxu0 %v5496_v33  ;;  %7393 = vmatpush3.bf16.msra.mxu0 %v7785_v11 }
 0x3b9   :  { %7394 = vmatprep.subr.bf16.mxu0 %v7786_v55 }
 0x3bc   :  { %7395 = vmatpush3.bf16.msra.mxu0 %v7786_v55 }
 0x3bd   :  { %7396 = vmatprep.subr.bf16.mxu0 %v7787_v6 }
 0x3bf   :  { %7381 = vmatmul.mubr.bf16.gmra.mrb[52].mxu0 %v5497_v42 }
 0x3c0   :  { %7384 = vmatprep.mubr.bf16.mxu0 %v5498_v9  ;;  %7397 = vmatpush3.bf16.msra.mxu0 %v7787_v6 }
 0x3c1   :  { %7398 = vmatprep.subr.bf16.mxu0 %v7788_v36 }
 0x3c4   :  { %7399 = vmatpush3.bf16.msra.mxu0 %v7788_v36 }
 0x3c5   :  { %7400 = vmatprep.subr.bf16.mxu0 %v7789_v21 }
 0x3c7   :  { %7385 = vmatmul.mubr.bf16.gmra.mrb[56].mxu0 %v5499_v43 }
 0x3c8   :  { %7388 = vmatprep.mubr.bf16.mxu0 %v5500_v17  ;;  %7401 = vmatpush3.bf16.msra.mxu0 %v7789_v21 }
 0x3c9   :  { %7402 = vmatprep.subr.bf16.mxu0 %v7790_v54 }
 0x3cc   :  { %7403 = vmatpush3.bf16.msra.mxu0 %v7790_v54 }
 0x3cd   :  { %7404 = vmatprep.subr.bf16.mxu0 %v7791_v13 }
 0x3cf   :  { %7389 = vmatmul.mubr.bf16.gmra.mrb[60].mxu0 %v5501_v5 }
 0x3d0   :  { %7405 = vmatpush3.bf16.msra.mxu0 %v7791_v13  ;;  %7408 = vmatprep.mubr.bf16.mxu0 %v10138_v14 }
 0x3d1   :  { %7406 = vmatprep.subr.bf16.mxu0 %v7792_v41 }
 0x3d4   :  { %7407 = vmatpush3.bf16.msra.mxu0 %v7792_v41 }
 0x3d7   :  { %7409 = vmatmul.mubr.bf16.vlgmr.msra.gmra.mrb[48].mxu0 %v10145_v20 }
 0x3d8   :  { %7412 = vmatprep.mubr.bf16.mxu0 %v10156_v0 }
 0x3df   :  { %7413 = vmatmul.mubr.bf16.gmra.mrb[52].mxu0 %v5699_v50 }
 0x3e0   :  { %7416 = vmatprep.mubr.bf16.mxu0 %v10168_v22 }
 0x3e7   :  { %7417 = vmatmul.mubr.bf16.gmra.mrb[56].mxu0 %v10175_v18 }
 0x3e8   :  { %7420 = vmatprep.mubr.bf16.mxu0 %v10186_v52 }
 0x3ef   :  { %7421 = vmatmul.mubr.bf16.gmra.mrb[60].mxu0 %v5703_v12 }
 0x4aa   :  { %v7410_v14 = vpop.f32.mrb[48].mxu0 }
 0x4ab   :  { %5884 = vst [vmem:[%s10456_s8 + $0x10] sm:$0xff] %v7410_v14  ;;  %v5803_v20 = vpop.f32.mrb[49].mxu0 }
 0x4ac   :  { %5882 = vst [vmem:[%s10456_s8] sm:$0xff] %v5803_v20  ;;  %v7411_v0 = vpop.f32.mrb[50].mxu0 }
 0x4ad   :  { %5885 = vst [vmem:[%s10456_s8 + $0x18] sm:$0xff] %v7411_v0  ;;  %v5806_v22 = vpop.f32.mrb[51].mxu0 }
 0x4ae   :  { %5883 = vst [vmem:[%s10456_s8 + $0x8] sm:$0xff] %v5806_v22 }
 0x4b2   :  { %v7414_v18 = vpop.f32.mrb[52].mxu0 }
 0x4b3   :  { %5888 = vst [vmem:[%s10456_s8 + $0x30] sm:$0xff] %v7414_v18  ;;  %v5819_v52 = vpop.f32.mrb[53].mxu0 }
 0x4b4   :  { %5886 = vst [vmem:[%s10456_s8 + $0x20] sm:$0xff] %v5819_v52  ;;  %v7415_v39 = vpop.f32.mrb[54].mxu0 }
 0x4b5   :  { %5889 = vst [vmem:[%s10456_s8 + $0x38] sm:$0xff] %v7415_v39  ;;  %v5822_v53 = vpop.f32.mrb[55].mxu0 }
 0x4b6   :  { %5887 = vst [vmem:[%s10456_s8 + $0x28] sm:$0xff] %v5822_v53 }
 0x4ba   :  { %v7418_v28 = vpop.f32.mrb[56].mxu0 }
 0x4bb   :  { %5892 = vst [vmem:[%s10456_s8 + $0x50] sm:$0xff] %v7418_v28  ;;  %v5835_v29 = vpop.f32.mrb[57].mxu0 }
 0x4bc   :  { %5890 = vst [vmem:[%s10456_s8 + $0x40] sm:$0xff] %v5835_v29  ;;  %v7419_v25 = vpop.f32.mrb[58].mxu0 }
 0x4bd   :  { %5893 = vst [vmem:[%s10456_s8 + $0x58] sm:$0xff] %v7419_v25  ;;  %v5838_v46 = vpop.f32.mrb[59].mxu0 }
 0x4be   :  { %5891 = vst [vmem:[%s10456_s8 + $0x48] sm:$0xff] %v5838_v46 }
 0x4c2   :  { %v7422_v15 = vpop.f32.mrb[60].mxu0 }
 0x4c3   :  { %5896 = vst [vmem:[%s10456_s8 + $0x70] sm:$0xff] %v7422_v15  ;;  %v5851_v23 = vpop.f32.mrb[61].mxu0 }
 0x4c4   :  { %5894 = vst [vmem:[%s10456_s8 + $0x60] sm:$0xff] %v5851_v23  ;;  %v7423_v19 = vpop.f32.mrb[62].mxu0 }
 0x4c5   :  { %5897 = vst [vmem:[%s10456_s8 + $0x78] sm:$0xff] %v7423_v19  ;;  %v5854_v7 = vpop.f32.mrb[63].mxu0 }
 0x4c6   :  { %5895 = vst [vmem:[%s10456_s8 + $0x68] sm:$0xff] %v5854_v7 }

</bundles_post_ra>
